<compile_context>
chip_gen: v7x
topology: tpu7x:2x2x1
jax: 0.10.0
libtpu: 0.0.40
codegen_flags: <defaults>
</compile_context>

<pallas_src>
import jax
import jax.numpy as jnp
from jax.experimental import pallas as pl
from jax.experimental.pallas import tpu as pltpu


# ----------------------------------------------------------------------------
# Kernel 1: fused matmul + BN(scale/shift) + ReLU  (block 1 via host im2col)
# ----------------------------------------------------------------------------
def _mm_bn_relu_kernel(x_ref, w_ref, scale_ref, shift_ref, o_ref):
    z = jnp.dot(x_ref[...], w_ref[...], preferred_element_type=jnp.float32)
    o_ref[...] = jnp.maximum(z * scale_ref[...] + shift_ref[...], 0.0)


def matmul_bn_relu(x, w, scale, shift):
    """y = relu((x @ w) * scale + shift).  x: (M, K), w: (K, N)."""
    M, K = x.shape
    N = w.shape[1]
    TM = 256 if M % 256 == 0 else M
    return pl.pallas_call(
        _mm_bn_relu_kernel,
        out_shape=jax.ShapeDtypeStruct((M, N), jnp.float32),
        grid_spec=pltpu.PrefetchScalarGridSpec(
            num_scalar_prefetch=0,
            grid=(M // TM,),
            in_specs=[pl.BlockSpec((TM, K), lambda i: (i, 0)),
                      pl.BlockSpec((K, N), lambda i: (0, 0)),
                      pl.BlockSpec((1, N), lambda i: (0, 0)),
                      pl.BlockSpec((1, N), lambda i: (0, 0))],
            out_specs=pl.BlockSpec((TM, N), lambda i: (i, 0))),
        compiler_params=pltpu.CompilerParams(
            dimension_semantics=("parallel",)),
    )(x, w, scale, shift)


def _im2col_s2_p1_3x3(x_nhwc):
    """Stride-2, pad-1, 3x3 im2col: (B,H,W,C) -> (B*OH*OW, 9*C), tap-major K order."""
    B, H, W, C = x_nhwc.shape
    OH, OW = H // 2, W // 2
    xp = jnp.pad(x_nhwc, ((0, 0), (1, 1), (1, 1), (0, 0)))
    taps = [xp[:, kh:kh + 2 * OH:2, kw:kw + 2 * OW:2, :]
            for kh in range(3) for kw in range(3)]
    patches = jnp.concatenate(taps, axis=-1)                 # (B, OH, OW, 9*C)
    return patches.reshape(B * OH * OW, 9 * C), (B, OH, OW)


# ----------------------------------------------------------------------------
# Kernel 2: depthwise-separable conv block + BN + ReLU (blocks 2-4)
#   depthwise 3x3 stride-2 pad-1 accumulated per row tile (register-resident),
#   then ONE pointwise matmul over channels, fused BN(scale/shift) + ReLU,
#   single lane-dense store of the (ROWS, OW, Cout) output slab.
# ----------------------------------------------------------------------------
def _dsconv_bn_relu_kernel(xee_ref, xeo_ref, xoe_ref, xoo_ref,
                           wdw_ref, wpw_ref, scale_ref, shift_ref, o_ref):
    _, ROWS, OW, Cout = o_ref.shape
    C = wpw_ref.shape[0]
    parity = {(0, 0): xee_ref, (0, 1): xeo_ref,
              (1, 0): xoe_ref, (1, 1): xoo_ref}

    r0 = pl.multiple_of(pl.program_id(1) * ROWS, ROWS)

    # depthwise 3x3 stride-2 pad-1 (pad + parity split done on host)
    acc = jnp.zeros((ROWS, OW, C), jnp.float32)
    for kh in range(3):
        for kw in range(3):
            src = parity[(kh % 2, kw % 2)]
            dh, dw = kh // 2, kw // 2
            tile = src[0, pl.ds(r0 + dh, ROWS), dw:dw + OW, :]   # (ROWS, OW, C)
            k = 3 * kh + kw
            acc = acc + tile * wdw_ref[k:k + 1, :]               # (1, C) broadcast

    # one pointwise matmul over channels, fused BN (inference) + ReLU
    z = jnp.dot(acc.reshape(ROWS * OW, C), wpw_ref[...],
                preferred_element_type=jnp.float32)              # (ROWS*OW, Cout)
    z = jnp.maximum(z * scale_ref[...] + shift_ref[...], 0.0)
    o_ref[0] = z.reshape(ROWS, OW, Cout)


def dsconv_bn_relu(x_nhwc, w_dw, w_pw, scale, shift):
    """x_nhwc: (B, H, W, Cin) -> (B, H//2, W//2, Cout)."""
    B, H, W, C = x_nhwc.shape
    Cout = w_pw.shape[1]
    OH, OW = H // 2, W // 2
    ROWS = min(8, OH)
    assert OH % ROWS == 0

    xp = jnp.pad(x_nhwc, ((0, 0), (1, 1), (1, 1), (0, 0)))
    xee = xp[:, 0::2, 0::2, :]
    xeo = xp[:, 0::2, 1::2, :]
    xoe = xp[:, 1::2, 0::2, :]
    xoo = xp[:, 1::2, 1::2, :]
    PH, PW = OH + 1, OW + 1

    par_spec = pl.BlockSpec((1, PH, PW, C), lambda b, r: (b, 0, 0, 0))

    return pl.pallas_call(
        _dsconv_bn_relu_kernel,
        out_shape=jax.ShapeDtypeStruct((B, OH, OW, Cout), jnp.float32),
        grid_spec=pltpu.PrefetchScalarGridSpec(
            num_scalar_prefetch=0,
            grid=(B, OH // ROWS),
            in_specs=[par_spec, par_spec, par_spec, par_spec,
                      pl.BlockSpec((9, C), lambda b, r: (0, 0)),
                      pl.BlockSpec((C, Cout), lambda b, r: (0, 0)),
                      pl.BlockSpec((1, Cout), lambda b, r: (0, 0)),
                      pl.BlockSpec((1, Cout), lambda b, r: (0, 0))],
            out_specs=pl.BlockSpec((1, ROWS, OW, Cout),
                                   lambda b, r: (b, r, 0, 0))),
        compiler_params=pltpu.CompilerParams(
            dimension_semantics=("parallel", "parallel")),
    )(xee, xeo, xoe, xoo, w_dw, w_pw, scale, shift)


# ----------------------------------------------------------------------------
# Kernel 3: final Linear layer.  Grid = (E tiles [parallel], K tiles [reduction]).
# bf16 weights (HBM-bound), f32 accumulator.
# ----------------------------------------------------------------------------
def _fc_kernel(x_ref, w_ref, b_ref, o_ref, acc_ref):
    k = pl.program_id(1)

    @pl.when(k == 0)
    def _():
        acc_ref[...] = jnp.zeros_like(acc_ref)

    acc_ref[...] += jnp.dot(x_ref[...].astype(jnp.bfloat16), w_ref[...],
                            preferred_element_type=jnp.float32)

    @pl.when(k == pl.num_programs(1) - 1)
    def _():
        o_ref[...] = acc_ref[...] + b_ref[...]


def fc(x, w_bf16, b):
    B, K = x.shape
    E = w_bf16.shape[1]
    tk = next((t for t in (2048, 1024, 512, 256, 128) if K % t == 0), K)
    te = 256 if E % 256 == 0 else E
    return pl.pallas_call(
        _fc_kernel,
        out_shape=jax.ShapeDtypeStruct((B, E), jnp.float32),
        grid_spec=pltpu.PrefetchScalarGridSpec(
            num_scalar_prefetch=0,
            grid=(E // te, K // tk),
            in_specs=[pl.BlockSpec((B, tk), lambda j, k: (0, k)),
                      pl.BlockSpec((tk, te), lambda j, k: (k, j)),
                      pl.BlockSpec((1, te), lambda j, k: (0, j))],
            out_specs=pl.BlockSpec((B, te), lambda j, k: (0, j)),
            scratch_shapes=[pltpu.VMEM((B, te), jnp.float32)]),
        compiler_params=pltpu.CompilerParams(
            dimension_semantics=("parallel", "arbitrary")),
    )(x, w_bf16, b)


# ----------------------------------------------------------------------------
# Model: parameter init + forward
# ----------------------------------------------------------------------------
def init_params(key, embedding_size=512):
    channels = [(3, 64), (64, 128), (128, 256), (256, 512)]
    eps = 1e-5
    blocks = []
    for cin, cout in channels:
        k1, k2, k3, k4, k5, k6, key = jax.random.split(key, 7)
        # depthwise weight: torch (Cin,1,3,3) -> ours (9, Cin), row = 3*kh+kw
        w_dw = jax.random.normal(k1, (9, cin), jnp.float32) * (2.0 / 9.0) ** 0.5
        # pointwise weight: torch (Cout,Cin,1,1) -> ours (Cin, Cout)
        w_pw = jax.random.normal(k2, (cin, cout), jnp.float32) * (2.0 / cin) ** 0.5
        gamma = jax.random.uniform(k3, (1, cout), jnp.float32, 0.5, 1.5)
        beta = jax.random.normal(k4, (1, cout), jnp.float32) * 0.1
        rmean = jax.random.normal(k5, (1, cout), jnp.float32) * 0.1
        rvar = jax.random.uniform(k6, (1, cout), jnp.float32, 0.5, 1.5)
        scale = gamma / jnp.sqrt(rvar + eps)
        shift = beta - rmean * scale
        blocks.append(dict(w_dw=w_dw, w_pw=w_pw, scale=scale, shift=shift))
    kf1, kf2, key = jax.random.split(key, 3)
    kin = 512 * 4 * 4
    # fc_w rows are in NHWC-flatten order (h, w, c).  To port a real torch Linear
    # weight Wt of shape (E, 512*4*4) (NCHW flatten), use:
    #   fc_w = Wt.reshape(E, 512, 4, 4).transpose(2, 3, 1, 0).reshape(kin, E)
    # Stored bf16: the FC is HBM-bound on this 16 MiB (f32) weight read.
    fc_w = (jax.random.normal(kf1, (kin, embedding_size), jnp.float32)
            * (1.0 / kin) ** 0.5).astype(jnp.bfloat16)
    fc_b = jax.random.normal(kf2, (1, embedding_size), jnp.float32) * 0.01
    return dict(blocks=blocks, fc_w=fc_w, fc_b=fc_b)


def face_recognition_forward(x_nchw, params):
    # NCHW (PyTorch) -> NHWC (kernel layout)
    x = jnp.transpose(x_nchw, (0, 2, 3, 1))

    # ---- block 1: im2col + fused-weight matmul (Cin=3 is lane-starved otherwise)
    blk1 = params["blocks"][0]
    cin = blk1["w_dw"].shape[1]
    patches, (B, OH, OW) = _im2col_s2_p1_3x3(x)
    # fused weight: w_eff[(3*kh+kw)*Cin + c, o] = w_dw[3*kh+kw, c] * w_pw[c, o]
    w_eff = (blk1["w_dw"][:, :, None] * blk1["w_pw"][None, :, :]).reshape(9 * cin, -1)
    y = matmul_bn_relu(patches, w_eff, blk1["scale"], blk1["shift"])
    x = y.reshape(B, OH, OW, -1)

    # ---- blocks 2-4
    for blk in params["blocks"][1:]:
        x = dsconv_bn_relu(x, blk["w_dw"], blk["w_pw"], blk["scale"], blk["shift"])

    # ---- FC: flatten directly in NHWC order (fc_w rows are NHWC-ordered)
    x_flat = x.reshape(x.shape[0], -1)
    return fc(x_flat, params["fc_w"], params["fc_b"])


if __name__ == "__main__":
    key = jax.random.PRNGKey(0)
    kx, kp = jax.random.split(key)
    params = init_params(kp, embedding_size=512)
    # fc expects 512*4*4 features -> input spatial must be 64x64 (4 stride-2 convs)
    x = jax.random.normal(kx, (2, 3, 64, 64), jnp.float32)
    out = jax.jit(lambda xx: face_recognition_forward(xx, params))(x)
    out = jax.block_until_ready(out)
    assert out.shape == (2, 512) and out.dtype == jnp.float32
    print("KERNEL_OK")
</pallas_src>

<mosaic_0001>
module attributes {stable_mosaic.version = 11 : i64} {
  func.func @_mm_bn_relu_kernel(%arg0: i32, %arg1: memref<256x27xf32, #tpu.memory_space<vmem>>, %arg2: memref<27x64xf32, #tpu.memory_space<vmem>>, %arg3: memref<1x64xf32, #tpu.memory_space<vmem>>, %arg4: memref<1x64xf32, #tpu.memory_space<vmem>>, %arg5: memref<256x64xf32, #tpu.memory_space<vmem>>) attributes {dimension_semantics = [#tpu.dimension_semantics<parallel>], iteration_bounds = array<i64: 8>, scalar_prefetch = 0 : i64, scratch_operands = 0 : i64, tpu.core_type = #tpu.core_type<tc>, window_params = [{transform_indices = @transform_0, window_bounds = array<i64: 256, 27>}, {pipeline_mode = #tpu.pipeline_mode<synchronous>, transform_indices = @transform_1, window_bounds = array<i64: 27, 64>}, {pipeline_mode = #tpu.pipeline_mode<synchronous>, transform_indices = @transform_2, window_bounds = array<i64: 1, 64>}, {pipeline_mode = #tpu.pipeline_mode<synchronous>, transform_indices = @transform_3, window_bounds = array<i64: 1, 64>}, {transform_indices = @transform_4, window_bounds = array<i64: 256, 64>}]} {
    %c0 = arith.constant 0 : index
    %c0_0 = arith.constant 0 : index
    %0 = vector.load %arg1[%c0, %c0_0] : memref<256x27xf32, #tpu.memory_space<vmem>>, vector<256x27xf32>
    %c0_1 = arith.constant 0 : index
    %c0_2 = arith.constant 0 : index
    %1 = vector.load %arg2[%c0_1, %c0_2] : memref<27x64xf32, #tpu.memory_space<vmem>>, vector<27x64xf32>
    %cst = arith.constant dense<0.000000e+00> : vector<256x64xf32>
    %2 = tpu.matmul %0, %1, %cst {dimension_numbers = #tpu.dot_dimension_numbers<[1], [0], [0], [1], [0, 0, 1, 1], [], []>} : vector<256x27xf32>, vector<27x64xf32>, vector<256x64xf32> -> vector<256x64xf32>
    %c0_3 = arith.constant 0 : index
    %c0_4 = arith.constant 0 : index
    %3 = vector.load %arg3[%c0_3, %c0_4] : memref<1x64xf32, #tpu.memory_space<vmem>>, vector<1x64xf32>
    %4 = vector.broadcast %3 : vector<1x64xf32> to vector<256x64xf32>
    %5 = arith.mulf %2, %4 : vector<256x64xf32>
    %c0_5 = arith.constant 0 : index
    %c0_6 = arith.constant 0 : index
    %6 = vector.load %arg4[%c0_5, %c0_6] : memref<1x64xf32, #tpu.memory_space<vmem>>, vector<1x64xf32>
    %7 = vector.broadcast %6 : vector<1x64xf32> to vector<256x64xf32>
    %8 = arith.addf %5, %7 : vector<256x64xf32>
    %cst_7 = arith.constant 0.000000e+00 : f32
    %9 = vector.broadcast %cst_7 : f32 to vector<256x64xf32>
    %10 = arith.maximumf %8, %9 : vector<256x64xf32>
    %c0_8 = arith.constant 0 : index
    %c0_9 = arith.constant 0 : index
    %11 = vector.load %arg5[%c0_8, %c0_9] : memref<256x64xf32, #tpu.memory_space<vmem>>, vector<256x64xf32>
    tpu.vector_store %arg5[%c0_8, %c0_9], %10 {strides = array<i32>} : memref<256x64xf32, #tpu.memory_space<vmem>>, vector<256x64xf32>,
    return
  }
  func.func @transform_0(%arg0: i32) -> (i32, i32) {
    %c0_i32 = arith.constant 0 : i32
    %c0_i32_0 = arith.constant 0 : i32
    return %arg0, %c0_i32 : i32, i32
  }
  func.func @transform_1(%arg0: i32) -> (i32, i32) {
    %c0_i32 = arith.constant 0 : i32
    %c0_i32_0 = arith.constant 0 : i32
    %c0_i32_1 = arith.constant 0 : i32
    return %c0_i32, %c0_i32_0 : i32, i32
  }
  func.func @transform_2(%arg0: i32) -> (i32, i32) {
    %c0_i32 = arith.constant 0 : i32
    %c0_i32_0 = arith.constant 0 : i32
    %c0_i32_1 = arith.constant 0 : i32
    return %c0_i32, %c0_i32_0 : i32, i32
  }
  func.func @transform_3(%arg0: i32) -> (i32, i32) {
    %c0_i32 = arith.constant 0 : i32
    %c0_i32_0 = arith.constant 0 : i32
    %c0_i32_1 = arith.constant 0 : i32
    return %c0_i32, %c0_i32_0 : i32, i32
  }
  func.func @transform_4(%arg0: i32) -> (i32, i32) {
    %c0_i32 = arith.constant 0 : i32
    %c0_i32_0 = arith.constant 0 : i32
    return %arg0, %c0_i32 : i32, i32
  }
}

module attributes {stable_mosaic.version = 11 : i64} {
  func.func @_dsconv_bn_relu_kernel(%arg0: i32, %arg1: i32, %arg2: memref<1x17x17x64xf32, #tpu.memory_space<vmem>>, %arg3: memref<1x17x17x64xf32, #tpu.memory_space<vmem>>, %arg4: memref<1x17x17x64xf32, #tpu.memory_space<vmem>>, %arg5: memref<1x17x17x64xf32, #tpu.memory_space<vmem>>, %arg6: memref<9x64xf32, #tpu.memory_space<vmem>>, %arg7: memref<64x128xf32, #tpu.memory_space<vmem>>, %arg8: memref<1x128xf32, #tpu.memory_space<vmem>>, %arg9: memref<1x128xf32, #tpu.memory_space<vmem>>, %arg10: memref<1x8x16x128xf32, #tpu.memory_space<vmem>>) attributes {dimension_semantics = [#tpu.dimension_semantics<parallel>, #tpu.dimension_semantics<parallel>], iteration_bounds = array<i64: 2, 2>, scalar_prefetch = 0 : i64, scratch_operands = 0 : i64, tpu.core_type = #tpu.core_type<tc>, window_params = [{transform_indices = @transform_0, window_bounds = array<i64: 1, 17, 17, 64>}, {transform_indices = @transform_1, window_bounds = array<i64: 1, 17, 17, 64>}, {transform_indices = @transform_2, window_bounds = array<i64: 1, 17, 17, 64>}, {transform_indices = @transform_3, window_bounds = array<i64: 1, 17, 17, 64>}, {pipeline_mode = #tpu.pipeline_mode<synchronous>, transform_indices = @transform_4, window_bounds = array<i64: 9, 64>}, {pipeline_mode = #tpu.pipeline_mode<synchronous>, transform_indices = @transform_5, window_bounds = array<i64: 64, 128>}, {pipeline_mode = #tpu.pipeline_mode<synchronous>, transform_indices = @transform_6, window_bounds = array<i64: 1, 128>}, {pipeline_mode = #tpu.pipeline_mode<synchronous>, transform_indices = @transform_7, window_bounds = array<i64: 1, 128>}, {transform_indices = @transform_8, window_bounds = array<i64: 1, 8, 16, 128>}]} {
    %c8_i32 = arith.constant 8 : i32
    %0 = arith.muli %arg1, %c8_i32 : i32
    %1 = tpu.assume_multiple %0, 8 : i32
    %cst = arith.constant 0.000000e+00 : f32
    %2 = vector.broadcast %cst : f32 to vector<8x16x64xf32>
    %c0_i32 = arith.constant 0 : i32
    %3 = arith.addi %1, %c0_i32 : i32
    %c0 = arith.constant 0 : index
    %4 = arith.index_cast %3 : i32 to index
    %c0_0 = arith.constant 0 : index
    %c0_1 = arith.constant 0 : index
    %5 = vector.load %arg2[%c0, %4, %c0_0, %c0_1] : memref<1x17x17x64xf32, #tpu.memory_space<vmem>>, vector<1x8x16x64xf32>
    %6 = vector.shape_cast %5 : vector<1x8x16x64xf32> to vector<8x16x64xf32>
    %c0_2 = arith.constant 0 : index
    %c0_3 = arith.constant 0 : index
    %7 = vector.load %arg6[%c0_2, %c0_3] : memref<9x64xf32, #tpu.memory_space<vmem>>, vector<1x64xf32>
    %8 = vector.shape_cast %7 : vector<1x64xf32> to vector<1x1x64xf32>
    %9 = vector.broadcast %8 : vector<1x1x64xf32> to vector<8x16x64xf32>
    %10 = arith.mulf %6, %9 : vector<8x16x64xf32>
    %11 = arith.addf %2, %10 : vector<8x16x64xf32>
    %c0_i32_4 = arith.constant 0 : i32
    %12 = arith.addi %1, %c0_i32_4 : i32
    %c0_5 = arith.constant 0 : index
    %13 = arith.index_cast %12 : i32 to index
    %c0_6 = arith.constant 0 : index
    %c0_7 = arith.constant 0 : index
    %14 = vector.load %arg3[%c0_5, %13, %c0_6, %c0_7] : memref<1x17x17x64xf32, #tpu.memory_space<vmem>>, vector<1x8x16x64xf32>
    %15 = vector.shape_cast %14 : vector<1x8x16x64xf32> to vector<8x16x64xf32>
    %c1 = arith.constant 1 : index
    %c0_8 = arith.constant 0 : index
    %16 = vector.load %arg6[%c1, %c0_8] : memref<9x64xf32, #tpu.memory_space<vmem>>, vector<1x64xf32>
    %17 = vector.shape_cast %16 : vector<1x64xf32> to vector<1x1x64xf32>
    %18 = vector.broadcast %17 : vector<1x1x64xf32> to vector<8x16x64xf32>
    %19 = arith.mulf %15, %18 : vector<8x16x64xf32>
    %20 = arith.addf %11, %19 : vector<8x16x64xf32>
    %c0_i32_9 = arith.constant 0 : i32
    %21 = arith.addi %1, %c0_i32_9 : i32
    %c0_10 = arith.constant 0 : index
    %22 = arith.index_cast %21 : i32 to index
    %c1_11 = arith.constant 1 : index
    %c0_12 = arith.constant 0 : index
    %23 = vector.load %arg2[%c0_10, %22, %c1_11, %c0_12] : memref<1x17x17x64xf32, #tpu.memory_space<vmem>>, vector<1x8x16x64xf32>
    %24 = vector.shape_cast %23 : vector<1x8x16x64xf32> to vector<8x16x64xf32>
    %c2 = arith.constant 2 : index
    %c0_13 = arith.constant 0 : index
    %25 = vector.load %arg6[%c2, %c0_13] : memref<9x64xf32, #tpu.memory_space<vmem>>, vector<1x64xf32>
    %26 = vector.shape_cast %25 : vector<1x64xf32> to vector<1x1x64xf32>
    %27 = vector.broadcast %26 : vector<1x1x64xf32> to vector<8x16x64xf32>
    %28 = arith.mulf %24, %27 : vector<8x16x64xf32>
    %29 = arith.addf %20, %28 : vector<8x16x64xf32>
    %c0_i32_14 = arith.constant 0 : i32
    %30 = arith.addi %1, %c0_i32_14 : i32
    %c0_15 = arith.constant 0 : index
    %31 = arith.index_cast %30 : i32 to index
    %c0_16 = arith.constant 0 : index
    %c0_17 = arith.constant 0 : index
    %32 = vector.load %arg4[%c0_15, %31, %c0_16, %c0_17] : memref<1x17x17x64xf32, #tpu.memory_space<vmem>>, vector<1x8x16x64xf32>
    %33 = vector.shape_cast %32 : vector<1x8x16x64xf32> to vector<8x16x64xf32>
    %c3 = arith.constant 3 : index
    %c0_18 = arith.constant 0 : index
    %34 = vector.load %arg6[%c3, %c0_18] : memref<9x64xf32, #tpu.memory_space<vmem>>, vector<1x64xf32>
    %35 = vector.shape_cast %34 : vector<1x64xf32> to vector<1x1x64xf32>
    %36 = vector.broadcast %35 : vector<1x1x64xf32> to vector<8x16x64xf32>
    %37 = arith.mulf %33, %36 : vector<8x16x64xf32>
    %38 = arith.addf %29, %37 : vector<8x16x64xf32>
    %c0_i32_19 = arith.constant 0 : i32
    %39 = arith.addi %1, %c0_i32_19 : i32
    %c0_20 = arith.constant 0 : index
    %40 = arith.index_cast %39 : i32 to index
    %c0_21 = arith.constant 0 : index
    %c0_22 = arith.constant 0 : index
    %41 = vector.load %arg5[%c0_20, %40, %c0_21, %c0_22] : memref<1x17x17x64xf32, #tpu.memory_space<vmem>>, vector<1x8x16x64xf32>
    %42 = vector.shape_cast %41 : vector<1x8x16x64xf32> to vector<8x16x64xf32>
    %c4 = arith.constant 4 : index
    %c0_23 = arith.constant 0 : index
    %43 = vector.load %arg6[%c4, %c0_23] : memref<9x64xf32, #tpu.memory_space<vmem>>, vector<1x64xf32>
    %44 = vector.shape_cast %43 : vector<1x64xf32> to vector<1x1x64xf32>
    %45 = vector.broadcast %44 : vector<1x1x64xf32> to vector<8x16x64xf32>
    %46 = arith.mulf %42, %45 : vector<8x16x64xf32>
    %47 = arith.addf %38, %46 : vector<8x16x64xf32>
    %c0_i32_24 = arith.constant 0 : i32
    %48 = arith.addi %1, %c0_i32_24 : i32
    %c0_25 = arith.constant 0 : index
    %49 = arith.index_cast %48 : i32 to index
    %c1_26 = arith.constant 1 : index
    %c0_27 = arith.constant 0 : index
    %50 = vector.load %arg4[%c0_25, %49, %c1_26, %c0_27] : memref<1x17x17x64xf32, #tpu.memory_space<vmem>>, vector<1x8x16x64xf32>
    %51 = vector.shape_cast %50 : vector<1x8x16x64xf32> to vector<8x16x64xf32>
    %c5 = arith.constant 5 : index
    %c0_28 = arith.constant 0 : index
    %52 = vector.load %arg6[%c5, %c0_28] : memref<9x64xf32, #tpu.memory_space<vmem>>, vector<1x64xf32>
    %53 = vector.shape_cast %52 : vector<1x64xf32> to vector<1x1x64xf32>
    %54 = vector.broadcast %53 : vector<1x1x64xf32> to vector<8x16x64xf32>
    %55 = arith.mulf %51, %54 : vector<8x16x64xf32>
    %56 = arith.addf %47, %55 : vector<8x16x64xf32>
    %c1_i32 = arith.constant 1 : i32
    %57 = arith.addi %1, %c1_i32 : i32
    %c0_29 = arith.constant 0 : index
    %58 = arith.index_cast %57 : i32 to index
    %c0_30 = arith.constant 0 : index
    %c0_31 = arith.constant 0 : index
    %59 = vector.load %arg2[%c0_29, %58, %c0_30, %c0_31] : memref<1x17x17x64xf32, #tpu.memory_space<vmem>>, vector<1x8x16x64xf32>
    %60 = vector.shape_cast %59 : vector<1x8x16x64xf32> to vector<8x16x64xf32>
    %c6 = arith.constant 6 : index
    %c0_32 = arith.constant 0 : index
    %61 = vector.load %arg6[%c6, %c0_32] : memref<9x64xf32, #tpu.memory_space<vmem>>, vector<1x64xf32>
    %62 = vector.shape_cast %61 : vector<1x64xf32> to vector<1x1x64xf32>
    %63 = vector.broadcast %62 : vector<1x1x64xf32> to vector<8x16x64xf32>
    %64 = arith.mulf %60, %63 : vector<8x16x64xf32>
    %65 = arith.addf %56, %64 : vector<8x16x64xf32>
    %c1_i32_33 = arith.constant 1 : i32
    %66 = arith.addi %1, %c1_i32_33 : i32
    %c0_34 = arith.constant 0 : index
    %67 = arith.index_cast %66 : i32 to index
    %c0_35 = arith.constant 0 : index
    %c0_36 = arith.constant 0 : index
    %68 = vector.load %arg3[%c0_34, %67, %c0_35, %c0_36] : memref<1x17x17x64xf32, #tpu.memory_space<vmem>>, vector<1x8x16x64xf32>
    %69 = vector.shape_cast %68 : vector<1x8x16x64xf32> to vector<8x16x64xf32>
    %c7 = arith.constant 7 : index
    %c0_37 = arith.constant 0 : index
    %70 = vector.load %arg6[%c7, %c0_37] : memref<9x64xf32, #tpu.memory_space<vmem>>, vector<1x64xf32>
    %71 = vector.shape_cast %70 : vector<1x64xf32> to vector<1x1x64xf32>
    %72 = vector.broadcast %71 : vector<1x1x64xf32> to vector<8x16x64xf32>
    %73 = arith.mulf %69, %72 : vector<8x16x64xf32>
    %74 = arith.addf %65, %73 : vector<8x16x64xf32>
    %c1_i32_38 = arith.constant 1 : i32
    %75 = arith.addi %1, %c1_i32_38 : i32
    %c0_39 = arith.constant 0 : index
    %76 = arith.index_cast %75 : i32 to index
    %c1_40 = arith.constant 1 : index
    %c0_41 = arith.constant 0 : index
    %77 = vector.load %arg2[%c0_39, %76, %c1_40, %c0_41] : memref<1x17x17x64xf32, #tpu.memory_space<vmem>>, vector<1x8x16x64xf32>
    %78 = vector.shape_cast %77 : vector<1x8x16x64xf32> to vector<8x16x64xf32>
    %c8 = arith.constant 8 : index
    %c0_42 = arith.constant 0 : index
    %79 = vector.load %arg6[%c8, %c0_42] : memref<9x64xf32, #tpu.memory_space<vmem>>, vector<1x64xf32>
    %80 = vector.shape_cast %79 : vector<1x64xf32> to vector<1x1x64xf32>
    %81 = vector.broadcast %80 : vector<1x1x64xf32> to vector<8x16x64xf32>
    %82 = arith.mulf %78, %81 : vector<8x16x64xf32>
    %83 = arith.addf %74, %82 : vector<8x16x64xf32>
    %84 = vector.shape_cast %83 : vector<8x16x64xf32> to vector<128x64xf32>
    %c0_43 = arith.constant 0 : index
    %c0_44 = arith.constant 0 : index
    %85 = vector.load %arg7[%c0_43, %c0_44] : memref<64x128xf32, #tpu.memory_space<vmem>>, vector<64x128xf32>
    %cst_45 = arith.constant dense<0.000000e+00> : vector<128x128xf32>
    %86 = tpu.matmul %84, %85, %cst_45 {dimension_numbers = #tpu.dot_dimension_numbers<[1], [0], [0], [1], [0, 0, 1, 1], [], []>} : vector<128x64xf32>, vector<64x128xf32>, vector<128x128xf32> -> vector<128x128xf32>
    %c0_46 = arith.constant 0 : index
    %c0_47 = arith.constant 0 : index
    %87 = vector.load %arg8[%c0_46, %c0_47] : memref<1x128xf32, #tpu.memory_space<vmem>>, vector<1x128xf32>
    %88 = vector.broadcast %87 : vector<1x128xf32> to vector<128x128xf32>
    %89 = arith.mulf %86, %88 : vector<128x128xf32>
    %c0_48 = arith.constant 0 : index
    %c0_49 = arith.constant 0 : index
    %90 = vector.load %arg9[%c0_48, %c0_49] : memref<1x128xf32, #tpu.memory_space<vmem>>, vector<1x128xf32>
    %91 = vector.broadcast %90 : vector<1x128xf32> to vector<128x128xf32>
    %92 = arith.addf %89, %91 : vector<128x128xf32>
    %cst_50 = arith.constant 0.000000e+00 : f32
    %93 = vector.broadcast %cst_50 : f32 to vector<128x128xf32>
    %94 = arith.maximumf %92, %93 : vector<128x128xf32>
    %95 = vector.shape_cast %94 : vector<128x128xf32> to vector<8x16x128xf32>
    %c0_51 = arith.constant 0 : index
    %c0_52 = arith.constant 0 : index
    %c0_53 = arith.constant 0 : index
    %c0_54 = arith.constant 0 : index
    %96 = vector.load %arg10[%c0_51, %c0_52, %c0_53, %c0_54] : memref<1x8x16x128xf32, #tpu.memory_space<vmem>>, vector<1x8x16x128xf32>
    %97 = vector.shape_cast %96 : vector<1x8x16x128xf32> to vector<8x16x128xf32>
    %98 = vector.shape_cast %95 : vector<8x16x128xf32> to vector<1x8x16x128xf32>
    tpu.vector_store %arg10[%c0_51, %c0_52, %c0_53, %c0_54], %98 {strides = array<i32>} : memref<1x8x16x128xf32, #tpu.memory_space<vmem>>, vector<1x8x16x128xf32>,
    return
  }
  func.func @transform_0(%arg0: i32, %arg1: i32) -> (i32, i32, i32, i32) {
    %c0_i32 = arith.constant 0 : i32
    %c0_i32_0 = arith.constant 0 : i32
    %c0_i32_1 = arith.constant 0 : i32
    %c0_i32_2 = arith.constant 0 : i32
    return %arg0, %c0_i32, %c0_i32_0, %c0_i32_1 : i32, i32, i32, i32
  }
  func.func @transform_1(%arg0: i32, %arg1: i32) -> (i32, i32, i32, i32) {
    %c0_i32 = arith.constant 0 : i32
    %c0_i32_0 = arith.constant 0 : i32
    %c0_i32_1 = arith.constant 0 : i32
    %c0_i32_2 = arith.constant 0 : i32
    return %arg0, %c0_i32, %c0_i32_0, %c0_i32_1 : i32, i32, i32, i32
  }
  func.func @transform_2(%arg0: i32, %arg1: i32) -> (i32, i32, i32, i32) {
    %c0_i32 = arith.constant 0 : i32
    %c0_i32_0 = arith.constant 0 : i32
    %c0_i32_1 = arith.constant 0 : i32
    %c0_i32_2 = arith.constant 0 : i32
    return %arg0, %c0_i32, %c0_i32_0, %c0_i32_1 : i32, i32, i32, i32
  }
  func.func @transform_3(%arg0: i32, %arg1: i32) -> (i32, i32, i32, i32) {
    %c0_i32 = arith.constant 0 : i32
    %c0_i32_0 = arith.constant 0 : i32
    %c0_i32_1 = arith.constant 0 : i32
    %c0_i32_2 = arith.constant 0 : i32
    return %arg0, %c0_i32, %c0_i32_0, %c0_i32_1 : i32, i32, i32, i32
  }
  func.func @transform_4(%arg0: i32, %arg1: i32) -> (i32, i32) {
    %c0_i32 = arith.constant 0 : i32
    %c0_i32_0 = arith.constant 0 : i32
    %c0_i32_1 = arith.constant 0 : i32
    return %c0_i32, %c0_i32_0 : i32, i32
  }
  func.func @transform_5(%arg0: i32, %arg1: i32) -> (i32, i32) {
    %c0_i32 = arith.constant 0 : i32
    %c0_i32_0 = arith.constant 0 : i32
    %c0_i32_1 = arith.constant 0 : i32
    return %c0_i32, %c0_i32_0 : i32, i32
  }
  func.func @transform_6(%arg0: i32, %arg1: i32) -> (i32, i32) {
    %c0_i32 = arith.constant 0 : i32
    %c0_i32_0 = arith.constant 0 : i32
    %c0_i32_1 = arith.constant 0 : i32
    return %c0_i32, %c0_i32_0 : i32, i32
  }
  func.func @transform_7(%arg0: i32, %arg1: i32) -> (i32, i32) {
    %c0_i32 = arith.constant 0 : i32
    %c0_i32_0 = arith.constant 0 : i32
    %c0_i32_1 = arith.constant 0 : i32
    return %c0_i32, %c0_i32_0 : i32, i32
  }
  func.func @transform_8(%arg0: i32, %arg1: i32) -> (i32, i32, i32, i32) {
    %c0_i32 = arith.constant 0 : i32
    %c0_i32_0 = arith.constant 0 : i32
    %c0_i32_1 = arith.constant 0 : i32
    return %arg0, %arg1, %c0_i32, %c0_i32_0 : i32, i32, i32, i32
  }
}

module attributes {stable_mosaic.version = 11 : i64} {
  func.func @_dsconv_bn_relu_kernel(%arg0: i32, %arg1: i32, %arg2: memref<1x9x9x128xf32, #tpu.memory_space<vmem>>, %arg3: memref<1x9x9x128xf32, #tpu.memory_space<vmem>>, %arg4: memref<1x9x9x128xf32, #tpu.memory_space<vmem>>, %arg5: memref<1x9x9x128xf32, #tpu.memory_space<vmem>>, %arg6: memref<9x128xf32, #tpu.memory_space<vmem>>, %arg7: memref<128x256xf32, #tpu.memory_space<vmem>>, %arg8: memref<1x256xf32, #tpu.memory_space<vmem>>, %arg9: memref<1x256xf32, #tpu.memory_space<vmem>>, %arg10: memref<1x8x8x256xf32, #tpu.memory_space<vmem>>) attributes {dimension_semantics = [#tpu.dimension_semantics<parallel>, #tpu.dimension_semantics<parallel>], iteration_bounds = array<i64: 2, 1>, scalar_prefetch = 0 : i64, scratch_operands = 0 : i64, tpu.core_type = #tpu.core_type<tc>, window_params = [{transform_indices = @transform_0, window_bounds = array<i64: 1, 9, 9, 128>}, {transform_indices = @transform_1, window_bounds = array<i64: 1, 9, 9, 128>}, {transform_indices = @transform_2, window_bounds = array<i64: 1, 9, 9, 128>}, {transform_indices = @transform_3, window_bounds = array<i64: 1, 9, 9, 128>}, {pipeline_mode = #tpu.pipeline_mode<synchronous>, transform_indices = @transform_4, window_bounds = array<i64: 9, 128>}, {pipeline_mode = #tpu.pipeline_mode<synchronous>, transform_indices = @transform_5, window_bounds = array<i64: 128, 256>}, {pipeline_mode = #tpu.pipeline_mode<synchronous>, transform_indices = @transform_6, window_bounds = array<i64: 1, 256>}, {pipeline_mode = #tpu.pipeline_mode<synchronous>, transform_indices = @transform_7, window_bounds = array<i64: 1, 256>}, {transform_indices = @transform_8, window_bounds = array<i64: 1, 8, 8, 256>}]} {
    %c8_i32 = arith.constant 8 : i32
    %0 = arith.muli %arg1, %c8_i32 : i32
    %1 = tpu.assume_multiple %0, 8 : i32
    %cst = arith.constant 0.000000e+00 : f32
    %2 = vector.broadcast %cst : f32 to vector<8x8x128xf32>
    %c0_i32 = arith.constant 0 : i32
    %3 = arith.addi %1, %c0_i32 : i32
    %c0 = arith.constant 0 : index
    %4 = arith.index_cast %3 : i32 to index
    %c0_0 = arith.constant 0 : index
    %c0_1 = arith.constant 0 : index
    %5 = vector.load %arg2[%c0, %4, %c0_0, %c0_1] : memref<1x9x9x128xf32, #tpu.memory_space<vmem>>, vector<1x8x8x128xf32>
    %6 = vector.shape_cast %5 : vector<1x8x8x128xf32> to vector<8x8x128xf32>
    %c0_2 = arith.constant 0 : index
    %c0_3 = arith.constant 0 : index
    %7 = vector.load %arg6[%c0_2, %c0_3] : memref<9x128xf32, #tpu.memory_space<vmem>>, vector<1x128xf32>
    %8 = vector.shape_cast %7 : vector<1x128xf32> to vector<1x1x128xf32>
    %9 = vector.broadcast %8 : vector<1x1x128xf32> to vector<8x8x128xf32>
    %10 = arith.mulf %6, %9 : vector<8x8x128xf32>
    %11 = arith.addf %2, %10 : vector<8x8x128xf32>
    %c0_i32_4 = arith.constant 0 : i32
    %12 = arith.addi %1, %c0_i32_4 : i32
    %c0_5 = arith.constant 0 : index
    %13 = arith.index_cast %12 : i32 to index
    %c0_6 = arith.constant 0 : index
    %c0_7 = arith.constant 0 : index
    %14 = vector.load %arg3[%c0_5, %13, %c0_6, %c0_7] : memref<1x9x9x128xf32, #tpu.memory_space<vmem>>, vector<1x8x8x128xf32>
    %15 = vector.shape_cast %14 : vector<1x8x8x128xf32> to vector<8x8x128xf32>
    %c1 = arith.constant 1 : index
    %c0_8 = arith.constant 0 : index
    %16 = vector.load %arg6[%c1, %c0_8] : memref<9x128xf32, #tpu.memory_space<vmem>>, vector<1x128xf32>
    %17 = vector.shape_cast %16 : vector<1x128xf32> to vector<1x1x128xf32>
    %18 = vector.broadcast %17 : vector<1x1x128xf32> to vector<8x8x128xf32>
    %19 = arith.mulf %15, %18 : vector<8x8x128xf32>
    %20 = arith.addf %11, %19 : vector<8x8x128xf32>
    %c0_i32_9 = arith.constant 0 : i32
    %21 = arith.addi %1, %c0_i32_9 : i32
    %c0_10 = arith.constant 0 : index
    %22 = arith.index_cast %21 : i32 to index
    %c1_11 = arith.constant 1 : index
    %c0_12 = arith.constant 0 : index
    %23 = vector.load %arg2[%c0_10, %22, %c1_11, %c0_12] : memref<1x9x9x128xf32, #tpu.memory_space<vmem>>, vector<1x8x8x128xf32>
    %24 = vector.shape_cast %23 : vector<1x8x8x128xf32> to vector<8x8x128xf32>
    %c2 = arith.constant 2 : index
    %c0_13 = arith.constant 0 : index
    %25 = vector.load %arg6[%c2, %c0_13] : memref<9x128xf32, #tpu.memory_space<vmem>>, vector<1x128xf32>
    %26 = vector.shape_cast %25 : vector<1x128xf32> to vector<1x1x128xf32>
    %27 = vector.broadcast %26 : vector<1x1x128xf32> to vector<8x8x128xf32>
    %28 = arith.mulf %24, %27 : vector<8x8x128xf32>
    %29 = arith.addf %20, %28 : vector<8x8x128xf32>
    %c0_i32_14 = arith.constant 0 : i32
    %30 = arith.addi %1, %c0_i32_14 : i32
    %c0_15 = arith.constant 0 : index
    %31 = arith.index_cast %30 : i32 to index
    %c0_16 = arith.constant 0 : index
    %c0_17 = arith.constant 0 : index
    %32 = vector.load %arg4[%c0_15, %31, %c0_16, %c0_17] : memref<1x9x9x128xf32, #tpu.memory_space<vmem>>, vector<1x8x8x128xf32>
    %33 = vector.shape_cast %32 : vector<1x8x8x128xf32> to vector<8x8x128xf32>
    %c3 = arith.constant 3 : index
    %c0_18 = arith.constant 0 : index
    %34 = vector.load %arg6[%c3, %c0_18] : memref<9x128xf32, #tpu.memory_space<vmem>>, vector<1x128xf32>
    %35 = vector.shape_cast %34 : vector<1x128xf32> to vector<1x1x128xf32>
    %36 = vector.broadcast %35 : vector<1x1x128xf32> to vector<8x8x128xf32>
    %37 = arith.mulf %33, %36 : vector<8x8x128xf32>
    %38 = arith.addf %29, %37 : vector<8x8x128xf32>
    %c0_i32_19 = arith.constant 0 : i32
    %39 = arith.addi %1, %c0_i32_19 : i32
    %c0_20 = arith.constant 0 : index
    %40 = arith.index_cast %39 : i32 to index
    %c0_21 = arith.constant 0 : index
    %c0_22 = arith.constant 0 : index
    %41 = vector.load %arg5[%c0_20, %40, %c0_21, %c0_22] : memref<1x9x9x128xf32, #tpu.memory_space<vmem>>, vector<1x8x8x128xf32>
    %42 = vector.shape_cast %41 : vector<1x8x8x128xf32> to vector<8x8x128xf32>
    %c4 = arith.constant 4 : index
    %c0_23 = arith.constant 0 : index
    %43 = vector.load %arg6[%c4, %c0_23] : memref<9x128xf32, #tpu.memory_space<vmem>>, vector<1x128xf32>
    %44 = vector.shape_cast %43 : vector<1x128xf32> to vector<1x1x128xf32>
    %45 = vector.broadcast %44 : vector<1x1x128xf32> to vector<8x8x128xf32>
    %46 = arith.mulf %42, %45 : vector<8x8x128xf32>
    %47 = arith.addf %38, %46 : vector<8x8x128xf32>
    %c0_i32_24 = arith.constant 0 : i32
    %48 = arith.addi %1, %c0_i32_24 : i32
    %c0_25 = arith.constant 0 : index
    %49 = arith.index_cast %48 : i32 to index
    %c1_26 = arith.constant 1 : index
    %c0_27 = arith.constant 0 : index
    %50 = vector.load %arg4[%c0_25, %49, %c1_26, %c0_27] : memref<1x9x9x128xf32, #tpu.memory_space<vmem>>, vector<1x8x8x128xf32>
    %51 = vector.shape_cast %50 : vector<1x8x8x128xf32> to vector<8x8x128xf32>
    %c5 = arith.constant 5 : index
    %c0_28 = arith.constant 0 : index
    %52 = vector.load %arg6[%c5, %c0_28] : memref<9x128xf32, #tpu.memory_space<vmem>>, vector<1x128xf32>
    %53 = vector.shape_cast %52 : vector<1x128xf32> to vector<1x1x128xf32>
    %54 = vector.broadcast %53 : vector<1x1x128xf32> to vector<8x8x128xf32>
    %55 = arith.mulf %51, %54 : vector<8x8x128xf32>
    %56 = arith.addf %47, %55 : vector<8x8x128xf32>
    %c1_i32 = arith.constant 1 : i32
    %57 = arith.addi %1, %c1_i32 : i32
    %c0_29 = arith.constant 0 : index
    %58 = arith.index_cast %57 : i32 to index
    %c0_30 = arith.constant 0 : index
    %c0_31 = arith.constant 0 : index
    %59 = vector.load %arg2[%c0_29, %58, %c0_30, %c0_31] : memref<1x9x9x128xf32, #tpu.memory_space<vmem>>, vector<1x8x8x128xf32>
    %60 = vector.shape_cast %59 : vector<1x8x8x128xf32> to vector<8x8x128xf32>
    %c6 = arith.constant 6 : index
    %c0_32 = arith.constant 0 : index
    %61 = vector.load %arg6[%c6, %c0_32] : memref<9x128xf32, #tpu.memory_space<vmem>>, vector<1x128xf32>
    %62 = vector.shape_cast %61 : vector<1x128xf32> to vector<1x1x128xf32>
    %63 = vector.broadcast %62 : vector<1x1x128xf32> to vector<8x8x128xf32>
    %64 = arith.mulf %60, %63 : vector<8x8x128xf32>
    %65 = arith.addf %56, %64 : vector<8x8x128xf32>
    %c1_i32_33 = arith.constant 1 : i32
    %66 = arith.addi %1, %c1_i32_33 : i32
    %c0_34 = arith.constant 0 : index
    %67 = arith.index_cast %66 : i32 to index
    %c0_35 = arith.constant 0 : index
    %c0_36 = arith.constant 0 : index
    %68 = vector.load %arg3[%c0_34, %67, %c0_35, %c0_36] : memref<1x9x9x128xf32, #tpu.memory_space<vmem>>, vector<1x8x8x128xf32>
    %69 = vector.shape_cast %68 : vector<1x8x8x128xf32> to vector<8x8x128xf32>
    %c7 = arith.constant 7 : index
    %c0_37 = arith.constant 0 : index
    %70 = vector.load %arg6[%c7, %c0_37] : memref<9x128xf32, #tpu.memory_space<vmem>>, vector<1x128xf32>
    %71 = vector.shape_cast %70 : vector<1x128xf32> to vector<1x1x128xf32>
    %72 = vector.broadcast %71 : vector<1x1x128xf32> to vector<8x8x128xf32>
    %73 = arith.mulf %69, %72 : vector<8x8x128xf32>
    %74 = arith.addf %65, %73 : vector<8x8x128xf32>
    %c1_i32_38 = arith.constant 1 : i32
    %75 = arith.addi %1, %c1_i32_38 : i32
    %c0_39 = arith.constant 0 : index
    %76 = arith.index_cast %75 : i32 to index
    %c1_40 = arith.constant 1 : index
    %c0_41 = arith.constant 0 : index
    %77 = vector.load %arg2[%c0_39, %76, %c1_40, %c0_41] : memref<1x9x9x128xf32, #tpu.memory_space<vmem>>, vector<1x8x8x128xf32>
    %78 = vector.shape_cast %77 : vector<1x8x8x128xf32> to vector<8x8x128xf32>
    %c8 = arith.constant 8 : index
    %c0_42 = arith.constant 0 : index
    %79 = vector.load %arg6[%c8, %c0_42] : memref<9x128xf32, #tpu.memory_space<vmem>>, vector<1x128xf32>
    %80 = vector.shape_cast %79 : vector<1x128xf32> to vector<1x1x128xf32>
    %81 = vector.broadcast %80 : vector<1x1x128xf32> to vector<8x8x128xf32>
    %82 = arith.mulf %78, %81 : vector<8x8x128xf32>
    %83 = arith.addf %74, %82 : vector<8x8x128xf32>
    %84 = vector.shape_cast %83 : vector<8x8x128xf32> to vector<64x128xf32>
    %c0_43 = arith.constant 0 : index
    %c0_44 = arith.constant 0 : index
    %85 = vector.load %arg7[%c0_43, %c0_44] : memref<128x256xf32, #tpu.memory_space<vmem>>, vector<128x256xf32>
    %cst_45 = arith.constant dense<0.000000e+00> : vector<64x256xf32>
    %86 = tpu.matmul %84, %85, %cst_45 {dimension_numbers = #tpu.dot_dimension_numbers<[1], [0], [0], [1], [0, 0, 1, 1], [], []>} : vector<64x128xf32>, vector<128x256xf32>, vector<64x256xf32> -> vector<64x256xf32>
    %c0_46 = arith.constant 0 : index
    %c0_47 = arith.constant 0 : index
    %87 = vector.load %arg8[%c0_46, %c0_47] : memref<1x256xf32, #tpu.memory_space<vmem>>, vector<1x256xf32>
    %88 = vector.broadcast %87 : vector<1x256xf32> to vector<64x256xf32>
    %89 = arith.mulf %86, %88 : vector<64x256xf32>
    %c0_48 = arith.constant 0 : index
    %c0_49 = arith.constant 0 : index
    %90 = vector.load %arg9[%c0_48, %c0_49] : memref<1x256xf32, #tpu.memory_space<vmem>>, vector<1x256xf32>
    %91 = vector.broadcast %90 : vector<1x256xf32> to vector<64x256xf32>
    %92 = arith.addf %89, %91 : vector<64x256xf32>
    %cst_50 = arith.constant 0.000000e+00 : f32
    %93 = vector.broadcast %cst_50 : f32 to vector<64x256xf32>
    %94 = arith.maximumf %92, %93 : vector<64x256xf32>
    %95 = vector.shape_cast %94 : vector<64x256xf32> to vector<8x8x256xf32>
    %c0_51 = arith.constant 0 : index
    %c0_52 = arith.constant 0 : index
    %c0_53 = arith.constant 0 : index
    %c0_54 = arith.constant 0 : index
    %96 = vector.load %arg10[%c0_51, %c0_52, %c0_53, %c0_54] : memref<1x8x8x256xf32, #tpu.memory_space<vmem>>, vector<1x8x8x256xf32>
    %97 = vector.shape_cast %96 : vector<1x8x8x256xf32> to vector<8x8x256xf32>
    %98 = vector.shape_cast %95 : vector<8x8x256xf32> to vector<1x8x8x256xf32>
    tpu.vector_store %arg10[%c0_51, %c0_52, %c0_53, %c0_54], %98 {strides = array<i32>} : memref<1x8x8x256xf32, #tpu.memory_space<vmem>>, vector<1x8x8x256xf32>,
    return
  }
  func.func @transform_0(%arg0: i32, %arg1: i32) -> (i32, i32, i32, i32) {
    %c0_i32 = arith.constant 0 : i32
    %c0_i32_0 = arith.constant 0 : i32
    %c0_i32_1 = arith.constant 0 : i32
    %c0_i32_2 = arith.constant 0 : i32
    return %arg0, %c0_i32, %c0_i32_0, %c0_i32_1 : i32, i32, i32, i32
  }
  func.func @transform_1(%arg0: i32, %arg1: i32) -> (i32, i32, i32, i32) {
    %c0_i32 = arith.constant 0 : i32
    %c0_i32_0 = arith.constant 0 : i32
    %c0_i32_1 = arith.constant 0 : i32
    %c0_i32_2 = arith.constant 0 : i32
    return %arg0, %c0_i32, %c0_i32_0, %c0_i32_1 : i32, i32, i32, i32
  }
  func.func @transform_2(%arg0: i32, %arg1: i32) -> (i32, i32, i32, i32) {
    %c0_i32 = arith.constant 0 : i32
    %c0_i32_0 = arith.constant 0 : i32
    %c0_i32_1 = arith.constant 0 : i32
    %c0_i32_2 = arith.constant 0 : i32
    return %arg0, %c0_i32, %c0_i32_0, %c0_i32_1 : i32, i32, i32, i32
  }
  func.func @transform_3(%arg0: i32, %arg1: i32) -> (i32, i32, i32, i32) {
    %c0_i32 = arith.constant 0 : i32
    %c0_i32_0 = arith.constant 0 : i32
    %c0_i32_1 = arith.constant 0 : i32
    %c0_i32_2 = arith.constant 0 : i32
    return %arg0, %c0_i32, %c0_i32_0, %c0_i32_1 : i32, i32, i32, i32
  }
  func.func @transform_4(%arg0: i32, %arg1: i32) -> (i32, i32) {
    %c0_i32 = arith.constant 0 : i32
    %c0_i32_0 = arith.constant 0 : i32
    %c0_i32_1 = arith.constant 0 : i32
    return %c0_i32, %c0_i32_0 : i32, i32
  }
  func.func @transform_5(%arg0: i32, %arg1: i32) -> (i32, i32) {
    %c0_i32 = arith.constant 0 : i32
    %c0_i32_0 = arith.constant 0 : i32
    %c0_i32_1 = arith.constant 0 : i32
    return %c0_i32, %c0_i32_0 : i32, i32
  }
  func.func @transform_6(%arg0: i32, %arg1: i32) -> (i32, i32) {
    %c0_i32 = arith.constant 0 : i32
    %c0_i32_0 = arith.constant 0 : i32
    %c0_i32_1 = arith.constant 0 : i32
    return %c0_i32, %c0_i32_0 : i32, i32
  }
  func.func @transform_7(%arg0: i32, %arg1: i32) -> (i32, i32) {
    %c0_i32 = arith.constant 0 : i32
    %c0_i32_0 = arith.constant 0 : i32
    %c0_i32_1 = arith.constant 0 : i32
    return %c0_i32, %c0_i32_0 : i32, i32
  }
  func.func @transform_8(%arg0: i32, %arg1: i32) -> (i32, i32, i32, i32) {
    %c0_i32 = arith.constant 0 : i32
    %c0_i32_0 = arith.constant 0 : i32
    %c0_i32_1 = arith.constant 0 : i32
    return %arg0, %arg1, %c0_i32, %c0_i32_0 : i32, i32, i32, i32
  }
}

module attributes {stable_mosaic.version = 11 : i64} {
  func.func @_dsconv_bn_relu_kernel(%arg0: i32, %arg1: i32, %arg2: memref<1x5x5x256xf32, #tpu.memory_space<vmem>>, %arg3: memref<1x5x5x256xf32, #tpu.memory_space<vmem>>, %arg4: memref<1x5x5x256xf32, #tpu.memory_space<vmem>>, %arg5: memref<1x5x5x256xf32, #tpu.memory_space<vmem>>, %arg6: memref<9x256xf32, #tpu.memory_space<vmem>>, %arg7: memref<256x512xf32, #tpu.memory_space<vmem>>, %arg8: memref<1x512xf32, #tpu.memory_space<vmem>>, %arg9: memref<1x512xf32, #tpu.memory_space<vmem>>, %arg10: memref<1x4x4x512xf32, #tpu.memory_space<vmem>>) attributes {dimension_semantics = [#tpu.dimension_semantics<parallel>, #tpu.dimension_semantics<parallel>], iteration_bounds = array<i64: 2, 1>, scalar_prefetch = 0 : i64, scratch_operands = 0 : i64, tpu.core_type = #tpu.core_type<tc>, window_params = [{transform_indices = @transform_0, window_bounds = array<i64: 1, 5, 5, 256>}, {transform_indices = @transform_1, window_bounds = array<i64: 1, 5, 5, 256>}, {transform_indices = @transform_2, window_bounds = array<i64: 1, 5, 5, 256>}, {transform_indices = @transform_3, window_bounds = array<i64: 1, 5, 5, 256>}, {pipeline_mode = #tpu.pipeline_mode<synchronous>, transform_indices = @transform_4, window_bounds = array<i64: 9, 256>}, {pipeline_mode = #tpu.pipeline_mode<synchronous>, transform_indices = @transform_5, window_bounds = array<i64: 256, 512>}, {pipeline_mode = #tpu.pipeline_mode<synchronous>, transform_indices = @transform_6, window_bounds = array<i64: 1, 512>}, {pipeline_mode = #tpu.pipeline_mode<synchronous>, transform_indices = @transform_7, window_bounds = array<i64: 1, 512>}, {transform_indices = @transform_8, window_bounds = array<i64: 1, 4, 4, 512>}]} {
    %c4_i32 = arith.constant 4 : i32
    %0 = arith.muli %arg1, %c4_i32 : i32
    %1 = tpu.assume_multiple %0, 4 : i32
    %cst = arith.constant 0.000000e+00 : f32
    %2 = vector.broadcast %cst : f32 to vector<4x4x256xf32>
    %c0_i32 = arith.constant 0 : i32
    %3 = arith.addi %1, %c0_i32 : i32
    %c0 = arith.constant 0 : index
    %4 = arith.index_cast %3 : i32 to index
    %c0_0 = arith.constant 0 : index
    %c0_1 = arith.constant 0 : index
    %5 = vector.load %arg2[%c0, %4, %c0_0, %c0_1] : memref<1x5x5x256xf32, #tpu.memory_space<vmem>>, vector<1x4x4x256xf32>
    %6 = vector.shape_cast %5 : vector<1x4x4x256xf32> to vector<4x4x256xf32>
    %c0_2 = arith.constant 0 : index
    %c0_3 = arith.constant 0 : index
    %7 = vector.load %arg6[%c0_2, %c0_3] : memref<9x256xf32, #tpu.memory_space<vmem>>, vector<1x256xf32>
    %8 = vector.shape_cast %7 : vector<1x256xf32> to vector<1x1x256xf32>
    %9 = vector.broadcast %8 : vector<1x1x256xf32> to vector<4x4x256xf32>
    %10 = arith.mulf %6, %9 : vector<4x4x256xf32>
    %11 = arith.addf %2, %10 : vector<4x4x256xf32>
    %c0_i32_4 = arith.constant 0 : i32
    %12 = arith.addi %1, %c0_i32_4 : i32
    %c0_5 = arith.constant 0 : index
    %13 = arith.index_cast %12 : i32 to index
    %c0_6 = arith.constant 0 : index
    %c0_7 = arith.constant 0 : index
    %14 = vector.load %arg3[%c0_5, %13, %c0_6, %c0_7] : memref<1x5x5x256xf32, #tpu.memory_space<vmem>>, vector<1x4x4x256xf32>
    %15 = vector.shape_cast %14 : vector<1x4x4x256xf32> to vector<4x4x256xf32>
    %c1 = arith.constant 1 : index
    %c0_8 = arith.constant 0 : index
    %16 = vector.load %arg6[%c1, %c0_8] : memref<9x256xf32, #tpu.memory_space<vmem>>, vector<1x256xf32>
    %17 = vector.shape_cast %16 : vector<1x256xf32> to vector<1x1x256xf32>
    %18 = vector.broadcast %17 : vector<1x1x256xf32> to vector<4x4x256xf32>
    %19 = arith.mulf %15, %18 : vector<4x4x256xf32>
    %20 = arith.addf %11, %19 : vector<4x4x256xf32>
    %c0_i32_9 = arith.constant 0 : i32
    %21 = arith.addi %1, %c0_i32_9 : i32
    %c0_10 = arith.constant 0 : index
    %22 = arith.index_cast %21 : i32 to index
    %c1_11 = arith.constant 1 : index
    %c0_12 = arith.constant 0 : index
    %23 = vector.load %arg2[%c0_10, %22, %c1_11, %c0_12] : memref<1x5x5x256xf32, #tpu.memory_space<vmem>>, vector<1x4x4x256xf32>
    %24 = vector.shape_cast %23 : vector<1x4x4x256xf32> to vector<4x4x256xf32>
    %c2 = arith.constant 2 : index
    %c0_13 = arith.constant 0 : index
    %25 = vector.load %arg6[%c2, %c0_13] : memref<9x256xf32, #tpu.memory_space<vmem>>, vector<1x256xf32>
    %26 = vector.shape_cast %25 : vector<1x256xf32> to vector<1x1x256xf32>
    %27 = vector.broadcast %26 : vector<1x1x256xf32> to vector<4x4x256xf32>
    %28 = arith.mulf %24, %27 : vector<4x4x256xf32>
    %29 = arith.addf %20, %28 : vector<4x4x256xf32>
    %c0_i32_14 = arith.constant 0 : i32
    %30 = arith.addi %1, %c0_i32_14 : i32
    %c0_15 = arith.constant 0 : index
    %31 = arith.index_cast %30 : i32 to index
    %c0_16 = arith.constant 0 : index
    %c0_17 = arith.constant 0 : index
    %32 = vector.load %arg4[%c0_15, %31, %c0_16, %c0_17] : memref<1x5x5x256xf32, #tpu.memory_space<vmem>>, vector<1x4x4x256xf32>
    %33 = vector.shape_cast %32 : vector<1x4x4x256xf32> to vector<4x4x256xf32>
    %c3 = arith.constant 3 : index
    %c0_18 = arith.constant 0 : index
    %34 = vector.load %arg6[%c3, %c0_18] : memref<9x256xf32, #tpu.memory_space<vmem>>, vector<1x256xf32>
    %35 = vector.shape_cast %34 : vector<1x256xf32> to vector<1x1x256xf32>
    %36 = vector.broadcast %35 : vector<1x1x256xf32> to vector<4x4x256xf32>
    %37 = arith.mulf %33, %36 : vector<4x4x256xf32>
    %38 = arith.addf %29, %37 : vector<4x4x256xf32>
    %c0_i32_19 = arith.constant 0 : i32
    %39 = arith.addi %1, %c0_i32_19 : i32
    %c0_20 = arith.constant 0 : index
    %40 = arith.index_cast %39 : i32 to index
    %c0_21 = arith.constant 0 : index
    %c0_22 = arith.constant 0 : index
    %41 = vector.load %arg5[%c0_20, %40, %c0_21, %c0_22] : memref<1x5x5x256xf32, #tpu.memory_space<vmem>>, vector<1x4x4x256xf32>
    %42 = vector.shape_cast %41 : vector<1x4x4x256xf32> to vector<4x4x256xf32>
    %c4 = arith.constant 4 : index
    %c0_23 = arith.constant 0 : index
    %43 = vector.load %arg6[%c4, %c0_23] : memref<9x256xf32, #tpu.memory_space<vmem>>, vector<1x256xf32>
    %44 = vector.shape_cast %43 : vector<1x256xf32> to vector<1x1x256xf32>
    %45 = vector.broadcast %44 : vector<1x1x256xf32> to vector<4x4x256xf32>
    %46 = arith.mulf %42, %45 : vector<4x4x256xf32>
    %47 = arith.addf %38, %46 : vector<4x4x256xf32>
    %c0_i32_24 = arith.constant 0 : i32
    %48 = arith.addi %1, %c0_i32_24 : i32
    %c0_25 = arith.constant 0 : index
    %49 = arith.index_cast %48 : i32 to index
    %c1_26 = arith.constant 1 : index
    %c0_27 = arith.constant 0 : index
    %50 = vector.load %arg4[%c0_25, %49, %c1_26, %c0_27] : memref<1x5x5x256xf32, #tpu.memory_space<vmem>>, vector<1x4x4x256xf32>
    %51 = vector.shape_cast %50 : vector<1x4x4x256xf32> to vector<4x4x256xf32>
    %c5 = arith.constant 5 : index
    %c0_28 = arith.constant 0 : index
    %52 = vector.load %arg6[%c5, %c0_28] : memref<9x256xf32, #tpu.memory_space<vmem>>, vector<1x256xf32>
    %53 = vector.shape_cast %52 : vector<1x256xf32> to vector<1x1x256xf32>
    %54 = vector.broadcast %53 : vector<1x1x256xf32> to vector<4x4x256xf32>
    %55 = arith.mulf %51, %54 : vector<4x4x256xf32>
    %56 = arith.addf %47, %55 : vector<4x4x256xf32>
    %c1_i32 = arith.constant 1 : i32
    %57 = arith.addi %1, %c1_i32 : i32
    %c0_29 = arith.constant 0 : index
    %58 = arith.index_cast %57 : i32 to index
    %c0_30 = arith.constant 0 : index
    %c0_31 = arith.constant 0 : index
    %59 = vector.load %arg2[%c0_29, %58, %c0_30, %c0_31] : memref<1x5x5x256xf32, #tpu.memory_space<vmem>>, vector<1x4x4x256xf32>
    %60 = vector.shape_cast %59 : vector<1x4x4x256xf32> to vector<4x4x256xf32>
    %c6 = arith.constant 6 : index
    %c0_32 = arith.constant 0 : index
    %61 = vector.load %arg6[%c6, %c0_32] : memref<9x256xf32, #tpu.memory_space<vmem>>, vector<1x256xf32>
    %62 = vector.shape_cast %61 : vector<1x256xf32> to vector<1x1x256xf32>
    %63 = vector.broadcast %62 : vector<1x1x256xf32> to vector<4x4x256xf32>
    %64 = arith.mulf %60, %63 : vector<4x4x256xf32>
    %65 = arith.addf %56, %64 : vector<4x4x256xf32>
    %c1_i32_33 = arith.constant 1 : i32
    %66 = arith.addi %1, %c1_i32_33 : i32
    %c0_34 = arith.constant 0 : index
    %67 = arith.index_cast %66 : i32 to index
    %c0_35 = arith.constant 0 : index
    %c0_36 = arith.constant 0 : index
    %68 = vector.load %arg3[%c0_34, %67, %c0_35, %c0_36] : memref<1x5x5x256xf32, #tpu.memory_space<vmem>>, vector<1x4x4x256xf32>
    %69 = vector.shape_cast %68 : vector<1x4x4x256xf32> to vector<4x4x256xf32>
    %c7 = arith.constant 7 : index
    %c0_37 = arith.constant 0 : index
    %70 = vector.load %arg6[%c7, %c0_37] : memref<9x256xf32, #tpu.memory_space<vmem>>, vector<1x256xf32>
    %71 = vector.shape_cast %70 : vector<1x256xf32> to vector<1x1x256xf32>
    %72 = vector.broadcast %71 : vector<1x1x256xf32> to vector<4x4x256xf32>
    %73 = arith.mulf %69, %72 : vector<4x4x256xf32>
    %74 = arith.addf %65, %73 : vector<4x4x256xf32>
    %c1_i32_38 = arith.constant 1 : i32
    %75 = arith.addi %1, %c1_i32_38 : i32
    %c0_39 = arith.constant 0 : index
    %76 = arith.index_cast %75 : i32 to index
    %c1_40 = arith.constant 1 : index
    %c0_41 = arith.constant 0 : index
    %77 = vector.load %arg2[%c0_39, %76, %c1_40, %c0_41] : memref<1x5x5x256xf32, #tpu.memory_space<vmem>>, vector<1x4x4x256xf32>
    %78 = vector.shape_cast %77 : vector<1x4x4x256xf32> to vector<4x4x256xf32>
    %c8 = arith.constant 8 : index
    %c0_42 = arith.constant 0 : index
    %79 = vector.load %arg6[%c8, %c0_42] : memref<9x256xf32, #tpu.memory_space<vmem>>, vector<1x256xf32>
    %80 = vector.shape_cast %79 : vector<1x256xf32> to vector<1x1x256xf32>
    %81 = vector.broadcast %80 : vector<1x1x256xf32> to vector<4x4x256xf32>
    %82 = arith.mulf %78, %81 : vector<4x4x256xf32>
    %83 = arith.addf %74, %82 : vector<4x4x256xf32>
    %84 = vector.shape_cast %83 : vector<4x4x256xf32> to vector<16x256xf32>
    %c0_43 = arith.constant 0 : index
    %c0_44 = arith.constant 0 : index
    %85 = vector.load %arg7[%c0_43, %c0_44] : memref<256x512xf32, #tpu.memory_space<vmem>>, vector<256x512xf32>
    %cst_45 = arith.constant dense<0.000000e+00> : vector<16x512xf32>
    %86 = tpu.matmul %84, %85, %cst_45 {dimension_numbers = #tpu.dot_dimension_numbers<[1], [0], [0], [1], [0, 0, 1, 1], [], []>} : vector<16x256xf32>, vector<256x512xf32>, vector<16x512xf32> -> vector<16x512xf32>
    %c0_46 = arith.constant 0 : index
    %c0_47 = arith.constant 0 : index
    %87 = vector.load %arg8[%c0_46, %c0_47] : memref<1x512xf32, #tpu.memory_space<vmem>>, vector<1x512xf32>
    %88 = vector.broadcast %87 : vector<1x512xf32> to vector<16x512xf32>
    %89 = arith.mulf %86, %88 : vector<16x512xf32>
    %c0_48 = arith.constant 0 : index
    %c0_49 = arith.constant 0 : index
    %90 = vector.load %arg9[%c0_48, %c0_49] : memref<1x512xf32, #tpu.memory_space<vmem>>, vector<1x512xf32>
    %91 = vector.broadcast %90 : vector<1x512xf32> to vector<16x512xf32>
    %92 = arith.addf %89, %91 : vector<16x512xf32>
    %cst_50 = arith.constant 0.000000e+00 : f32
    %93 = vector.broadcast %cst_50 : f32 to vector<16x512xf32>
    %94 = arith.maximumf %92, %93 : vector<16x512xf32>
    %95 = vector.shape_cast %94 : vector<16x512xf32> to vector<4x4x512xf32>
    %c0_51 = arith.constant 0 : index
    %c0_52 = arith.constant 0 : index
    %c0_53 = arith.constant 0 : index
    %c0_54 = arith.constant 0 : index
    %96 = vector.load %arg10[%c0_51, %c0_52, %c0_53, %c0_54] : memref<1x4x4x512xf32, #tpu.memory_space<vmem>>, vector<1x4x4x512xf32>
    %97 = vector.shape_cast %96 : vector<1x4x4x512xf32> to vector<4x4x512xf32>
    %98 = vector.shape_cast %95 : vector<4x4x512xf32> to vector<1x4x4x512xf32>
    tpu.vector_store %arg10[%c0_51, %c0_52, %c0_53, %c0_54], %98 {strides = array<i32>} : memref<1x4x4x512xf32, #tpu.memory_space<vmem>>, vector<1x4x4x512xf32>,
    return
  }
  func.func @transform_0(%arg0: i32, %arg1: i32) -> (i32, i32, i32, i32) {
    %c0_i32 = arith.constant 0 : i32
    %c0_i32_0 = arith.constant 0 : i32
    %c0_i32_1 = arith.constant 0 : i32
    %c0_i32_2 = arith.constant 0 : i32
    return %arg0, %c0_i32, %c0_i32_0, %c0_i32_1 : i32, i32, i32, i32
  }
  func.func @transform_1(%arg0: i32, %arg1: i32) -> (i32, i32, i32, i32) {
    %c0_i32 = arith.constant 0 : i32
    %c0_i32_0 = arith.constant 0 : i32
    %c0_i32_1 = arith.constant 0 : i32
    %c0_i32_2 = arith.constant 0 : i32
    return %arg0, %c0_i32, %c0_i32_0, %c0_i32_1 : i32, i32, i32, i32
  }
  func.func @transform_2(%arg0: i32, %arg1: i32) -> (i32, i32, i32, i32) {
    %c0_i32 = arith.constant 0 : i32
    %c0_i32_0 = arith.constant 0 : i32
    %c0_i32_1 = arith.constant 0 : i32
    %c0_i32_2 = arith.constant 0 : i32
    return %arg0, %c0_i32, %c0_i32_0, %c0_i32_1 : i32, i32, i32, i32
  }
  func.func @transform_3(%arg0: i32, %arg1: i32) -> (i32, i32, i32, i32) {
    %c0_i32 = arith.constant 0 : i32
    %c0_i32_0 = arith.constant 0 : i32
    %c0_i32_1 = arith.constant 0 : i32
    %c0_i32_2 = arith.constant 0 : i32
    return %arg0, %c0_i32, %c0_i32_0, %c0_i32_1 : i32, i32, i32, i32
  }
  func.func @transform_4(%arg0: i32, %arg1: i32) -> (i32, i32) {
    %c0_i32 = arith.constant 0 : i32
    %c0_i32_0 = arith.constant 0 : i32
    %c0_i32_1 = arith.constant 0 : i32
    return %c0_i32, %c0_i32_0 : i32, i32
  }
  func.func @transform_5(%arg0: i32, %arg1: i32) -> (i32, i32) {
    %c0_i32 = arith.constant 0 : i32
    %c0_i32_0 = arith.constant 0 : i32
    %c0_i32_1 = arith.constant 0 : i32
    return %c0_i32, %c0_i32_0 : i32, i32
  }
  func.func @transform_6(%arg0: i32, %arg1: i32) -> (i32, i32) {
    %c0_i32 = arith.constant 0 : i32
    %c0_i32_0 = arith.constant 0 : i32
    %c0_i32_1 = arith.constant 0 : i32
    return %c0_i32, %c0_i32_0 : i32, i32
  }
  func.func @transform_7(%arg0: i32, %arg1: i32) -> (i32, i32) {
    %c0_i32 = arith.constant 0 : i32
    %c0_i32_0 = arith.constant 0 : i32
    %c0_i32_1 = arith.constant 0 : i32
    return %c0_i32, %c0_i32_0 : i32, i32
  }
  func.func @transform_8(%arg0: i32, %arg1: i32) -> (i32, i32, i32, i32) {
    %c0_i32 = arith.constant 0 : i32
    %c0_i32_0 = arith.constant 0 : i32
    %c0_i32_1 = arith.constant 0 : i32
    return %arg0, %arg1, %c0_i32, %c0_i32_0 : i32, i32, i32, i32
  }
}

module attributes {stable_mosaic.version = 11 : i64} {
  func.func @_fc_kernel(%arg0: i32, %arg1: i32, %arg2: memref<2x2048xf32, #tpu.memory_space<vmem>>, %arg3: memref<2048x256xbf16, #tpu.memory_space<vmem>>, %arg4: memref<1x256xf32, #tpu.memory_space<vmem>>, %arg5: memref<2x256xf32, #tpu.memory_space<vmem>>, %arg6: memref<2x256xf32, #tpu.memory_space<vmem>>) attributes {dimension_semantics = [#tpu.dimension_semantics<parallel>, #tpu.dimension_semantics<arbitrary>], iteration_bounds = array<i64: 2, 4>, scalar_prefetch = 0 : i64, scratch_operands = 1 : i64, tpu.core_type = #tpu.core_type<tc>, window_params = [{transform_indices = @transform_0, window_bounds = array<i64: 2, 2048>}, {transform_indices = @transform_1, window_bounds = array<i64: 2048, 256>}, {transform_indices = @transform_2, window_bounds = array<i64: 1, 256>}, {transform_indices = @transform_3, window_bounds = array<i64: 2, 256>}]} {
    %c0_i32 = arith.constant 0 : i32
    %0 = arith.cmpi eq, %arg1, %c0_i32 : i32
    %1 = arith.extui %0 : i1 to i32
    %c0_i32_0 = arith.constant 0 : i32
    %2 = arith.cmpi ne, %1, %c0_i32_0 : i32
    scf.if %2 {
      %cst_9 = arith.constant 0.000000e+00 : f32
      %13 = vector.broadcast %cst_9 : f32 to vector<2x256xf32>
      %c0_10 = arith.constant 0 : index
      %c0_11 = arith.constant 0 : index
      %14 = vector.load %arg6[%c0_10, %c0_11] : memref<2x256xf32, #tpu.memory_space<vmem>>, vector<2x256xf32>
      tpu.vector_store %arg6[%c0_10, %c0_11], %13 {strides = array<i32>} : memref<2x256xf32, #tpu.memory_space<vmem>>, vector<2x256xf32>,
    } else {
    }
    %c0 = arith.constant 0 : index
    %c0_1 = arith.constant 0 : index
    %3 = vector.load %arg6[%c0, %c0_1] : memref<2x256xf32, #tpu.memory_space<vmem>>, vector<2x256xf32>
    %c0_2 = arith.constant 0 : index
    %c0_3 = arith.constant 0 : index
    %4 = vector.load %arg2[%c0_2, %c0_3] : memref<2x2048xf32, #tpu.memory_space<vmem>>, vector<2x2048xf32>
    %5 = arith.truncf %4 : vector<2x2048xf32> to vector<2x2048xbf16>
    %c0_4 = arith.constant 0 : index
    %c0_5 = arith.constant 0 : index
    %6 = vector.load %arg3[%c0_4, %c0_5] : memref<2048x256xbf16, #tpu.memory_space<vmem>>, vector<2048x256xbf16>
    %cst = arith.constant dense<0.000000e+00> : vector<2x256xf32>
    %7 = tpu.matmul %5, %6, %cst {dimension_numbers = #tpu.dot_dimension_numbers<[1], [0], [0], [1], [0, 0, 1, 1], [], []>} : vector<2x2048xbf16>, vector<2048x256xbf16>, vector<2x256xf32> -> vector<2x256xf32>
    %8 = arith.addf %3, %7 : vector<2x256xf32>
    %c0_6 = arith.constant 0 : index
    %c0_7 = arith.constant 0 : index
    %9 = vector.load %arg6[%c0_6, %c0_7] : memref<2x256xf32, #tpu.memory_space<vmem>>, vector<2x256xf32>
    tpu.vector_store %arg6[%c0_6, %c0_7], %8 {strides = array<i32>} : memref<2x256xf32, #tpu.memory_space<vmem>>, vector<2x256xf32>,
    %c3_i32 = arith.constant 3 : i32
    %10 = arith.cmpi eq, %arg1, %c3_i32 : i32
    %11 = arith.extui %10 : i1 to i32
    %c0_i32_8 = arith.constant 0 : i32
    %12 = arith.cmpi ne, %11, %c0_i32_8 : i32
    scf.if %12 {
      %c0_9 = arith.constant 0 : index
      %c0_10 = arith.constant 0 : index
      %13 = vector.load %arg6[%c0_9, %c0_10] : memref<2x256xf32, #tpu.memory_space<vmem>>, vector<2x256xf32>
      %c0_11 = arith.constant 0 : index
      %c0_12 = arith.constant 0 : index
      %14 = vector.load %arg4[%c0_11, %c0_12] : memref<1x256xf32, #tpu.memory_space<vmem>>, vector<1x256xf32>
      %15 = vector.broadcast %14 : vector<1x256xf32> to vector<2x256xf32>
      %16 = arith.addf %13, %15 : vector<2x256xf32>
      %c0_13 = arith.constant 0 : index
      %c0_14 = arith.constant 0 : index
      %17 = vector.load %arg5[%c0_13, %c0_14] : memref<2x256xf32, #tpu.memory_space<vmem>>, vector<2x256xf32>
      tpu.vector_store %arg5[%c0_13, %c0_14], %16 {strides = array<i32>} : memref<2x256xf32, #tpu.memory_space<vmem>>, vector<2x256xf32>,
    } else {
    }
    return
  }
  func.func @transform_0(%arg0: i32, %arg1: i32) -> (i32, i32) {
    %c0_i32 = arith.constant 0 : i32
    %c0_i32_0 = arith.constant 0 : i32
    return %c0_i32, %arg1 : i32, i32
  }
  func.func @transform_1(%arg0: i32, %arg1: i32) -> (i32, i32) {
    %c0_i32 = arith.constant 0 : i32
    return %arg1, %arg0 : i32, i32
  }
  func.func @transform_2(%arg0: i32, %arg1: i32) -> (i32, i32) {
    %c0_i32 = arith.constant 0 : i32
    %c0_i32_0 = arith.constant 0 : i32
    return %c0_i32, %arg0 : i32, i32
  }
  func.func @transform_3(%arg0: i32, %arg1: i32) -> (i32, i32) {
    %c0_i32 = arith.constant 0 : i32
    %c0_i32_0 = arith.constant 0 : i32
    return %c0_i32, %arg0 : i32, i32
  }
}

</mosaic_0001>

<bundles_post_ra>
// kernel: _lambda_.5
= control target key start
LH: loop header
LB: loop body
LE: loop exit
PB: predicated region body
PF: predicated region fallthrough
CT: control target
= control target key end

     0   :  { %9 = vsyncpa [#allocation3], 0  ;;  %s1412_s0 = inlined_call_operand.vmem [shape: f32[2048,27], index: 0, kind: input, shape index: {}]   ;;  %s1413_s1 = inlined_call_operand.vmem [shape: f32[27,64], index: 1, kind: input, shape index: {}]   ;;  %s1414_s2 = inlined_call_operand.hbm [shape: f32[1,64], index: 2, kind: input, shape index: {}]   ;;  %s1415_s3 = inlined_call_operand.hbm [shape: f32[1,64], index: 3, kind: input, shape index: {}]   ;;  %s1416_s4 = inlined_call_operand.vmem [shape: f32[2048,64], index: 4, kind: output, shape index: {}]  }
   0x1   :  { %10 = vsyncpa [#allocation5], 0  ;;  %s1096_s15 = smov 0  }
   0x2 LB: > { %s810_s16 = sadd.s32 4294967295, %s1066_s15   ;;  %p812_p0 = scmp.ge.s32.totalorder %s1066_s15, 1  ;;  %s1066_s15 = sphi %s1096_s15, %s16_s15  }
   0x3   : > { %p136_p1 = scmp.lt.s32.totalorder %s1066_s15, 9  ;;  %p1106_p2 = scmp.eq.s32.totalorder %s810_s16, 0 }
   0x4   : > { %s1068_s19 = smov [#allocation2]   ;;  %s1069_s21 = smov [#allocation4]  }
   0x5   : > { %s1420_s17 = scalar_select %p1106_p2, 1, 0 }
   0x6   : > { %p1110_p3 = pnand %p812_p0, %p136_p1  ;;  %s152_s20 = sshll.u32 %s1068_s19, 4  ;;  %s153_s20 = int_to_ptr.vmem [resolvable:$true] %s152_s20 }
   0x7   : > { %s163_s22 = sshll.u32 %s1069_s21, 4  ;;  %s996_s26 = scalar_lea.hbm %s1414_s2, 16  ;;  %s1122_s22 = int_to_ptr.vmem [resolvable:$true] %s163_s22 }
   0x8   : > { %s1421_s18 = scalar_select %p1110_p3, 1, 0 }
   0x9   : > { %p974_p4 = pneg %p1110_p3  ;;  %p997_p6 = scmp.ne.s32.totalorder %s1414_s2, %s996_s26 }
   0xa   : > { %p1003_p10 = scmp.lt.u32.totalorder %s996_s26, %s1414_s2 }
   0xb   : > { %p1118_p5 = pnand %p1106_p2, %p974_p4 }
   0xd   : > { %p998_p7 = pneg %p1118_p5 }
   0xf   : > { %p999_p8 = pnand %p998_p7, %p997_p6 }
  0x11   : > { %p1000_p9 = pneg %p999_p8 }
  0x13   : > { %p1005_p11 = pnand %p1003_p10, %p1000_p9 }
  0x15   : > { %1008 = shalt.err (!%p1005_p11)
}
  0x16   : > { %s1009_s5 = scalar_lea.vmem %s153_s20, 16  ;;  %s1016_s6 = scalar_lea.vmem %s153_s20, 32 }
  0x17   : > { %p1010_p12 = scmp.ne.s32.totalorder %s153_s20, %s1009_s5  ;;  %p1017_p1 = scmp.lt.s32.totalorder %s153_s20, %s153_s20 }
  0x18   : > { %p1018_p4 = scmp.lt.s32.totalorder %s1016_s6, %s1009_s5 }
  0x19   : > { %p1012_p13 = pnand %p1010_p12, %p998_p7 }
  0x1a   : > { %p1019_p2 = por %p1018_p4, %p1017_p1 }
  0x1b   : > { %p1013_p0 = pneg %p1012_p13 }
  0x1d   : > { %p1020_p3 = pnand %p1019_p2, %p1013_p0 }
  0x1f   : > { %1023 = shalt.err (!%p1020_p3)
}
  0x20   : > { %977 = dma.hbm_to_vmem [thread:$0]  (!%p1118_p5), %s1414_s2, 16, %s153_s20, [#allocation3]  }
  0x21   : > { %s1024_s11 = scalar_lea.hbm %s1415_s3, 16 }
  0x22   : > { %p1025_p6 = scmp.ne.s32.totalorder %s1415_s3, %s1024_s11  ;;  %p1031_p3 = scmp.lt.u32.totalorder %s1024_s11, %s1415_s3 }
  0x24   : > { %p1027_p8 = pnand %p1025_p6, %p998_p7 }
  0x26   : > { %p1028_p2 = pneg %p1027_p8 }
  0x28   : > { %p1033_p9 = pnand %p1031_p3, %p1028_p2 }
  0x2a   : > { %1036 = shalt.err (!%p1033_p9)
}
  0x2b   : > { %s1037_s20 = scalar_lea.vmem %s1122_s22, 16  ;;  %s1044_s21 = scalar_lea.vmem %s1122_s22, 32 }
  0x2c   : > { %p1038_p10 = scmp.ne.s32.totalorder %s1122_s22, %s1037_s20  ;;  %p1045_p13 = scmp.lt.s32.totalorder %s1122_s22, %s1122_s22 }
  0x2d   : > { %p1046_p0 = scmp.lt.s32.totalorder %s1044_s21, %s1037_s20 }
  0x2e   : > { %p1040_p11 = pnand %p1038_p10, %p998_p7 }
  0x2f   : > { %p1047_p1 = por %p1046_p0, %p1045_p13 }
  0x30   : > { %p1041_p12 = pneg %p1040_p11 }
  0x32   : > { %p1048_p4 = pnand %p1047_p1, %p1041_p12 }
  0x34   : > { %1051 = shalt.err (!%p1048_p4)
}
  0x35   : > { %980 = dma.hbm_to_vmem [thread:$0]  (!%p1118_p5), %s1415_s3, 16, %s1122_s22, [#allocation5]  }
  0x36   : > { %p1423_p6 = scmp.ne.s32.totalorder %s1421_s18, 0 }
  0x37   : > { %p1424_p7 = scmp.ne.s32.totalorder (!%p1423_p6), %s1420_s17, 0 }
  0x38   : > { %185 = sbr.rel (%p1423_p6) target bundleno = 326 (0x146), region = 36 }
  0x3f   : > { %1057 = dma.done.wait (%p1424_p7), [#allocation3], 16  }
  0x40   : > { %1059 = vsyncadd (%p1424_p7), [#allocation3], 4294967280 }
  0x41   : > { %1061 = dma.done.wait (%p1424_p7), [#allocation5], 16  }
  0x42   : > { %1063 = vsyncadd (%p1424_p7), [#allocation5], 4294967280  ;;  %s819_s23 = sshll.u32 %s810_s16, 5  ;;  %vm360_vm0 = vcmask 1042432   ;;  %vm263_vm1 = vcmask 220160   ;;  %v259_v0 = vld [vmem:[%s1413_s1] sm:$0xff] }
  0x43   : > { %p216_p8 = scmp.lt.s32.totalorder %s819_s23, 255  ;;  %v260_v1 = vld [vmem:[%s1413_s1 + $0x8] sm:$0xff]  ;;  %v261_v2 = vld [vmem:[%s1413_s1 + $0x10] sm:$0xff]  ;;  %v262_v4 = vld [vmem:[%s1413_s1 + $0x18] sm:$0x7]  ;;  %vm1070_vm2 = vmmov 1  }
  0x44   : > { %v952_v3 = vpack.c.bf16 %v260_v1, %v259_v0  ;;  %v956_v7 = vpack.c.bf16 %v262_v4, %v261_v2  ;;  %vm957_vm3 = vmpackc.low %vm360_vm0, %vm1070_vm2  ;;  %v1270_v38 = vld [vmem:[#allocation2] ss:$0 sm:$0xff]  ;;  %v1272_v40 = vld [vmem:[#allocation4] ss:$0 sm:$0xff]  ;;  %vm699_vm4 = vcmask 523264  }
  0x45   : > { %s1426_s23 = smov (!%p216_p8, %s819_s23), 255 }
  0x46   : > { %s820_s18 = sshll.u32 %s1426_s23, 3  ;;  %953 = vmatprep.subr.bf16.mxu0 %v952_v3  ;;  %962 = vmatprep.subr.bf16.mxu1 %v952_v3 }
  0x47   : > { %s1192_s27 = scalar_lea.vmem %s1412_s0, %s820_s18  ;;  %955 = vmatpush3.bf16.msra.mxu0 %v952_v3  ;;  %964 = vmatpush3.bf16.msra.mxu1 %v952_v3  ;;  %s1285_s10 = scalar_lea.vmem %s1416_s4, %s820_s18 }
  0x48   : > { %v227_v5 = vld [vmem:[%s1192_s27] sm:$0xff]  ;;  %958 = vmatprep.subr.msk.bf16.mxu0 %vm957_vm3, %v956_v7  ;;  %963 = vmatprep.subr.msk.bf16.mxu1 %vm957_vm3, %v956_v7  ;;  %v228_v8 = vld [vmem:[%s1192_s27 + $0x8] sm:$0xff]  ;;  %v229_v10 = vld [vmem:[%s1192_s27 + $0x10] sm:$0xff] }
  0x49   : > { %v243_v6 = vld [vmem:[%s1192_s27 + $0x80] sm:$0xff]  ;;  %904 = vmatprep.mubr.msk.f32.mxu0 %vm263_vm1, %v227_v5  ;;  %v244_v9 = vld [vmem:[%s1192_s27 + $0x88] sm:$0xff]  ;;  %v245_v11 = vld [vmem:[%s1192_s27 + $0x90] sm:$0xff] }
  0x4a   : > { %928 = vmatprep.mubr.msk.f32.mxu1 %vm263_vm1, %v243_v6  ;;  %v230_v12 = vld [vmem:[%s1192_s27 + $0x18] sm:$0xff]  ;;  %v231_v14 = vld [vmem:[%s1192_s27 + $0x20] sm:$0xff]  ;;  %v232_v16 = vld [vmem:[%s1192_s27 + $0x28] sm:$0xff] }
  0x4b   : > { %961 = vmatpush3.bf16.msk.msra.mxu0 %vm957_vm3, %v956_v7  ;;  %965 = vmatpush3.bf16.msk.msra.mxu1 %vm957_vm3, %v956_v7  ;;  %v246_v13 = vld [vmem:[%s1192_s27 + $0x98] sm:$0xff]  ;;  %v247_v15 = vld [vmem:[%s1192_s27 + $0xa0] sm:$0xff]  ;;  %v248_v17 = vld [vmem:[%s1192_s27 + $0xa8] sm:$0xff] }
  0x4c   : > { %v233_v18 = vld [vmem:[%s1192_s27 + $0x30] sm:$0xff]  ;;  %v234_v20 = vld [vmem:[%s1192_s27 + $0x38] sm:$0xff]  ;;  %v235_v22 = vld [vmem:[%s1192_s27 + $0x40] sm:$0xff] }
  0x4d   : > { %v249_v19 = vld [vmem:[%s1192_s27 + $0xb0] sm:$0xff]  ;;  %v250_v21 = vld [vmem:[%s1192_s27 + $0xb8] sm:$0xff]  ;;  %v251_v23 = vld [vmem:[%s1192_s27 + $0xc0] sm:$0xff] }
  0x4e   : > { %905 = vmatmul.mubr.msk.f32.vlgmr.msra.gmra.mrb[0].mxu0 %vm263_vm1, %v228_v8  ;;  %929 = vmatmul.mubr.msk.f32.vlgmr.msra.gmra.mrb[0].mxu1 %vm263_vm1, %v244_v9  ;;  %v236_v24 = vld [vmem:[%s1192_s27 + $0x48] sm:$0xff]  ;;  %v237_v26 = vld [vmem:[%s1192_s27 + $0x50] sm:$0xff]  ;;  %v238_v28 = vld [vmem:[%s1192_s27 + $0x58] sm:$0xff] }
  0x4f   : > { %907 = vmatprep.mubr.msk.f32.mxu0 %vm263_vm1, %v229_v10  ;;  %931 = vmatprep.mubr.msk.f32.mxu1 %vm263_vm1, %v245_v11  ;;  %v252_v25 = vld [vmem:[%s1192_s27 + $0xc8] sm:$0xff]  ;;  %v253_v27 = vld [vmem:[%s1192_s27 + $0xd0] sm:$0xff]  ;;  %v254_v29 = vld [vmem:[%s1192_s27 + $0xd8] sm:$0xff] }
  0x50   : > { %v239_v30 = vld [vmem:[%s1192_s27 + $0x60] sm:$0xff]  ;;  %v240_v32 = vld [vmem:[%s1192_s27 + $0x68] sm:$0xff]  ;;  %v241_v34 = vld [vmem:[%s1192_s27 + $0x70] sm:$0xff] }
  0x51   : > { %v255_v31 = vld [vmem:[%s1192_s27 + $0xe0] sm:$0xff]  ;;  %v256_v33 = vld [vmem:[%s1192_s27 + $0xe8] sm:$0xff]  ;;  %v257_v35 = vld [vmem:[%s1192_s27 + $0xf0] sm:$0xff] }
  0x52   : > { %908 = vmatmul.mubr.msk.f32.gmra.mrb[2].mxu0 %vm263_vm1, %v230_v12  ;;  %932 = vmatmul.mubr.msk.f32.gmra.mrb[2].mxu1 %vm263_vm1, %v246_v13  ;;  %v242_v36 = vld [vmem:[%s1192_s27 + $0x78] sm:$0xff] }
  0x53   : > { %910 = vmatprep.mubr.msk.f32.mxu0 %vm263_vm1, %v231_v14  ;;  %934 = vmatprep.mubr.msk.f32.mxu1 %vm263_vm1, %v247_v15  ;;  %v258_v37 = vld [vmem:[%s1192_s27 + $0xf8] sm:$0xff] }
  0x56   : > { %911 = vmatmul.mubr.msk.f32.gmra.mrb[4].mxu0 %vm263_vm1, %v232_v16  ;;  %935 = vmatmul.mubr.msk.f32.gmra.mrb[4].mxu1 %vm263_vm1, %v248_v17 }
  0x57   : > { %913 = vmatprep.mubr.msk.f32.mxu0 %vm263_vm1, %v233_v18  ;;  %937 = vmatprep.mubr.msk.f32.mxu1 %vm263_vm1, %v249_v19 }
  0x5a   : > { %914 = vmatmul.mubr.msk.f32.gmra.mrb[6].mxu0 %vm263_vm1, %v234_v20  ;;  %938 = vmatmul.mubr.msk.f32.gmra.mrb[6].mxu1 %vm263_vm1, %v250_v21 }
  0x5b   : > { %916 = vmatprep.mubr.msk.f32.mxu0 %vm263_vm1, %v235_v22  ;;  %940 = vmatprep.mubr.msk.f32.mxu1 %vm263_vm1, %v251_v23 }
  0x5e   : > { %917 = vmatmul.mubr.msk.f32.gmra.mrb[8].mxu0 %vm263_vm1, %v236_v24  ;;  %941 = vmatmul.mubr.msk.f32.gmra.mrb[8].mxu1 %vm263_vm1, %v252_v25 }
  0x5f   : > { %919 = vmatprep.mubr.msk.f32.mxu0 %vm263_vm1, %v237_v26  ;;  %943 = vmatprep.mubr.msk.f32.mxu1 %vm263_vm1, %v253_v27 }
  0x62   : > { %920 = vmatmul.mubr.msk.f32.gmra.mrb[10].mxu0 %vm263_vm1, %v238_v28  ;;  %944 = vmatmul.mubr.msk.f32.gmra.mrb[10].mxu1 %vm263_vm1, %v254_v29 }
  0x63   : > { %922 = vmatprep.mubr.msk.f32.mxu0 %vm263_vm1, %v239_v30  ;;  %946 = vmatprep.mubr.msk.f32.mxu1 %vm263_vm1, %v255_v31 }
  0x66   : > { %923 = vmatmul.mubr.msk.f32.gmra.mrb[12].mxu0 %vm263_vm1, %v240_v32  ;;  %947 = vmatmul.mubr.msk.f32.gmra.mrb[12].mxu1 %vm263_vm1, %v256_v33 }
  0x67   : > { %925 = vmatprep.mubr.msk.f32.mxu0 %vm263_vm1, %v241_v34  ;;  %949 = vmatprep.mubr.msk.f32.mxu1 %vm263_vm1, %v257_v35 }
  0x6a   : > { %926 = vmatmul.mubr.msk.f32.gmra.mrb[14].mxu0 %vm263_vm1, %v242_v36  ;;  %950 = vmatmul.mubr.msk.f32.gmra.mrb[14].mxu1 %vm263_vm1, %v258_v37 }
 0x121   : > { %v906_v39 = vpop.f32.mrb[0].mxu0  ;;  %v930_v41 = vpop.f32.mrb[0].mxu1 }
 0x122   : > { %v597_v42 = vmul.f32 %v906_v39, %v1270_v38  ;;  %v613_v43 = vmul.f32 %v930_v41, %v1270_v38  ;;  %v430_v44 = vpop.f32.mrb[1].mxu0  ;;  %v510_v45 = vpop.f32.mrb[1].mxu1 }
 0x123   : > { %v596_v46 = vmul.f32 %v1270_v38, %v430_v44  ;;  %v612_v47 = vmul.f32 %v1270_v38, %v510_v45 }
 0x124   : > { %v636_v48 = vadd.f32 %v1272_v40, %v597_v42  ;;  %v652_v49 = vadd.f32 %v1272_v40, %v613_v43 }
 0x125   : > { %v635_v50 = vadd.f32 %v1272_v40, %v596_v46  ;;  %v651_v51 = vadd.f32 %v1272_v40, %v612_v47  ;;  %v909_v52 = vpop.f32.mrb[2].mxu0  ;;  %v933_v53 = vpop.f32.mrb[2].mxu1 }
 0x126   : > { %v668_v54 = vmax.f32 %v636_v48, 0.0  ;;  %v684_v55 = vmax.f32 %v652_v49, 0.0  ;;  %v599_v56 = vmul.f32 %v909_v52, %v1270_v38  ;;  %v615_v57 = vmul.f32 %v933_v53, %v1270_v38  ;;  %v440_v58 = vpop.f32.mrb[3].mxu0  ;;  %v520_v59 = vpop.f32.mrb[3].mxu1 }
 0x127   : > { %v667_v60 = vmax.f32 %v635_v50, 0.0  ;;  %v683_v61 = vmax.f32 %v651_v51, 0.0  ;;  %v598_v62 = vmul.f32 %v1270_v38, %v440_v58  ;;  %v614_v63 = vmul.f32 %v1270_v38, %v520_v59 }
 0x128   : > { %701 = vst.msk [vmem:[%s1285_s10 + $0x8] sm:$0xff] %vm699_vm4, %v668_v54  ;;  %717 = vst.msk [vmem:[%s1285_s10 + $0x88] sm:$0xff] %vm699_vm4, %v684_v55  ;;  %v638_v0 = vadd.f32 %v1272_v40, %v599_v56  ;;  %v654_v1 = vadd.f32 %v1272_v40, %v615_v57 }
 0x129   : > { %700 = vst.msk [vmem:[%s1285_s10] sm:$0xff] %vm699_vm4, %v667_v60  ;;  %716 = vst.msk [vmem:[%s1285_s10 + $0x80] sm:$0xff] %vm699_vm4, %v683_v61  ;;  %v637_v2 = vadd.f32 %v1272_v40, %v598_v62  ;;  %v653_v3 = vadd.f32 %v1272_v40, %v614_v63  ;;  %v912_v4 = vpop.f32.mrb[4].mxu0  ;;  %v936_v5 = vpop.f32.mrb[4].mxu1 }
 0x12a   : > { %v670_v6 = vmax.f32 %v638_v0, 0.0  ;;  %v686_v7 = vmax.f32 %v654_v1, 0.0  ;;  %v601_v8 = vmul.f32 %v912_v4, %v1270_v38  ;;  %v617_v9 = vmul.f32 %v936_v5, %v1270_v38  ;;  %v450_v10 = vpop.f32.mrb[5].mxu0  ;;  %v530_v11 = vpop.f32.mrb[5].mxu1 }
 0x12b   : > { %v669_v12 = vmax.f32 %v637_v2, 0.0  ;;  %v685_v13 = vmax.f32 %v653_v3, 0.0  ;;  %v600_v14 = vmul.f32 %v1270_v38, %v450_v10  ;;  %v616_v15 = vmul.f32 %v1270_v38, %v530_v11 }
 0x12c   : > { %703 = vst.msk [vmem:[%s1285_s10 + $0x18] sm:$0xff] %vm699_vm4, %v670_v6  ;;  %719 = vst.msk [vmem:[%s1285_s10 + $0x98] sm:$0xff] %vm699_vm4, %v686_v7  ;;  %v640_v16 = vadd.f32 %v1272_v40, %v601_v8  ;;  %v656_v17 = vadd.f32 %v1272_v40, %v617_v9 }
 0x12d   : > { %702 = vst.msk [vmem:[%s1285_s10 + $0x10] sm:$0xff] %vm699_vm4, %v669_v12  ;;  %718 = vst.msk [vmem:[%s1285_s10 + $0x90] sm:$0xff] %vm699_vm4, %v685_v13  ;;  %v639_v18 = vadd.f32 %v1272_v40, %v600_v14  ;;  %v655_v19 = vadd.f32 %v1272_v40, %v616_v15  ;;  %v915_v20 = vpop.f32.mrb[6].mxu0  ;;  %v939_v21 = vpop.f32.mrb[6].mxu1 }
 0x12e   : > { %v672_v22 = vmax.f32 %v640_v16, 0.0  ;;  %v688_v23 = vmax.f32 %v656_v17, 0.0  ;;  %v603_v24 = vmul.f32 %v915_v20, %v1270_v38  ;;  %v619_v25 = vmul.f32 %v939_v21, %v1270_v38  ;;  %v460_v26 = vpop.f32.mrb[7].mxu0  ;;  %v540_v27 = vpop.f32.mrb[7].mxu1 }
 0x12f   : > { %v671_v28 = vmax.f32 %v639_v18, 0.0  ;;  %v687_v29 = vmax.f32 %v655_v19, 0.0  ;;  %v602_v30 = vmul.f32 %v1270_v38, %v460_v26  ;;  %v618_v31 = vmul.f32 %v1270_v38, %v540_v27 }
 0x130   : > { %705 = vst.msk [vmem:[%s1285_s10 + $0x28] sm:$0xff] %vm699_vm4, %v672_v22  ;;  %721 = vst.msk [vmem:[%s1285_s10 + $0xa8] sm:$0xff] %vm699_vm4, %v688_v23  ;;  %v642_v32 = vadd.f32 %v1272_v40, %v603_v24  ;;  %v658_v33 = vadd.f32 %v1272_v40, %v619_v25 }
 0x131   : > { %704 = vst.msk [vmem:[%s1285_s10 + $0x20] sm:$0xff] %vm699_vm4, %v671_v28  ;;  %720 = vst.msk [vmem:[%s1285_s10 + $0xa0] sm:$0xff] %vm699_vm4, %v687_v29  ;;  %v641_v34 = vadd.f32 %v1272_v40, %v602_v30  ;;  %v657_v35 = vadd.f32 %v1272_v40, %v618_v31  ;;  %v918_v36 = vpop.f32.mrb[8].mxu0  ;;  %v942_v37 = vpop.f32.mrb[8].mxu1 }
 0x132   : > { %v674_v39 = vmax.f32 %v642_v32, 0.0  ;;  %v690_v41 = vmax.f32 %v658_v33, 0.0  ;;  %v605_v42 = vmul.f32 %v918_v36, %v1270_v38  ;;  %v621_v43 = vmul.f32 %v942_v37, %v1270_v38  ;;  %v470_v44 = vpop.f32.mrb[9].mxu0  ;;  %v550_v45 = vpop.f32.mrb[9].mxu1 }
 0x133   : > { %v673_v46 = vmax.f32 %v641_v34, 0.0  ;;  %v689_v47 = vmax.f32 %v657_v35, 0.0  ;;  %v604_v48 = vmul.f32 %v1270_v38, %v470_v44  ;;  %v620_v49 = vmul.f32 %v1270_v38, %v550_v45 }
 0x134   : > { %707 = vst.msk [vmem:[%s1285_s10 + $0x38] sm:$0xff] %vm699_vm4, %v674_v39  ;;  %723 = vst.msk [vmem:[%s1285_s10 + $0xb8] sm:$0xff] %vm699_vm4, %v690_v41  ;;  %v644_v50 = vadd.f32 %v1272_v40, %v605_v42  ;;  %v660_v51 = vadd.f32 %v1272_v40, %v621_v43 }
 0x135   : > { %706 = vst.msk [vmem:[%s1285_s10 + $0x30] sm:$0xff] %vm699_vm4, %v673_v46  ;;  %722 = vst.msk [vmem:[%s1285_s10 + $0xb0] sm:$0xff] %vm699_vm4, %v689_v47  ;;  %v643_v52 = vadd.f32 %v1272_v40, %v604_v48  ;;  %v659_v53 = vadd.f32 %v1272_v40, %v620_v49  ;;  %v921_v54 = vpop.f32.mrb[10].mxu0  ;;  %v945_v55 = vpop.f32.mrb[10].mxu1 }
 0x136   : > { %v676_v56 = vmax.f32 %v644_v50, 0.0  ;;  %v692_v57 = vmax.f32 %v660_v51, 0.0  ;;  %v607_v58 = vmul.f32 %v921_v54, %v1270_v38  ;;  %v623_v59 = vmul.f32 %v945_v55, %v1270_v38  ;;  %v480_v60 = vpop.f32.mrb[11].mxu0  ;;  %v560_v61 = vpop.f32.mrb[11].mxu1 }
 0x137   : > { %v675_v62 = vmax.f32 %v643_v52, 0.0  ;;  %v691_v63 = vmax.f32 %v659_v53, 0.0  ;;  %v606_v0 = vmul.f32 %v1270_v38, %v480_v60  ;;  %v622_v1 = vmul.f32 %v1270_v38, %v560_v61 }
 0x138   : > { %709 = vst.msk [vmem:[%s1285_s10 + $0x48] sm:$0xff] %vm699_vm4, %v676_v56  ;;  %725 = vst.msk [vmem:[%s1285_s10 + $0xc8] sm:$0xff] %vm699_vm4, %v692_v57  ;;  %v646_v2 = vadd.f32 %v1272_v40, %v607_v58  ;;  %v662_v3 = vadd.f32 %v1272_v40, %v623_v59 }
 0x139   : > { %708 = vst.msk [vmem:[%s1285_s10 + $0x40] sm:$0xff] %vm699_vm4, %v675_v62  ;;  %724 = vst.msk [vmem:[%s1285_s10 + $0xc0] sm:$0xff] %vm699_vm4, %v691_v63  ;;  %v645_v4 = vadd.f32 %v1272_v40, %v606_v0  ;;  %v661_v5 = vadd.f32 %v1272_v40, %v622_v1  ;;  %v924_v6 = vpop.f32.mrb[12].mxu0  ;;  %v948_v7 = vpop.f32.mrb[12].mxu1 }
 0x13a   : > { %v678_v8 = vmax.f32 %v646_v2, 0.0  ;;  %v694_v9 = vmax.f32 %v662_v3, 0.0  ;;  %v609_v10 = vmul.f32 %v924_v6, %v1270_v38  ;;  %v625_v11 = vmul.f32 %v948_v7, %v1270_v38  ;;  %v490_v12 = vpop.f32.mrb[13].mxu0  ;;  %v570_v13 = vpop.f32.mrb[13].mxu1 }
 0x13b   : > { %v677_v14 = vmax.f32 %v645_v4, 0.0  ;;  %v693_v15 = vmax.f32 %v661_v5, 0.0  ;;  %v608_v16 = vmul.f32 %v1270_v38, %v490_v12  ;;  %v624_v17 = vmul.f32 %v1270_v38, %v570_v13 }
 0x13c   : > { %711 = vst.msk [vmem:[%s1285_s10 + $0x58] sm:$0xff] %vm699_vm4, %v678_v8  ;;  %727 = vst.msk [vmem:[%s1285_s10 + $0xd8] sm:$0xff] %vm699_vm4, %v694_v9  ;;  %v648_v18 = vadd.f32 %v1272_v40, %v609_v10  ;;  %v664_v19 = vadd.f32 %v1272_v40, %v625_v11 }
 0x13d   : > { %710 = vst.msk [vmem:[%s1285_s10 + $0x50] sm:$0xff] %vm699_vm4, %v677_v14  ;;  %726 = vst.msk [vmem:[%s1285_s10 + $0xd0] sm:$0xff] %vm699_vm4, %v693_v15  ;;  %v647_v20 = vadd.f32 %v1272_v40, %v608_v16  ;;  %v663_v21 = vadd.f32 %v1272_v40, %v624_v17  ;;  %v927_v22 = vpop.f32.mrb[14].mxu0  ;;  %v951_v23 = vpop.f32.mrb[14].mxu1 }
 0x13e   : > { %v680_v24 = vmax.f32 %v648_v18, 0.0  ;;  %v696_v25 = vmax.f32 %v664_v19, 0.0  ;;  %v611_v26 = vmul.f32 %v927_v22, %v1270_v38  ;;  %v627_v27 = vmul.f32 %v951_v23, %v1270_v38  ;;  %v500_v28 = vpop.f32.mrb[15].mxu0  ;;  %v580_v29 = vpop.f32.mrb[15].mxu1 }
 0x13f   : > { %v679_v30 = vmax.f32 %v647_v20, 0.0  ;;  %v695_v31 = vmax.f32 %v663_v21, 0.0  ;;  %v610_v32 = vmul.f32 %v1270_v38, %v500_v28  ;;  %v626_v33 = vmul.f32 %v1270_v38, %v580_v29 }
 0x140   : > { %713 = vst.msk [vmem:[%s1285_s10 + $0x68] sm:$0xff] %vm699_vm4, %v680_v24  ;;  %729 = vst.msk [vmem:[%s1285_s10 + $0xe8] sm:$0xff] %vm699_vm4, %v696_v25  ;;  %v650_v34 = vadd.f32 %v1272_v40, %v611_v26  ;;  %v666_v35 = vadd.f32 %v1272_v40, %v627_v27 }
 0x141   : > { %712 = vst.msk [vmem:[%s1285_s10 + $0x60] sm:$0xff] %vm699_vm4, %v679_v30  ;;  %728 = vst.msk [vmem:[%s1285_s10 + $0xe0] sm:$0xff] %vm699_vm4, %v695_v31  ;;  %v649_v36 = vadd.f32 %v1272_v40, %v610_v32  ;;  %v665_v37 = vadd.f32 %v1272_v40, %v626_v33 }
 0x142   : > { %v682_v39 = vmax.f32 %v650_v34, 0.0  ;;  %v698_v41 = vmax.f32 %v666_v35, 0.0 }
 0x143   : > { %v681_v38 = vmax.f32 %v649_v36, 0.0  ;;  %v697_v42 = vmax.f32 %v665_v37, 0.0 }
 0x144   : > { %715 = vst.msk [vmem:[%s1285_s10 + $0x78] sm:$0xff] %vm699_vm4, %v682_v39  ;;  %731 = vst.msk [vmem:[%s1285_s10 + $0xf8] sm:$0xff] %vm699_vm4, %v698_v41 }
 0x145   : > { %714 = vst.msk [vmem:[%s1285_s10 + $0x70] sm:$0xff] %vm699_vm4, %v681_v38  ;;  %730 = vst.msk [vmem:[%s1285_s10 + $0xf0] sm:$0xff] %vm699_vm4, %v697_v42 }
 0x146 PF: > { %s16_s15 = sadd.s32 1, %s1066_s15  }
 0x147   : > { %p13_p5 = scmp.ge.s32.totalorder %s16_s15, 10  }
 0x149   :  { %15 = sbr.rel (!%p13_p5) target bundleno = 2 (0x2), region = 75 }
 0x150   :  { %754 = vsyncpa [#allocation3], 1 }
 0x151   :  { %756 = vsyncpa [#allocation3 + $0x1], 1 }
 0x152   :  { %757 = vsyncpa [#allocation5], 1 }

// kernel: _lambda_.6
= control target key start
LH: loop header
LB: loop body
LE: loop exit
PB: predicated region body
PF: predicated region fallthrough
CT: control target
= control target key end

     0   :  { %s1610_s27 = smov 0   ;;  %s1612_s28 = smov 0   ;;  %s2133_s0 = inlined_call_operand.vmem [shape: f32[2,17,17,64], index: 0, kind: input, shape index: {}]   ;;  %s2134_s1 = inlined_call_operand.vmem [shape: f32[2,17,17,64], index: 1, kind: input, shape index: {}]   ;;  %s2135_s2 = inlined_call_operand.vmem [shape: f32[2,17,17,64], index: 2, kind: input, shape index: {}]   ;;  %s2136_s3 = inlined_call_operand.vmem [shape: f32[2,17,17,64], index: 3, kind: input, shape index: {}]   ;;  %s2137_s4 = inlined_call_operand.vmem [shape: f32[9,64], index: 4, kind: input, shape index: {}]   ;;  %s2138_s5 = inlined_call_operand.vmem [shape: f32[64,128], index: 5, kind: input, shape index: {}]   ;;  %s2139_s6 = inlined_call_operand.vmem [shape: f32[1,128], index: 6, kind: input, shape index: {}]   ;;  %s2140_s7 = inlined_call_operand.vmem [shape: f32[1,128], index: 7, kind: input, shape index: {}]   ;;  %s2141_s8 = inlined_call_operand.vmem [shape: f32[2,16,16,128], index: 8, kind: output, shape index: {}]  }
   0x1   :  { %s1614_s29 = smov 0   ;;  %s1616_s30 = smov 0  }
   0x2   :  { %s1618_s9 = smov 0  }
   0x3 LB: > { %2143 = sst [smem:[#allocation2_spill]] %s1559_s30  ;;  %s27_s10 = sadd.s32 1, %s1555_s29  ;;  %s1563_s9 = sphi %s1618_s9, %s18_s9   ;;  %s1559_s30 = sphi %s1616_s30, %s2148_s30   ;;  %s1555_s29 = sphi %s1614_s29, %s2150_s29   ;;  %s1551_s28 = sphi %s1612_s28, %s2146_s28   ;;  %s1547_s27 = sphi %s1610_s27, %s2149_s27  }
   0x4   : > { %s30_s11 = sadd.s32 1, %s1559_s30  ;;  %p28_p0 = scmp.ge.s32.totalorder %s27_s10, 2 }
   0x5   : > { %p1304_p1 = scmp.ge.s32.totalorder %s1563_s9, 1  ;;  %p306_p2 = scmp.lt.s32.totalorder %s1563_s9, 5 }
   0x6   : > { %s2152_s10 = smov (%p28_p0, %s27_s10), 0  ;;  %s2154_s11 = smov (!%p28_p0, %s30_s11), %s1559_s30 }
   0x7   : > { %2144 = sst [smem:[#allocation3_spill]] %s2152_s10  ;;  %p307_p3 = pnand %p1304_p1, %p306_p2 }
   0x8   : > { %p32_p4 = scmp.ge.s32.totalorder %s2154_s11, 2  ;;  %v878_v0 = vld [vmem:[%s2138_s5] sm:$0xff] (!%p307_p3)  ;;  %v879_v1 = vld [vmem:[%s2138_s5 + $0x8] sm:$0xff] (!%p307_p3)  ;;  %v880_v2 = vld [vmem:[%s2138_s5 + $0x10] sm:$0xff] (!%p307_p3)  ;;  %p360_p5 = scmp.lt.s32.totalorder (!%p307_p3), %s1551_s28, 1  ;;  %vm886_vm0 = vcmask (!%p307_p3), 523264  }
   0x9   : > { %310 = sbr.rel (%p307_p3) target bundleno = 321 (0x141), region = 52  ;;  %v1460_v3 = vpack.c.bf16 (!%p307_p3), %v879_v1, %v878_v0  ;;  %v881_v4 = vld [vmem:[%s2138_s5 + $0x18] sm:$0xff] (!%p307_p3)  ;;  %v882_v6 = vld [vmem:[%s2138_s5 + $0x20] sm:$0xff] (!%p307_p3)  ;;  %v883_v7 = vld [vmem:[%s2138_s5 + $0x28] sm:$0xff] (!%p307_p3)  ;;  %s1309_s15 = sshll.u32 (!%p307_p3), %s1547_s27, 3 }
   0xa   : > { %s2156_s11 = smov (%p32_p4, %s2154_s11), 0  ;;  %v1464_v5 = vpack.c.bf16 (!%p307_p3), %v881_v4, %v880_v2  ;;  %s1314_s24 = smul.u32 (!%p307_p3), 192, %s1547_s27  ;;  %v1468_v8 = vpack.c.bf16 (!%p307_p3), %v883_v7, %v882_v6  ;;  %v884_v9 = vld [vmem:[%s2138_s5 + $0x30] sm:$0xff] (!%p307_p3)  ;;  %v885_v10 = vld [vmem:[%s2138_s5 + $0x38] sm:$0xff] (!%p307_p3)  ;;  %v1685_v11 = vld [vmem:[%s2137_s4] ss:$0 sm:$0xff] (!%p307_p3) }
   0xb   : > { %2145 = sst [smem:[#allocation4_spill]] %s2156_s11  ;;  %1461 = vmatprep.subr.bf16.mxu0 (!%p307_p3), %v1460_v3  ;;  %1476 = vmatprep.subr.bf16.mxu1 (!%p307_p3), %v1460_v3  ;;  %v1690_v12 = vld [vmem:[%s2137_s4 + $0x1] ss:$0 sm:$0xff] (!%p307_p3)  ;;  %v1695_v13 = vld [vmem:[%s2137_s4 + $0x2] ss:$0 sm:$0xff] (!%p307_p3)  ;;  %v1472_v15 = vpack.c.bf16 (!%p307_p3), %v885_v10, %v884_v9  ;;  %p383_p6 = scmp.lt.s32.totalorder (!%p307_p3), %s1309_s15, 15 }
   0xc   : > { %1463 = vmatpush3.bf16.msra.mxu0 (!%p307_p3), %v1460_v3  ;;  %1480 = vmatpush3.bf16.msra.mxu1 (!%p307_p3), %v1460_v3  ;;  %v1704_v14 = vld [vmem:[%s2137_s4 + $0x3] ss:$0 sm:$0xff] (!%p307_p3)  ;;  %v1716_v19 = vld [vmem:[%s2137_s4 + $0x4] ss:$0 sm:$0xff] (!%p307_p3)  ;;  %v1721_v20 = vld [vmem:[%s2137_s4 + $0x5] ss:$0 sm:$0xff] (!%p307_p3) }
   0xd   : > { %1465 = vmatprep.subr.bf16.mxu0 (!%p307_p3), %v1464_v5  ;;  %1477 = vmatprep.subr.bf16.mxu1 (!%p307_p3), %v1464_v5  ;;  %v1730_v25 = vld [vmem:[%s2137_s4 + $0x6] ss:$0 sm:$0xff] (!%p307_p3)  ;;  %v1735_v26 = vld [vmem:[%s2137_s4 + $0x7] ss:$0 sm:$0xff] (!%p307_p3)  ;;  %v1742_v29 = vld [vmem:[%s2137_s4 + $0x8] ss:$0 sm:$0xff] (!%p307_p3) }
  0x10   : > { %s2158_s28 = smov (!%p360_p5, %s1551_s28), 1  ;;  %1467 = vmatpush3.bf16.msra.mxu0 %v1464_v5  ;;  %1481 = vmatpush3.bf16.msra.mxu1 %v1464_v5  ;;  %s2160_s15 = smov (!%p383_p6, %s1309_s15), 15 }
  0x11   : > { %s1484_s25 = smul.u32 408, %s2158_s28  ;;  %1469 = vmatprep.subr.bf16.mxu0 %v1468_v8  ;;  %1478 = vmatprep.subr.bf16.mxu1 %v1468_v8  ;;  %s1310_s16 = sshll.u32 %s2160_s15, 1 }
  0x13   : > { %s364_s17 = scalar_lea.vmem %s2133_s0, %s1484_s25  ;;  %s369_s20 = scalar_lea.vmem %s2134_s1, %s1484_s25 }
  0x14   : > { %s374_s23 = scalar_lea.vmem %s2135_s2, %s1484_s25  ;;  %s379_s26 = scalar_lea.vmem %s2136_s3, %s1484_s25  ;;  %1471 = vmatpush3.bf16.msra.mxu0 %v1468_v8  ;;  %1482 = vmatpush3.bf16.msra.mxu1 %v1468_v8 }
  0x15   : > { %s1697_s18 = scalar_lea.vmem %s364_s17, %s1314_s24  ;;  %s1699_s10 = scalar_lea.vmem %s369_s20, %s1314_s24  ;;  %1473 = vmatprep.subr.bf16.mxu0 %v1472_v15  ;;  %1479 = vmatprep.subr.bf16.mxu1 %v1472_v15 }
  0x16   : > { %v394_v16 = vld [vmem:[%s1697_s18] sm:$0xff]  ;;  %s1709_s25 = scalar_lea.vmem %s374_s23, %s1314_s24  ;;  %s1711_s17 = scalar_lea.vmem %s379_s26, %s1314_s24  ;;  %v1755_v35 = vld [vmem:[%s1697_s18 + $0x18] sm:$0xff]  ;;  %v395_v51 = vld [vmem:[%s1697_s18 + $0x8] sm:$0xff] }
  0x17   : > { %v448_v17 = vld [vmem:[%s1699_s10] sm:$0xff]  ;;  %v415_v21 = vmul.f32 %v1685_v11, %v394_v16  ;;  %v1758_v36 = vld [vmem:[%s1699_s10 + $0x18] sm:$0xff]  ;;  %v739_v47 = vmul.f32 %v1730_v25, %v1755_v35  ;;  %v449_v52 = vld [vmem:[%s1699_s10 + $0x8] sm:$0xff]  ;;  %v416_v58 = vmul.f32 %v1685_v11, %v395_v51 }
  0x18   : > { %v501_v18 = vld [vmem:[%s1697_s18 + $0x1] sm:$0xff]  ;;  %v469_v22 = vmul.f32 %v1690_v12, %v448_v17  ;;  %v1768_v43 = vld [vmem:[%s1697_s18 + $0x19] sm:$0xff]  ;;  %v793_v48 = vmul.f32 %v1735_v26, %v1758_v36  ;;  %v502_v53 = vld [vmem:[%s1697_s18 + $0x9] sm:$0xff]  ;;  %1475 = vmatpush3.bf16.msra.mxu0 %v1472_v15  ;;  %1483 = vmatpush3.bf16.msra.mxu1 %v1472_v15  ;;  %v470_v63 = vmul.f32 %v1690_v12, %v449_v52 }
  0x19   : > { %v522_v23 = vmul.f32 %v1695_v13, %v501_v18  ;;  %v555_v24 = vld [vmem:[%s1709_s25] sm:$0xff]  ;;  %v846_v55 = vmul.f32 %v1742_v29, %v1768_v43  ;;  %v1785_v56 = vld [vmem:[%s1697_s18 + $0x78] sm:$0xff]  ;;  %v556_v59 = vld [vmem:[%s1709_s25 + $0x8] sm:$0xff]  ;;  %v523_v0 = vmul.f32 %v1695_v13, %v502_v53 }
  0x1a   : > { %v609_v27 = vld [vmem:[%s1711_s17] sm:$0xff]  ;;  %v485_v30 = vadd.f32 %v469_v22, %v415_v21  ;;  %v576_v31 = vmul.f32 %v1704_v14, %v555_v24  ;;  %v1788_v57 = vld [vmem:[%s1699_s10 + $0x78] sm:$0xff]  ;;  %v610_v1 = vld [vmem:[%s1711_s17 + $0x8] sm:$0xff]  ;;  %v747_v5 = vmul.f32 %v1730_v25, %v1785_v56  ;;  %v486_v16 = vadd.f32 %v470_v63, %v416_v58 }
  0x1b   : > { %v662_v28 = vld [vmem:[%s1709_s25 + $0x1] sm:$0xff]  ;;  %v630_v41 = vmul.f32 %v1716_v19, %v609_v27  ;;  %v1794_v62 = vld [vmem:[%s1697_s18 + $0x79] sm:$0xff]  ;;  %v663_v2 = vld [vmem:[%s1709_s25 + $0x9] sm:$0xff]  ;;  %v801_v6 = vmul.f32 %v1735_v26, %v1788_v57  ;;  %v577_v17 = vmul.f32 %v1704_v14, %v556_v59  ;;  %v471_v58 = vmul.f32 %v1758_v36, %v1690_v12 }
  0x1c   : > { %v1746_v32 = vld [vmem:[%s1697_s18 + $0x60] sm:$0xff]  ;;  %v538_v40 = vadd.f32 %v522_v23, %v485_v30  ;;  %v683_v42 = vmul.f32 %v1721_v20, %v662_v28  ;;  %v1806_v7 = vld [vmem:[%s1697_s18 + $0x68] sm:$0xff]  ;;  %v854_v15 = vmul.f32 %v1742_v29, %v1794_v62  ;;  %v539_v30 = vadd.f32 %v523_v0, %v486_v16  ;;  %v611_v0 = vld [vmem:[%s1711_s17 + $0x18] sm:$0xff] }
  0x1d   : > { %v1749_v33 = vld [vmem:[%s1699_s10 + $0x60] sm:$0xff]  ;;  %v423_v37 = vmul.f32 %v1685_v11, %v1746_v32  ;;  %v1809_v8 = vld [vmem:[%s1699_s10 + $0x68] sm:$0xff]  ;;  %v424_v22 = vmul.f32 %v1685_v11, %v1806_v7  ;;  %v524_v63 = vmul.f32 %v1768_v43, %v1695_v13 }
  0x1e   : > { %v1752_v34 = vld [vmem:[%s1697_s18 + $0x61] sm:$0xff]  ;;  %v477_v38 = vmul.f32 %v1690_v12, %v1749_v33  ;;  %v592_v54 = vadd.f32 %v576_v31, %v538_v40  ;;  %v1812_v9 = vld [vmem:[%s1697_s18 + $0x69] sm:$0xff]  ;;  %v478_v23 = vmul.f32 %v1690_v12, %v1809_v8  ;;  %v631_v31 = vmul.f32 %v1716_v19, %v610_v1 }
  0x1f   : > { %v563_v39 = vld [vmem:[%s1709_s25 + $0x60] sm:$0xff]  ;;  %v530_v44 = vmul.f32 %v1695_v13, %v1752_v34  ;;  %v564_v18 = vld [vmem:[%s1709_s25 + $0x68] sm:$0xff]  ;;  %v531_v24 = vmul.f32 %v1695_v13, %v1812_v9 }
  0x20   : > { %v617_v45 = vld [vmem:[%s1711_s17 + $0x60] sm:$0xff]  ;;  %v493_v49 = vadd.f32 %v477_v38, %v423_v37  ;;  %v584_v50 = vmul.f32 %v1704_v14, %v563_v39  ;;  %v646_v3 = vadd.f32 %v630_v41, %v592_v54  ;;  %v618_v27 = vld [vmem:[%s1711_s17 + $0x68] sm:$0xff]  ;;  %v684_v37 = vmul.f32 %v1721_v20, %v663_v2 }
  0x21   : > { %v670_v46 = vld [vmem:[%s1709_s25 + $0x61] sm:$0xff]  ;;  %v638_v61 = vmul.f32 %v1716_v19, %v617_v45  ;;  %v671_v45 = vld [vmem:[%s1709_s25 + $0x69] sm:$0xff]  ;;  %v639_v51 = vmul.f32 %v1716_v19, %v618_v27  ;;  %v417_v54 = vmul.f32 %v1755_v35, %v1685_v11  ;;  %v425_v27 = vmul.f32 %v1785_v56, %v1685_v11 }
  0x22   : > { %v546_v60 = vadd.f32 %v530_v44, %v493_v49  ;;  %v691_v4 = vmul.f32 %v1721_v20, %v670_v46  ;;  %v699_v21 = vadd.f32 %v683_v42, %v646_v3  ;;  %v1828_v38 = vld [vmem:[%s1697_s18 + $0x20] sm:$0xff]  ;;  %v494_v42 = vadd.f32 %v478_v23, %v424_v22  ;;  %v1325_v56 = vld [vmem:[%s1697_s18 + $0x30] sm:$0xff] }
  0x23   : > { %v740_v40 = vmul.f32 %v1730_v25, %v1828_v38  ;;  %v1833_v41 = vld [vmem:[%s1699_s10 + $0x20] sm:$0xff]  ;;  %v585_v44 = vmul.f32 %v1704_v14, %v564_v18  ;;  %v593_v49 = vadd.f32 %v577_v17, %v539_v30  ;;  %v632_v22 = vmul.f32 %v1716_v19, %v611_v0 }
  0x24   : > { %v600_v10 = vadd.f32 %v584_v50, %v546_v60  ;;  %v755_v39 = vadd.f32 %v739_v47, %v699_v21  ;;  %v794_v50 = vmul.f32 %v1735_v26, %v1833_v41  ;;  %v557_v47 = vld [vmem:[%s1709_s25 + $0x18] sm:$0xff]  ;;  %v547_v53 = vadd.f32 %v531_v24, %v494_v42  ;;  %v1360_v2 = vld [vmem:[%s1697_s18 + $0x21] sm:$0xff] }
  0x25   : > { %v647_v60 = vadd.f32 %v631_v31, %v593_v49  ;;  %v1332_v3 = vld [vmem:[%s1697_s18 + $0x80] sm:$0xff]  ;;  %v578_v35 = vmul.f32 %v1704_v14, %v557_v47  ;;  %v532_v42 = vmul.f32 %v1794_v62, %v1695_v13  ;;  %v741_v47 = vmul.f32 %v1730_v25, %v1325_v56 }
  0x26   : > { %v654_v28 = vadd.f32 %v638_v61, %v600_v10  ;;  %v809_v52 = vadd.f32 %v793_v48, %v755_v39  ;;  %v692_v61 = vmul.f32 %v1721_v20, %v671_v45  ;;  %v601_v48 = vadd.f32 %v585_v44, %v547_v53  ;;  %v1351_v17 = vld [vmem:[%s1699_s10 + $0x80] sm:$0xff]  ;;  %v619_v44 = vld [vmem:[%s1711_s17 + $0x78] sm:$0xff]  ;;  %v1344_v45 = vld [vmem:[%s1699_s10 + $0x30] sm:$0xff] }
  0x27   : > { %v700_v36 = vadd.f32 %v684_v37, %v647_v60  ;;  %v748_v16 = vmul.f32 %v1730_v25, %v1332_v3  ;;  %v664_v18 = vld [vmem:[%s1709_s25 + $0x19] sm:$0xff]  ;;  %v1368_v31 = vld [vmem:[%s1697_s18 + $0x81] sm:$0xff]  ;;  %v795_v62 = vmul.f32 %v1735_v26, %v1344_v45  ;;  %v472_v0 = vmul.f32 %v1833_v41, %v1690_v12 }
  0x28   : > { %v707_v46 = vadd.f32 %v691_v4, %v654_v28  ;;  %v862_v1 = vadd.f32 %v846_v55, %v809_v52  ;;  %v487_v4 = vadd.f32 %v471_v58, %v417_v54  ;;  %v655_v43 = vadd.f32 %v639_v51, %v601_v48  ;;  %v672_v52 = vld [vmem:[%s1709_s25 + $0x79] sm:$0xff] }
  0x29   : > { %v802_v55 = vmul.f32 %v1735_v26, %v1351_v17  ;;  %v756_v24 = vadd.f32 %v740_v40, %v700_v36  ;;  %v479_v28 = vmul.f32 %v1788_v57, %v1690_v12  ;;  %v685_v39 = vmul.f32 %v1721_v20, %v664_v18  ;;  %v612_v48 = vld [vmem:[%s1711_s17 + $0x20] sm:$0xff] }
  0x2a   : > { %v763_v59 = vadd.f32 %v747_v5, %v707_v46  ;;  %v847_v5 = vmul.f32 %v1742_v29, %v1360_v2  ;;  %1436 = vmatprep.mubr.msk.f32.mxu0 %vm886_vm0, %v862_v1  ;;  %v540_v21 = vadd.f32 %v524_v63, %v487_v4  ;;  %v708_v30 = vadd.f32 %v692_v61, %v655_v43  ;;  %v1361_v63 = vld [vmem:[%s1697_s18 + $0x31] sm:$0xff]  ;;  %v665_v18 = vld [vmem:[%s1709_s25 + $0x21] sm:$0xff] }
  0x2b   : > { %v855_v40 = vmul.f32 %v1742_v29, %v1368_v31  ;;  %v495_v57 = vadd.f32 %v479_v28, %v425_v27  ;;  %v418_v58 = vmul.f32 %v1828_v38, %v1685_v11  ;;  %v525_v1 = vmul.f32 %v1360_v2, %v1695_v13 }
  0x2c   : > { %v817_v10 = vadd.f32 %v801_v6, %v763_v59  ;;  %v565_v6 = vld [vmem:[%s1709_s25 + $0x78] sm:$0xff]  ;;  %v594_v37 = vadd.f32 %v578_v35, %v540_v21  ;;  %v764_v49 = vadd.f32 %v748_v16, %v708_v30  ;;  %v558_v59 = vld [vmem:[%s1709_s25 + $0x20] sm:$0xff]  ;;  %v848_v4 = vmul.f32 %v1742_v29, %v1361_v63 }
  0x2d   : > { %v586_v46 = vmul.f32 %v1704_v14, %v565_v6  ;;  %v548_v54 = vadd.f32 %v532_v42, %v495_v57  ;;  %v693_v38 = vmul.f32 %v1721_v20, %v672_v52  ;;  %v488_v16 = vadd.f32 %v472_v0, %v418_v58  ;;  %v1326_v57 = vld [vmem:[%s1697_s18 + $0x38] sm:$0xff]  ;;  %v559_v52 = vld [vmem:[%s1709_s25 + $0x30] sm:$0xff] }
  0x2e   : > { %v870_v23 = vadd.f32 %v854_v15, %v817_v10  ;;  %v810_v15 = vadd.f32 %v794_v50, %v756_v24  ;;  %v648_v51 = vadd.f32 %v632_v22, %v594_v37  ;;  %v640_v50 = vmul.f32 %v1716_v19, %v619_v44  ;;  %v566_v22 = vld [vmem:[%s1709_s25 + $0x80] sm:$0xff]  ;;  %v1369_v24 = vld [vmem:[%s1697_s18 + $0x91] sm:$0xff] }
  0x2f   : > { %v818_v60 = vadd.f32 %v802_v55, %v764_v49  ;;  %v602_v35 = vadd.f32 %v586_v46, %v548_v54  ;;  %v579_v41 = vmul.f32 %v1704_v14, %v558_v59  ;;  %v633_v55 = vmul.f32 %v1716_v19, %v612_v48  ;;  %v620_v37 = vld [vmem:[%s1711_s17 + $0x80] sm:$0xff]  ;;  %v1345_v54 = vld [vmem:[%s1699_s10 + $0x38] sm:$0xff] }
  0x30   : > { %1448 = vmatprep.mubr.msk.f32.mxu1 %vm886_vm0, %v870_v23  ;;  %v863_v53 = vadd.f32 %v847_v5, %v810_v15  ;;  %v701_v61 = vadd.f32 %v685_v39, %v648_v51  ;;  %v1333_v5 = vld [vmem:[%s1697_s18 + $0x90] sm:$0xff]  ;;  %v426_v21 = vmul.f32 %v1332_v3, %v1685_v11  ;;  %v541_v27 = vadd.f32 %v525_v1, %v488_v16  ;;  %v673_v49 = vld [vmem:[%s1709_s25 + $0x81] sm:$0xff] }
  0x31   : > { %v871_v10 = vadd.f32 %v855_v40, %v818_v60  ;;  %v656_v2 = vadd.f32 %v640_v50, %v602_v35  ;;  %v749_v43 = vmul.f32 %v1730_v25, %v1333_v5  ;;  %v1352_v23 = vld [vmem:[%s1699_s10 + $0x90] sm:$0xff]  ;;  %v480_v28 = vmul.f32 %v1351_v17, %v1690_v12  ;;  %v1362_v50 = vld [vmem:[%s1697_s18 + $0x39] sm:$0xff] }
  0x32   : > { %1437 = vmatmul.mubr.msk.f32.vlgmr.msra.gmra.mrb[0].mxu0 %vm886_vm0, %v863_v53  ;;  %v757_v36 = vadd.f32 %v741_v47, %v701_v61  ;;  %v533_v30 = vmul.f32 %v1368_v31, %v1695_v13  ;;  %v803_v42 = vmul.f32 %v1735_v26, %v1352_v23  ;;  %v856_v3 = vmul.f32 %v1742_v29, %v1369_v24  ;;  %v613_v61 = vld [vmem:[%s1711_s17 + $0x30] sm:$0xff] }
  0x33   : > { %1449 = vmatmul.mubr.msk.f32.vlgmr.msra.gmra.mrb[0].mxu1 %vm886_vm0, %v871_v10  ;;  %v709_v39 = vadd.f32 %v693_v38, %v656_v2  ;;  %v686_v44 = vmul.f32 %v1721_v20, %v665_v18  ;;  %v595_v40 = vadd.f32 %v579_v41, %v541_v27  ;;  %v496_v46 = vadd.f32 %v480_v28, %v426_v21  ;;  %v1334_v38 = vld [vmem:[%s1697_s18 + $0x98] sm:$0xff]  ;;  %v621_v27 = vld [vmem:[%s1711_s17 + $0x90] sm:$0xff] }
  0x34   : > { %v811_v6 = vadd.f32 %v795_v62, %v757_v36  ;;  %v587_v17 = vmul.f32 %v1704_v14, %v566_v22  ;;  %v742_v51 = vmul.f32 %v1730_v25, %v1326_v57  ;;  %v641_v47 = vmul.f32 %v1716_v19, %v620_v37  ;;  %v666_v16 = vld [vmem:[%s1709_s25 + $0x31] sm:$0xff] }
  0x35   : > { %v765_v31 = vadd.f32 %v749_v43, %v709_v39  ;;  %v419_v62 = vmul.f32 %v1325_v56, %v1685_v11  ;;  %v649_v53 = vadd.f32 %v633_v55, %v595_v40  ;;  %v549_v58 = vadd.f32 %v533_v30, %v496_v46  ;;  %v1353_v21 = vld [vmem:[%s1699_s10 + $0x98] sm:$0xff] }
  0x36   : > { %v864_v15 = vadd.f32 %v848_v4, %v811_v6  ;;  %v473_v59 = vmul.f32 %v1344_v45, %v1690_v12  ;;  %v526_v60 = vmul.f32 %v1361_v63, %v1695_v13  ;;  %v796_v1 = vmul.f32 %v1735_v26, %v1345_v54  ;;  %v567_v45 = vld [vmem:[%s1709_s25 + $0x90] sm:$0xff] }
  0x37   : > { %v819_v0 = vadd.f32 %v803_v42, %v765_v31  ;;  %v849_v56 = vmul.f32 %v1742_v29, %v1362_v50  ;;  %v694_v48 = vmul.f32 %v1721_v20, %v673_v49  ;;  %v702_v4 = vadd.f32 %v686_v44, %v649_v53  ;;  %v674_v49 = vld [vmem:[%s1709_s25 + $0x91] sm:$0xff] }
  0x38   : > { %1439 = vmatprep.mubr.msk.f32.mxu0 %vm886_vm0, %v864_v15  ;;  %v603_v35 = vadd.f32 %v587_v17, %v549_v58  ;;  %v489_v10 = vadd.f32 %v473_v59, %v419_v62  ;;  %v580_v36 = vmul.f32 %v1704_v14, %v559_v52  ;;  %v750_v63 = vmul.f32 %v1730_v25, %v1334_v38  ;;  %v1346_v62 = vld [vmem:[%s1699_s10 + $0x48] sm:$0xff]  ;;  %v560_v58 = vld [vmem:[%s1709_s25 + $0x38] sm:$0xff] }
  0x39   : > { %v872_v41 = vadd.f32 %v856_v3, %v819_v0  ;;  %v634_v18 = vmul.f32 %v1716_v19, %v613_v61  ;;  %v427_v2 = vmul.f32 %v1333_v5, %v1685_v11  ;;  %v758_v43 = vadd.f32 %v742_v51, %v702_v4  ;;  %v1370_v3 = vld [vmem:[%s1697_s18 + $0x99] sm:$0xff]  ;;  %v1363_v52 = vld [vmem:[%s1697_s18 + $0x49] sm:$0xff] }
  0x3a   : > { %v657_v55 = vadd.f32 %v641_v47, %v603_v35  ;;  %v542_v22 = vadd.f32 %v526_v60, %v489_v10  ;;  %v481_v6 = vmul.f32 %v1352_v23, %v1690_v12  ;;  %v804_v28 = vmul.f32 %v1735_v26, %v1353_v21  ;;  %v1327_v23 = vld [vmem:[%s1697_s18 + $0x48] sm:$0xff]  ;;  %v614_v10 = vld [vmem:[%s1711_s17 + $0x38] sm:$0xff] }
  0x3b   : > { %1451 = vmatprep.mubr.msk.f32.mxu1 %vm886_vm0, %v872_v41  ;;  %v687_v30 = vmul.f32 %v1721_v20, %v666_v16  ;;  %v534_v37 = vmul.f32 %v1369_v24, %v1695_v13  ;;  %v588_v5 = vmul.f32 %v1704_v14, %v567_v45  ;;  %v812_v39 = vadd.f32 %v796_v1, %v758_v43  ;;  %v1335_v4 = vld [vmem:[%s1697_s18 + $0xa8] sm:$0xff]  ;;  %v667_v45 = vld [vmem:[%s1709_s25 + $0x39] sm:$0xff] }
  0x3c   : > { %v710_v42 = vadd.f32 %v694_v48, %v657_v55  ;;  %v596_v44 = vadd.f32 %v580_v36, %v542_v22  ;;  %v497_v15 = vadd.f32 %v481_v6, %v427_v2  ;;  %v857_v40 = vmul.f32 %v1742_v29, %v1370_v3  ;;  %v1354_v35 = vld [vmem:[%s1699_s10 + $0xa8] sm:$0xff]  ;;  %v568_v43 = vld [vmem:[%s1709_s25 + $0x98] sm:$0xff] }
  0x3d   : > { %v743_v46 = vmul.f32 %v1730_v25, %v1327_v23  ;;  %v642_v17 = vmul.f32 %v1716_v19, %v621_v27  ;;  %v420_v24 = vmul.f32 %v1326_v57, %v1685_v11  ;;  %v865_v31 = vadd.f32 %v849_v56, %v812_v39  ;;  %v1371_v55 = vld [vmem:[%s1697_s18 + $0xa9] sm:$0xff] }
  0x3e   : > { %v766_v51 = vadd.f32 %v750_v63, %v710_v42  ;;  %v650_v47 = vadd.f32 %v634_v18, %v596_v44  ;;  %v550_v53 = vadd.f32 %v534_v37, %v497_v15  ;;  %v797_v59 = vmul.f32 %v1735_v26, %v1346_v62  ;;  %v1328_v42 = vld [vmem:[%s1697_s18 + $0x50] sm:$0xff] }
  0x3f   : > { %v850_v60 = vmul.f32 %v1742_v29, %v1363_v52  ;;  %v474_v61 = vmul.f32 %v1345_v54, %v1690_v12  ;;  %v527_v0 = vmul.f32 %v1362_v50, %v1695_v13  ;;  %1440 = vmatmul.mubr.msk.f32.gmra.mrb[2].mxu0 %vm886_vm0, %v865_v31  ;;  %v695_v48 = vmul.f32 %v1721_v20, %v674_v49  ;;  %v561_v31 = vld [vmem:[%s1709_s25 + $0x48] sm:$0xff] }
  0x40   : > { %v820_v57 = vadd.f32 %v804_v28, %v766_v51  ;;  %v703_v1 = vadd.f32 %v687_v30, %v650_v47  ;;  %v604_v56 = vadd.f32 %v588_v5, %v550_v53  ;;  %v751_v36 = vmul.f32 %v1730_v25, %v1335_v4  ;;  %v622_v30 = vld [vmem:[%s1711_s17 + $0x98] sm:$0xff]  ;;  %v1347_v47 = vld [vmem:[%s1699_s10 + $0x50] sm:$0xff] }
  0x41   : > { %v805_v16 = vmul.f32 %v1735_v26, %v1354_v35  ;;  %v490_v54 = vadd.f32 %v474_v61, %v420_v24  ;;  %v581_v50 = vmul.f32 %v1704_v14, %v560_v58  ;;  %v428_v2 = vmul.f32 %v1334_v38, %v1685_v11  ;;  %v1364_v53 = vld [vmem:[%s1697_s18 + $0x51] sm:$0xff] }
  0x42   : > { %v873_v41 = vadd.f32 %v857_v40, %v820_v57  ;;  %v759_v63 = vadd.f32 %v743_v46, %v703_v1  ;;  %v658_v18 = vadd.f32 %v642_v17, %v604_v56  ;;  %v635_v6 = vmul.f32 %v1716_v19, %v614_v10  ;;  %v675_v40 = vld [vmem:[%s1709_s25 + $0x99] sm:$0xff]  ;;  %v1336_v10 = vld [vmem:[%s1697_s18 + $0xb0] sm:$0xff] }
  0x43   : > { %v543_v22 = vadd.f32 %v527_v0, %v490_v54  ;;  %v482_v27 = vmul.f32 %v1353_v21, %v1690_v12  ;;  %v535_v28 = vmul.f32 %v1370_v3, %v1695_v13  ;;  %v858_v38 = vmul.f32 %v1742_v29, %v1371_v55  ;;  %v615_v0 = vld [vmem:[%s1711_s17 + $0x48] sm:$0xff] }
  0x44   : > { %1452 = vmatmul.mubr.msk.f32.gmra.mrb[2].mxu1 %vm886_vm0, %v873_v41  ;;  %v813_v37 = vadd.f32 %v797_v59, %v759_v63  ;;  %v711_v5 = vadd.f32 %v695_v48, %v658_v18  ;;  %v688_v39 = vmul.f32 %v1721_v20, %v667_v45  ;;  %v744_v15 = vmul.f32 %v1730_v25, %v1328_v42  ;;  %v668_v54 = vld [vmem:[%s1709_s25 + $0x49] sm:$0xff] }
  0x45   : > { %v597_v44 = vadd.f32 %v581_v50, %v543_v22  ;;  %v498_v21 = vadd.f32 %v482_v27, %v428_v2  ;;  %v589_v3 = vmul.f32 %v1704_v14, %v568_v43  ;;  %v643_v49 = vmul.f32 %v1716_v19, %v622_v30  ;;  %v1355_v2 = vld [vmem:[%s1699_s10 + $0xb0] sm:$0xff] }
  0x46   : > { %v866_v46 = vadd.f32 %v850_v60, %v813_v37  ;;  %v767_v17 = vadd.f32 %v751_v36, %v711_v5  ;;  %v421_v24 = vmul.f32 %v1327_v23, %v1685_v11  ;;  %v475_v59 = vmul.f32 %v1346_v62, %v1690_v12 }
  0x47   : > { %v651_v51 = vadd.f32 %v635_v6, %v597_v44  ;;  %v551_v58 = vadd.f32 %v535_v28, %v498_v21  ;;  %v528_v61 = vmul.f32 %v1363_v52, %v1695_v13  ;;  %v798_v57 = vmul.f32 %v1735_v26, %v1347_v47  ;;  %v569_v52 = vld [vmem:[%s1709_s25 + $0xa8] sm:$0xff] }
  0x48   : > { %1442 = vmatprep.mubr.msk.f32.mxu0 %vm886_vm0, %v866_v46  ;;  %v821_v60 = vadd.f32 %v805_v16, %v767_v17  ;;  %v851_v23 = vmul.f32 %v1742_v29, %v1364_v53  ;;  %v696_v1 = vmul.f32 %v1721_v20, %v675_v40  ;;  %v491_v36 = vadd.f32 %v475_v59, %v421_v24  ;;  %v623_v6 = vld [vmem:[%s1711_s17 + $0xa8] sm:$0xff]  ;;  %v1337_v24 = vld [vmem:[%s1697_s18 + $0xc0] sm:$0xff] }
  0x49   : > { %v704_v56 = vadd.f32 %v688_v39, %v651_v51  ;;  %v605_v48 = vadd.f32 %v589_v3, %v551_v58  ;;  %v582_v62 = vmul.f32 %v1704_v14, %v561_v31  ;;  %v752_v45 = vmul.f32 %v1730_v25, %v1336_v10  ;;  %v676_v3 = vld [vmem:[%s1709_s25 + $0xa9] sm:$0xff] }
  0x4a   : > { %v874_v50 = vadd.f32 %v858_v38, %v821_v60  ;;  %v636_v16 = vmul.f32 %v1716_v19, %v615_v0  ;;  %v429_v41 = vmul.f32 %v1335_v4, %v1685_v11  ;;  %v544_v43 = vadd.f32 %v528_v61, %v491_v36  ;;  %v1372_v38 = vld [vmem:[%s1697_s18 + $0xb1] sm:$0xff] }
  0x4b   : > { %v760_v63 = vadd.f32 %v744_v15, %v704_v56  ;;  %v659_v18 = vadd.f32 %v643_v49, %v605_v48  ;;  %v483_v22 = vmul.f32 %v1354_v35, %v1690_v12  ;;  %v806_v27 = vmul.f32 %v1735_v26, %v1355_v2  ;;  %v562_v31 = vld [vmem:[%s1709_s25 + $0x50] sm:$0xff] }
  0x4c   : > { %1454 = vmatprep.mubr.msk.f32.mxu1 %vm886_vm0, %v874_v50  ;;  %v689_v28 = vmul.f32 %v1721_v20, %v668_v54  ;;  %v536_v30 = vmul.f32 %v1371_v55, %v1695_v13  ;;  %v590_v37 = vmul.f32 %v1704_v14, %v569_v52  ;;  %v598_v39 = vadd.f32 %v582_v62, %v544_v43  ;;  %v616_v60 = vld [vmem:[%s1711_s17 + $0x50] sm:$0xff]  ;;  %v1373_v52 = vld [vmem:[%s1697_s18 + $0xc1] sm:$0xff] }
  0x4d   : > { %v814_v4 = vadd.f32 %v798_v57, %v760_v63  ;;  %v712_v5 = vadd.f32 %v696_v1, %v659_v18  ;;  %v499_v44 = vadd.f32 %v483_v22, %v429_v41  ;;  %v859_v35 = vmul.f32 %v1742_v29, %v1372_v38  ;;  %v669_v36 = vld [vmem:[%s1709_s25 + $0x51] sm:$0xff] }
  0x4e   : > { %v745_v15 = vmul.f32 %v1730_v25, %v1746_v32  ;;  %v644_v21 = vmul.f32 %v1716_v19, %v623_v6  ;;  %v422_v55 = vmul.f32 %v1328_v42, %v1685_v11  ;;  %v652_v17 = vadd.f32 %v636_v16, %v598_v39  ;;  %v570_v54 = vld [vmem:[%s1709_s25 + $0xb0] sm:$0xff] }
  0x4f   : > { %v867_v40 = vadd.f32 %v851_v23, %v814_v4  ;;  %v768_v46 = vadd.f32 %v752_v45, %v712_v5  ;;  %v552_v49 = vadd.f32 %v536_v30, %v499_v44  ;;  %v799_v51 = vmul.f32 %v1735_v26, %v1749_v33  ;;  %v1356_v23 = vld [vmem:[%s1699_s10 + $0xc0] sm:$0xff]  ;;  %v624_v43 = vld [vmem:[%s1711_s17 + $0xb0] sm:$0xff] }
  0x50   : > { %v476_v58 = vmul.f32 %v1347_v47, %v1690_v12  ;;  %v529_v32 = vmul.f32 %v1364_v53, %v1695_v13  ;;  %v705_v42 = vadd.f32 %v689_v28, %v652_v17  ;;  %v697_v0 = vmul.f32 %v1721_v20, %v676_v3 }
  0x51   : > { %1443 = vmatmul.mubr.msk.f32.gmra.mrb[4].mxu0 %vm886_vm0, %v867_v40  ;;  %v822_v59 = vadd.f32 %v806_v27, %v768_v46  ;;  %v606_v61 = vadd.f32 %v590_v37, %v552_v49  ;;  %v852_v57 = vmul.f32 %v1742_v29, %v1752_v34  ;;  %v753_v33 = vmul.f32 %v1730_v25, %v1337_v24  ;;  %v1374_v40 = vld [vmem:[%s1697_s18 + $0xc9] sm:$0xff] }
  0x52   : > { %v492_v47 = vadd.f32 %v476_v58, %v422_v55  ;;  %v583_v1 = vmul.f32 %v1704_v14, %v562_v31  ;;  %v761_v56 = vadd.f32 %v745_v15, %v705_v42  ;;  %v430_v62 = vmul.f32 %v1336_v10, %v1685_v11 }
  0x53   : > { %v875_v53 = vadd.f32 %v859_v35, %v822_v59  ;;  %v660_v48 = vadd.f32 %v644_v21, %v606_v61  ;;  %v637_v45 = vmul.f32 %v1716_v19, %v616_v60  ;;  %v484_v34 = vmul.f32 %v1355_v2, %v1690_v12  ;;  %v1357_v21 = vld [vmem:[%s1699_s10 + $0xc8] sm:$0xff]  ;;  %s1311_s10 = sshll.u32 %s2158_s28, 5 }
  0x54   : > { %v545_v50 = vadd.f32 %v529_v32, %v492_v47  ;;  %v537_v16 = vmul.f32 %v1372_v38, %v1695_v13  ;;  %v815_v41 = vadd.f32 %v799_v51, %v761_v56  ;;  %v807_v18 = vmul.f32 %v1735_v26, %v1356_v23  ;;  %v677_v13 = vld [vmem:[%s1709_s25 + $0xb1] sm:$0xff]  ;;  %v1338_v38 = vld [vmem:[%s1697_s18 + $0xc8] sm:$0xff]  ;;  %s387_s18 = sadd.s32 %s1311_s10, %s1310_s16 }
  0x55   : > { %1455 = vmatmul.mubr.msk.f32.gmra.mrb[4].mxu1 %vm886_vm0, %v875_v53  ;;  %v713_v63 = vadd.f32 %v697_v0, %v660_v48  ;;  %v690_v11 = vmul.f32 %v1721_v20, %v669_v36  ;;  %v500_v10 = vadd.f32 %v484_v34, %v430_v62  ;;  %v591_v6 = vmul.f32 %v1704_v14, %v570_v54  ;;  %s1312_s19 = sshll.u32 %s387_s18, 3 }
  0x56   : > { %v599_v22 = vadd.f32 %v583_v1, %v545_v50  ;;  %v868_v27 = vadd.f32 %v852_v57, %v815_v41  ;;  %v860_v12 = vmul.f32 %v1742_v29, %v1373_v52  ;;  %v746_v30 = vmul.f32 %v1730_v25, %v1806_v7  ;;  %s2071_s20 = scalar_lea.vmem %s2141_s8, %s1312_s19 }
  0x57   : > { %v769_v28 = vadd.f32 %v753_v33, %v713_v63  ;;  %v553_v37 = vadd.f32 %v537_v16, %v500_v10  ;;  %v645_v4 = vmul.f32 %v1716_v19, %v624_v43  ;;  %v800_v14 = vmul.f32 %v1735_v26, %v1809_v8 }
  0x58   : > { %v653_v2 = vadd.f32 %v637_v45, %v599_v22  ;;  %1445 = vmatprep.mubr.msk.f32.mxu0 %vm886_vm0, %v868_v27  ;;  %v698_v35 = vmul.f32 %v1721_v20, %v677_v13  ;;  %v853_v7 = vmul.f32 %v1742_v29, %v1812_v9  ;;  %v754_v19 = vmul.f32 %v1730_v25, %v1338_v38  ;;  %v2058_v25 = vld [vmem:[%s2139_s6] ss:$0 sm:$0xff] }
  0x59   : > { %v823_v5 = vadd.f32 %v807_v18, %v769_v28  ;;  %v607_v44 = vadd.f32 %v591_v6, %v553_v37  ;;  %v808_v8 = vmul.f32 %v1735_v26, %v1357_v21  ;;  %v861_v24 = vmul.f32 %v1742_v29, %v1374_v40  ;;  %v2063_v29 = vld [vmem:[%s2140_s7] ss:$0 sm:$0xff] }
  0x5a   : > { %v706_v39 = vadd.f32 %v690_v11, %v653_v2 }
  0x5b   : > { %v876_v15 = vadd.f32 %v860_v12, %v823_v5  ;;  %v661_v55 = vadd.f32 %v645_v4, %v607_v44 }
  0x5c   : > { %v762_v3 = vadd.f32 %v746_v30, %v706_v39 }
  0x5d   : > { %1457 = vmatprep.mubr.msk.f32.mxu1 %vm886_vm0, %v876_v15  ;;  %v714_v17 = vadd.f32 %v698_v35, %v661_v55 }
  0x5e   : > { %v816_v46 = vadd.f32 %v800_v14, %v762_v3 }
  0x5f   : > { %v770_v20 = vadd.f32 %v754_v19, %v714_v17 }
  0x60   : > { %v869_v49 = vadd.f32 %v853_v7, %v816_v46 }
  0x61   : > { %v824_v31 = vadd.f32 %v808_v8, %v770_v20 }
  0x62   : > { %1446 = vmatmul.mubr.msk.f32.gmra.mrb[6].mxu0 %vm886_vm0, %v869_v49 }
  0x63   : > { %v877_v51 = vadd.f32 %v861_v24, %v824_v31 }
  0x65   : > { %1458 = vmatmul.mubr.msk.f32.gmra.mrb[6].mxu1 %vm886_vm0, %v877_v51 }
 0x105   : > { %v1438_v26 = vpop.f32.mrb[0].mxu0 }
 0x106   : > { %v1088_v9 = vmul.f32 %v1438_v26, %v2058_v25  ;;  %v1001_v58 = vpop.f32.mrb[1].mxu0  ;;  %v1450_v42 = vpop.f32.mrb[0].mxu1 }
 0x107   : > { %v1087_v32 = vmul.f32 %v2058_v25, %v1001_v58  ;;  %v1096_v61 = vmul.f32 %v1450_v42, %v2058_v25  ;;  %v1041_v60 = vpop.f32.mrb[1].mxu1 }
 0x108   : > { %v1111_v59 = vadd.f32 %v2063_v29, %v1088_v9  ;;  %v1095_v33 = vmul.f32 %v2058_v25, %v1041_v60 }
 0x109   : > { %v1110_v0 = vadd.f32 %v2063_v29, %v1087_v32  ;;  %v1119_v23 = vadd.f32 %v2063_v29, %v1096_v61 }
 0x10a   : > { %v1127_v57 = vmax.f32 %v1111_v59, 0.0  ;;  %v1118_v1 = vadd.f32 %v2063_v29, %v1095_v33 }
 0x10b   : > { %v1126_v47 = vmax.f32 %v1110_v0, 0.0  ;;  %v1135_v53 = vmax.f32 %v1119_v23, 0.0 }
 0x10c   : > { %1143 = vst [vmem:[%s2071_s20 + $0x8] sm:$0xff] %v1127_v57  ;;  %v1134_v56 = vmax.f32 %v1118_v1, 0.0 }
 0x10d   : > { %1142 = vst [vmem:[%s2071_s20] sm:$0xff] %v1126_v47  ;;  %1151 = vst [vmem:[%s2071_s20 + $0x48] sm:$0xff] %v1135_v53 }
 0x10e   : > { %1150 = vst [vmem:[%s2071_s20 + $0x40] sm:$0xff] %v1134_v56 }
 0x112   : > { %v1441_v48 = vpop.f32.mrb[2].mxu0 }
 0x113   : > { %v1090_v36 = vmul.f32 %v1441_v48, %v2058_v25  ;;  %v1011_v62 = vpop.f32.mrb[3].mxu0 }
 0x114   : > { %v1089_v54 = vmul.f32 %v2058_v25, %v1011_v62 }
 0x115   : > { %v1113_v52 = vadd.f32 %v2063_v29, %v1090_v36 }
 0x116   : > { %v1112_v45 = vadd.f32 %v2063_v29, %v1089_v54 }
 0x117   : > { %v1453_v50 = vpop.f32.mrb[2].mxu1  ;;  %v1129_v34 = vmax.f32 %v1113_v52, 0.0 }
 0x118   : > { %v1098_v16 = vmul.f32 %v1453_v50, %v2058_v25  ;;  %v1051_v41 = vpop.f32.mrb[3].mxu1  ;;  %v1128_v63 = vmax.f32 %v1112_v45, 0.0 }
 0x119   : > { %v1097_v18 = vmul.f32 %v2058_v25, %v1051_v41  ;;  %1145 = vst [vmem:[%s2071_s20 + $0x18] sm:$0xff] %v1129_v34 }
 0x11a   : > { %v1121_v43 = vadd.f32 %v2063_v29, %v1098_v16  ;;  %1144 = vst [vmem:[%s2071_s20 + $0x10] sm:$0xff] %v1128_v63 }
 0x11b   : > { %v1120_v22 = vadd.f32 %v2063_v29, %v1097_v18 }
 0x11c   : > { %v1137_v11 = vmax.f32 %v1121_v43, 0.0 }
 0x11d   : > { %v1136_v10 = vmax.f32 %v1120_v22, 0.0 }
 0x11e   : > { %1153 = vst [vmem:[%s2071_s20 + $0x58] sm:$0xff] %v1137_v11 }
 0x11f   : > { %1152 = vst [vmem:[%s2071_s20 + $0x50] sm:$0xff] %v1136_v10 }
 0x124   : > { %v1444_v6 = vpop.f32.mrb[4].mxu0 }
 0x125   : > { %v1092_v27 = vmul.f32 %v1444_v6, %v2058_v25  ;;  %v1021_v28 = vpop.f32.mrb[5].mxu0 }
 0x126   : > { %v1091_v12 = vmul.f32 %v2058_v25, %v1021_v28 }
 0x127   : > { %v1115_v13 = vadd.f32 %v2063_v29, %v1092_v27 }
 0x128   : > { %v1456_v2 = vpop.f32.mrb[4].mxu1  ;;  %v1114_v30 = vadd.f32 %v2063_v29, %v1091_v12 }
 0x129   : > { %v1131_v37 = vmax.f32 %v1115_v13, 0.0  ;;  %v1100_v4 = vmul.f32 %v1456_v2, %v2058_v25  ;;  %v1061_v5 = vpop.f32.mrb[5].mxu1 }
 0x12a   : > { %v1130_v38 = vmax.f32 %v1114_v30, 0.0  ;;  %v1099_v39 = vmul.f32 %v2058_v25, %v1061_v5 }
 0x12b   : > { %1147 = vst [vmem:[%s2071_s20 + $0x28] sm:$0xff] %v1131_v37  ;;  %v1123_v14 = vadd.f32 %v2063_v29, %v1100_v4 }
 0x12c   : > { %1146 = vst [vmem:[%s2071_s20 + $0x20] sm:$0xff] %v1130_v38  ;;  %v1122_v44 = vadd.f32 %v2063_v29, %v1099_v39 }
 0x12d   : > { %v1139_v35 = vmax.f32 %v1123_v14, 0.0 }
 0x12e   : > { %v1138_v15 = vmax.f32 %v1122_v44, 0.0 }
 0x12f   : > { %1155 = vst [vmem:[%s2071_s20 + $0x68] sm:$0xff] %v1139_v35 }
 0x130   : > { %1154 = vst [vmem:[%s2071_s20 + $0x60] sm:$0xff] %v1138_v15 }
 0x135   : > { %v1447_v21 = vpop.f32.mrb[6].mxu0 }
 0x136   : > { %v1094_v3 = vmul.f32 %v1447_v21, %v2058_v25  ;;  %v1031_v7 = vpop.f32.mrb[7].mxu0 }
 0x137   : > { %v1093_v55 = vmul.f32 %v2058_v25, %v1031_v7 }
 0x138   : > { %v1117_v19 = vadd.f32 %v2063_v29, %v1094_v3  ;;  %v1459_v40 = vpop.f32.mrb[6].mxu1 }
 0x139   : > { %v1116_v46 = vadd.f32 %v2063_v29, %v1093_v55  ;;  %v1102_v8 = vmul.f32 %v1459_v40, %v2058_v25  ;;  %v1071_v49 = vpop.f32.mrb[7].mxu1 }
 0x13a   : > { %v1133_v17 = vmax.f32 %v1117_v19, 0.0  ;;  %v1101_v24 = vmul.f32 %v2058_v25, %v1071_v49 }
 0x13b   : > { %v1132_v20 = vmax.f32 %v1116_v46, 0.0  ;;  %v1125_v31 = vadd.f32 %v2063_v29, %v1102_v8 }
 0x13c   : > { %1149 = vst [vmem:[%s2071_s20 + $0x38] sm:$0xff] %v1133_v17  ;;  %v1124_v51 = vadd.f32 %v2063_v29, %v1101_v24 }
 0x13d   : > { %1148 = vst [vmem:[%s2071_s20 + $0x30] sm:$0xff] %v1132_v20  ;;  %v1141_v26 = vmax.f32 %v1125_v31, 0.0 }
 0x13e   : > { %v1140_v9 = vmax.f32 %v1124_v51, 0.0 }
 0x13f   : > { %1157 = vst [vmem:[%s2071_s20 + $0x78] sm:$0xff] %v1141_v26 }
 0x140   : > { %1156 = vst [vmem:[%s2071_s20 + $0x70] sm:$0xff] %v1140_v9 }
 0x141 PF: > { %s18_s9 = sadd.s32 1, %s1563_s9   ;;  %s2146_s28 = sld [smem:[#allocation2_spill]] }
 0x142   : > { %p15_p7 = scmp.ge.s32.totalorder %s18_s9, 6   ;;  %s2147_s21 = sld [smem:[#allocation3_spill]] }
 0x143   : > { %s2148_s30 = sld [smem:[#allocation4_spill]]  ;;  %s2149_s27 = smov %s1555_s29 }
 0x144   :  { %17 = sbr.rel (!%p15_p7) target bundleno = 3 (0x3), region = 97 }
 0x148   : > { %s2150_s29 = smov %s2147_s21 }

// kernel: _lambda_.7
= control target key start
LH: loop header
LB: loop body
LE: loop exit
PB: predicated region body
PF: predicated region fallthrough
CT: control target
= control target key end

     0   :  { %s1225_s27 = smov 0   ;;  %s1227_s28 = smov 0   ;;  %s1649_s0 = inlined_call_operand.vmem [shape: f32[2,9,9,128], index: 0, kind: input, shape index: {}]   ;;  %s1650_s1 = inlined_call_operand.vmem [shape: f32[2,9,9,128], index: 1, kind: input, shape index: {}]   ;;  %s1651_s2 = inlined_call_operand.vmem [shape: f32[2,9,9,128], index: 2, kind: input, shape index: {}]   ;;  %s1652_s3 = inlined_call_operand.vmem [shape: f32[2,9,9,128], index: 3, kind: input, shape index: {}]   ;;  %s1653_s4 = inlined_call_operand.vmem [shape: f32[9,128], index: 4, kind: input, shape index: {}]   ;;  %s1654_s5 = inlined_call_operand.vmem [shape: f32[128,256], index: 5, kind: input, shape index: {}]   ;;  %s1655_s6 = inlined_call_operand.vmem [shape: f32[1,256], index: 6, kind: input, shape index: {}]   ;;  %s1656_s7 = inlined_call_operand.vmem [shape: f32[1,256], index: 7, kind: input, shape index: {}]   ;;  %s1657_s8 = inlined_call_operand.vmem [shape: f32[2,8,8,256], index: 8, kind: output, shape index: {}]  }
   0x1   :  { %s1229_s29 = smov 0  }
   0x2 LB: > { %s30_s30 = sadd.s32 1, %s1173_s28  ;;  %p1038_p0 = scmp.ge.s32.totalorder %s1177_s29, 1  ;;  %s1177_s29 = sphi %s1229_s29, %s18_s29   ;;  %s1173_s28 = sphi %s1227_s28, %s1659_s28   ;;  %s1169_s27 = sphi %s1225_s27, %s1658_s27  }
   0x3   : > { %p32_p1 = scmp.ge.s32.totalorder %s30_s30, 2  ;;  %p306_p2 = scmp.lt.s32.totalorder %s1177_s29, 3 }
   0x5   : > { %s1661_s30 = smov (%p32_p1, %s30_s30), 0  ;;  %p307_p3 = pnand %p1038_p0, %p306_p2 }
   0x6   : > { %v663_v0 = vld [vmem:[%s1654_s5 + $0x8] sm:$0xff] (!%p307_p3)  ;;  %v665_v1 = vld [vmem:[%s1654_s5 + $0x18] sm:$0xff] (!%p307_p3)  ;;  %v662_v2 = vld [vmem:[%s1654_s5] sm:$0xff] (!%p307_p3)  ;;  %p360_p4 = scmp.lt.s32.totalorder (!%p307_p3), %s1169_s27, 1  ;;  %v1179_v7 = vmov (!%p307_p3), 0.0  }
   0x7   : > { %310 = sbr.rel (%p307_p3) target bundleno = 286 (0x11e), region = 52  ;;  %v1081_v3 = vpack.c.bf16 (!%p307_p3), %v665_v1, %v663_v0  ;;  %v664_v4 = vld [vmem:[%s1654_s5 + $0x10] sm:$0xff] (!%p307_p3)  ;;  %v667_v5 = vld [vmem:[%s1654_s5 + $0x28] sm:$0xff] (!%p307_p3)  ;;  %v669_v6 = vld [vmem:[%s1654_s5 + $0x38] sm:$0xff] (!%p307_p3)  ;;  %758 = vmatprep.mubr.f32.mxu0 (!%p307_p3), %v1179_v7  ;;  %782 = vmatprep.mubr.f32.mxu1 (!%p307_p3), %v1179_v7 }
   0x8   : > { %v1083_v8 = vpack.c.bf16 (!%p307_p3), %v664_v4, %v662_v2  ;;  %v1085_v9 = vpack.c.bf16 (!%p307_p3), %v669_v6, %v667_v5  ;;  %v666_v10 = vld [vmem:[%s1654_s5 + $0x20] sm:$0xff] (!%p307_p3)  ;;  %v668_v11 = vld [vmem:[%s1654_s5 + $0x30] sm:$0xff] (!%p307_p3)  ;;  %v671_v12 = vld [vmem:[%s1654_s5 + $0x48] sm:$0xff] (!%p307_p3) }
   0x9   : > { %1082 = vmatprep.subr.bf16.mxu0 (!%p307_p3), %v1081_v3  ;;  %1113 = vmatprep.subr.bf16.mxu1 (!%p307_p3), %v1081_v3  ;;  %v673_v13 = vld [vmem:[%s1654_s5 + $0x58] sm:$0xff] (!%p307_p3)  ;;  %v1087_v14 = vpack.c.bf16 (!%p307_p3), %v668_v11, %v666_v10  ;;  %v670_v16 = vld [vmem:[%s1654_s5 + $0x40] sm:$0xff] (!%p307_p3)  ;;  %v672_v17 = vld [vmem:[%s1654_s5 + $0x50] sm:$0xff] (!%p307_p3) }
   0xa   : > { %1084 = vmatpush1.bf16.msra.mxu0 (!%p307_p3), %v1083_v8  ;;  %1121 = vmatpush1.bf16.msra.mxu1 (!%p307_p3), %v1083_v8  ;;  %v1089_v15 = vpack.c.bf16 (!%p307_p3), %v673_v13, %v671_v12  ;;  %v675_v18 = vld [vmem:[%s1654_s5 + $0x68] sm:$0xff] (!%p307_p3)  ;;  %v677_v19 = vld [vmem:[%s1654_s5 + $0x78] sm:$0xff] (!%p307_p3)  ;;  %v1091_v20 = vpack.c.bf16 (!%p307_p3), %v672_v17, %v670_v16  ;;  %v674_v21 = vld [vmem:[%s1654_s5 + $0x60] sm:$0xff] (!%p307_p3) }
   0xb   : > { %1086 = vmatprep.subr.bf16.mxu0 (!%p307_p3), %v1085_v9  ;;  %1114 = vmatprep.subr.bf16.mxu1 (!%p307_p3), %v1085_v9  ;;  %v676_v22 = vld [vmem:[%s1654_s5 + $0x70] sm:$0xff] (!%p307_p3)  ;;  %v679_v23 = vld [vmem:[%s1654_s5 + $0x88] sm:$0xff] (!%p307_p3)  ;;  %v1093_v24 = vpack.c.bf16 (!%p307_p3), %v677_v19, %v675_v18  ;;  %v681_v25 = vld [vmem:[%s1654_s5 + $0x98] sm:$0xff] (!%p307_p3) }
   0xc   : > { %v678_v26 = vld [vmem:[%s1654_s5 + $0x80] sm:$0xff] (!%p307_p3)  ;;  %v680_v27 = vld [vmem:[%s1654_s5 + $0x90] sm:$0xff] (!%p307_p3)  ;;  %v683_v28 = vld [vmem:[%s1654_s5 + $0xa8] sm:$0xff] (!%p307_p3)  ;;  %v1095_v40 = vpack.c.bf16 (!%p307_p3), %v676_v22, %v674_v21  ;;  %v1097_v48 = vpack.c.bf16 (!%p307_p3), %v681_v25, %v679_v23 }
   0xd   : > { %v685_v29 = vld [vmem:[%s1654_s5 + $0xb8] sm:$0xff] (!%p307_p3)  ;;  %v682_v30 = vld [vmem:[%s1654_s5 + $0xa0] sm:$0xff] (!%p307_p3)  ;;  %v684_v31 = vld [vmem:[%s1654_s5 + $0xb0] sm:$0xff] (!%p307_p3)  ;;  %v1099_v53 = vpack.c.bf16 (!%p307_p3), %v680_v27, %v678_v26 }
   0xe   : > { %s1663_s27 = smov (!%p360_p4, %s1169_s27), 1  ;;  %1088 = vmatpush1.bf16.msra.mxu0 %v1087_v14  ;;  %1122 = vmatpush1.bf16.msra.mxu1 %v1087_v14  ;;  %v687_v32 = vld [vmem:[%s1654_s5 + $0xc8] sm:$0xff]  ;;  %v689_v33 = vld [vmem:[%s1654_s5 + $0xd8] sm:$0xff]  ;;  %v686_v35 = vld [vmem:[%s1654_s5 + $0xc0] sm:$0xff]  ;;  %v1101_v59 = vpack.c.bf16 %v685_v29, %v683_v28  ;;  %v1103_v60 = vpack.c.bf16 %v684_v31, %v682_v30 }
   0xf   : > { %s1278_s11 = smul.u32 144, %s1663_s27  ;;  %1090 = vmatprep.subr.bf16.mxu0 %v1089_v15  ;;  %1115 = vmatprep.subr.bf16.mxu1 %v1089_v15  ;;  %v688_v36 = vld [vmem:[%s1654_s5 + $0xd0] sm:$0xff]  ;;  %v1362_v37 = vld [vmem:[%s1653_s4] ss:$0 sm:$0xff]  ;;  %v1368_v39 = vld [vmem:[%s1653_s4 + $0x1] ss:$0 sm:$0xff]  ;;  %v1405_v61 = vpack.c.bf16 %v689_v33, %v687_v32 }
  0x10   : > { %v691_v41 = vld [vmem:[%s1654_s5 + $0xe8] sm:$0xff]  ;;  %v693_v42 = vld [vmem:[%s1654_s5 + $0xf8] sm:$0xff]  ;;  %v1382_v46 = vld [vmem:[%s1653_s4 + $0x2] ss:$0 sm:$0xff]  ;;  %v1415_v2 = vpack.c.bf16 %v688_v36, %v686_v35  ;;  %s1080_s10 = sshll.u32 %s1663_s27, 7 }
  0x11   : > { %s1296_s22 = scalar_lea.vmem %s1649_s0, %s1278_s11  ;;  %s1311_s14 = scalar_lea.vmem %s1650_s1, %s1278_s11  ;;  %v1389_v50 = vld [vmem:[%s1653_s4 + $0x3] ss:$0 sm:$0xff]  ;;  %v1395_v52 = vld [vmem:[%s1653_s4 + $0x4] ss:$0 sm:$0xff]  ;;  %v692_v55 = vld [vmem:[%s1654_s5 + $0xf0] sm:$0xff]  ;;  %v1431_v9 = vpack.c.bf16 %v693_v42, %v691_v41 }
  0x12   : > { %s1326_s24 = scalar_lea.vmem %s1651_s2, %s1278_s11  ;;  %s1350_s25 = scalar_lea.vmem %s1652_s3, %s1278_s11  ;;  %v394_v34 = vld [vmem:[%s1296_s22] sm:$0xff]  ;;  %1092 = vmatpush1.bf16.msra.mxu0 %v1091_v20  ;;  %1123 = vmatpush1.bf16.msra.mxu1 %v1091_v20  ;;  %v1051_v58 = vld [vmem:[%s1296_s22 + $0x10] sm:$0xff]  ;;  %v1448_v18 = vld [vmem:[%s1653_s4 + $0x8] ss:$0 sm:$0xff] }
  0x13   : > { %v424_v38 = vld [vmem:[%s1311_s14] sm:$0xff]  ;;  %v407_v43 = vmul.f32 %v1362_v37, %v394_v34  ;;  %1094 = vmatprep.subr.bf16.mxu0 %v1093_v24  ;;  %1116 = vmatprep.subr.bf16.mxu1 %v1093_v24  ;;  %v1060_v0 = vld [vmem:[%s1311_s14 + $0x10] sm:$0xff]  ;;  %v408_v1 = vmul.f32 %v1051_v58, %v1362_v37  ;;  %s1595_s15 = scalar_lea.vmem %s1657_s8, %s1080_s10 }
  0x14   : > { %v437_v44 = vmul.f32 %v1368_v39, %v424_v38  ;;  %v453_v45 = vld [vmem:[%s1296_s22 + $0x1] sm:$0xff]  ;;  %v438_v14 = vmul.f32 %v1060_v0, %v1368_v39  ;;  %v1069_v17 = vld [vmem:[%s1296_s22 + $0x11] sm:$0xff] }
  0x15   : > { %v483_v47 = vld [vmem:[%s1326_s24] sm:$0xff]  ;;  %v466_v49 = vmul.f32 %v1382_v46, %v453_v45  ;;  %v484_v27 = vld [vmem:[%s1326_s24 + $0x10] sm:$0xff]  ;;  %v646_v33 = vmul.f32 %v1448_v18, %v1069_v17  ;;  %v467_v35 = vmul.f32 %v1069_v17, %v1382_v46 }
  0x16   : > { %v513_v51 = vld [vmem:[%s1350_s25] sm:$0xff]  ;;  %v445_v56 = vadd.f32 %v437_v44, %v407_v43  ;;  %v496_v57 = vmul.f32 %v1389_v50, %v483_v47  ;;  %1096 = vmatpush1.bf16.msra.mxu0 %v1095_v40  ;;  %1124 = vmatpush1.bf16.msra.mxu1 %v1095_v40  ;;  %v446_v26 = vadd.f32 %v438_v14, %v408_v1  ;;  %v514_v31 = vld [vmem:[%s1350_s25 + $0x10] sm:$0xff] }
  0x17   : > { %v690_v54 = vld [vmem:[%s1654_s5 + $0xe0] sm:$0xff]  ;;  %v526_v4 = vmul.f32 %v1395_v52, %v513_v51  ;;  %1098 = vmatprep.subr.bf16.mxu0 %v1097_v48  ;;  %1117 = vmatprep.subr.bf16.mxu1 %v1097_v48  ;;  %v543_v32 = vld [vmem:[%s1326_s24 + $0x11] sm:$0xff]  ;;  %v497_v36 = vmul.f32 %v1389_v50, %v484_v27  ;;  %v527_v48 = vmul.f32 %v1395_v52, %v514_v31 }
  0x18   : > { %v542_v62 = vld [vmem:[%s1326_s24 + $0x1] sm:$0xff]  ;;  %v474_v3 = vadd.f32 %v466_v49, %v445_v56  ;;  %v1454_v21 = vpack.c.bf16 %v692_v55, %v690_v54  ;;  %v1055_v34 = vld [vmem:[%s1296_s22 + $0x50] sm:$0xff]  ;;  %v475_v47 = vadd.f32 %v467_v35, %v446_v26 }
  0x19   : > { %v1411_v63 = vld [vmem:[%s1653_s4 + $0x5] ss:$0 sm:$0xff]  ;;  %v1421_v5 = vld [vmem:[%s1653_s4 + $0x6] ss:$0 sm:$0xff]  ;;  %v1426_v6 = vld [vmem:[%s1653_s4 + $0x7] ss:$0 sm:$0xff]  ;;  %v412_v54 = vmul.f32 %v1055_v34, %v1362_v37 }
  0x1a   : > { %v1429_v8 = vld [vmem:[%s1296_s22 + $0x40] sm:$0xff]  ;;  %v504_v15 = vadd.f32 %v496_v57, %v474_v3  ;;  %v555_v16 = vmul.f32 %v1411_v63, %v542_v62  ;;  %v587_v22 = vmul.f32 %v1421_v5, %v1051_v58  ;;  %v617_v23 = vmul.f32 %v1426_v6, %v1060_v0  ;;  %1100 = vmatpush1.bf16.msra.mxu0 %v1099_v53  ;;  %v1064_v43 = vld [vmem:[%s1311_s14 + $0x50] sm:$0xff] }
  0x1b   : > { %v411_v10 = vmul.f32 %v1362_v37, %v1429_v8  ;;  %v1436_v11 = vld [vmem:[%s1311_s14 + $0x40] sm:$0xff]  ;;  %1125 = vmatpush1.bf16.msra.mxu1 %v1099_v53  ;;  %1102 = vmatprep.subr.bf16.mxu0 %v1101_v59  ;;  %v1073_v44 = vld [vmem:[%s1296_s22 + $0x51] sm:$0xff]  ;;  %v591_v45 = vmul.f32 %v1421_v5, %v1055_v34  ;;  %v556_v49 = vmul.f32 %v1411_v63, %v543_v32 }
  0x1c   : > { %v1439_v12 = vld [vmem:[%s1296_s22 + $0x41] sm:$0xff]  ;;  %v441_v19 = vmul.f32 %v1368_v39, %v1436_v11  ;;  %v534_v28 = vadd.f32 %v526_v4, %v504_v15  ;;  %1118 = vmatprep.subr.bf16.mxu1 %v1101_v59  ;;  %v488_v55 = vld [vmem:[%s1326_s24 + $0x50] sm:$0xff]  ;;  %v505_v56 = vadd.f32 %v497_v36, %v475_v47  ;;  %v442_v58 = vmul.f32 %v1064_v43, %v1368_v39 }
  0x1d   : > { %v487_v13 = vld [vmem:[%s1326_s24 + $0x40] sm:$0xff]  ;;  %v470_v20 = vmul.f32 %v1382_v46, %v1439_v12  ;;  %v471_v59 = vmul.f32 %v1073_v44, %v1382_v46  ;;  %v650_v0 = vmul.f32 %v1448_v18, %v1073_v44  ;;  %v518_v3 = vld [vmem:[%s1350_s25 + $0x50] sm:$0xff]  ;;  %v501_v15 = vmul.f32 %v1389_v50, %v488_v55 }
  0x1e   : > { %v517_v24 = vld [vmem:[%s1350_s25 + $0x40] sm:$0xff]  ;;  %v449_v29 = vadd.f32 %v441_v19, %v411_v10  ;;  %v500_v30 = vmul.f32 %v1389_v50, %v487_v13  ;;  %v563_v38 = vadd.f32 %v555_v16, %v534_v28  ;;  %1104 = vmatpush1.bf16.msra.mxu0 %v1103_v60  ;;  %v535_v10 = vadd.f32 %v527_v48, %v505_v56  ;;  %v1053_v55 = vld [vmem:[%s1296_s22 + $0x30] sm:$0xff] }
  0x1f   : > { %v546_v25 = vld [vmem:[%s1326_s24 + $0x41] sm:$0xff]  ;;  %v530_v41 = vmul.f32 %v1395_v52, %v517_v24  ;;  %1126 = vmatpush1.bf16.msra.mxu1 %v1103_v60  ;;  %1106 = vmatprep.subr.bf16.mxu0 %v1405_v61  ;;  %v621_v60 = vmul.f32 %v1426_v6, %v1064_v43  ;;  %v450_v14 = vadd.f32 %v442_v58, %v412_v54 }
  0x20   : > { %v478_v40 = vadd.f32 %v470_v20, %v449_v29  ;;  %v559_v42 = vmul.f32 %v1411_v63, %v546_v25  ;;  %v595_v51 = vadd.f32 %v587_v22, %v563_v38  ;;  %1119 = vmatprep.subr.bf16.mxu1 %v1405_v61  ;;  %v1052_v57 = vld [vmem:[%s1296_s22 + $0x20] sm:$0xff]  ;;  %v547_v20 = vld [vmem:[%s1326_s24 + $0x51] sm:$0xff]  ;;  %v564_v22 = vadd.f32 %v556_v49, %v535_v10 }
  0x21   : > { %v588_v1 = vmul.f32 %v1421_v5, %v1052_v57  ;;  %v1061_v13 = vld [vmem:[%s1311_s14 + $0x20] sm:$0xff]  ;;  %v531_v24 = vmul.f32 %v1395_v52, %v518_v3  ;;  %v409_v26 = vmul.f32 %v1052_v57, %v1362_v37 }
  0x22   : > { %v508_v53 = vadd.f32 %v500_v30, %v478_v40  ;;  %v625_v4 = vadd.f32 %v617_v23, %v595_v51  ;;  %v1070_v61 = vld [vmem:[%s1296_s22 + $0x21] sm:$0xff]  ;;  %1108 = vmatpush1.bf16.msra.mxu0 %v1415_v2  ;;  %v618_v17 = vmul.f32 %v1426_v6, %v1061_v13  ;;  %v479_v23 = vadd.f32 %v471_v59, %v450_v14 }
  0x23   : > { %1127 = vmatpush1.bf16.msra.mxu1 %v1415_v2  ;;  %v647_v19 = vmul.f32 %v1448_v18, %v1070_v61  ;;  %1110 = vmatprep.subr.bf16.mxu0 %v1431_v9  ;;  %v485_v25 = vld [vmem:[%s1326_s24 + $0x20] sm:$0xff]  ;;  %v439_v27 = vmul.f32 %v1061_v13, %v1368_v39  ;;  %v468_v28 = vmul.f32 %v1070_v61, %v1382_v46 }
  0x24   : > { %v538_v62 = vadd.f32 %v530_v41, %v508_v53  ;;  %1120 = vmatprep.subr.bf16.mxu1 %v1431_v9  ;;  %v654_v29 = vadd.f32 %v646_v33, %v625_v4  ;;  %v596_v30 = vadd.f32 %v588_v1, %v564_v22  ;;  %v509_v31 = vadd.f32 %v501_v15, %v479_v23  ;;  %v1056_v32 = vld [vmem:[%s1296_s22 + $0x60] sm:$0xff]  ;;  %v1057_v22 = vld [vmem:[%s1296_s22 + $0x70] sm:$0xff] }
  0x25   : > { %v560_v9 = vmul.f32 %v1411_v63, %v547_v20  ;;  %v515_v34 = vld [vmem:[%s1350_s25 + $0x20] sm:$0xff]  ;;  %v447_v40 = vadd.f32 %v439_v27, %v409_v26  ;;  %v498_v41 = vmul.f32 %v1389_v50, %v485_v25  ;;  %v592_v43 = vmul.f32 %v1421_v5, %v1056_v32  ;;  %v516_v25 = vld [vmem:[%s1350_s25 + $0x30] sm:$0xff] }
  0x26   : > { %v567_v16 = vadd.f32 %v559_v42, %v538_v62  ;;  %1112 = vmatpush1.bf16.msra.mxu0 %v1454_v21  ;;  %v1065_v36 = vld [vmem:[%s1311_s14 + $0x60] sm:$0xff]  ;;  %v626_v33 = vadd.f32 %v618_v17, %v596_v30  ;;  %v539_v42 = vadd.f32 %v531_v24, %v509_v31  ;;  %v413_v49 = vmul.f32 %v1056_v32, %v1362_v37  ;;  %v486_v17 = vld [vmem:[%s1326_s24 + $0x30] sm:$0xff] }
  0x27   : > { %1128 = vmatpush1.bf16.msra.mxu1 %v1454_v21  ;;  %v1074_v38 = vld [vmem:[%s1296_s22 + $0x61] sm:$0xff]  ;;  %v622_v44 = vmul.f32 %v1426_v6, %v1065_v36  ;;  %v476_v48 = vadd.f32 %v468_v28, %v447_v40  ;;  %v528_v21 = vmul.f32 %v1395_v52, %v515_v34  ;;  %v443_v56 = vmul.f32 %v1065_v36, %v1368_v39  ;;  %v1075_v30 = vld [vmem:[%s1296_s22 + $0x71] sm:$0xff] }
  0x28   : > { %v599_v2 = vadd.f32 %v591_v45, %v567_v16  ;;  %v544_v45 = vld [vmem:[%s1326_s24 + $0x21] sm:$0xff]  ;;  %v655_v53 = vadd.f32 %v647_v19, %v626_v33  ;;  %v568_v54 = vadd.f32 %v560_v9, %v539_v42  ;;  %v472_v57 = vmul.f32 %v1074_v38, %v1382_v46  ;;  %v490_v33 = vld [vmem:[%s1326_s24 + $0x70] sm:$0xff] }
  0x29   : > { %v489_v51 = vld [vmem:[%s1326_s24 + $0x60] sm:$0xff]  ;;  %759 = vmatmul.mubr.f32.vlgmr.msra.gmra.mrb[0].mxu0 %v654_v29  ;;  %v506_v59 = vadd.f32 %v498_v41, %v476_v48  ;;  %v557_v62 = vmul.f32 %v1411_v63, %v544_v45  ;;  %v651_v3 = vmul.f32 %v1448_v18, %v1074_v38  ;;  %v451_v4 = vadd.f32 %v443_v56, %v413_v49  ;;  %v1066_v29 = vld [vmem:[%s1311_s14 + $0x70] sm:$0xff] }
  0x2a   : > { %v629_v35 = vadd.f32 %v621_v60, %v599_v2  ;;  %v519_v58 = vld [vmem:[%s1350_s25 + $0x60] sm:$0xff]  ;;  %764 = vmatprep.mubr.f32.mxu0 %v1179_v7  ;;  %v1062_v60 = vld [vmem:[%s1311_s14 + $0x30] sm:$0xff]  ;;  %v600_v1 = vadd.f32 %v592_v43, %v568_v54  ;;  %v502_v10 = vmul.f32 %v1389_v50, %v489_v51  ;;  %v589_v14 = vmul.f32 %v1421_v5, %v1053_v55 }
  0x2b   : > { %v548_v13 = vld [vmem:[%s1326_s24 + $0x61] sm:$0xff]  ;;  %v536_v61 = vadd.f32 %v528_v21, %v506_v59  ;;  %v532_v15 = vmul.f32 %v1395_v52, %v519_v58  ;;  %v410_v16 = vmul.f32 %v1053_v55, %v1362_v37  ;;  %v480_v20 = vadd.f32 %v472_v57, %v451_v4  ;;  %v520_v49 = vld [vmem:[%s1350_s25 + $0x70] sm:$0xff] }
  0x2c   : > { %v658_v47 = vadd.f32 %v650_v0, %v629_v35  ;;  %v1071_v0 = vld [vmem:[%s1296_s22 + $0x31] sm:$0xff]  ;;  %v630_v19 = vadd.f32 %v622_v44, %v600_v1  ;;  %v440_v23 = vmul.f32 %v1062_v60, %v1368_v39  ;;  %v619_v26 = vmul.f32 %v1426_v6, %v1062_v60 }
  0x2d   : > { %765 = vmatmul.mubr.f32.gmra.mrb[2].mxu0 %v655_v53  ;;  %v469_v24 = vmul.f32 %v1071_v0, %v1382_v46  ;;  %v565_v2 = vadd.f32 %v557_v62, %v536_v61  ;;  %v648_v27 = vmul.f32 %v1448_v18, %v1071_v0  ;;  %v561_v28 = vmul.f32 %v1411_v63, %v548_v13  ;;  %v545_v35 = vld [vmem:[%s1326_s24 + $0x31] sm:$0xff]  ;;  %v1058_v0 = vld [vmem:[%s1296_s22 + $0x80] sm:$0xff] }
  0x2e   : > { %783 = vmatmul.mubr.f32.vlgmr.msra.gmra.mrb[0].mxu1 %v658_v47  ;;  %770 = vmatprep.mubr.f32.mxu0 %v1179_v7  ;;  %v659_v31 = vadd.f32 %v651_v3, %v630_v19  ;;  %v510_v9 = vadd.f32 %v502_v10, %v480_v20  ;;  %v448_v32 = vadd.f32 %v440_v23, %v410_v16  ;;  %v1067_v10 = vld [vmem:[%s1311_s14 + $0x80] sm:$0xff]  ;;  %v809_v23 = vlaneseq }
  0x2f   : > { %788 = vmatprep.mubr.f32.mxu1 %v1179_v7  ;;  %v499_v34 = vmul.f32 %v1389_v50, %v486_v17  ;;  %v597_v36 = vadd.f32 %v589_v14, %v565_v2  ;;  %v593_v38 = vmul.f32 %v1421_v5, %v1057_v22  ;;  %v529_v40 = vmul.f32 %v1395_v52, %v516_v25  ;;  %v807_v25 = vld [vmem:[%s1655_s6] sm:$0x3] }
  0x30   : > { %v414_v41 = vmul.f32 %v1057_v22, %v1362_v37  ;;  %v540_v42 = vadd.f32 %v532_v15, %v510_v9  ;;  %v477_v43 = vadd.f32 %v469_v24, %v448_v32  ;;  %v444_v44 = vmul.f32 %v1066_v29, %v1368_v39  ;;  %v1076_v15 = vld [vmem:[%s1296_s22 + $0x81] sm:$0xff] }
  0x31   : > { %v473_v45 = vmul.f32 %v1075_v30, %v1382_v46  ;;  %v627_v47 = vadd.f32 %v619_v26, %v597_v36  ;;  %v623_v48 = vmul.f32 %v1426_v6, %v1066_v29  ;;  %v558_v21 = vmul.f32 %v1411_v63, %v545_v35  ;;  %v549_v46 = vld [vmem:[%s1326_s24 + $0x71] sm:$0xff] }
  0x32   : > { %789 = vmatmul.mubr.f32.gmra.mrb[2].mxu1 %v659_v31  ;;  %v569_v51 = vadd.f32 %v561_v28, %v540_v42  ;;  %v507_v37 = vadd.f32 %v499_v34, %v477_v43  ;;  %v452_v53 = vadd.f32 %v444_v44, %v414_v41  ;;  %v503_v54 = vmul.f32 %v1389_v50, %v490_v33 }
  0x33   : > { %794 = vmatprep.mubr.f32.mxu1 %v1179_v7  ;;  %v656_v55 = vadd.f32 %v648_v27, %v627_v47  ;;  %v652_v56 = vmul.f32 %v1448_v18, %v1075_v30  ;;  %v590_v39 = vmul.f32 %v1421_v5, %v1429_v8  ;;  %v533_v62 = vmul.f32 %v1395_v52, %v520_v49 }
  0x34   : > { %v601_v57 = vadd.f32 %v593_v38, %v569_v51  ;;  %v537_v58 = vadd.f32 %v529_v40, %v507_v37  ;;  %v481_v59 = vadd.f32 %v473_v45, %v452_v53  ;;  %v620_v60 = vmul.f32 %v1426_v6, %v1436_v11 }
  0x35   : > { %771 = vmatmul.mubr.f32.gmra.mrb[4].mxu0 %v656_v55  ;;  %v562_v4 = vmul.f32 %v1411_v63, %v549_v46  ;;  %v649_v8 = vmul.f32 %v1448_v18, %v1439_v12  ;;  %v594_v52 = vmul.f32 %v1421_v5, %v1058_v0  ;;  %v624_v17 = vmul.f32 %v1426_v6, %v1067_v10 }
  0x36   : > { %v631_v50 = vadd.f32 %v623_v48, %v601_v57  ;;  %776 = vmatprep.mubr.f32.mxu0 %v1179_v7  ;;  %v566_v1 = vadd.f32 %v558_v21, %v537_v58  ;;  %v511_v3 = vadd.f32 %v503_v54, %v481_v59  ;;  %v653_v63 = vmul.f32 %v1448_v18, %v1076_v15 }
  0x37   : > { %v810_v24 = vshrl.u32 %v809_v23, 7 }
  0x38   : > { %v660_v13 = vadd.f32 %v652_v56, %v631_v50  ;;  %v598_v61 = vadd.f32 %v590_v39, %v566_v1  ;;  %v541_v14 = vadd.f32 %v533_v62, %v511_v3 }
  0x39   : > { %v811_v5 = vsub.s32 0, %v810_v24  ;;  %v815_v2 = vsub.s32 1, %v810_v24 }
  0x3a   : > { %795 = vmatmul.mubr.f32.gmra.mrb[4].mxu1 %v660_v13  ;;  %v628_v11 = vadd.f32 %v620_v60, %v598_v61  ;;  %v570_v16 = vadd.f32 %v562_v4, %v541_v14 }
  0x3b   : > { %800 = vmatprep.mubr.f32.mxu1 %v1179_v7  ;;  %v835_v7 = vld [vmem:[%s1656_s7] sm:$0x3]  ;;  %v1578_v6 = vrot.slane %v807_v25, %v811_v5  ;;  %v1580_v18 = vrot.slane %v807_v25, %v815_v2 }
  0x3c   : > { %v657_v19 = vadd.f32 %v649_v8, %v628_v11  ;;  %v602_v20 = vadd.f32 %v594_v52, %v570_v16  ;;  %v1582_v26 = vrot.slane %v835_v7, %v811_v5  ;;  %v1584_v28 = vrot.slane %v835_v7, %v815_v2 }
  0x3e   : > { %777 = vmatmul.mubr.f32.gmra.mrb[6].mxu0 %v657_v19  ;;  %v632_v12 = vadd.f32 %v624_v17, %v602_v20 }
  0x40   : > { %v661_v22 = vadd.f32 %v653_v63, %v632_v12 }
  0x42   : > { %801 = vmatmul.mubr.f32.gmra.mrb[6].mxu1 %v661_v22 }
  0xfc   : > { %v760_v27 = vpop.f32.mrb[0].mxu0 }
  0xfd   : > { %v819_v29 = vmul.f32 %v1578_v6, %v760_v27  ;;  %v762_v31 = vpop.f32.mrb[1].mxu0 }
  0xfe   : > { %v820_v32 = vmul.f32 %v1580_v18, %v762_v31 }
  0xff   : > { %v847_v35 = vadd.f32 %v1582_v26, %v819_v29 }
 0x100   : > { %v848_v40 = vadd.f32 %v1584_v28, %v820_v32  ;;  %v766_v41 = vpop.f32.mrb[2].mxu0 }
 0x101   : > { %v784_v30 = vpop.f32.mrb[0].mxu1  ;;  %v863_v33 = vmax.f32 %v847_v35, 0.0  ;;  %v821_v43 = vmul.f32 %v1578_v6, %v766_v41  ;;  %v768_v44 = vpop.f32.mrb[3].mxu0 }
 0x102   : > { %v827_v9 = vmul.f32 %v1578_v6, %v784_v30  ;;  %v786_v34 = vpop.f32.mrb[1].mxu1  ;;  %v864_v47 = vmax.f32 %v848_v40, 0.0  ;;  %v822_v48 = vmul.f32 %v1580_v18, %v768_v44 }
 0x103   : > { %v828_v36 = vmul.f32 %v1580_v18, %v786_v34  ;;  %879 = vst [vmem:[%s1595_s15] sm:$0xff] %v863_v33  ;;  %v849_v49 = vadd.f32 %v1582_v26, %v821_v43 }
 0x104   : > { %v855_v38 = vadd.f32 %v1582_v26, %v827_v9  ;;  %880 = vst [vmem:[%s1595_s15 + $0x8] sm:$0xff] %v864_v47  ;;  %v850_v37 = vadd.f32 %v1584_v28, %v822_v48 }
 0x105   : > { %v856_v42 = vadd.f32 %v1584_v28, %v828_v36  ;;  %v790_v51 = vpop.f32.mrb[2].mxu1  ;;  %v865_v53 = vmax.f32 %v849_v49, 0.0 }
 0x106   : > { %v871_v45 = vmax.f32 %v855_v38, 0.0  ;;  %v829_v54 = vmul.f32 %v1578_v6, %v790_v51  ;;  %v792_v55 = vpop.f32.mrb[3].mxu1  ;;  %v866_v56 = vmax.f32 %v850_v37, 0.0 }
 0x107   : > { %v872_v21 = vmax.f32 %v856_v42, 0.0  ;;  %v830_v39 = vmul.f32 %v1580_v18, %v792_v55  ;;  %881 = vst [vmem:[%s1595_s15 + $0x10] sm:$0xff] %v865_v53 }
 0x108   : > { %887 = vst [vmem:[%s1595_s15 + $0x40] sm:$0xff] %v871_v45  ;;  %v857_v46 = vadd.f32 %v1582_v26, %v829_v54  ;;  %882 = vst [vmem:[%s1595_s15 + $0x18] sm:$0xff] %v866_v56  ;;  %v772_v59 = vpop.f32.mrb[4].mxu0 }
 0x109   : > { %888 = vst [vmem:[%s1595_s15 + $0x48] sm:$0xff] %v872_v21  ;;  %v858_v57 = vadd.f32 %v1584_v28, %v830_v39  ;;  %v823_v60 = vmul.f32 %v1578_v6, %v772_v59  ;;  %v774_v0 = vpop.f32.mrb[5].mxu0 }
 0x10a   : > { %v873_v58 = vmax.f32 %v857_v46, 0.0  ;;  %v824_v50 = vmul.f32 %v1580_v18, %v774_v0 }
 0x10b   : > { %v874_v62 = vmax.f32 %v858_v57, 0.0  ;;  %v851_v1 = vadd.f32 %v1582_v26, %v823_v60 }
 0x10c   : > { %889 = vst [vmem:[%s1595_s15 + $0x50] sm:$0xff] %v873_v58  ;;  %v852_v3 = vadd.f32 %v1584_v28, %v824_v50 }
 0x10d   : > { %890 = vst [vmem:[%s1595_s15 + $0x58] sm:$0xff] %v874_v62  ;;  %v867_v4 = vmax.f32 %v851_v1, 0.0  ;;  %v796_v8 = vpop.f32.mrb[4].mxu1 }
 0x10e   : > { %v831_v10 = vmul.f32 %v1578_v6, %v796_v8  ;;  %v868_v13 = vmax.f32 %v852_v3, 0.0  ;;  %v798_v61 = vpop.f32.mrb[5].mxu1 }
 0x10f   : > { %883 = vst [vmem:[%s1595_s15 + $0x20] sm:$0xff] %v867_v4  ;;  %v832_v14 = vmul.f32 %v1580_v18, %v798_v61 }
 0x110   : > { %v859_v52 = vadd.f32 %v1582_v26, %v831_v10  ;;  %884 = vst [vmem:[%s1595_s15 + $0x28] sm:$0xff] %v868_v13 }
 0x111   : > { %v860_v15 = vadd.f32 %v1584_v28, %v832_v14  ;;  %v778_v11 = vpop.f32.mrb[6].mxu0 }
 0x112   : > { %v875_v16 = vmax.f32 %v859_v52, 0.0  ;;  %v825_v17 = vmul.f32 %v1578_v6, %v778_v11  ;;  %v780_v19 = vpop.f32.mrb[7].mxu0 }
 0x113   : > { %v876_v20 = vmax.f32 %v860_v15, 0.0  ;;  %v826_v63 = vmul.f32 %v1580_v18, %v780_v19 }
 0x114   : > { %891 = vst [vmem:[%s1595_s15 + $0x60] sm:$0xff] %v875_v16  ;;  %v853_v12 = vadd.f32 %v1582_v26, %v825_v17 }
 0x115   : > { %892 = vst [vmem:[%s1595_s15 + $0x68] sm:$0xff] %v876_v20  ;;  %v802_v22 = vpop.f32.mrb[6].mxu1  ;;  %v854_v23 = vadd.f32 %v1584_v28, %v826_v63 }
 0x116   : > { %v869_v24 = vmax.f32 %v853_v12, 0.0  ;;  %v833_v5 = vmul.f32 %v1578_v6, %v802_v22  ;;  %v804_v25 = vpop.f32.mrb[7].mxu1 }
 0x117   : > { %v870_v2 = vmax.f32 %v854_v23, 0.0  ;;  %v834_v7 = vmul.f32 %v1580_v18, %v804_v25 }
 0x118   : > { %885 = vst [vmem:[%s1595_s15 + $0x30] sm:$0xff] %v869_v24  ;;  %v861_v27 = vadd.f32 %v1582_v26, %v833_v5 }
 0x119   : > { %886 = vst [vmem:[%s1595_s15 + $0x38] sm:$0xff] %v870_v2  ;;  %v862_v29 = vadd.f32 %v1584_v28, %v834_v7 }
 0x11a   : > { %v877_v30 = vmax.f32 %v861_v27, 0.0 }
 0x11b   : > { %v878_v31 = vmax.f32 %v862_v29, 0.0 }
 0x11c   : > { %893 = vst [vmem:[%s1595_s15 + $0x70] sm:$0xff] %v877_v30 }
 0x11d   : > { %894 = vst [vmem:[%s1595_s15 + $0x78] sm:$0xff] %v878_v31 }
 0x11e PF: > { %s18_s29 = sadd.s32 1, %s1177_s29   ;;  %s1658_s27 = smov %s1173_s28 }
 0x11f   : > { %p15_p5 = scmp.ge.s32.totalorder %s18_s29, 4   ;;  %s1659_s28 = smov %s1661_s30 }
 0x121   :  { %17 = sbr.rel (!%p15_p5) target bundleno = 2 (0x2), region = 97 }

// kernel: _lambda_.8
= control target key start
LH: loop header
LB: loop body
LE: loop exit
PB: predicated region body
PF: predicated region fallthrough
CT: control target
= control target key end

     0   :  { %s1624_s27 = smov 0   ;;  %s1626_s28 = smov 0   ;;  %s2504_s0 = inlined_call_operand.vmem [shape: f32[2,5,5,256], index: 0, kind: input, shape index: {}]   ;;  %s2505_s1 = inlined_call_operand.vmem [shape: f32[2,5,5,256], index: 1, kind: input, shape index: {}]   ;;  %s2506_s2 = inlined_call_operand.vmem [shape: f32[2,5,5,256], index: 2, kind: input, shape index: {}]   ;;  %s2507_s3 = inlined_call_operand.vmem [shape: f32[2,5,5,256], index: 3, kind: input, shape index: {}]   ;;  %s2508_s4 = inlined_call_operand.vmem [shape: f32[9,256], index: 4, kind: input, shape index: {}]   ;;  %s2509_s5 = inlined_call_operand.vmem [shape: f32[256,512], index: 5, kind: input, shape index: {}]   ;;  %s2510_s6 = inlined_call_operand.vmem [shape: f32[1,512], index: 6, kind: input, shape index: {}]   ;;  %s2511_s7 = inlined_call_operand.vmem [shape: f32[1,512], index: 7, kind: input, shape index: {}]   ;;  %s2512_s8 = inlined_call_operand.vmem [shape: f32[2,4,4,512], index: 8, kind: output, shape index: {}]  }
   0x1   :  { %s1628_s29 = smov 0  }
   0x2 LB: > { %s30_s30 = sadd.s32 1, %s1573_s28  ;;  %p1356_p0 = scmp.ge.s32.totalorder %s1577_s29, 1  ;;  %s1577_s29 = sphi %s1628_s29, %s18_s29   ;;  %s1573_s28 = sphi %s1626_s28, %s2522_s28   ;;  %s1569_s27 = sphi %s1624_s27, %s2521_s27  }
   0x3   : > { %p32_p1 = scmp.ge.s32.totalorder %s30_s30, 2  ;;  %p306_p2 = scmp.lt.s32.totalorder %s1577_s29, 3 }
   0x5   : > { %s2524_s30 = smov (%p32_p1, %s30_s30), 0  ;;  %p307_p3 = pnand %p1356_p0, %p306_p2 }
   0x6   : > { %v824_v0 = vld [vmem:[%s2509_s5 + $0x8] sm:$0xff] (!%p307_p3)  ;;  %v826_v2 = vld [vmem:[%s2509_s5 + $0x18] sm:$0xff] (!%p307_p3)  ;;  %v823_v5 = vld [vmem:[%s2509_s5] sm:$0xff] (!%p307_p3)  ;;  %p360_p4 = scmp.lt.s32.totalorder (!%p307_p3), %s1569_s27, 1 }
   0x7   : > { %310 = sbr.rel (%p307_p3) target bundleno = 333 (0x14d), region = 52  ;;  %v828_v1 = vld [vmem:[%s2509_s5 + $0x28] sm:$0xff] (!%p307_p3)  ;;  %v830_v4 = vld [vmem:[%s2509_s5 + $0x38] sm:$0xff] (!%p307_p3)  ;;  %v827_v6 = vld [vmem:[%s2509_s5 + $0x20] sm:$0xff] (!%p307_p3) }
   0x8   : > { %v1402_v3 = vpack.c.bf16 (!%p307_p3), %v828_v1, %v824_v0  ;;  %v1466_v7 = vpack.c.bf16 (!%p307_p3), %v830_v4, %v826_v2  ;;  %v1404_v8 = vpack.c.bf16 (!%p307_p3), %v827_v6, %v823_v5  ;;  %v825_v9 = vld [vmem:[%s2509_s5 + $0x10] sm:$0xff] (!%p307_p3)  ;;  %v832_v11 = vld [vmem:[%s2509_s5 + $0x48] sm:$0xff] (!%p307_p3)  ;;  %v834_v14 = vld [vmem:[%s2509_s5 + $0x58] sm:$0xff] (!%p307_p3) }
   0x9   : > { %v829_v10 = vld [vmem:[%s2509_s5 + $0x30] sm:$0xff] (!%p307_p3)  ;;  %v836_v13 = vld [vmem:[%s2509_s5 + $0x68] sm:$0xff] (!%p307_p3)  ;;  %v838_v15 = vld [vmem:[%s2509_s5 + $0x78] sm:$0xff] (!%p307_p3) }
   0xa   : > { %1403 = vmatprep.subr.bf16.mxu0 (!%p307_p3), %v1402_v3  ;;  %v1468_v12 = vpack.c.bf16 (!%p307_p3), %v829_v10, %v825_v9  ;;  %1467 = vmatprep.subr.bf16.mxu1 (!%p307_p3), %v1466_v7  ;;  %v1406_v16 = vpack.c.bf16 (!%p307_p3), %v836_v13, %v832_v11  ;;  %v1470_v17 = vpack.c.bf16 (!%p307_p3), %v838_v15, %v834_v14  ;;  %v831_v18 = vld [vmem:[%s2509_s5 + $0x40] sm:$0xff] (!%p307_p3)  ;;  %v833_v20 = vld [vmem:[%s2509_s5 + $0x50] sm:$0xff] (!%p307_p3)  ;;  %v840_v23 = vld [vmem:[%s2509_s5 + $0x88] sm:$0xff] (!%p307_p3) }
   0xb   : > { %1405 = vmatpush1.bf16.msra.mxu0 (!%p307_p3), %v1404_v8  ;;  %v835_v19 = vld [vmem:[%s2509_s5 + $0x60] sm:$0xff] (!%p307_p3)  ;;  %v837_v22 = vld [vmem:[%s2509_s5 + $0x70] sm:$0xff] (!%p307_p3)  ;;  %v844_v24 = vld [vmem:[%s2509_s5 + $0xa8] sm:$0xff] (!%p307_p3) }
   0xc   : > { %1469 = vmatpush1.bf16.msra.mxu1 (!%p307_p3), %v1468_v12  ;;  %v1408_v21 = vpack.c.bf16 (!%p307_p3), %v835_v19, %v831_v18  ;;  %1407 = vmatprep.subr.bf16.mxu0 (!%p307_p3), %v1406_v16  ;;  %v1472_v25 = vpack.c.bf16 (!%p307_p3), %v837_v22, %v833_v20  ;;  %v1410_v26 = vpack.c.bf16 (!%p307_p3), %v844_v24, %v840_v23  ;;  %v842_v27 = vld [vmem:[%s2509_s5 + $0x98] sm:$0xff] (!%p307_p3)  ;;  %v839_v29 = vld [vmem:[%s2509_s5 + $0x80] sm:$0xff] (!%p307_p3)  ;;  %v841_v32 = vld [vmem:[%s2509_s5 + $0x90] sm:$0xff] (!%p307_p3) }
   0xd   : > { %1471 = vmatprep.subr.bf16.mxu1 (!%p307_p3), %v1470_v17  ;;  %v846_v28 = vld [vmem:[%s2509_s5 + $0xb8] sm:$0xff] (!%p307_p3)  ;;  %v843_v31 = vld [vmem:[%s2509_s5 + $0xa0] sm:$0xff] (!%p307_p3)  ;;  %v845_v33 = vld [vmem:[%s2509_s5 + $0xb0] sm:$0xff] (!%p307_p3) }
   0xe   : > { %v1474_v30 = vpack.c.bf16 %v846_v28, %v842_v27  ;;  %v1412_v34 = vpack.c.bf16 %v843_v31, %v839_v29  ;;  %v848_v35 = vld [vmem:[%s2509_s5 + $0xc8] sm:$0xff]  ;;  %v850_v37 = vld [vmem:[%s2509_s5 + $0xd8] sm:$0xff]  ;;  %v1476_v38 = vpack.c.bf16 %v845_v33, %v841_v32  ;;  %v847_v41 = vld [vmem:[%s2509_s5 + $0xc0] sm:$0xff]  ;;  %s2526_s27 = smov (!%p360_p4, %s1569_s27), 1 }
   0xf   : > { %1409 = vmatpush1.bf16.msra.mxu0 %v1408_v21  ;;  %v852_v36 = vld [vmem:[%s2509_s5 + $0xe8] sm:$0xff]  ;;  %v854_v40 = vld [vmem:[%s2509_s5 + $0xf8] sm:$0xff]  ;;  %v851_v42 = vld [vmem:[%s2509_s5 + $0xe0] sm:$0xff]  ;;  %s1913_s19 = smul.u32 80, %s2526_s27  ;;  %s1401_s23 = sshll.u32 %s2526_s27, 6 }
  0x10   : > { %1473 = vmatpush1.bf16.msra.mxu1 %v1472_v25  ;;  %1411 = vmatprep.subr.bf16.mxu0 %v1410_v26  ;;  %v1414_v39 = vpack.c.bf16 %v852_v36, %v848_v35  ;;  %v1478_v43 = vpack.c.bf16 %v854_v40, %v850_v37  ;;  %v849_v44 = vld [vmem:[%s2509_s5 + $0xd0] sm:$0xff]  ;;  %v856_v46 = vld [vmem:[%s2509_s5 + $0x108] sm:$0xff]  ;;  %v858_v48 = vld [vmem:[%s2509_s5 + $0x118] sm:$0xff]  ;;  %v1416_v50 = vpack.c.bf16 %v851_v42, %v847_v41  ;;  %s2485_s25 = scalar_lea.vmem %s2512_s8, %s1401_s23 }
  0x11   : > { %1475 = vmatprep.subr.bf16.mxu1 %v1474_v30  ;;  %v853_v45 = vld [vmem:[%s2509_s5 + $0xf0] sm:$0xff]  ;;  %v860_v47 = vld [vmem:[%s2509_s5 + $0x128] sm:$0xff]  ;;  %v862_v49 = vld [vmem:[%s2509_s5 + $0x138] sm:$0xff]  ;;  %s2041_s18 = scalar_lea.vmem %s2504_s0, %s1913_s19  ;;  %s2096_s22 = scalar_lea.vmem %s2505_s1, %s1913_s19 }
  0x12   : > { %v1480_v51 = vpack.c.bf16 %v853_v45, %v849_v44  ;;  %v1418_v52 = vpack.c.bf16 %v860_v47, %v856_v46  ;;  %v855_v53 = vld [vmem:[%s2509_s5 + $0x100] sm:$0xff]  ;;  %v857_v55 = vld [vmem:[%s2509_s5 + $0x110] sm:$0xff]  ;;  %v1482_v56 = vpack.c.bf16 %v862_v49, %v858_v48  ;;  %v864_v58 = vld [vmem:[%s2509_s5 + $0x148] sm:$0xff]  ;;  %v405_v48 = vlaneseq  ;;  %s2170_s10 = scalar_lea.vmem %s2506_s2, %s1913_s19  ;;  %s2203_s21 = scalar_lea.vmem %s2507_s3, %s1913_s19 }
  0x13   : > { %1413 = vmatpush1.bf16.msra.mxu0 %v1412_v34  ;;  %v859_v54 = vld [vmem:[%s2509_s5 + $0x120] sm:$0xff]  ;;  %v861_v57 = vld [vmem:[%s2509_s5 + $0x130] sm:$0xff]  ;;  %v868_v59 = vld [vmem:[%s2509_s5 + $0x168] sm:$0xff] }
  0x14   : > { %1477 = vmatpush1.bf16.msra.mxu1 %v1476_v38  ;;  %1415 = vmatprep.subr.bf16.mxu0 %v1414_v39  ;;  %v866_v60 = vld [vmem:[%s2509_s5 + $0x158] sm:$0xff]  ;;  %v1420_v62 = vpack.c.bf16 %v859_v54, %v855_v53  ;;  %v1484_v63 = vpack.c.bf16 %v861_v57, %v857_v55  ;;  %v1422_v0 = vpack.c.bf16 %v868_v59, %v864_v58  ;;  %v863_v1 = vld [vmem:[%s2509_s5 + $0x140] sm:$0xff]  ;;  %v865_v3 = vld [vmem:[%s2509_s5 + $0x150] sm:$0xff] }
  0x15   : > { %1479 = vmatprep.subr.bf16.mxu1 %v1478_v43  ;;  %v870_v61 = vld [vmem:[%s2509_s5 + $0x178] sm:$0xff]  ;;  %v867_v2 = vld [vmem:[%s2509_s5 + $0x160] sm:$0xff]  ;;  %v869_v5 = vld [vmem:[%s2509_s5 + $0x170] sm:$0xff] }
  0x16   : > { %v1486_v4 = vpack.c.bf16 %v870_v61, %v866_v60  ;;  %v872_v6 = vld [vmem:[%s2509_s5 + $0x188] sm:$0xff]  ;;  %v874_v8 = vld [vmem:[%s2509_s5 + $0x198] sm:$0xff]  ;;  %v1424_v10 = vpack.c.bf16 %v867_v2, %v863_v1  ;;  %v1488_v11 = vpack.c.bf16 %v869_v5, %v865_v3  ;;  %v871_v13 = vld [vmem:[%s2509_s5 + $0x180] sm:$0xff]  ;;  %v1935_v2 = vshrl.u32 %v405_v48, 7 }
  0x17   : > { %1417 = vmatpush1.bf16.msra.mxu0 %v1416_v50  ;;  %v876_v7 = vld [vmem:[%s2509_s5 + $0x1a8] sm:$0xff]  ;;  %v878_v9 = vld [vmem:[%s2509_s5 + $0x1b8] sm:$0xff]  ;;  %v875_v14 = vld [vmem:[%s2509_s5 + $0x1a0] sm:$0xff] }
  0x18   : > { %1481 = vmatpush1.bf16.msra.mxu1 %v1480_v51  ;;  %1419 = vmatprep.subr.bf16.mxu0 %v1418_v52  ;;  %v1426_v12 = vpack.c.bf16 %v876_v7, %v872_v6  ;;  %v873_v15 = vld [vmem:[%s2509_s5 + $0x190] sm:$0xff]  ;;  %v1490_v16 = vpack.c.bf16 %v878_v9, %v874_v8  ;;  %v880_v18 = vld [vmem:[%s2509_s5 + $0x1c8] sm:$0xff]  ;;  %v882_v20 = vld [vmem:[%s2509_s5 + $0x1d8] sm:$0xff]  ;;  %v1428_v22 = vpack.c.bf16 %v875_v14, %v871_v13  ;;  %v2136_v48 = vsub.s32 0, %v1935_v2 }
  0x19   : > { %1483 = vmatprep.subr.bf16.mxu1 %v1482_v56  ;;  %v877_v17 = vld [vmem:[%s2509_s5 + $0x1b0] sm:$0xff]  ;;  %v884_v19 = vld [vmem:[%s2509_s5 + $0x1e8] sm:$0xff]  ;;  %v886_v21 = vld [vmem:[%s2509_s5 + $0x1f8] sm:$0xff] }
  0x1a   : > { %v1492_v23 = vpack.c.bf16 %v877_v17, %v873_v15  ;;  %v1430_v24 = vpack.c.bf16 %v884_v19, %v880_v18  ;;  %v879_v25 = vld [vmem:[%s2509_s5 + $0x1c0] sm:$0xff]  ;;  %v881_v27 = vld [vmem:[%s2509_s5 + $0x1d0] sm:$0xff]  ;;  %v1494_v28 = vpack.c.bf16 %v886_v21, %v882_v20  ;;  %v888_v30 = vld [vmem:[%s2509_s5 + $0x208] sm:$0xff] }
  0x1b   : > { %1421 = vmatpush1.bf16.msra.mxu0 %v1420_v62  ;;  %v883_v26 = vld [vmem:[%s2509_s5 + $0x1e0] sm:$0xff]  ;;  %v885_v29 = vld [vmem:[%s2509_s5 + $0x1f0] sm:$0xff]  ;;  %v892_v31 = vld [vmem:[%s2509_s5 + $0x228] sm:$0xff] }
  0x1c   : > { %1485 = vmatpush1.bf16.msra.mxu1 %v1484_v63  ;;  %1423 = vmatprep.subr.bf16.mxu0 %v1422_v0  ;;  %v890_v32 = vld [vmem:[%s2509_s5 + $0x218] sm:$0xff]  ;;  %v1432_v34 = vpack.c.bf16 %v883_v26, %v879_v25  ;;  %v1496_v35 = vpack.c.bf16 %v885_v29, %v881_v27  ;;  %v1434_v36 = vpack.c.bf16 %v892_v31, %v888_v30  ;;  %v887_v37 = vld [vmem:[%s2509_s5 + $0x200] sm:$0xff]  ;;  %v889_v39 = vld [vmem:[%s2509_s5 + $0x210] sm:$0xff] }
  0x1d   : > { %1487 = vmatprep.subr.bf16.mxu1 %v1486_v4  ;;  %v894_v33 = vld [vmem:[%s2509_s5 + $0x238] sm:$0xff]  ;;  %v891_v38 = vld [vmem:[%s2509_s5 + $0x220] sm:$0xff]  ;;  %v893_v41 = vld [vmem:[%s2509_s5 + $0x230] sm:$0xff] }
  0x1e   : > { %v1498_v40 = vpack.c.bf16 %v894_v33, %v890_v32  ;;  %v896_v42 = vld [vmem:[%s2509_s5 + $0x248] sm:$0xff]  ;;  %v898_v44 = vld [vmem:[%s2509_s5 + $0x258] sm:$0xff]  ;;  %v1436_v46 = vpack.c.bf16 %v891_v38, %v887_v37  ;;  %v895_v47 = vld [vmem:[%s2509_s5 + $0x240] sm:$0xff]  ;;  %v1500_v49 = vpack.c.bf16 %v893_v41, %v889_v39  ;;  %v2071_v32 = vsub.s32 1, %v1935_v2 }
  0x1f   : > { %1425 = vmatpush1.bf16.msra.mxu0 %v1424_v10  ;;  %v900_v43 = vld [vmem:[%s2509_s5 + $0x268] sm:$0xff]  ;;  %v902_v45 = vld [vmem:[%s2509_s5 + $0x278] sm:$0xff]  ;;  %v899_v51 = vld [vmem:[%s2509_s5 + $0x260] sm:$0xff] }
  0x20   : > { %1489 = vmatpush1.bf16.msra.mxu1 %v1488_v11  ;;  %1427 = vmatprep.subr.bf16.mxu0 %v1426_v12  ;;  %v1438_v50 = vpack.c.bf16 %v900_v43, %v896_v42  ;;  %v897_v52 = vld [vmem:[%s2509_s5 + $0x250] sm:$0xff]  ;;  %v1502_v54 = vpack.c.bf16 %v902_v45, %v898_v44  ;;  %v904_v55 = vld [vmem:[%s2509_s5 + $0x288] sm:$0xff]  ;;  %v906_v57 = vld [vmem:[%s2509_s5 + $0x298] sm:$0xff]  ;;  %v1440_v61 = vpack.c.bf16 %v899_v51, %v895_v47 }
  0x21   : > { %1491 = vmatprep.subr.bf16.mxu1 %v1490_v16  ;;  %v901_v53 = vld [vmem:[%s2509_s5 + $0x270] sm:$0xff]  ;;  %v908_v56 = vld [vmem:[%s2509_s5 + $0x2a8] sm:$0xff]  ;;  %v910_v58 = vld [vmem:[%s2509_s5 + $0x2b8] sm:$0xff] }
  0x22   : > { %v1905_v59 = vld [vmem:[%s2509_s5 + $0x280] sm:$0xff]  ;;  %v1918_v62 = vld [vmem:[%s2509_s5 + $0x290] sm:$0xff]  ;;  %v1928_v0 = vld [vmem:[%s2509_s5 + $0x2c8] sm:$0xff]  ;;  %v1504_v3 = vpack.c.bf16 %v901_v53, %v897_v52  ;;  %v1442_v4 = vpack.c.bf16 %v908_v56, %v904_v55  ;;  %v1506_v11 = vpack.c.bf16 %v910_v58, %v906_v57 }
  0x23   : > { %1429 = vmatpush1.bf16.msra.mxu0 %v1428_v22  ;;  %v1910_v60 = vld [vmem:[%s2509_s5 + $0x2a0] sm:$0xff]  ;;  %v1923_v63 = vld [vmem:[%s2509_s5 + $0x2b0] sm:$0xff]  ;;  %v1933_v1 = vld [vmem:[%s2509_s5 + $0x2e8] sm:$0xff] }
  0x24   : > { %1493 = vmatpush1.bf16.msra.mxu1 %v1492_v23  ;;  %1431 = vmatprep.subr.bf16.mxu0 %v1430_v24  ;;  %v1940_v5 = vld [vmem:[%s2509_s5 + $0x2d8] sm:$0xff]  ;;  %v1950_v7 = vld [vmem:[%s2509_s5 + $0x2c0] sm:$0xff]  ;;  %v1960_v9 = vld [vmem:[%s2509_s5 + $0x2d0] sm:$0xff]  ;;  %v1444_v26 = vpack.c.bf16 %v1910_v60, %v1905_v59  ;;  %v1508_v33 = vpack.c.bf16 %v1923_v63, %v1918_v62 }
  0x25   : > { %1495 = vmatprep.subr.bf16.mxu1 %v1494_v28  ;;  %v1945_v6 = vld [vmem:[%s2509_s5 + $0x2f8] sm:$0xff]  ;;  %v1955_v8 = vld [vmem:[%s2509_s5 + $0x2e0] sm:$0xff]  ;;  %v1965_v10 = vld [vmem:[%s2509_s5 + $0x2f0] sm:$0xff] }
  0x26   : > { %v1970_v12 = vld [vmem:[%s2509_s5 + $0x308] sm:$0xff]  ;;  %v1980_v14 = vld [vmem:[%s2509_s5 + $0x318] sm:$0xff]  ;;  %v1990_v16 = vld [vmem:[%s2509_s5 + $0x300] sm:$0xff]  ;;  %v1510_v38 = vpack.c.bf16 %v1945_v6, %v1940_v5  ;;  %v1448_v39 = vpack.c.bf16 %v1955_v8, %v1950_v7 }
  0x27   : > { %1433 = vmatpush1.bf16.msra.mxu0 %v1432_v34  ;;  %v1975_v13 = vld [vmem:[%s2509_s5 + $0x328] sm:$0xff]  ;;  %v1985_v15 = vld [vmem:[%s2509_s5 + $0x338] sm:$0xff]  ;;  %v1995_v17 = vld [vmem:[%s2509_s5 + $0x320] sm:$0xff]  ;;  %v1446_v34 = vpack.c.bf16 %v1933_v1, %v1928_v0 }
  0x28   : > { %1497 = vmatpush1.bf16.msra.mxu1 %v1496_v35  ;;  %1435 = vmatprep.subr.bf16.mxu0 %v1434_v36  ;;  %v2000_v18 = vld [vmem:[%s2509_s5 + $0x310] sm:$0xff]  ;;  %v2010_v20 = vld [vmem:[%s2509_s5 + $0x348] sm:$0xff]  ;;  %v2020_v22 = vld [vmem:[%s2509_s5 + $0x358] sm:$0xff]  ;;  %v1452_v51 = vpack.c.bf16 %v1995_v17, %v1990_v16 }
  0x29   : > { %1499 = vmatprep.subr.bf16.mxu1 %v1498_v40  ;;  %v2005_v19 = vld [vmem:[%s2509_s5 + $0x330] sm:$0xff]  ;;  %v2015_v21 = vld [vmem:[%s2509_s5 + $0x368] sm:$0xff]  ;;  %v2025_v23 = vld [vmem:[%s2509_s5 + $0x378] sm:$0xff]  ;;  %v1512_v40 = vpack.c.bf16 %v1965_v10, %v1960_v9 }
  0x2a   : > { %v2030_v24 = vld [vmem:[%s2509_s5 + $0x340] sm:$0xff]  ;;  %v2048_v27 = vld [vmem:[%s2509_s5 + $0x350] sm:$0xff]  ;;  %v2058_v29 = vld [vmem:[%s2509_s5 + $0x388] sm:$0xff]  ;;  %v1516_v52 = vpack.c.bf16 %v2005_v19, %v2000_v18  ;;  %v1454_v56 = vpack.c.bf16 %v2015_v21, %v2010_v20  ;;  %v1518_v57 = vpack.c.bf16 %v2025_v23, %v2020_v22 }
  0x2b   : > { %1437 = vmatpush1.bf16.msra.mxu0 %v1436_v46  ;;  %v2035_v25 = vld [vmem:[%s2509_s5 + $0x360] sm:$0xff]  ;;  %v2053_v28 = vld [vmem:[%s2509_s5 + $0x370] sm:$0xff]  ;;  %v2063_v30 = vld [vmem:[%s2509_s5 + $0x3a8] sm:$0xff] }
  0x2c   : > { %1501 = vmatpush1.bf16.msra.mxu1 %v1500_v49  ;;  %1439 = vmatprep.subr.bf16.mxu0 %v1438_v50  ;;  %v2068_v31 = vld [vmem:[%s2509_s5 + $0x398] sm:$0xff]  ;;  %v2085_v36 = vld [vmem:[%s2509_s5 + $0x380] sm:$0xff]  ;;  %v2107_v41 = vld [vmem:[%s2509_s5 + $0x390] sm:$0xff]  ;;  %v1450_v49 = vpack.c.bf16 %v1975_v13, %v1970_v12  ;;  %v1514_v50 = vpack.c.bf16 %v1985_v15, %v1980_v14  ;;  %v1456_v58 = vpack.c.bf16 %v2035_v25, %v2030_v24 }
  0x2d   : > { %1503 = vmatprep.subr.bf16.mxu1 %v1502_v54  ;;  %v2080_v35 = vld [vmem:[%s2509_s5 + $0x3b8] sm:$0xff]  ;;  %v2090_v37 = vld [vmem:[%s2509_s5 + $0x3a0] sm:$0xff]  ;;  %v2112_v42 = vld [vmem:[%s2509_s5 + $0x3b0] sm:$0xff]  ;;  %v1520_v63 = vpack.c.bf16 %v2053_v28, %v2048_v27  ;;  %v2513_v24 = vpack.c.bf16 %v2063_v30, %v2058_v29 }
  0x2e   : > { %v2117_v43 = vld [vmem:[%s2509_s5 + $0x3c8] sm:$0xff]  ;;  %v2127_v45 = vld [vmem:[%s2509_s5 + $0x3d8] sm:$0xff]  ;;  %v2149_v53 = vld [vmem:[%s2509_s5 + $0x3c0] sm:$0xff] }
  0x2f   : > { %1441 = vmatpush1.bf16.msra.mxu0 %v1440_v61  ;;  %v2122_v44 = vld [vmem:[%s2509_s5 + $0x3e8] sm:$0xff]  ;;  %v2132_v46 = vld [vmem:[%s2509_s5 + $0x3f8] sm:$0xff]  ;;  %v2164_v59 = vld [vmem:[%s2509_s5 + $0x3e0] sm:$0xff] }
  0x30   : > { %1505 = vmatpush1.bf16.msra.mxu1 %v1504_v3  ;;  %1443 = vmatprep.subr.bf16.mxu0 %v1442_v4  ;;  %v396_v47 = vld [vmem:[%s2041_s18 + $0x8] sm:$0xf]  ;;  %v398_v54 = vld [vmem:[%s2041_s18 + $0x18] sm:$0xf]  ;;  %v2186_v3 = vld [vmem:[%s2509_s5 + $0x3d0] sm:$0xff] }
  0x31   : > { %1507 = vmatprep.subr.bf16.mxu1 %v1506_v11  ;;  %v403_v55 = vld [vmem:[%s2508_s4] ss:$8 sm:$0x3]  ;;  %v436_v62 = vld [vmem:[%s2096_s22 + $0x18] sm:$0xf]  ;;  %v2197_v7 = vld [vmem:[%s2509_s5 + $0x3f0] sm:$0xff] }
  0x32   : > { %v2173_v60 = vrot.slane %v403_v55, %v2071_v32  ;;  %v434_v61 = vld [vmem:[%s2096_s22 + $0x8] sm:$0xf]  ;;  %v473_v11 = vld [vmem:[%s2041_s18 + $0x18] sm:$0x1e]  ;;  %v470_v30 = vld [vmem:[%s2041_s18] sm:$0x1e] }
  0x33   : > { %1445 = vmatpush1.bf16.msra.mxu0 %v1444_v26  ;;  %v1363_v4 = vld [vmem:[%s2508_s4 + $0x1] ss:$8 sm:$0x3]  ;;  %v1364_v12 = vld [vmem:[%s2508_s4 + $0x2] ss:$8 sm:$0x3] }
  0x34   : > { %1509 = vmatpush1.bf16.msra.mxu1 %v1508_v33  ;;  %1447 = vmatprep.subr.bf16.mxu0 %v1446_v34  ;;  %v471_v5 = vld [vmem:[%s2041_s18 + $0x8] sm:$0x1e]  ;;  %v416_v8 = vmul.f32 %v2173_v60, %v396_v47  ;;  %v418_v9 = vmul.f32 %v2173_v60, %v398_v54  ;;  %v2208_v10 = vrot.slane %v1363_v4, %v2071_v32  ;;  %v536_v47 = vld [vmem:[%s2170_s10 + $0x18] sm:$0xf] }
  0x35   : > { %1511 = vmatprep.subr.bf16.mxu1 %v1510_v38  ;;  %v2221_v16 = vrot.slane %v1364_v12, %v2071_v32  ;;  %v534_v17 = vld [vmem:[%s2170_s10 + $0x8] sm:$0xf]  ;;  %v575_v15 = vld [vmem:[%s2203_s21 + $0x18] sm:$0xf] }
  0x36   : > { %v1365_v26 = vld [vmem:[%s2508_s4 + $0x3] ss:$8 sm:$0x3]  ;;  %v455_v34 = vmul.f32 %v2208_v10, %v434_v61  ;;  %v457_v38 = vmul.f32 %v2208_v10, %v436_v62  ;;  %v1366_v61 = vld [vmem:[%s2508_s4 + $0x4] ss:$8 sm:$0x3]  ;;  %v2244_v62 = vrot.slane %v403_v55, %v2136_v48 }
  0x37   : > { %1449 = vmatpush1.bf16.msra.mxu0 %v1448_v39  ;;  %v2233_v54 = vrot.slane %v1365_v26, %v2071_v32  ;;  %v492_v39 = vmul.f32 %v2221_v16, %v471_v5  ;;  %v494_v33 = vmul.f32 %v2221_v16, %v473_v11  ;;  %v573_v14 = vld [vmem:[%s2203_s21 + $0x8] sm:$0xf]  ;;  %v1367_v5 = vld [vmem:[%s2508_s4 + $0x5] ss:$8 sm:$0x3]  ;;  %v2253_v0 = vrot.slane %v1366_v61, %v2071_v32 }
  0x38   : > { %1513 = vmatpush1.bf16.msra.mxu1 %v1512_v40  ;;  %1451 = vmatprep.subr.bf16.mxu0 %v1450_v49  ;;  %v463_v40 = vadd.f32 %v455_v34, %v416_v8  ;;  %v465_v49 = vadd.f32 %v457_v38, %v418_v9  ;;  %v612_v55 = vld [vmem:[%s2170_s10 + $0x18] sm:$0x1e]  ;;  %v2258_v8 = vrot.slane %v1363_v4, %v2136_v48  ;;  %v1376_v34 = vld [vmem:[%s2508_s4 + $0x6] ss:$8 sm:$0x3] }
  0x39   : > { %1515 = vmatprep.subr.bf16.mxu1 %v1514_v50  ;;  %v555_v13 = vmul.f32 %v2233_v54, %v534_v17  ;;  %v508_v6 = vrot.slane %v492_v39, 1  ;;  %v510_v11 = vrot.slane %v494_v33, 1  ;;  %v557_v1 = vmul.f32 %v2233_v54, %v536_v47  ;;  %v610_v50 = vld [vmem:[%s2170_s10 + $0x8] sm:$0x1e]  ;;  %v1387_v23 = vld [vmem:[%s2041_s18 + $0x18] sm:$0x1e] }
  0x3a   : > { %v2261_v9 = vrot.slane %v1364_v12, %v2136_v48  ;;  %v2264_v17 = vrot.slane %v1365_v26, %v2136_v48  ;;  %v2267_v33 = vrot.slane %v1367_v5, %v2071_v32  ;;  %v594_v12 = vmul.f32 %v2253_v0, %v573_v14  ;;  %v1369_v26 = vld [vmem:[%s2041_s18 + $0x18] sm:$0xf]  ;;  %v2283_v38 = vld [vmem:[%s2508_s4 + $0x7] ss:$8 sm:$0x3] }
  0x3b   : > { %1453 = vmatpush1.bf16.msra.mxu0 %v1452_v51  ;;  %v524_v51 = vadd.f32 %v508_v6, %v463_v40  ;;  %v526_v4 = vadd.f32 %v510_v11, %v465_v49  ;;  %v2289_v18 = vrot.slane %v1366_v61, %v2136_v48  ;;  %v596_v19 = vmul.f32 %v2253_v0, %v575_v15  ;;  %v1380_v6 = vld [vmem:[%s2096_s22 + $0x28] sm:$0xf]  ;;  %v395_v40 = vld [vmem:[%s2041_s18] sm:$0xf]  ;;  %v397_v49 = vld [vmem:[%s2041_s18 + $0x10] sm:$0xf] }
  0x3c   : > { %1517 = vmatpush1.bf16.msra.mxu1 %v1516_v52  ;;  %1455 = vmatprep.subr.bf16.mxu0 %v1454_v56  ;;  %v631_v20 = vmul.f32 %v2267_v33, %v610_v50  ;;  %v633_v21 = vmul.f32 %v2267_v33, %v612_v55  ;;  %v1371_v52 = vld [vmem:[%s2041_s18 + $0x28] sm:$0xf]  ;;  %v1378_v56 = vld [vmem:[%s2096_s22 + $0x18] sm:$0xf]  ;;  %v2298_v39 = vrot.slane %v1367_v5, %v2136_v48  ;;  %v433_v50 = vld [vmem:[%s2096_s22] sm:$0xf] }
  0x3d   : > { %1519 = vmatprep.subr.bf16.mxu1 %v1518_v57  ;;  %v563_v14 = vadd.f32 %v555_v13, %v524_v51  ;;  %v565_v47 = vadd.f32 %v557_v1, %v526_v4  ;;  %v2301_v22 = vrot.slane %v1376_v34, %v2071_v32  ;;  %v1394_v57 = vld [vmem:[%s2508_s4 + $0x10] ss:$8 sm:$0x3]  ;;  %v2311_v15 = vrot.slane %v1376_v34, %v2136_v48  ;;  %v1389_v11 = vld [vmem:[%s2041_s18 + $0x28] sm:$0x1e] }
  0x3e   : > { %v647_v13 = vrot.slane %v631_v20, 1  ;;  %v649_v1 = vrot.slane %v633_v21, 1  ;;  %v2315_v61 = vrot.slane %v2283_v38, %v2071_v32  ;;  %v435_v55 = vld [vmem:[%s2096_s22 + $0x10] sm:$0xf]  ;;  %v2514_v34 = vpack.c.bf16 %v2080_v35, %v2068_v31 }
  0x3f   : > { %1457 = vmatpush1.bf16.msra.mxu0 %v1456_v58  ;;  %v602_v25 = vadd.f32 %v594_v12, %v563_v14  ;;  %v604_v58 = vadd.f32 %v596_v19, %v565_v47  ;;  %v696_v5 = vmul.f32 %v1369_v26, %v2301_v22  ;;  %v698_v51 = vmul.f32 %v1371_v52, %v2301_v22  ;;  %v472_v52 = vld [vmem:[%s2041_s18 + $0x10] sm:$0x1e]  ;;  %v533_v47 = vld [vmem:[%s2170_s10] sm:$0xf] }
  0x40   : > { %1521 = vmatpush1.bf16.msra.mxu1 %v1520_v63  ;;  %1459 = vmatprep.subr.bf16.mxu0 %v2513_v24  ;;  %v735_v27 = vmul.f32 %v1378_v56, %v2315_v61  ;;  %v737_v28 = vmul.f32 %v1380_v6, %v2315_v61  ;;  %v2336_v29 = vrot.slane %v1394_v57, %v2071_v32 }
  0x41   : > { %1523 = vmatprep.subr.bf16.mxu1 %v2514_v34  ;;  %v663_v63 = vadd.f32 %v647_v13, %v602_v25  ;;  %v665_v4 = vadd.f32 %v649_v1, %v604_v58  ;;  %v415_v12 = vmul.f32 %v2244_v62, %v395_v40  ;;  %v417_v31 = vmul.f32 %v2244_v62, %v397_v49  ;;  %v572_v13 = vld [vmem:[%s2203_s21] sm:$0xf] }
  0x42   : > { %v2515_v35 = vpack.c.bf16 %v2090_v37, %v2085_v36  ;;  %v772_v26 = vmul.f32 %v1387_v23, %v2336_v29  ;;  %v774_v19 = vmul.f32 %v1389_v11, %v2336_v29  ;;  %v454_v20 = vmul.f32 %v2258_v8, %v433_v50  ;;  %v535_v23 = vld [vmem:[%s2170_s10 + $0x10] sm:$0xf]  ;;  %v609_v58 = vld [vmem:[%s2170_s10] sm:$0x1e] }
  0x43   : > { %v456_v21 = vmul.f32 %v2258_v8, %v435_v55  ;;  %v2516_v56 = vpack.c.bf16 %v2112_v42, %v2107_v41  ;;  %v2517_v6 = vpack.c.bf16 %v2122_v44, %v2117_v43  ;;  %v704_v36 = vadd.f32 %v696_v5, %v663_v63  ;;  %v611_v5 = vld [vmem:[%s2170_s10 + $0x10] sm:$0x1e] }
  0x44   : > { %1461 = vmatpush1.bf16.msra.mxu0 %v2515_v35  ;;  %v706_v37 = vadd.f32 %v698_v51, %v665_v4  ;;  %v491_v14 = vmul.f32 %v2261_v9, %v470_v30  ;;  %v2518_v1 = vpack.c.bf16 %v2132_v46, %v2127_v45  ;;  %v788_v41 = vrot.slane %v772_v26, 1  ;;  %v574_v55 = vld [vmem:[%s2203_s21 + $0x10] sm:$0xf]  ;;  %v1370_v30 = vld [vmem:[%s2041_s18 + $0x20] sm:$0xf] }
  0x45   : > { %1525 = vmatpush1.bf16.msra.mxu1 %v2516_v56  ;;  %1463 = vmatprep.subr.bf16.mxu0 %v2517_v6  ;;  %v790_v42 = vrot.slane %v774_v19, 1  ;;  %v462_v40 = vadd.f32 %v454_v20, %v415_v12  ;;  %v464_v43 = vadd.f32 %v456_v21, %v417_v31  ;;  %v743_v44 = vadd.f32 %v735_v27, %v704_v36  ;;  %v1368_v51 = vld [vmem:[%s2041_s18 + $0x10] sm:$0xf]  ;;  %v1388_v31 = vld [vmem:[%s2041_s18 + $0x20] sm:$0x1e] }
  0x46   : > { %1527 = vmatprep.subr.bf16.mxu1 %v2518_v1  ;;  %v745_v49 = vadd.f32 %v737_v28, %v706_v37  ;;  %v493_v24 = vmul.f32 %v2261_v9, %v472_v52  ;;  %v507_v25 = vrot.slane %v491_v14, 1  ;;  %v2519_v11 = vpack.c.bf16 %v2164_v59, %v2149_v53  ;;  %v1386_v63 = vld [vmem:[%s2041_s18 + $0x10] sm:$0x1e]  ;;  %v400_v21 = vld [vmem:[%s2041_s18 + $0x28] sm:$0xf] }
  0x47   : > { %v2369_v45 = vrot.slane %v1394_v57, %v2136_v48  ;;  %v554_v46 = vmul.f32 %v2264_v17, %v533_v47  ;;  %v556_v50 = vmul.f32 %v2264_v17, %v535_v23  ;;  %v593_v34 = vmul.f32 %v2289_v18, %v572_v13  ;;  %v402_v52 = vld [vmem:[%s2041_s18 + $0x38] sm:$0xf]  ;;  %v438_v56 = vld [vmem:[%s2096_s22 + $0x28] sm:$0xf]  ;;  %v1379_v37 = vld [vmem:[%s2096_s22 + $0x20] sm:$0xf] }
  0x48   : > { %1465 = vmatpush1.bf16.msra.mxu0 %v2519_v11  ;;  %v2520_v27 = vpack.c.bf16 %v2197_v7, %v2186_v3  ;;  %v804_v53 = vadd.f32 %v788_v41, %v743_v44  ;;  %v806_v59 = vadd.f32 %v790_v42, %v745_v49  ;;  %v509_v57 = vrot.slane %v493_v24, 1  ;;  %v1377_v7 = vld [vmem:[%s2096_s22 + $0x10] sm:$0xf]  ;;  %v440_v47 = vld [vmem:[%s2096_s22 + $0x38] sm:$0xf] }
  0x49   : > { %v523_v28 = vadd.f32 %v507_v25, %v462_v40  ;;  %v2383_v4 = vrot.slane %v2283_v38, %v2136_v48  ;;  %v630_v12 = vmul.f32 %v2298_v39, %v609_v58  ;;  %v632_v3 = vmul.f32 %v2298_v39, %v611_v5  ;;  %v475_v42 = vld [vmem:[%s2041_s18 + $0x28] sm:$0x1e]  ;;  %v477_v40 = vld [vmem:[%s2041_s18 + $0x38] sm:$0x1e] }
  0x4a   : > { %1529 = vmatpush1.bf16.msra.mxu1 %v2520_v27  ;;  %v1396_v35 = vcombine.low %v804_v53, %v806_v59  ;;  %v525_v26 = vadd.f32 %v509_v57, %v464_v43  ;;  %v595_v20 = vmul.f32 %v2289_v18, %v574_v55  ;;  %v695_v38 = vmul.f32 %v1368_v51, %v2311_v15  ;;  %v614_v27 = vld [vmem:[%s2170_s10 + $0x28] sm:$0x1e]  ;;  %v616_v53 = vld [vmem:[%s2170_s10 + $0x38] sm:$0x1e] }
  0x4b   : > { %v562_v19 = vadd.f32 %v554_v46, %v523_v28  ;;  %v646_v6 = vrot.slane %v630_v12, 1  ;;  %v697_v36 = vmul.f32 %v1370_v30, %v2311_v15  ;;  %v771_v14 = vmul.f32 %v1386_v63, %v2369_v45  ;;  %v538_v46 = vld [vmem:[%s2170_s10 + $0x28] sm:$0xf]  ;;  %v579_v12 = vld [vmem:[%s2203_s21 + $0x38] sm:$0xf] }
  0x4c   : > { %1023 = vmatprep.mubr.f32.mxu0 %v1396_v35  ;;  %1100 = vmatprep.mubr.f32.mxu1 %v1396_v35  ;;  %v564_v23 = vadd.f32 %v556_v50, %v525_v26  ;;  %v648_v1 = vrot.slane %v632_v3, 1  ;;  %v773_v41 = vmul.f32 %v1388_v31, %v2369_v45  ;;  %v734_v43 = vmul.f32 %v1377_v7, %v2383_v4  ;;  %v540_v50 = vld [vmem:[%s2170_s10 + $0x38] sm:$0xf]  ;;  %v577_v63 = vld [vmem:[%s2203_s21 + $0x28] sm:$0xf] }
  0x4d   : > { %v601_v13 = vadd.f32 %v593_v34, %v562_v19  ;;  %v420_v44 = vmul.f32 %v2173_v60, %v400_v21  ;;  %v422_v49 = vmul.f32 %v2173_v60, %v402_v52  ;;  %v459_v24 = vmul.f32 %v2208_v10, %v438_v56  ;;  %v1373_v35 = vld [vmem:[%s2041_s18 + $0x38] sm:$0xf]  ;;  %v1375_v26 = vld [vmem:[%s2041_s18 + $0x48] sm:$0xf] }
  0x4e   : > { %v603_v25 = vadd.f32 %v595_v20, %v564_v23  ;;  %v736_v5 = vmul.f32 %v1379_v37, %v2383_v4  ;;  %v461_v11 = vmul.f32 %v2208_v10, %v440_v47  ;;  %v787_v55 = vrot.slane %v771_v14, 1  ;;  %v1393_v37 = vld [vmem:[%s2041_s18 + $0x48] sm:$0x1e]  ;;  %v399_v14 = vld [vmem:[%s2041_s18 + $0x20] sm:$0xf] }
  0x4f   : > { %v662_v58 = vadd.f32 %v646_v6, %v601_v13  ;;  %v467_v34 = vadd.f32 %v459_v24, %v420_v44  ;;  %v496_v51 = vmul.f32 %v2221_v16, %v475_v42  ;;  %v498_v60 = vmul.f32 %v2221_v16, %v477_v40 }
  0x50   : > { %v664_v59 = vadd.f32 %v648_v1, %v603_v25  ;;  %v789_v28 = vrot.slane %v773_v41, 1  ;;  %v469_v30 = vadd.f32 %v461_v11, %v422_v49  ;;  %v559_v7 = vmul.f32 %v2233_v54, %v538_v46  ;;  %v1382_v1 = vld [vmem:[%s2096_s22 + $0x38] sm:$0xf]  ;;  %v437_v41 = vld [vmem:[%s2096_s22 + $0x20] sm:$0xf] }
  0x51   : > { %v703_v57 = vadd.f32 %v695_v38, %v662_v58  ;;  %v512_v10 = vrot.slane %v496_v51, 1  ;;  %v514_v3 = vrot.slane %v498_v60, 1  ;;  %v561_v31 = vmul.f32 %v2233_v54, %v540_v50  ;;  %v1391_v54 = vld [vmem:[%s2041_s18 + $0x38] sm:$0x1e]  ;;  %v439_v49 = vld [vmem:[%s2096_s22 + $0x30] sm:$0xf] }
  0x52   : > { %v705_v16 = vadd.f32 %v697_v36, %v664_v59  ;;  %v635_v20 = vmul.f32 %v2267_v33, %v614_v27  ;;  %v637_v21 = vmul.f32 %v2267_v33, %v616_v53  ;;  %v598_v6 = vmul.f32 %v2253_v0, %v577_v63  ;;  %v401_v33 = vld [vmem:[%s2041_s18 + $0x30] sm:$0xf]  ;;  %v537_v53 = vld [vmem:[%s2170_s10 + $0x20] sm:$0xf] }
  0x53   : > { %v742_v19 = vadd.f32 %v734_v43, %v703_v57  ;;  %v528_v52 = vadd.f32 %v512_v10, %v467_v34  ;;  %v530_v56 = vadd.f32 %v514_v3, %v469_v30  ;;  %v600_v38 = vmul.f32 %v2253_v0, %v579_v12  ;;  %v1384_v0 = vld [vmem:[%s2096_s22 + $0x48] sm:$0xf]  ;;  %v476_v34 = vld [vmem:[%s2041_s18 + $0x30] sm:$0x1e]  ;;  %v613_v12 = vld [vmem:[%s2170_s10 + $0x20] sm:$0x1e] }
  0x54   : > { %v744_v47 = vadd.f32 %v736_v5, %v705_v16  ;;  %v700_v23 = vmul.f32 %v1373_v35, %v2301_v22  ;;  %v702_v13 = vmul.f32 %v1375_v26, %v2301_v22  ;;  %v651_v43 = vrot.slane %v635_v20, 1  ;;  %v474_v22 = vld [vmem:[%s2041_s18 + $0x20] sm:$0x1e]  ;;  %v539_v63 = vld [vmem:[%s2170_s10 + $0x30] sm:$0xf] }
  0x55   : > { %v803_v36 = vadd.f32 %v787_v55, %v742_v19  ;;  %v567_v42 = vadd.f32 %v559_v7, %v528_v52  ;;  %v569_v40 = vadd.f32 %v561_v31, %v530_v56  ;;  %v653_v44 = vrot.slane %v637_v21, 1  ;;  %v615_v31 = vld [vmem:[%s2170_s10 + $0x30] sm:$0x1e] }
  0x56   : > { %v805_v24 = vadd.f32 %v789_v28, %v744_v47  ;;  %v776_v25 = vmul.f32 %v1391_v54, %v2336_v29  ;;  %v778_v58 = vmul.f32 %v1393_v37, %v2336_v29  ;;  %v419_v5 = vmul.f32 %v2244_v62, %v399_v14  ;;  %v578_v19 = vld [vmem:[%s2203_s21 + $0x30] sm:$0xf] }
  0x57   : > { %v606_v11 = vadd.f32 %v598_v6, %v567_v42  ;;  %v608_v46 = vadd.f32 %v600_v38, %v569_v40  ;;  %v421_v50 = vmul.f32 %v2244_v62, %v401_v33  ;;  %v458_v55 = vmul.f32 %v2258_v8, %v437_v41  ;;  %v576_v62 = vld [vmem:[%s2203_s21 + $0x20] sm:$0xf]  ;;  %v1372_v47 = vld [vmem:[%s2041_s18 + $0x30] sm:$0xf] }
  0x58   : > { %v1395_v51 = vcombine.low %v803_v36, %v805_v24  ;;  %v739_v60 = vmul.f32 %v1382_v1, %v2315_v61  ;;  %v741_v27 = vmul.f32 %v1384_v0, %v2315_v61  ;;  %v460_v29 = vmul.f32 %v2258_v8, %v439_v49  ;;  %v1390_v36 = vld [vmem:[%s2041_s18 + $0x30] sm:$0x1e]  ;;  %v1374_v33 = vld [vmem:[%s2041_s18 + $0x40] sm:$0xf] }
  0x59   : > { %v667_v59 = vadd.f32 %v651_v43, %v606_v11  ;;  %v669_v57 = vadd.f32 %v653_v44, %v608_v46  ;;  %v466_v28 = vadd.f32 %v458_v55, %v419_v5  ;;  %v495_v30 = vmul.f32 %v2261_v9, %v474_v22  ;;  %v1392_v41 = vld [vmem:[%s2041_s18 + $0x40] sm:$0x1e]  ;;  %v1381_v43 = vld [vmem:[%s2096_s22 + $0x30] sm:$0xf] }
  0x5a   : > { %1024 = vmatmul.mubr.f32.vlgmr.msra.gmra.mrb[0].mxu0 %v1395_v51  ;;  %1101 = vmatmul.mubr.f32.vlgmr.msra.gmra.mrb[0].mxu1 %v1395_v51  ;;  %v792_v10 = vrot.slane %v776_v25, 1  ;;  %v794_v3 = vrot.slane %v778_v58, 1  ;;  %v468_v7 = vadd.f32 %v460_v29, %v421_v50  ;;  %v497_v61 = vmul.f32 %v2261_v9, %v476_v34 }
  0x5b   : > { %v708_v8 = vadd.f32 %v700_v23, %v667_v59  ;;  %v710_v35 = vadd.f32 %v702_v13, %v669_v57  ;;  %v511_v26 = vrot.slane %v495_v30, 1  ;;  %v558_v16 = vmul.f32 %v2264_v17, %v537_v53 }
  0x5c   : > { %v513_v20 = vrot.slane %v497_v61, 1  ;;  %v560_v21 = vmul.f32 %v2264_v17, %v539_v63  ;;  %v597_v52 = vmul.f32 %v2289_v18, %v576_v62  ;;  %v634_v56 = vmul.f32 %v2298_v39, %v613_v12 }
  0x5d   : > { %v747_v6 = vadd.f32 %v739_v60, %v708_v8  ;;  %v749_v9 = vadd.f32 %v741_v27, %v710_v35  ;;  %v527_v38 = vadd.f32 %v511_v26, %v466_v28  ;;  %v636_v54 = vmul.f32 %v2298_v39, %v615_v31  ;;  %v1383_v39 = vld [vmem:[%s2096_s22 + $0x40] sm:$0xf] }
  0x5e   : > { %v529_v37 = vadd.f32 %v513_v20, %v468_v7  ;;  %v599_v14 = vmul.f32 %v2289_v18, %v578_v19  ;;  %v650_v1 = vrot.slane %v634_v56, 1  ;;  %v699_v49 = vmul.f32 %v1372_v47, %v2311_v15 }
  0x5f   : > { %v808_v23 = vadd.f32 %v792_v10, %v747_v6  ;;  %v810_v13 = vadd.f32 %v794_v3, %v749_v9  ;;  %v566_v17 = vadd.f32 %v558_v16, %v527_v38  ;;  %v652_v40 = vrot.slane %v636_v54, 1 }
  0x60   : > { %v568_v42 = vadd.f32 %v560_v21, %v529_v37  ;;  %v775_v24 = vmul.f32 %v1390_v36, %v2369_v45  ;;  %v701_v18 = vmul.f32 %v1374_v33, %v2311_v15  ;;  %v777_v58 = vmul.f32 %v1392_v41, %v2369_v45  ;;  %v1113_v45 = vld [vmem:[%s2510_s6] sm:$0xf] }
  0x61   : > { %v1398_v44 = vcombine.low %v808_v23, %v810_v13  ;;  %v605_v0 = vadd.f32 %v597_v52, %v566_v17  ;;  %v738_v22 = vmul.f32 %v1381_v43, %v2383_v4  ;;  %v740_v46 = vmul.f32 %v1383_v39, %v2383_v4  ;;  %v1143_v4 = vld [vmem:[%s2511_s7] sm:$0xf] }
  0x62   : > { %v607_v25 = vadd.f32 %v599_v14, %v568_v42  ;;  %v791_v55 = vrot.slane %v775_v24, 1  ;;  %v793_v51 = vrot.slane %v777_v58, 1  ;;  %v1125_v15 = vsub.s32 2, %v1935_v2 }
  0x63   : > { %1029 = vmatprep.mubr.f32.mxu0 %v1398_v44  ;;  %1106 = vmatprep.mubr.f32.mxu1 %v1398_v44  ;;  %v666_v5 = vadd.f32 %v650_v1, %v605_v0  ;;  %v1129_v57 = vsub.s32 3, %v1935_v2  ;;  %v1118_v28 = vrot.slane %v1113_v45, %v2136_v48  ;;  %v1122_v63 = vrot.slane %v1113_v45, %v2071_v32 }
  0x64   : > { %v668_v11 = vadd.f32 %v652_v40, %v607_v25  ;;  %v1126_v30 = vrot.slane %v1113_v45, %v1125_v15  ;;  %v1148_v12 = vrot.slane %v1143_v4, %v2136_v48  ;;  %v1156_v10 = vrot.slane %v1143_v4, %v1125_v15 }
  0x65   : > { %v707_v50 = vadd.f32 %v699_v49, %v666_v5  ;;  %v1130_v62 = vrot.slane %v1113_v45, %v1129_v57  ;;  %v1152_v61 = vrot.slane %v1143_v4, %v2071_v32  ;;  %v1160_v31 = vrot.slane %v1143_v4, %v1129_v57 }
  0x66   : > { %v709_v34 = vadd.f32 %v701_v18, %v668_v11 }
  0x67   : > { %v746_v60 = vadd.f32 %v738_v22, %v707_v50 }
  0x68   : > { %v748_v27 = vadd.f32 %v740_v46, %v709_v34 }
  0x69   : > { %v807_v29 = vadd.f32 %v791_v55, %v746_v60 }
  0x6a   : > { %v809_v53 = vadd.f32 %v793_v51, %v748_v27 }
  0x6c   : > { %v1397_v59 = vcombine.low %v807_v29, %v809_v53 }
  0x6e   : > { %1030 = vmatmul.mubr.f32.gmra.mrb[2].mxu0 %v1397_v59  ;;  %1107 = vmatmul.mubr.f32.gmra.mrb[2].mxu1 %v1397_v59 }
 0x12d   : > { %v1025_v3 = vpop.f32.mrb[0].mxu0  ;;  %v1102_v7 = vpop.f32.mrb[0].mxu1 }
 0x12e   : > { %v1135_v2 = vmul.f32 %v1118_v28, %v1025_v3  ;;  %v1137_v8 = vmul.f32 %v1126_v30, %v1102_v7  ;;  %v1027_v35 = vpop.f32.mrb[1].mxu0  ;;  %v1104_v26 = vpop.f32.mrb[1].mxu1 }
 0x12f   : > { %v1136_v16 = vmul.f32 %v1122_v63, %v1027_v35  ;;  %v1138_v19 = vmul.f32 %v1130_v62, %v1104_v26 }
 0x130   : > { %v1165_v20 = vadd.f32 %v1148_v12, %v1135_v2  ;;  %v1167_v21 = vadd.f32 %v1156_v10, %v1137_v8 }
 0x131   : > { %v1166_v52 = vadd.f32 %v1152_v61, %v1136_v16  ;;  %v1168_v56 = vadd.f32 %v1160_v31, %v1138_v19 }
 0x132   : > { %v1173_v6 = vmax.f32 %v1165_v20, 0.0  ;;  %v1175_v9 = vmax.f32 %v1167_v21, 0.0 }
 0x133   : > { %v1174_v48 = vmax.f32 %v1166_v52, 0.0  ;;  %v1176_v38 = vmax.f32 %v1168_v56, 0.0 }
 0x135   : > { %v1189_v32 = vcombine.low %v1173_v6, %v1174_v48  ;;  %v1190_v54 = vcombine.high %v1173_v6, %v1174_v48  ;;  %v1191_v37 = vcombine.low %v1175_v9, %v1176_v38  ;;  %v1192_v14 = vcombine.high %v1175_v9, %v1176_v38 }
 0x137   : > { %1205 = vst [vmem:[%s2485_s25] sm:$0xff] %v1189_v32  ;;  %1207 = vst [vmem:[%s2485_s25 + $0x10] sm:$0xff] %v1190_v54 }
 0x138   : > { %1206 = vst [vmem:[%s2485_s25 + $0x8] sm:$0xff] %v1191_v37  ;;  %1208 = vst [vmem:[%s2485_s25 + $0x18] sm:$0xff] %v1192_v14 }
 0x141   : > { %v1031_v47 = vpop.f32.mrb[2].mxu0  ;;  %v1108_v36 = vpop.f32.mrb[2].mxu1 }
 0x142   : > { %v1139_v23 = vmul.f32 %v1118_v28, %v1031_v47  ;;  %v1141_v13 = vmul.f32 %v1126_v30, %v1108_v36  ;;  %v1033_v17 = vpop.f32.mrb[3].mxu0  ;;  %v1110_v1 = vpop.f32.mrb[3].mxu1 }
 0x143   : > { %v1140_v33 = vmul.f32 %v1122_v63, %v1033_v17  ;;  %v1142_v41 = vmul.f32 %v1130_v62, %v1110_v1 }
 0x144   : > { %v1169_v42 = vadd.f32 %v1148_v12, %v1139_v23  ;;  %v1171_v40 = vadd.f32 %v1156_v10, %v1141_v13 }
 0x145   : > { %v1170_v43 = vadd.f32 %v1152_v61, %v1140_v33  ;;  %v1172_v44 = vadd.f32 %v1160_v31, %v1142_v41 }
 0x146   : > { %v1177_v0 = vmax.f32 %v1169_v42, 0.0  ;;  %v1179_v49 = vmax.f32 %v1171_v40, 0.0 }
 0x147   : > { %v1178_v39 = vmax.f32 %v1170_v43, 0.0  ;;  %v1180_v24 = vmax.f32 %v1172_v44, 0.0 }
 0x149   : > { %v1193_v25 = vcombine.low %v1177_v0, %v1178_v39  ;;  %v1194_v18 = vcombine.high %v1177_v0, %v1178_v39  ;;  %v1195_v58 = vcombine.low %v1179_v49, %v1180_v24  ;;  %v1196_v5 = vcombine.high %v1179_v49, %v1180_v24 }
 0x14b   : > { %1209 = vst [vmem:[%s2485_s25 + $0x20] sm:$0xff] %v1193_v25  ;;  %1211 = vst [vmem:[%s2485_s25 + $0x30] sm:$0xff] %v1194_v18 }
 0x14c   : > { %1210 = vst [vmem:[%s2485_s25 + $0x28] sm:$0xff] %v1195_v58  ;;  %1212 = vst [vmem:[%s2485_s25 + $0x38] sm:$0xff] %v1196_v5 }
 0x14d PF: > { %s18_s29 = sadd.s32 1, %s1577_s29   ;;  %s2521_s27 = smov %s1573_s28 }
 0x14e   : > { %p15_p5 = scmp.ge.s32.totalorder %s18_s29, 4   ;;  %s2522_s28 = smov %s2524_s30 }
 0x150   :  { %17 = sbr.rel (!%p15_p5) target bundleno = 2 (0x2), region = 105 }

// kernel: _lambda_.9
= control target key start
LH: loop header
LB: loop body
LE: loop exit
PB: predicated region body
PF: predicated region fallthrough
CT: control target
= control target key end

     0   :  { %s5373_s0 = inlined_call_operand.vmem [shape: f32[2,8192], index: 0, kind: input, shape index: {}]   ;;  %s5374_s1 = inlined_call_operand.vmem [shape: bf16[8192,512], index: 1, kind: input, shape index: {}]   ;;  %s5375_s2 = inlined_call_operand.vmem [shape: f32[1,512], index: 2, kind: input, shape index: {}]   ;;  %s5376_s3 = inlined_call_operand.hbm [shape: f32[2,512], index: 3, kind: output, shape index: {}]  }
   0x1   :  { %5378 = sst [smem:[#allocation7_spill]] %s5374_s1 }
   0x2   :  { %8 = vsyncpa [#allocation5], 0 }
   0x3   :  { %10 = vsyncpa [#allocation5 + $0x1], 0  ;;  %s4335_s12 = smov 0   ;;  %s4337_s13 = smov 0  }
   0x4   :  { %s4339_s14 = smov 0   ;;  %s4341_s15 = smov 0  }
   0x5   :  { %s4343_s16 = smov 0   ;;  %s4345_s17 = smov 0  }
   0x6   :  { %s4347_s18 = smov 0   ;;  %s4349_s19 = smov 0  }
   0x7   :  { %s4351_s20 = smov 0   ;;  %s4353_s21 = smov 0  }
   0x8 LB: > { %s3417_s22 = sadd.s32 4294967295, %s4310_s21   ;;  %s3418_s23 = sadd.s32 4294967294, %s4310_s21   ;;  %s4310_s21 = sphi %s4353_s21, %s16_s21   ;;  %s4306_s20 = sphi %s4351_s20, %s5392_s20   ;;  %s4302_s19 = sphi %s4349_s19, %s5391_s19   ;;  %s4298_s18 = sphi %s4347_s18, %s5390_s18   ;;  %s4294_s17 = sphi %s4345_s17, %s5389_s17   ;;  %s4290_s16 = sphi %s4343_s16, %s5388_s16   ;;  %s4286_s15 = sphi %s4341_s15, %s5387_s15   ;;  %s4282_s14 = sphi %s4339_s14, %s5386_s14   ;;  %s4278_s13 = sphi %s4337_s13, %s5385_s13   ;;  %s4274_s12 = sphi %s4335_s12, %s5384_s12  }
   0x9   : > { %s25_s24 = sadd.s32 1, %s4302_s19  ;;  %s28_s25 = sadd.s32 1, %s4306_s20 }
   0xa   : > { %p26_p0 = scmp.ge.s32.totalorder %s25_s24, 4  ;;  %s63_s26 = sadd.s32 1, %s4290_s16 }
   0xb   : > { %p70_p1 = scmp.ne.s32.totalorder %s4290_s16, %s4286_s15  ;;  %p71_p2 = scmp.eq.s32.totalorder %s4310_s21, 0 }
   0xc   : > { %s5394_s24 = smov (%p26_p0, %s25_s24), 0  ;;  %s5396_s25 = smov (!%p26_p0, %s28_s25), %s4306_s20 }
   0xd   : > { %s58_s27 = ssub.s32 %s4302_s19, %s5394_s24  ;;  %p4398_p3 = por %p71_p2, %p70_p1 }
   0xe   : > { %p30_p4 = scmp.ge.s32.totalorder %s5396_s25, 2  ;;  %s115_s29 = sadd.s32 1, %s4282_s14 }
   0xf   : > { %p125_p5 = scmp.ne.s32.totalorder %s4282_s14, %s4278_s13  ;;  %p126_p6 = scmp.eq.s32.totalorder %s3417_s22, 7 }
  0x10   : > { %s5398_s25 = smov (%p30_p4, %s5396_s25), 0  ;;  %p131_p8 = scmp.ne.s32.totalorder %s4278_s13, %s4274_s12 }
  0x11   : > { %p4407_p7 = por %p126_p6, %p125_p5  ;;  %s59_s4 = ssub.s32 %s4306_s20, %s5398_s25 }
  0x12   : > { %p132_p9 = scmp.eq.s32.totalorder %s3418_s23, 7  ;;  %s60_s5 = sor.u32 %s59_s4, %s58_s27 }
  0x13   : > { %p113_p10 = scmp.eq.s32.totalorder %s59_s4, 0  ;;  %p61_p11 = scmp.eq.s32.totalorder %s60_s5, 0 }
  0x14   : > { %p4415_p12 = por %p132_p9, %p131_p8  ;;  %p3420_p13 = scmp.ge.s32.totalorder %s4310_s21, 8 }
  0x15   : > { %s4420_s7 = scalar_select %p113_p10, %s4282_s14, %s115_s29  }
  0x16   : > { %s4423_s8 = scalar_select %p61_p11, %s4290_s16, %s63_s26  }
  0x17   : > { %148 = sbr.rel (%p3420_p13) target bundleno = 168 (0xa8), region = 16 }
  0x1e   : > { %160 = sbr.rel (!%p4398_p3) target bundleno = 168 (0xa8), region = 24  ;;  %s162_s9 = sand.u32 (%p4398_p3), 1, %s4290_s16  }
  0x1f   : > { %s3423_s10 = sshll.u32 (%p4398_p3), %s4306_s20, 1  ;;  %s3421_s11 = sshll.u32 (%p4398_p3), %s162_s9, 11 }
  0x20   : > { %s3695_s22 = sshll.u32 (%p4398_p3), %s4302_s19, 10  ;;  %s5382_s1 = sld [smem:[#allocation7_spill]] (%p4398_p3) }
  0x21   : > { %s168_s23 = sadd.s32 (%p4398_p3), %s3695_s22, %s3423_s10  ;;  %s4439_s28 = scalar_lea.vmem (%p4398_p3), [#allocation3], %s3421_s11 }
  0x22   : > { %s3425_s27 = sshll.u32 (%p4398_p3), %s168_s23, 2 }
  0x26   : > { %s4434_s26 = scalar_lea.vmem %s5382_s1, %s3425_s27 }
  0x27   : > { %v708_v0 = vld [vmem:[%s4434_s26] sm:$0xff]  ;;  %v710_v1 = vld [vmem:[%s4434_s26 + $0x10] sm:$0xff] }
  0x28   : > { %v712_v2 = vld [vmem:[%s4434_s26 + $0x20] sm:$0xff]  ;;  %709 = vst [vmem:[%s4439_s28] sm:$0xff] %v708_v0  ;;  %711 = vst [vmem:[%s4439_s28 + $0x8] sm:$0xff] %v710_v1  ;;  %v714_v3 = vld [vmem:[%s4434_s26 + $0x30] sm:$0xff] }
  0x29   : > { %713 = vst [vmem:[%s4439_s28 + $0x10] sm:$0xff] %v712_v2  ;;  %v716_v4 = vld [vmem:[%s4434_s26 + $0x40] sm:$0xff]  ;;  %v718_v5 = vld [vmem:[%s4434_s26 + $0x50] sm:$0xff]  ;;  %715 = vst [vmem:[%s4439_s28 + $0x18] sm:$0xff] %v714_v3 }
  0x2a   : > { %717 = vst [vmem:[%s4439_s28 + $0x20] sm:$0xff] %v716_v4  ;;  %719 = vst [vmem:[%s4439_s28 + $0x28] sm:$0xff] %v718_v5  ;;  %v720_v6 = vld [vmem:[%s4434_s26 + $0x60] sm:$0xff]  ;;  %v722_v7 = vld [vmem:[%s4434_s26 + $0x70] sm:$0xff] }
  0x2b   : > { %v724_v8 = vld [vmem:[%s4434_s26 + $0x80] sm:$0xff]  ;;  %721 = vst [vmem:[%s4439_s28 + $0x30] sm:$0xff] %v720_v6  ;;  %723 = vst [vmem:[%s4439_s28 + $0x38] sm:$0xff] %v722_v7  ;;  %v726_v9 = vld [vmem:[%s4434_s26 + $0x90] sm:$0xff] }
  0x2c   : > { %725 = vst [vmem:[%s4439_s28 + $0x40] sm:$0xff] %v724_v8  ;;  %v728_v10 = vld [vmem:[%s4434_s26 + $0xa0] sm:$0xff]  ;;  %v730_v11 = vld [vmem:[%s4434_s26 + $0xb0] sm:$0xff]  ;;  %727 = vst [vmem:[%s4439_s28 + $0x48] sm:$0xff] %v726_v9 }
  0x2d   : > { %729 = vst [vmem:[%s4439_s28 + $0x50] sm:$0xff] %v728_v10  ;;  %731 = vst [vmem:[%s4439_s28 + $0x58] sm:$0xff] %v730_v11  ;;  %v732_v12 = vld [vmem:[%s4434_s26 + $0xc0] sm:$0xff]  ;;  %v734_v13 = vld [vmem:[%s4434_s26 + $0xd0] sm:$0xff] }
  0x2e   : > { %v736_v14 = vld [vmem:[%s4434_s26 + $0xe0] sm:$0xff]  ;;  %733 = vst [vmem:[%s4439_s28 + $0x60] sm:$0xff] %v732_v12  ;;  %735 = vst [vmem:[%s4439_s28 + $0x68] sm:$0xff] %v734_v13  ;;  %v738_v15 = vld [vmem:[%s4434_s26 + $0xf0] sm:$0xff] }
  0x2f   : > { %737 = vst [vmem:[%s4439_s28 + $0x70] sm:$0xff] %v736_v14  ;;  %v740_v16 = vld [vmem:[%s4434_s26 + $0x100] sm:$0xff]  ;;  %v742_v17 = vld [vmem:[%s4434_s26 + $0x110] sm:$0xff]  ;;  %739 = vst [vmem:[%s4439_s28 + $0x78] sm:$0xff] %v738_v15 }
  0x30   : > { %741 = vst [vmem:[%s4439_s28 + $0x80] sm:$0xff] %v740_v16  ;;  %743 = vst [vmem:[%s4439_s28 + $0x88] sm:$0xff] %v742_v17  ;;  %v744_v18 = vld [vmem:[%s4434_s26 + $0x120] sm:$0xff]  ;;  %v746_v19 = vld [vmem:[%s4434_s26 + $0x130] sm:$0xff] }
  0x31   : > { %v748_v20 = vld [vmem:[%s4434_s26 + $0x140] sm:$0xff]  ;;  %745 = vst [vmem:[%s4439_s28 + $0x90] sm:$0xff] %v744_v18  ;;  %747 = vst [vmem:[%s4439_s28 + $0x98] sm:$0xff] %v746_v19  ;;  %v750_v21 = vld [vmem:[%s4434_s26 + $0x150] sm:$0xff] }
  0x32   : > { %749 = vst [vmem:[%s4439_s28 + $0xa0] sm:$0xff] %v748_v20  ;;  %v752_v22 = vld [vmem:[%s4434_s26 + $0x160] sm:$0xff]  ;;  %v754_v23 = vld [vmem:[%s4434_s26 + $0x170] sm:$0xff]  ;;  %751 = vst [vmem:[%s4439_s28 + $0xa8] sm:$0xff] %v750_v21 }
  0x33   : > { %753 = vst [vmem:[%s4439_s28 + $0xb0] sm:$0xff] %v752_v22  ;;  %755 = vst [vmem:[%s4439_s28 + $0xb8] sm:$0xff] %v754_v23  ;;  %v756_v24 = vld [vmem:[%s4434_s26 + $0x180] sm:$0xff]  ;;  %v758_v25 = vld [vmem:[%s4434_s26 + $0x190] sm:$0xff] }
  0x34   : > { %v760_v26 = vld [vmem:[%s4434_s26 + $0x1a0] sm:$0xff]  ;;  %757 = vst [vmem:[%s4439_s28 + $0xc0] sm:$0xff] %v756_v24  ;;  %759 = vst [vmem:[%s4439_s28 + $0xc8] sm:$0xff] %v758_v25  ;;  %v762_v27 = vld [vmem:[%s4434_s26 + $0x1b0] sm:$0xff] }
  0x35   : > { %761 = vst [vmem:[%s4439_s28 + $0xd0] sm:$0xff] %v760_v26  ;;  %v764_v28 = vld [vmem:[%s4434_s26 + $0x1c0] sm:$0xff]  ;;  %v766_v29 = vld [vmem:[%s4434_s26 + $0x1d0] sm:$0xff]  ;;  %763 = vst [vmem:[%s4439_s28 + $0xd8] sm:$0xff] %v762_v27 }
  0x36   : > { %765 = vst [vmem:[%s4439_s28 + $0xe0] sm:$0xff] %v764_v28  ;;  %767 = vst [vmem:[%s4439_s28 + $0xe8] sm:$0xff] %v766_v29  ;;  %v768_v30 = vld [vmem:[%s4434_s26 + $0x1e0] sm:$0xff]  ;;  %v770_v31 = vld [vmem:[%s4434_s26 + $0x1f0] sm:$0xff] }
  0x37   : > { %v772_v32 = vld [vmem:[%s4434_s26 + $0x200] sm:$0xff]  ;;  %769 = vst [vmem:[%s4439_s28 + $0xf0] sm:$0xff] %v768_v30  ;;  %771 = vst [vmem:[%s4439_s28 + $0xf8] sm:$0xff] %v770_v31  ;;  %v774_v33 = vld [vmem:[%s4434_s26 + $0x210] sm:$0xff] }
  0x38   : > { %773 = vst [vmem:[%s4439_s28 + $0x100] sm:$0xff] %v772_v32  ;;  %v776_v34 = vld [vmem:[%s4434_s26 + $0x220] sm:$0xff]  ;;  %v778_v35 = vld [vmem:[%s4434_s26 + $0x230] sm:$0xff]  ;;  %775 = vst [vmem:[%s4439_s28 + $0x108] sm:$0xff] %v774_v33 }
  0x39   : > { %777 = vst [vmem:[%s4439_s28 + $0x110] sm:$0xff] %v776_v34  ;;  %779 = vst [vmem:[%s4439_s28 + $0x118] sm:$0xff] %v778_v35  ;;  %v780_v36 = vld [vmem:[%s4434_s26 + $0x240] sm:$0xff]  ;;  %v782_v37 = vld [vmem:[%s4434_s26 + $0x250] sm:$0xff] }
  0x3a   : > { %v784_v38 = vld [vmem:[%s4434_s26 + $0x260] sm:$0xff]  ;;  %781 = vst [vmem:[%s4439_s28 + $0x120] sm:$0xff] %v780_v36  ;;  %783 = vst [vmem:[%s4439_s28 + $0x128] sm:$0xff] %v782_v37  ;;  %v786_v39 = vld [vmem:[%s4434_s26 + $0x270] sm:$0xff] }
  0x3b   : > { %785 = vst [vmem:[%s4439_s28 + $0x130] sm:$0xff] %v784_v38  ;;  %v788_v40 = vld [vmem:[%s4434_s26 + $0x280] sm:$0xff]  ;;  %v790_v41 = vld [vmem:[%s4434_s26 + $0x290] sm:$0xff]  ;;  %787 = vst [vmem:[%s4439_s28 + $0x138] sm:$0xff] %v786_v39 }
  0x3c   : > { %789 = vst [vmem:[%s4439_s28 + $0x140] sm:$0xff] %v788_v40  ;;  %791 = vst [vmem:[%s4439_s28 + $0x148] sm:$0xff] %v790_v41  ;;  %v792_v42 = vld [vmem:[%s4434_s26 + $0x2a0] sm:$0xff]  ;;  %v794_v43 = vld [vmem:[%s4434_s26 + $0x2b0] sm:$0xff] }
  0x3d   : > { %v796_v44 = vld [vmem:[%s4434_s26 + $0x2c0] sm:$0xff]  ;;  %793 = vst [vmem:[%s4439_s28 + $0x150] sm:$0xff] %v792_v42  ;;  %795 = vst [vmem:[%s4439_s28 + $0x158] sm:$0xff] %v794_v43  ;;  %v798_v45 = vld [vmem:[%s4434_s26 + $0x2d0] sm:$0xff] }
  0x3e   : > { %797 = vst [vmem:[%s4439_s28 + $0x160] sm:$0xff] %v796_v44  ;;  %v800_v46 = vld [vmem:[%s4434_s26 + $0x2e0] sm:$0xff]  ;;  %v802_v47 = vld [vmem:[%s4434_s26 + $0x2f0] sm:$0xff]  ;;  %799 = vst [vmem:[%s4439_s28 + $0x168] sm:$0xff] %v798_v45 }
  0x3f   : > { %801 = vst [vmem:[%s4439_s28 + $0x170] sm:$0xff] %v800_v46  ;;  %803 = vst [vmem:[%s4439_s28 + $0x178] sm:$0xff] %v802_v47  ;;  %v804_v48 = vld [vmem:[%s4434_s26 + $0x300] sm:$0xff]  ;;  %v806_v49 = vld [vmem:[%s4434_s26 + $0x310] sm:$0xff] }
  0x40   : > { %v808_v50 = vld [vmem:[%s4434_s26 + $0x320] sm:$0xff]  ;;  %805 = vst [vmem:[%s4439_s28 + $0x180] sm:$0xff] %v804_v48  ;;  %807 = vst [vmem:[%s4439_s28 + $0x188] sm:$0xff] %v806_v49  ;;  %v810_v51 = vld [vmem:[%s4434_s26 + $0x330] sm:$0xff] }
  0x41   : > { %809 = vst [vmem:[%s4439_s28 + $0x190] sm:$0xff] %v808_v50  ;;  %v812_v52 = vld [vmem:[%s4434_s26 + $0x340] sm:$0xff]  ;;  %v814_v53 = vld [vmem:[%s4434_s26 + $0x350] sm:$0xff]  ;;  %811 = vst [vmem:[%s4439_s28 + $0x198] sm:$0xff] %v810_v51 }
  0x42   : > { %813 = vst [vmem:[%s4439_s28 + $0x1a0] sm:$0xff] %v812_v52  ;;  %815 = vst [vmem:[%s4439_s28 + $0x1a8] sm:$0xff] %v814_v53  ;;  %v816_v54 = vld [vmem:[%s4434_s26 + $0x360] sm:$0xff]  ;;  %v818_v55 = vld [vmem:[%s4434_s26 + $0x370] sm:$0xff] }
  0x43   : > { %v820_v56 = vld [vmem:[%s4434_s26 + $0x380] sm:$0xff]  ;;  %817 = vst [vmem:[%s4439_s28 + $0x1b0] sm:$0xff] %v816_v54  ;;  %819 = vst [vmem:[%s4439_s28 + $0x1b8] sm:$0xff] %v818_v55  ;;  %v822_v57 = vld [vmem:[%s4434_s26 + $0x390] sm:$0xff] }
  0x44   : > { %821 = vst [vmem:[%s4439_s28 + $0x1c0] sm:$0xff] %v820_v56  ;;  %v824_v58 = vld [vmem:[%s4434_s26 + $0x3a0] sm:$0xff]  ;;  %v826_v59 = vld [vmem:[%s4434_s26 + $0x3b0] sm:$0xff]  ;;  %823 = vst [vmem:[%s4439_s28 + $0x1c8] sm:$0xff] %v822_v57 }
  0x45   : > { %825 = vst [vmem:[%s4439_s28 + $0x1d0] sm:$0xff] %v824_v58  ;;  %827 = vst [vmem:[%s4439_s28 + $0x1d8] sm:$0xff] %v826_v59  ;;  %v828_v60 = vld [vmem:[%s4434_s26 + $0x3c0] sm:$0xff]  ;;  %v830_v61 = vld [vmem:[%s4434_s26 + $0x3d0] sm:$0xff] }
  0x46   : > { %v832_v62 = vld [vmem:[%s4434_s26 + $0x3e0] sm:$0xff]  ;;  %829 = vst [vmem:[%s4439_s28 + $0x1e0] sm:$0xff] %v828_v60  ;;  %831 = vst [vmem:[%s4439_s28 + $0x1e8] sm:$0xff] %v830_v61  ;;  %v834_v63 = vld [vmem:[%s4434_s26 + $0x3f0] sm:$0xff] }
  0x47   : > { %833 = vst [vmem:[%s4439_s28 + $0x1f0] sm:$0xff] %v832_v62  ;;  %v836_v0 = vld [vmem:[%s4434_s26 + $0x400] sm:$0xff]  ;;  %v838_v1 = vld [vmem:[%s4434_s26 + $0x410] sm:$0xff]  ;;  %835 = vst [vmem:[%s4439_s28 + $0x1f8] sm:$0xff] %v834_v63 }
  0x48   : > { %837 = vst [vmem:[%s4439_s28 + $0x200] sm:$0xff] %v836_v0  ;;  %839 = vst [vmem:[%s4439_s28 + $0x208] sm:$0xff] %v838_v1  ;;  %v840_v2 = vld [vmem:[%s4434_s26 + $0x420] sm:$0xff]  ;;  %v842_v3 = vld [vmem:[%s4434_s26 + $0x430] sm:$0xff] }
  0x49   : > { %v844_v4 = vld [vmem:[%s4434_s26 + $0x440] sm:$0xff]  ;;  %841 = vst [vmem:[%s4439_s28 + $0x210] sm:$0xff] %v840_v2  ;;  %843 = vst [vmem:[%s4439_s28 + $0x218] sm:$0xff] %v842_v3  ;;  %v846_v5 = vld [vmem:[%s4434_s26 + $0x450] sm:$0xff] }
  0x4a   : > { %845 = vst [vmem:[%s4439_s28 + $0x220] sm:$0xff] %v844_v4  ;;  %v848_v6 = vld [vmem:[%s4434_s26 + $0x460] sm:$0xff]  ;;  %v850_v7 = vld [vmem:[%s4434_s26 + $0x470] sm:$0xff]  ;;  %847 = vst [vmem:[%s4439_s28 + $0x228] sm:$0xff] %v846_v5 }
  0x4b   : > { %849 = vst [vmem:[%s4439_s28 + $0x230] sm:$0xff] %v848_v6  ;;  %851 = vst [vmem:[%s4439_s28 + $0x238] sm:$0xff] %v850_v7  ;;  %v852_v8 = vld [vmem:[%s4434_s26 + $0x480] sm:$0xff]  ;;  %v854_v9 = vld [vmem:[%s4434_s26 + $0x490] sm:$0xff] }
  0x4c   : > { %v856_v10 = vld [vmem:[%s4434_s26 + $0x4a0] sm:$0xff]  ;;  %853 = vst [vmem:[%s4439_s28 + $0x240] sm:$0xff] %v852_v8  ;;  %855 = vst [vmem:[%s4439_s28 + $0x248] sm:$0xff] %v854_v9  ;;  %v858_v11 = vld [vmem:[%s4434_s26 + $0x4b0] sm:$0xff] }
  0x4d   : > { %857 = vst [vmem:[%s4439_s28 + $0x250] sm:$0xff] %v856_v10  ;;  %v860_v12 = vld [vmem:[%s4434_s26 + $0x4c0] sm:$0xff]  ;;  %v862_v13 = vld [vmem:[%s4434_s26 + $0x4d0] sm:$0xff]  ;;  %859 = vst [vmem:[%s4439_s28 + $0x258] sm:$0xff] %v858_v11 }
  0x4e   : > { %861 = vst [vmem:[%s4439_s28 + $0x260] sm:$0xff] %v860_v12  ;;  %863 = vst [vmem:[%s4439_s28 + $0x268] sm:$0xff] %v862_v13  ;;  %v864_v14 = vld [vmem:[%s4434_s26 + $0x4e0] sm:$0xff]  ;;  %v866_v15 = vld [vmem:[%s4434_s26 + $0x4f0] sm:$0xff] }
  0x4f   : > { %v868_v16 = vld [vmem:[%s4434_s26 + $0x500] sm:$0xff]  ;;  %865 = vst [vmem:[%s4439_s28 + $0x270] sm:$0xff] %v864_v14  ;;  %867 = vst [vmem:[%s4439_s28 + $0x278] sm:$0xff] %v866_v15  ;;  %v870_v17 = vld [vmem:[%s4434_s26 + $0x510] sm:$0xff] }
  0x50   : > { %869 = vst [vmem:[%s4439_s28 + $0x280] sm:$0xff] %v868_v16  ;;  %v872_v18 = vld [vmem:[%s4434_s26 + $0x520] sm:$0xff]  ;;  %v874_v19 = vld [vmem:[%s4434_s26 + $0x530] sm:$0xff]  ;;  %871 = vst [vmem:[%s4439_s28 + $0x288] sm:$0xff] %v870_v17 }
  0x51   : > { %873 = vst [vmem:[%s4439_s28 + $0x290] sm:$0xff] %v872_v18  ;;  %875 = vst [vmem:[%s4439_s28 + $0x298] sm:$0xff] %v874_v19  ;;  %v876_v20 = vld [vmem:[%s4434_s26 + $0x540] sm:$0xff]  ;;  %v878_v21 = vld [vmem:[%s4434_s26 + $0x550] sm:$0xff] }
  0x52   : > { %v880_v22 = vld [vmem:[%s4434_s26 + $0x560] sm:$0xff]  ;;  %877 = vst [vmem:[%s4439_s28 + $0x2a0] sm:$0xff] %v876_v20  ;;  %879 = vst [vmem:[%s4439_s28 + $0x2a8] sm:$0xff] %v878_v21  ;;  %v882_v23 = vld [vmem:[%s4434_s26 + $0x570] sm:$0xff] }
  0x53   : > { %881 = vst [vmem:[%s4439_s28 + $0x2b0] sm:$0xff] %v880_v22  ;;  %v884_v24 = vld [vmem:[%s4434_s26 + $0x580] sm:$0xff]  ;;  %v886_v25 = vld [vmem:[%s4434_s26 + $0x590] sm:$0xff]  ;;  %883 = vst [vmem:[%s4439_s28 + $0x2b8] sm:$0xff] %v882_v23 }
  0x54   : > { %885 = vst [vmem:[%s4439_s28 + $0x2c0] sm:$0xff] %v884_v24  ;;  %887 = vst [vmem:[%s4439_s28 + $0x2c8] sm:$0xff] %v886_v25  ;;  %v888_v26 = vld [vmem:[%s4434_s26 + $0x5a0] sm:$0xff]  ;;  %v890_v27 = vld [vmem:[%s4434_s26 + $0x5b0] sm:$0xff] }
  0x55   : > { %v892_v28 = vld [vmem:[%s4434_s26 + $0x5c0] sm:$0xff]  ;;  %889 = vst [vmem:[%s4439_s28 + $0x2d0] sm:$0xff] %v888_v26  ;;  %891 = vst [vmem:[%s4439_s28 + $0x2d8] sm:$0xff] %v890_v27  ;;  %v894_v29 = vld [vmem:[%s4434_s26 + $0x5d0] sm:$0xff] }
  0x56   : > { %893 = vst [vmem:[%s4439_s28 + $0x2e0] sm:$0xff] %v892_v28  ;;  %v896_v30 = vld [vmem:[%s4434_s26 + $0x5e0] sm:$0xff]  ;;  %v898_v31 = vld [vmem:[%s4434_s26 + $0x5f0] sm:$0xff]  ;;  %895 = vst [vmem:[%s4439_s28 + $0x2e8] sm:$0xff] %v894_v29 }
  0x57   : > { %897 = vst [vmem:[%s4439_s28 + $0x2f0] sm:$0xff] %v896_v30  ;;  %899 = vst [vmem:[%s4439_s28 + $0x2f8] sm:$0xff] %v898_v31  ;;  %v900_v32 = vld [vmem:[%s4434_s26 + $0x600] sm:$0xff]  ;;  %v902_v33 = vld [vmem:[%s4434_s26 + $0x610] sm:$0xff] }
  0x58   : > { %v904_v34 = vld [vmem:[%s4434_s26 + $0x620] sm:$0xff]  ;;  %901 = vst [vmem:[%s4439_s28 + $0x300] sm:$0xff] %v900_v32  ;;  %903 = vst [vmem:[%s4439_s28 + $0x308] sm:$0xff] %v902_v33  ;;  %v906_v35 = vld [vmem:[%s4434_s26 + $0x630] sm:$0xff] }
  0x59   : > { %905 = vst [vmem:[%s4439_s28 + $0x310] sm:$0xff] %v904_v34  ;;  %v908_v36 = vld [vmem:[%s4434_s26 + $0x640] sm:$0xff]  ;;  %v910_v37 = vld [vmem:[%s4434_s26 + $0x650] sm:$0xff]  ;;  %907 = vst [vmem:[%s4439_s28 + $0x318] sm:$0xff] %v906_v35 }
  0x5a   : > { %909 = vst [vmem:[%s4439_s28 + $0x320] sm:$0xff] %v908_v36  ;;  %911 = vst [vmem:[%s4439_s28 + $0x328] sm:$0xff] %v910_v37  ;;  %v912_v38 = vld [vmem:[%s4434_s26 + $0x660] sm:$0xff]  ;;  %v914_v39 = vld [vmem:[%s4434_s26 + $0x670] sm:$0xff] }
  0x5b   : > { %v916_v40 = vld [vmem:[%s4434_s26 + $0x680] sm:$0xff]  ;;  %913 = vst [vmem:[%s4439_s28 + $0x330] sm:$0xff] %v912_v38  ;;  %915 = vst [vmem:[%s4439_s28 + $0x338] sm:$0xff] %v914_v39  ;;  %v918_v41 = vld [vmem:[%s4434_s26 + $0x690] sm:$0xff] }
  0x5c   : > { %917 = vst [vmem:[%s4439_s28 + $0x340] sm:$0xff] %v916_v40  ;;  %v920_v42 = vld [vmem:[%s4434_s26 + $0x6a0] sm:$0xff]  ;;  %v922_v43 = vld [vmem:[%s4434_s26 + $0x6b0] sm:$0xff]  ;;  %919 = vst [vmem:[%s4439_s28 + $0x348] sm:$0xff] %v918_v41 }
  0x5d   : > { %921 = vst [vmem:[%s4439_s28 + $0x350] sm:$0xff] %v920_v42  ;;  %923 = vst [vmem:[%s4439_s28 + $0x358] sm:$0xff] %v922_v43  ;;  %v924_v44 = vld [vmem:[%s4434_s26 + $0x6c0] sm:$0xff]  ;;  %v926_v45 = vld [vmem:[%s4434_s26 + $0x6d0] sm:$0xff] }
  0x5e   : > { %v928_v46 = vld [vmem:[%s4434_s26 + $0x6e0] sm:$0xff]  ;;  %925 = vst [vmem:[%s4439_s28 + $0x360] sm:$0xff] %v924_v44  ;;  %927 = vst [vmem:[%s4439_s28 + $0x368] sm:$0xff] %v926_v45  ;;  %v930_v47 = vld [vmem:[%s4434_s26 + $0x6f0] sm:$0xff] }
  0x5f   : > { %929 = vst [vmem:[%s4439_s28 + $0x370] sm:$0xff] %v928_v46  ;;  %v932_v48 = vld [vmem:[%s4434_s26 + $0x700] sm:$0xff]  ;;  %v934_v49 = vld [vmem:[%s4434_s26 + $0x710] sm:$0xff]  ;;  %931 = vst [vmem:[%s4439_s28 + $0x378] sm:$0xff] %v930_v47 }
  0x60   : > { %933 = vst [vmem:[%s4439_s28 + $0x380] sm:$0xff] %v932_v48  ;;  %935 = vst [vmem:[%s4439_s28 + $0x388] sm:$0xff] %v934_v49  ;;  %v936_v50 = vld [vmem:[%s4434_s26 + $0x720] sm:$0xff]  ;;  %v938_v51 = vld [vmem:[%s4434_s26 + $0x730] sm:$0xff] }
  0x61   : > { %v940_v52 = vld [vmem:[%s4434_s26 + $0x740] sm:$0xff]  ;;  %937 = vst [vmem:[%s4439_s28 + $0x390] sm:$0xff] %v936_v50  ;;  %939 = vst [vmem:[%s4439_s28 + $0x398] sm:$0xff] %v938_v51  ;;  %v942_v53 = vld [vmem:[%s4434_s26 + $0x750] sm:$0xff] }
  0x62   : > { %941 = vst [vmem:[%s4439_s28 + $0x3a0] sm:$0xff] %v940_v52  ;;  %v944_v54 = vld [vmem:[%s4434_s26 + $0x760] sm:$0xff]  ;;  %v946_v55 = vld [vmem:[%s4434_s26 + $0x770] sm:$0xff]  ;;  %943 = vst [vmem:[%s4439_s28 + $0x3a8] sm:$0xff] %v942_v53 }
  0x63   : > { %945 = vst [vmem:[%s4439_s28 + $0x3b0] sm:$0xff] %v944_v54  ;;  %947 = vst [vmem:[%s4439_s28 + $0x3b8] sm:$0xff] %v946_v55  ;;  %v948_v56 = vld [vmem:[%s4434_s26 + $0x780] sm:$0xff]  ;;  %v950_v57 = vld [vmem:[%s4434_s26 + $0x790] sm:$0xff] }
  0x64   : > { %v952_v58 = vld [vmem:[%s4434_s26 + $0x7a0] sm:$0xff]  ;;  %949 = vst [vmem:[%s4439_s28 + $0x3c0] sm:$0xff] %v948_v56  ;;  %951 = vst [vmem:[%s4439_s28 + $0x3c8] sm:$0xff] %v950_v57  ;;  %v954_v59 = vld [vmem:[%s4434_s26 + $0x7b0] sm:$0xff] }
  0x65   : > { %953 = vst [vmem:[%s4439_s28 + $0x3d0] sm:$0xff] %v952_v58  ;;  %v956_v60 = vld [vmem:[%s4434_s26 + $0x7c0] sm:$0xff]  ;;  %v958_v61 = vld [vmem:[%s4434_s26 + $0x7d0] sm:$0xff]  ;;  %955 = vst [vmem:[%s4439_s28 + $0x3d8] sm:$0xff] %v954_v59 }
  0x66   : > { %957 = vst [vmem:[%s4439_s28 + $0x3e0] sm:$0xff] %v956_v60  ;;  %959 = vst [vmem:[%s4439_s28 + $0x3e8] sm:$0xff] %v958_v61  ;;  %v960_v62 = vld [vmem:[%s4434_s26 + $0x7e0] sm:$0xff]  ;;  %v962_v63 = vld [vmem:[%s4434_s26 + $0x7f0] sm:$0xff] }
  0x67   : > { %v964_v0 = vld [vmem:[%s4434_s26 + $0x800] sm:$0xff]  ;;  %961 = vst [vmem:[%s4439_s28 + $0x3f0] sm:$0xff] %v960_v62  ;;  %963 = vst [vmem:[%s4439_s28 + $0x3f8] sm:$0xff] %v962_v63  ;;  %v966_v1 = vld [vmem:[%s4434_s26 + $0x810] sm:$0xff] }
  0x68   : > { %965 = vst [vmem:[%s4439_s28 + $0x400] sm:$0xff] %v964_v0  ;;  %v968_v2 = vld [vmem:[%s4434_s26 + $0x820] sm:$0xff]  ;;  %v970_v3 = vld [vmem:[%s4434_s26 + $0x830] sm:$0xff]  ;;  %967 = vst [vmem:[%s4439_s28 + $0x408] sm:$0xff] %v966_v1 }
  0x69   : > { %969 = vst [vmem:[%s4439_s28 + $0x410] sm:$0xff] %v968_v2  ;;  %971 = vst [vmem:[%s4439_s28 + $0x418] sm:$0xff] %v970_v3  ;;  %v972_v4 = vld [vmem:[%s4434_s26 + $0x840] sm:$0xff]  ;;  %v974_v5 = vld [vmem:[%s4434_s26 + $0x850] sm:$0xff] }
  0x6a   : > { %v976_v6 = vld [vmem:[%s4434_s26 + $0x860] sm:$0xff]  ;;  %973 = vst [vmem:[%s4439_s28 + $0x420] sm:$0xff] %v972_v4  ;;  %975 = vst [vmem:[%s4439_s28 + $0x428] sm:$0xff] %v974_v5  ;;  %v978_v7 = vld [vmem:[%s4434_s26 + $0x870] sm:$0xff] }
  0x6b   : > { %977 = vst [vmem:[%s4439_s28 + $0x430] sm:$0xff] %v976_v6  ;;  %v980_v8 = vld [vmem:[%s4434_s26 + $0x880] sm:$0xff]  ;;  %v982_v9 = vld [vmem:[%s4434_s26 + $0x890] sm:$0xff]  ;;  %979 = vst [vmem:[%s4439_s28 + $0x438] sm:$0xff] %v978_v7 }
  0x6c   : > { %981 = vst [vmem:[%s4439_s28 + $0x440] sm:$0xff] %v980_v8  ;;  %983 = vst [vmem:[%s4439_s28 + $0x448] sm:$0xff] %v982_v9  ;;  %v984_v10 = vld [vmem:[%s4434_s26 + $0x8a0] sm:$0xff]  ;;  %v986_v11 = vld [vmem:[%s4434_s26 + $0x8b0] sm:$0xff] }
  0x6d   : > { %v988_v12 = vld [vmem:[%s4434_s26 + $0x8c0] sm:$0xff]  ;;  %985 = vst [vmem:[%s4439_s28 + $0x450] sm:$0xff] %v984_v10  ;;  %987 = vst [vmem:[%s4439_s28 + $0x458] sm:$0xff] %v986_v11  ;;  %v990_v13 = vld [vmem:[%s4434_s26 + $0x8d0] sm:$0xff] }
  0x6e   : > { %989 = vst [vmem:[%s4439_s28 + $0x460] sm:$0xff] %v988_v12  ;;  %v992_v14 = vld [vmem:[%s4434_s26 + $0x8e0] sm:$0xff]  ;;  %v994_v15 = vld [vmem:[%s4434_s26 + $0x8f0] sm:$0xff]  ;;  %991 = vst [vmem:[%s4439_s28 + $0x468] sm:$0xff] %v990_v13 }
  0x6f   : > { %993 = vst [vmem:[%s4439_s28 + $0x470] sm:$0xff] %v992_v14  ;;  %995 = vst [vmem:[%s4439_s28 + $0x478] sm:$0xff] %v994_v15  ;;  %v996_v16 = vld [vmem:[%s4434_s26 + $0x900] sm:$0xff]  ;;  %v998_v17 = vld [vmem:[%s4434_s26 + $0x910] sm:$0xff] }
  0x70   : > { %v1000_v18 = vld [vmem:[%s4434_s26 + $0x920] sm:$0xff]  ;;  %997 = vst [vmem:[%s4439_s28 + $0x480] sm:$0xff] %v996_v16  ;;  %999 = vst [vmem:[%s4439_s28 + $0x488] sm:$0xff] %v998_v17  ;;  %v1002_v19 = vld [vmem:[%s4434_s26 + $0x930] sm:$0xff] }
  0x71   : > { %1001 = vst [vmem:[%s4439_s28 + $0x490] sm:$0xff] %v1000_v18  ;;  %v1004_v20 = vld [vmem:[%s4434_s26 + $0x940] sm:$0xff]  ;;  %v1006_v21 = vld [vmem:[%s4434_s26 + $0x950] sm:$0xff]  ;;  %1003 = vst [vmem:[%s4439_s28 + $0x498] sm:$0xff] %v1002_v19 }
  0x72   : > { %1005 = vst [vmem:[%s4439_s28 + $0x4a0] sm:$0xff] %v1004_v20  ;;  %1007 = vst [vmem:[%s4439_s28 + $0x4a8] sm:$0xff] %v1006_v21  ;;  %v1008_v22 = vld [vmem:[%s4434_s26 + $0x960] sm:$0xff]  ;;  %v1010_v23 = vld [vmem:[%s4434_s26 + $0x970] sm:$0xff] }
  0x73   : > { %v1012_v24 = vld [vmem:[%s4434_s26 + $0x980] sm:$0xff]  ;;  %1009 = vst [vmem:[%s4439_s28 + $0x4b0] sm:$0xff] %v1008_v22  ;;  %1011 = vst [vmem:[%s4439_s28 + $0x4b8] sm:$0xff] %v1010_v23  ;;  %v1014_v25 = vld [vmem:[%s4434_s26 + $0x990] sm:$0xff] }
  0x74   : > { %1013 = vst [vmem:[%s4439_s28 + $0x4c0] sm:$0xff] %v1012_v24  ;;  %v1016_v26 = vld [vmem:[%s4434_s26 + $0x9a0] sm:$0xff]  ;;  %v1018_v27 = vld [vmem:[%s4434_s26 + $0x9b0] sm:$0xff]  ;;  %1015 = vst [vmem:[%s4439_s28 + $0x4c8] sm:$0xff] %v1014_v25 }
  0x75   : > { %1017 = vst [vmem:[%s4439_s28 + $0x4d0] sm:$0xff] %v1016_v26  ;;  %1019 = vst [vmem:[%s4439_s28 + $0x4d8] sm:$0xff] %v1018_v27  ;;  %v1020_v28 = vld [vmem:[%s4434_s26 + $0x9c0] sm:$0xff]  ;;  %v1022_v29 = vld [vmem:[%s4434_s26 + $0x9d0] sm:$0xff] }
  0x76   : > { %v1024_v30 = vld [vmem:[%s4434_s26 + $0x9e0] sm:$0xff]  ;;  %1021 = vst [vmem:[%s4439_s28 + $0x4e0] sm:$0xff] %v1020_v28  ;;  %1023 = vst [vmem:[%s4439_s28 + $0x4e8] sm:$0xff] %v1022_v29  ;;  %v1026_v31 = vld [vmem:[%s4434_s26 + $0x9f0] sm:$0xff] }
  0x77   : > { %1025 = vst [vmem:[%s4439_s28 + $0x4f0] sm:$0xff] %v1024_v30  ;;  %v1028_v32 = vld [vmem:[%s4434_s26 + $0xa00] sm:$0xff]  ;;  %v1030_v33 = vld [vmem:[%s4434_s26 + $0xa10] sm:$0xff]  ;;  %1027 = vst [vmem:[%s4439_s28 + $0x4f8] sm:$0xff] %v1026_v31 }
  0x78   : > { %1029 = vst [vmem:[%s4439_s28 + $0x500] sm:$0xff] %v1028_v32  ;;  %1031 = vst [vmem:[%s4439_s28 + $0x508] sm:$0xff] %v1030_v33  ;;  %v1032_v34 = vld [vmem:[%s4434_s26 + $0xa20] sm:$0xff]  ;;  %v1034_v35 = vld [vmem:[%s4434_s26 + $0xa30] sm:$0xff] }
  0x79   : > { %v1036_v36 = vld [vmem:[%s4434_s26 + $0xa40] sm:$0xff]  ;;  %1033 = vst [vmem:[%s4439_s28 + $0x510] sm:$0xff] %v1032_v34  ;;  %1035 = vst [vmem:[%s4439_s28 + $0x518] sm:$0xff] %v1034_v35  ;;  %v1038_v37 = vld [vmem:[%s4434_s26 + $0xa50] sm:$0xff] }
  0x7a   : > { %1037 = vst [vmem:[%s4439_s28 + $0x520] sm:$0xff] %v1036_v36  ;;  %v1040_v38 = vld [vmem:[%s4434_s26 + $0xa60] sm:$0xff]  ;;  %v1042_v39 = vld [vmem:[%s4434_s26 + $0xa70] sm:$0xff]  ;;  %1039 = vst [vmem:[%s4439_s28 + $0x528] sm:$0xff] %v1038_v37 }
  0x7b   : > { %1041 = vst [vmem:[%s4439_s28 + $0x530] sm:$0xff] %v1040_v38  ;;  %1043 = vst [vmem:[%s4439_s28 + $0x538] sm:$0xff] %v1042_v39  ;;  %v1044_v40 = vld [vmem:[%s4434_s26 + $0xa80] sm:$0xff]  ;;  %v1046_v41 = vld [vmem:[%s4434_s26 + $0xa90] sm:$0xff] }
  0x7c   : > { %v1048_v42 = vld [vmem:[%s4434_s26 + $0xaa0] sm:$0xff]  ;;  %1045 = vst [vmem:[%s4439_s28 + $0x540] sm:$0xff] %v1044_v40  ;;  %1047 = vst [vmem:[%s4439_s28 + $0x548] sm:$0xff] %v1046_v41  ;;  %v1050_v43 = vld [vmem:[%s4434_s26 + $0xab0] sm:$0xff] }
  0x7d   : > { %1049 = vst [vmem:[%s4439_s28 + $0x550] sm:$0xff] %v1048_v42  ;;  %v1052_v44 = vld [vmem:[%s4434_s26 + $0xac0] sm:$0xff]  ;;  %v1054_v45 = vld [vmem:[%s4434_s26 + $0xad0] sm:$0xff]  ;;  %1051 = vst [vmem:[%s4439_s28 + $0x558] sm:$0xff] %v1050_v43 }
  0x7e   : > { %1053 = vst [vmem:[%s4439_s28 + $0x560] sm:$0xff] %v1052_v44  ;;  %1055 = vst [vmem:[%s4439_s28 + $0x568] sm:$0xff] %v1054_v45  ;;  %v1056_v46 = vld [vmem:[%s4434_s26 + $0xae0] sm:$0xff]  ;;  %v1058_v47 = vld [vmem:[%s4434_s26 + $0xaf0] sm:$0xff] }
  0x7f   : > { %v1060_v48 = vld [vmem:[%s4434_s26 + $0xb00] sm:$0xff]  ;;  %1057 = vst [vmem:[%s4439_s28 + $0x570] sm:$0xff] %v1056_v46  ;;  %1059 = vst [vmem:[%s4439_s28 + $0x578] sm:$0xff] %v1058_v47  ;;  %v1062_v49 = vld [vmem:[%s4434_s26 + $0xb10] sm:$0xff] }
  0x80   : > { %1061 = vst [vmem:[%s4439_s28 + $0x580] sm:$0xff] %v1060_v48  ;;  %v1064_v50 = vld [vmem:[%s4434_s26 + $0xb20] sm:$0xff]  ;;  %v1066_v51 = vld [vmem:[%s4434_s26 + $0xb30] sm:$0xff]  ;;  %1063 = vst [vmem:[%s4439_s28 + $0x588] sm:$0xff] %v1062_v49 }
  0x81   : > { %1065 = vst [vmem:[%s4439_s28 + $0x590] sm:$0xff] %v1064_v50  ;;  %1067 = vst [vmem:[%s4439_s28 + $0x598] sm:$0xff] %v1066_v51  ;;  %v1068_v52 = vld [vmem:[%s4434_s26 + $0xb40] sm:$0xff]  ;;  %v1070_v53 = vld [vmem:[%s4434_s26 + $0xb50] sm:$0xff] }
  0x82   : > { %v1072_v54 = vld [vmem:[%s4434_s26 + $0xb60] sm:$0xff]  ;;  %1069 = vst [vmem:[%s4439_s28 + $0x5a0] sm:$0xff] %v1068_v52  ;;  %1071 = vst [vmem:[%s4439_s28 + $0x5a8] sm:$0xff] %v1070_v53  ;;  %v1074_v55 = vld [vmem:[%s4434_s26 + $0xb70] sm:$0xff] }
  0x83   : > { %1073 = vst [vmem:[%s4439_s28 + $0x5b0] sm:$0xff] %v1072_v54  ;;  %v1076_v56 = vld [vmem:[%s4434_s26 + $0xb80] sm:$0xff]  ;;  %v1078_v57 = vld [vmem:[%s4434_s26 + $0xb90] sm:$0xff]  ;;  %1075 = vst [vmem:[%s4439_s28 + $0x5b8] sm:$0xff] %v1074_v55 }
  0x84   : > { %1077 = vst [vmem:[%s4439_s28 + $0x5c0] sm:$0xff] %v1076_v56  ;;  %1079 = vst [vmem:[%s4439_s28 + $0x5c8] sm:$0xff] %v1078_v57  ;;  %v1080_v58 = vld [vmem:[%s4434_s26 + $0xba0] sm:$0xff]  ;;  %v1082_v59 = vld [vmem:[%s4434_s26 + $0xbb0] sm:$0xff] }
  0x85   : > { %v1084_v60 = vld [vmem:[%s4434_s26 + $0xbc0] sm:$0xff]  ;;  %1081 = vst [vmem:[%s4439_s28 + $0x5d0] sm:$0xff] %v1080_v58  ;;  %1083 = vst [vmem:[%s4439_s28 + $0x5d8] sm:$0xff] %v1082_v59  ;;  %v1086_v61 = vld [vmem:[%s4434_s26 + $0xbd0] sm:$0xff] }
  0x86   : > { %1085 = vst [vmem:[%s4439_s28 + $0x5e0] sm:$0xff] %v1084_v60  ;;  %v1088_v62 = vld [vmem:[%s4434_s26 + $0xbe0] sm:$0xff]  ;;  %v1090_v63 = vld [vmem:[%s4434_s26 + $0xbf0] sm:$0xff]  ;;  %1087 = vst [vmem:[%s4439_s28 + $0x5e8] sm:$0xff] %v1086_v61 }
  0x87   : > { %1089 = vst [vmem:[%s4439_s28 + $0x5f0] sm:$0xff] %v1088_v62  ;;  %1091 = vst [vmem:[%s4439_s28 + $0x5f8] sm:$0xff] %v1090_v63  ;;  %v1092_v0 = vld [vmem:[%s4434_s26 + $0xc00] sm:$0xff]  ;;  %v1094_v1 = vld [vmem:[%s4434_s26 + $0xc10] sm:$0xff] }
  0x88   : > { %v1096_v2 = vld [vmem:[%s4434_s26 + $0xc20] sm:$0xff]  ;;  %1093 = vst [vmem:[%s4439_s28 + $0x600] sm:$0xff] %v1092_v0  ;;  %1095 = vst [vmem:[%s4439_s28 + $0x608] sm:$0xff] %v1094_v1  ;;  %v1098_v3 = vld [vmem:[%s4434_s26 + $0xc30] sm:$0xff] }
  0x89   : > { %1097 = vst [vmem:[%s4439_s28 + $0x610] sm:$0xff] %v1096_v2  ;;  %v1100_v4 = vld [vmem:[%s4434_s26 + $0xc40] sm:$0xff]  ;;  %v1102_v5 = vld [vmem:[%s4434_s26 + $0xc50] sm:$0xff]  ;;  %1099 = vst [vmem:[%s4439_s28 + $0x618] sm:$0xff] %v1098_v3 }
  0x8a   : > { %1101 = vst [vmem:[%s4439_s28 + $0x620] sm:$0xff] %v1100_v4  ;;  %1103 = vst [vmem:[%s4439_s28 + $0x628] sm:$0xff] %v1102_v5  ;;  %v1104_v6 = vld [vmem:[%s4434_s26 + $0xc60] sm:$0xff]  ;;  %v1106_v7 = vld [vmem:[%s4434_s26 + $0xc70] sm:$0xff] }
  0x8b   : > { %v1108_v8 = vld [vmem:[%s4434_s26 + $0xc80] sm:$0xff]  ;;  %1105 = vst [vmem:[%s4439_s28 + $0x630] sm:$0xff] %v1104_v6  ;;  %1107 = vst [vmem:[%s4439_s28 + $0x638] sm:$0xff] %v1106_v7  ;;  %v1110_v9 = vld [vmem:[%s4434_s26 + $0xc90] sm:$0xff] }
  0x8c   : > { %1109 = vst [vmem:[%s4439_s28 + $0x640] sm:$0xff] %v1108_v8  ;;  %v1112_v10 = vld [vmem:[%s4434_s26 + $0xca0] sm:$0xff]  ;;  %v1114_v11 = vld [vmem:[%s4434_s26 + $0xcb0] sm:$0xff]  ;;  %1111 = vst [vmem:[%s4439_s28 + $0x648] sm:$0xff] %v1110_v9 }
  0x8d   : > { %1113 = vst [vmem:[%s4439_s28 + $0x650] sm:$0xff] %v1112_v10  ;;  %1115 = vst [vmem:[%s4439_s28 + $0x658] sm:$0xff] %v1114_v11  ;;  %v1116_v12 = vld [vmem:[%s4434_s26 + $0xcc0] sm:$0xff]  ;;  %v1118_v13 = vld [vmem:[%s4434_s26 + $0xcd0] sm:$0xff] }
  0x8e   : > { %v1120_v14 = vld [vmem:[%s4434_s26 + $0xce0] sm:$0xff]  ;;  %1117 = vst [vmem:[%s4439_s28 + $0x660] sm:$0xff] %v1116_v12  ;;  %1119 = vst [vmem:[%s4439_s28 + $0x668] sm:$0xff] %v1118_v13  ;;  %v1122_v15 = vld [vmem:[%s4434_s26 + $0xcf0] sm:$0xff] }
  0x8f   : > { %1121 = vst [vmem:[%s4439_s28 + $0x670] sm:$0xff] %v1120_v14  ;;  %v1124_v16 = vld [vmem:[%s4434_s26 + $0xd00] sm:$0xff]  ;;  %v1126_v17 = vld [vmem:[%s4434_s26 + $0xd10] sm:$0xff]  ;;  %1123 = vst [vmem:[%s4439_s28 + $0x678] sm:$0xff] %v1122_v15 }
  0x90   : > { %1125 = vst [vmem:[%s4439_s28 + $0x680] sm:$0xff] %v1124_v16  ;;  %1127 = vst [vmem:[%s4439_s28 + $0x688] sm:$0xff] %v1126_v17  ;;  %v1128_v18 = vld [vmem:[%s4434_s26 + $0xd20] sm:$0xff]  ;;  %v1130_v19 = vld [vmem:[%s4434_s26 + $0xd30] sm:$0xff] }
  0x91   : > { %v1132_v20 = vld [vmem:[%s4434_s26 + $0xd40] sm:$0xff]  ;;  %1129 = vst [vmem:[%s4439_s28 + $0x690] sm:$0xff] %v1128_v18  ;;  %1131 = vst [vmem:[%s4439_s28 + $0x698] sm:$0xff] %v1130_v19  ;;  %v1134_v21 = vld [vmem:[%s4434_s26 + $0xd50] sm:$0xff] }
  0x92   : > { %1133 = vst [vmem:[%s4439_s28 + $0x6a0] sm:$0xff] %v1132_v20  ;;  %v1136_v22 = vld [vmem:[%s4434_s26 + $0xd60] sm:$0xff]  ;;  %v1138_v23 = vld [vmem:[%s4434_s26 + $0xd70] sm:$0xff]  ;;  %1135 = vst [vmem:[%s4439_s28 + $0x6a8] sm:$0xff] %v1134_v21 }
  0x93   : > { %1137 = vst [vmem:[%s4439_s28 + $0x6b0] sm:$0xff] %v1136_v22  ;;  %1139 = vst [vmem:[%s4439_s28 + $0x6b8] sm:$0xff] %v1138_v23  ;;  %v1140_v24 = vld [vmem:[%s4434_s26 + $0xd80] sm:$0xff]  ;;  %v1142_v25 = vld [vmem:[%s4434_s26 + $0xd90] sm:$0xff] }
  0x94   : > { %v1144_v26 = vld [vmem:[%s4434_s26 + $0xda0] sm:$0xff]  ;;  %1141 = vst [vmem:[%s4439_s28 + $0x6c0] sm:$0xff] %v1140_v24  ;;  %1143 = vst [vmem:[%s4439_s28 + $0x6c8] sm:$0xff] %v1142_v25  ;;  %v1146_v27 = vld [vmem:[%s4434_s26 + $0xdb0] sm:$0xff] }
  0x95   : > { %1145 = vst [vmem:[%s4439_s28 + $0x6d0] sm:$0xff] %v1144_v26  ;;  %v1148_v28 = vld [vmem:[%s4434_s26 + $0xdc0] sm:$0xff]  ;;  %v1150_v29 = vld [vmem:[%s4434_s26 + $0xdd0] sm:$0xff]  ;;  %1147 = vst [vmem:[%s4439_s28 + $0x6d8] sm:$0xff] %v1146_v27 }
  0x96   : > { %1149 = vst [vmem:[%s4439_s28 + $0x6e0] sm:$0xff] %v1148_v28  ;;  %1151 = vst [vmem:[%s4439_s28 + $0x6e8] sm:$0xff] %v1150_v29  ;;  %v1152_v30 = vld [vmem:[%s4434_s26 + $0xde0] sm:$0xff]  ;;  %v1154_v31 = vld [vmem:[%s4434_s26 + $0xdf0] sm:$0xff] }
  0x97   : > { %v1156_v32 = vld [vmem:[%s4434_s26 + $0xe00] sm:$0xff]  ;;  %1153 = vst [vmem:[%s4439_s28 + $0x6f0] sm:$0xff] %v1152_v30  ;;  %1155 = vst [vmem:[%s4439_s28 + $0x6f8] sm:$0xff] %v1154_v31  ;;  %v1158_v33 = vld [vmem:[%s4434_s26 + $0xe10] sm:$0xff] }
  0x98   : > { %1157 = vst [vmem:[%s4439_s28 + $0x700] sm:$0xff] %v1156_v32  ;;  %v1160_v34 = vld [vmem:[%s4434_s26 + $0xe20] sm:$0xff]  ;;  %v1162_v35 = vld [vmem:[%s4434_s26 + $0xe30] sm:$0xff]  ;;  %1159 = vst [vmem:[%s4439_s28 + $0x708] sm:$0xff] %v1158_v33 }
  0x99   : > { %1161 = vst [vmem:[%s4439_s28 + $0x710] sm:$0xff] %v1160_v34  ;;  %1163 = vst [vmem:[%s4439_s28 + $0x718] sm:$0xff] %v1162_v35  ;;  %v1164_v36 = vld [vmem:[%s4434_s26 + $0xe40] sm:$0xff]  ;;  %v1166_v37 = vld [vmem:[%s4434_s26 + $0xe50] sm:$0xff] }
  0x9a   : > { %v1168_v38 = vld [vmem:[%s4434_s26 + $0xe60] sm:$0xff]  ;;  %1165 = vst [vmem:[%s4439_s28 + $0x720] sm:$0xff] %v1164_v36  ;;  %1167 = vst [vmem:[%s4439_s28 + $0x728] sm:$0xff] %v1166_v37  ;;  %v1170_v39 = vld [vmem:[%s4434_s26 + $0xe70] sm:$0xff] }
  0x9b   : > { %1169 = vst [vmem:[%s4439_s28 + $0x730] sm:$0xff] %v1168_v38  ;;  %v1172_v40 = vld [vmem:[%s4434_s26 + $0xe80] sm:$0xff]  ;;  %v1174_v41 = vld [vmem:[%s4434_s26 + $0xe90] sm:$0xff]  ;;  %1171 = vst [vmem:[%s4439_s28 + $0x738] sm:$0xff] %v1170_v39 }
  0x9c   : > { %1173 = vst [vmem:[%s4439_s28 + $0x740] sm:$0xff] %v1172_v40  ;;  %1175 = vst [vmem:[%s4439_s28 + $0x748] sm:$0xff] %v1174_v41  ;;  %v1176_v42 = vld [vmem:[%s4434_s26 + $0xea0] sm:$0xff]  ;;  %v1178_v43 = vld [vmem:[%s4434_s26 + $0xeb0] sm:$0xff] }
  0x9d   : > { %v1180_v44 = vld [vmem:[%s4434_s26 + $0xec0] sm:$0xff]  ;;  %1177 = vst [vmem:[%s4439_s28 + $0x750] sm:$0xff] %v1176_v42  ;;  %1179 = vst [vmem:[%s4439_s28 + $0x758] sm:$0xff] %v1178_v43  ;;  %v1182_v45 = vld [vmem:[%s4434_s26 + $0xed0] sm:$0xff] }
  0x9e   : > { %1181 = vst [vmem:[%s4439_s28 + $0x760] sm:$0xff] %v1180_v44  ;;  %v1184_v46 = vld [vmem:[%s4434_s26 + $0xee0] sm:$0xff]  ;;  %v1186_v47 = vld [vmem:[%s4434_s26 + $0xef0] sm:$0xff]  ;;  %1183 = vst [vmem:[%s4439_s28 + $0x768] sm:$0xff] %v1182_v45 }
  0x9f   : > { %1185 = vst [vmem:[%s4439_s28 + $0x770] sm:$0xff] %v1184_v46  ;;  %1187 = vst [vmem:[%s4439_s28 + $0x778] sm:$0xff] %v1186_v47  ;;  %v1188_v48 = vld [vmem:[%s4434_s26 + $0xf00] sm:$0xff]  ;;  %v1190_v49 = vld [vmem:[%s4434_s26 + $0xf10] sm:$0xff] }
  0xa0   : > { %v1192_v50 = vld [vmem:[%s4434_s26 + $0xf20] sm:$0xff]  ;;  %1189 = vst [vmem:[%s4439_s28 + $0x780] sm:$0xff] %v1188_v48  ;;  %1191 = vst [vmem:[%s4439_s28 + $0x788] sm:$0xff] %v1190_v49  ;;  %v1194_v51 = vld [vmem:[%s4434_s26 + $0xf30] sm:$0xff] }
  0xa1   : > { %1193 = vst [vmem:[%s4439_s28 + $0x790] sm:$0xff] %v1192_v50  ;;  %v1196_v52 = vld [vmem:[%s4434_s26 + $0xf40] sm:$0xff]  ;;  %v1198_v53 = vld [vmem:[%s4434_s26 + $0xf50] sm:$0xff]  ;;  %1195 = vst [vmem:[%s4439_s28 + $0x798] sm:$0xff] %v1194_v51 }
  0xa2   : > { %1197 = vst [vmem:[%s4439_s28 + $0x7a0] sm:$0xff] %v1196_v52  ;;  %1199 = vst [vmem:[%s4439_s28 + $0x7a8] sm:$0xff] %v1198_v53  ;;  %v1200_v54 = vld [vmem:[%s4434_s26 + $0xf60] sm:$0xff]  ;;  %v1202_v55 = vld [vmem:[%s4434_s26 + $0xf70] sm:$0xff] }
  0xa3   : > { %v1204_v56 = vld [vmem:[%s4434_s26 + $0xf80] sm:$0xff]  ;;  %1201 = vst [vmem:[%s4439_s28 + $0x7b0] sm:$0xff] %v1200_v54  ;;  %1203 = vst [vmem:[%s4439_s28 + $0x7b8] sm:$0xff] %v1202_v55  ;;  %v1206_v57 = vld [vmem:[%s4434_s26 + $0xf90] sm:$0xff] }
  0xa4   : > { %1205 = vst [vmem:[%s4439_s28 + $0x7c0] sm:$0xff] %v1204_v56  ;;  %v1208_v58 = vld [vmem:[%s4434_s26 + $0xfa0] sm:$0xff]  ;;  %v1210_v59 = vld [vmem:[%s4434_s26 + $0xfb0] sm:$0xff]  ;;  %1207 = vst [vmem:[%s4439_s28 + $0x7c8] sm:$0xff] %v1206_v57 }
  0xa5   : > { %1209 = vst [vmem:[%s4439_s28 + $0x7d0] sm:$0xff] %v1208_v58  ;;  %1211 = vst [vmem:[%s4439_s28 + $0x7d8] sm:$0xff] %v1210_v59  ;;  %v1212_v60 = vld [vmem:[%s4434_s26 + $0xfc0] sm:$0xff]  ;;  %v1214_v61 = vld [vmem:[%s4434_s26 + $0xfd0] sm:$0xff] }
  0xa6   : > { %v1216_v62 = vld [vmem:[%s4434_s26 + $0xfe0] sm:$0xff]  ;;  %1213 = vst [vmem:[%s4439_s28 + $0x7e0] sm:$0xff] %v1212_v60  ;;  %1215 = vst [vmem:[%s4439_s28 + $0x7e8] sm:$0xff] %v1214_v61  ;;  %v1218_v63 = vld [vmem:[%s4434_s26 + $0xff0] sm:$0xff] }
  0xa7   : > { %1217 = vst [vmem:[%s4439_s28 + $0x7f0] sm:$0xff] %v1216_v62  ;;  %1219 = vst [vmem:[%s4439_s28 + $0x7f8] sm:$0xff] %v1218_v63 }
  0xa8 PF: > { %p3426_p0 = scmp.ge.s32.totalorder %s4310_s21, 1  ;;  %p1232_p1 = scmp.lt.s32.totalorder %s4310_s21, 9 }
  0xaa   : > { %p1233_p2 = pnand %p3426_p0, %p1232_p1 }
  0xab   : > { %s1239_s5 = sand.u32 (!%p1233_p2), 1, %s4286_s15   ;;  %s5377_s9 = sand.u32 (!%p1233_p2), 1, %s4278_s13  }
  0xac   : > { %1236 = sbr.rel (%p1233_p2) target bundleno = 703 (0x2bf), region = 66  ;;  %s3427_s10 = sshll.u32 (!%p1233_p2), %s1239_s5, 11 }
  0xad   : > { %s4956_s11 = sshll.u32 (!%p1233_p2), %s5377_s9, 2  ;;  %s3429_s22 = sshll.u32 (!%p1233_p2), %s4294_s17, 4 }
  0xae   : > { %s3431_s23 = sshll.u32 (!%p1233_p2), %s4298_s18, 1  ;;  %p1272_p3 = scmp.lt.s32.totalorder (!%p1233_p2), %s3429_s22, 63 }
  0xaf   : > { %p1280_p4 = scmp.lt.s32.totalorder (!%p1233_p2), %s3431_s23, 3  ;;  %s4971_s9 = scalar_lea.vmem (!%p1233_p2), [#allocation3], %s3427_s10 }
  0xb0   : > { %s1270_s1 = scalar_lea.vmem (!%p1233_p2), [#allocation4], %s4956_s11  ;;  %p3432_p5 = scmp.ne.s32.totalorder (!%p1233_p2), %s4294_s17, 0 }
  0xb3   : > { %s5400_s22 = smov (!%p1272_p3, %s3429_s22), 63  ;;  %s5402_s23 = smov (!%p1280_p4, %s3431_s23), 3 }
  0xb4   : > { %s3430_s27 = sshll.u32 %s5400_s22, 1  ;;  %s1282_s5 = scalar_lea.vmem %s5375_s2, %s5402_s23  ;;  %v4312_v0 = vmov (!%p3432_p5), 0.0  }
  0xb5   : > { %s4965_s26 = scalar_lea.vmem %s5373_s0, %s3430_s27  ;;  %1288 = sbr.rel (%p3432_p5) target bundleno = 188 (0xbc), region = 74  ;;  %1289 = vst [vmem:[#allocation2] sm:$0xf] (!%p3432_p5), %v4312_v0 }
  0xbc PF: > { %v3812_v1 = vld [vmem:[%s4971_s9 + $0x4] ss:$8 sps:$4 sm:$0xff]   ;;  %v3816_v3 = vld [vmem:[%s4971_s9] ss:$8 sps:$4 sm:$0xff]   ;;  %v3818_v5 = vld [vmem:[%s4971_s9 + $0x14] ss:$8 sps:$4 sm:$0xff]   ;;  %v1303_v39 = vlaneseq }
  0xbd   : > { %v3814_v2 = vld [vmem:[%s4971_s9 + $0x404] ss:$8 sps:$4 sm:$0xff]   ;;  %2935 = vmatprep.subr.bf16.mxu1 %v3812_v1  ;;  %v3817_v4 = vld [vmem:[%s4971_s9 + $0x400] ss:$8 sps:$4 sm:$0xff]   ;;  %v3820_v6 = vld [vmem:[%s4971_s9 + $0x414] ss:$8 sps:$4 sm:$0xff]  }
  0xbe   : > { %3099 = vmatprep.subr.bf16.mxu0 %v3814_v2  ;;  %2936 = vmatpush1.bf16.msra.mxu1 %v3816_v3  ;;  %v3822_v7 = vld [vmem:[%s4971_s9 + $0x10] ss:$8 sps:$4 sm:$0xff]   ;;  %v3824_v9 = vld [vmem:[%s4971_s9 + $0x24] ss:$8 sps:$4 sm:$0xff]   ;;  %v3828_v11 = vld [vmem:[%s4971_s9 + $0x20] ss:$8 sps:$4 sm:$0xff]  }
  0xbf   : > { %3100 = vmatpush1.bf16.msra.mxu0 %v3817_v4  ;;  %2937 = vmatprep.subr.bf16.mxu1 %v3818_v5  ;;  %v3823_v8 = vld [vmem:[%s4971_s9 + $0x410] ss:$8 sps:$4 sm:$0xff]   ;;  %v3826_v10 = vld [vmem:[%s4971_s9 + $0x424] ss:$8 sps:$4 sm:$0xff]   ;;  %v3829_v12 = vld [vmem:[%s4971_s9 + $0x420] ss:$8 sps:$4 sm:$0xff]  }
  0xc0   : > { %3101 = vmatprep.subr.bf16.mxu0 %v3820_v6  ;;  %v3830_v13 = vld [vmem:[%s4971_s9 + $0x34] ss:$8 sps:$4 sm:$0xff]   ;;  %v3834_v15 = vld [vmem:[%s4971_s9 + $0x30] ss:$8 sps:$4 sm:$0xff]   ;;  %v3836_v17 = vld [vmem:[%s4971_s9 + $0x44] ss:$8 sps:$4 sm:$0xff]  }
  0xc1   : > { %v3832_v14 = vld [vmem:[%s4971_s9 + $0x434] ss:$8 sps:$4 sm:$0xff]   ;;  %v3835_v16 = vld [vmem:[%s4971_s9 + $0x430] ss:$8 sps:$4 sm:$0xff]   ;;  %v3838_v18 = vld [vmem:[%s4971_s9 + $0x444] ss:$8 sps:$4 sm:$0xff]  }
  0xc2   : > { %2938 = vmatpush1.bf16.msra.mxu1 %v3822_v7  ;;  %v3840_v19 = vld [vmem:[%s4971_s9 + $0x40] ss:$8 sps:$4 sm:$0xff]   ;;  %v3842_v21 = vld [vmem:[%s4971_s9 + $0x54] ss:$8 sps:$4 sm:$0xff]   ;;  %v3846_v23 = vld [vmem:[%s4971_s9 + $0x50] ss:$8 sps:$4 sm:$0xff]  }
  0xc3   : > { %3102 = vmatpush1.bf16.msra.mxu0 %v3823_v8  ;;  %2939 = vmatprep.subr.bf16.mxu1 %v3824_v9  ;;  %v3841_v20 = vld [vmem:[%s4971_s9 + $0x440] ss:$8 sps:$4 sm:$0xff]   ;;  %v3844_v22 = vld [vmem:[%s4971_s9 + $0x454] ss:$8 sps:$4 sm:$0xff]   ;;  %v3847_v24 = vld [vmem:[%s4971_s9 + $0x450] ss:$8 sps:$4 sm:$0xff]  }
  0xc4   : > { %3103 = vmatprep.subr.bf16.mxu0 %v3826_v10  ;;  %v3848_v25 = vld [vmem:[%s4971_s9 + $0x64] ss:$8 sps:$4 sm:$0xff]   ;;  %v3852_v27 = vld [vmem:[%s4971_s9 + $0x60] ss:$8 sps:$4 sm:$0xff]   ;;  %v3854_v29 = vld [vmem:[%s4971_s9 + $0x74] ss:$8 sps:$4 sm:$0xff]  }
  0xc5   : > { %v3850_v26 = vld [vmem:[%s4971_s9 + $0x464] ss:$8 sps:$4 sm:$0xff]   ;;  %v3853_v28 = vld [vmem:[%s4971_s9 + $0x460] ss:$8 sps:$4 sm:$0xff]   ;;  %v3856_v30 = vld [vmem:[%s4971_s9 + $0x474] ss:$8 sps:$4 sm:$0xff]  }
  0xc6   : > { %2940 = vmatpush1.bf16.msra.mxu1 %v3828_v11  ;;  %v3858_v31 = vld [vmem:[%s4971_s9 + $0x70] ss:$8 sps:$4 sm:$0xff]   ;;  %v3860_v33 = vld [vmem:[%s4971_s9 + $0x84] ss:$8 sps:$4 sm:$0xff]   ;;  %v3864_v35 = vld [vmem:[%s4971_s9 + $0x80] ss:$8 sps:$4 sm:$0xff]  }
  0xc7   : > { %3104 = vmatpush1.bf16.msra.mxu0 %v3829_v12  ;;  %2941 = vmatprep.subr.bf16.mxu1 %v3830_v13  ;;  %v3859_v32 = vld [vmem:[%s4971_s9 + $0x470] ss:$8 sps:$4 sm:$0xff]   ;;  %v3862_v34 = vld [vmem:[%s4971_s9 + $0x484] ss:$8 sps:$4 sm:$0xff]   ;;  %v3865_v36 = vld [vmem:[%s4971_s9 + $0x480] ss:$8 sps:$4 sm:$0xff]  }
  0xc8   : > { %3105 = vmatprep.subr.bf16.mxu0 %v3832_v14  ;;  %v4313_v37 = vmov 1983009808   ;;  %v3866_v40 = vld [vmem:[%s4971_s9 + $0x94] ss:$8 sps:$4 sm:$0xff]   ;;  %v3870_v42 = vld [vmem:[%s4971_s9 + $0x90] ss:$8 sps:$4 sm:$0xff]  }
  0xc9   : > { %v1301_v38 = vunpack.c.l.s4 %v4313_v37  ;;  %v3868_v41 = vld [vmem:[%s4971_s9 + $0x494] ss:$8 sps:$4 sm:$0xff]   ;;  %v5014_v44 = vshrl.u32 %v1303_v39, 7  ;;  %v3871_v45 = vld [vmem:[%s4971_s9 + $0x490] ss:$8 sps:$4 sm:$0xff]   ;;  %p3689_p6 = scmp.ne.s32.totalorder %s4294_s17, 3 }
  0xca   : > { %2942 = vmatpush1.bf16.msra.mxu1 %v3834_v15  ;;  %v3872_v46 = vld [vmem:[%s4971_s9 + $0xa4] ss:$8 sps:$4 sm:$0xff]   ;;  %v3876_v48 = vld [vmem:[%s4971_s9 + $0xa0] ss:$8 sps:$4 sm:$0xff]   ;;  %v3878_v51 = vld [vmem:[%s4971_s9 + $0xb4] ss:$8 sps:$4 sm:$0xff]  }
  0xcb   : > { %3106 = vmatpush1.bf16.msra.mxu0 %v3835_v16  ;;  %2943 = vmatprep.subr.bf16.mxu1 %v3836_v17  ;;  %v1302_v43 = vunpack.c.0.s8 %v1301_v38  ;;  %v3874_v47 = vld [vmem:[%s4971_s9 + $0x4a4] ss:$8 sps:$4 sm:$0xff]   ;;  %v3877_v49 = vld [vmem:[%s4971_s9 + $0x4a0] ss:$8 sps:$4 sm:$0xff]   ;;  %v3880_v52 = vld [vmem:[%s4971_s9 + $0x4b4] ss:$8 sps:$4 sm:$0xff]  }
  0xcc   : > { %3107 = vmatprep.subr.bf16.mxu0 %v3838_v18  ;;  %v1291_v53 = vld [vmem:[%s4965_s26] sm:$0xff]  ;;  %v3882_v54 = vld [vmem:[%s4971_s9 + $0xb0] ss:$8 sps:$4 sm:$0xff]   ;;  %v3884_v58 = vld [vmem:[%s4971_s9 + $0xc4] ss:$8 sps:$4 sm:$0xff]  }
  0xcd   : > { %v5022_v50 = vsub.s32 %v1302_v43, %v5014_v44  ;;  %v3883_v56 = vld [vmem:[%s4971_s9 + $0x4b0] ss:$8 sps:$4 sm:$0xff]   ;;  %v3886_v59 = vld [vmem:[%s4971_s9 + $0x4c4] ss:$8 sps:$4 sm:$0xff]   ;;  %v3888_v0 = vld [vmem:[%s4971_s9 + $0xc0] ss:$8 sps:$4 sm:$0xff]   ;;  %v1299_v9 = vcombine.high %v1291_v53, %v1291_v53 }
  0xce   : > { %2944 = vmatpush1.bf16.msra.mxu1 %v3840_v19  ;;  %v1293_v57 = vld [vmem:[%s4965_s26 + $0x10] sm:$0xff]  ;;  %v3889_v1 = vld [vmem:[%s4971_s9 + $0x4c0] ss:$8 sps:$4 sm:$0xff]   ;;  %v3890_v2 = vld [vmem:[%s4971_s9 + $0xd4] ss:$8 sps:$4 sm:$0xff]  }
  0xcf   : > { %3108 = vmatpush1.bf16.msra.mxu0 %v3841_v20  ;;  %2945 = vmatprep.subr.bf16.mxu1 %v3842_v21  ;;  %v5029_v55 = vrot.slane %v1291_v53, %v5022_v50  ;;  %v1340_v61 = vrot.slane %v1293_v57, %v5022_v50  ;;  %v3892_v3 = vld [vmem:[%s4971_s9 + $0x4d4] ss:$8 sps:$4 sm:$0xff]   ;;  %v3894_v5 = vld [vmem:[%s4971_s9 + $0xd0] ss:$8 sps:$4 sm:$0xff]   ;;  %v3896_v7 = vld [vmem:[%s4971_s9 + $0xe4] ss:$8 sps:$4 sm:$0xff]   ;;  %v1333_v10 = vcombine.high %v1293_v57, %v1293_v57 }
  0xd0   : > { %3109 = vmatprep.subr.bf16.mxu0 %v3844_v22  ;;  %v3895_v6 = vld [vmem:[%s4971_s9 + $0x4d0] ss:$8 sps:$4 sm:$0xff]   ;;  %v3898_v8 = vld [vmem:[%s4971_s9 + $0x4e4] ss:$8 sps:$4 sm:$0xff]   ;;  %v3900_v11 = vld [vmem:[%s4971_s9 + $0xe0] ss:$8 sps:$4 sm:$0xff]   ;;  %v5051_v15 = vrot.slane %v1299_v9, %v5022_v50 }
  0xd1   : > { %v1314_v60 = vcombine.high %v5029_v55, %v5029_v55  ;;  %v1348_v63 = vcombine.high %v1340_v61, %v1340_v61  ;;  %v3901_v12 = vld [vmem:[%s4971_s9 + $0x4e0] ss:$8 sps:$4 sm:$0xff]   ;;  %v3902_v13 = vld [vmem:[%s4971_s9 + $0xf4] ss:$8 sps:$4 sm:$0xff]   ;;  %v5054_v16 = vrot.slane %v1333_v10, %v5022_v50  ;;  %v3906_v17 = vld [vmem:[%s4971_s9 + $0xf0] ss:$8 sps:$4 sm:$0xff]  }
  0xd2   : > { %2946 = vmatpush1.bf16.msra.mxu1 %v3846_v23  ;;  %v3904_v14 = vld [vmem:[%s4971_s9 + $0x4f4] ss:$8 sps:$4 sm:$0xff]   ;;  %v3907_v18 = vld [vmem:[%s4971_s9 + $0x4f0] ss:$8 sps:$4 sm:$0xff]   ;;  %v3911_v19 = vld [vmem:[%s4971_s9 + $0x104] ss:$8 sps:$4 sm:$0xff]   ;;  %v1315_v21 = vcombine.high %v5051_v15, %v5051_v15  ;;  %v1383_v23 = vpack.c.bf16 %v5029_v55, %v5029_v55 }
  0xd3   : > { %3110 = vmatpush1.bf16.msra.mxu0 %v3847_v24  ;;  %2947 = vmatprep.subr.bf16.mxu1 %v3848_v25  ;;  %v1384_v62 = vpack.c.bf16 %v1314_v60, %v1314_v60  ;;  %v1392_v4 = vpack.c.bf16 %v1348_v63, %v1348_v63  ;;  %v3915_v20 = vld [vmem:[%s4971_s9 + $0x504] ss:$8 sps:$4 sm:$0xff]   ;;  %v1349_v22 = vcombine.high %v5054_v16, %v5054_v16  ;;  %v3909_v25 = vld [vmem:[%s4971_s9 + $0x100] ss:$8 sps:$4 sm:$0xff]   ;;  %v3930_v37 = vld [vmem:[%s4971_s9 + $0x134] ss:$8 sps:$4 sm:$0xff]  }
  0xd4   : > { %3111 = vmatprep.subr.bf16.mxu0 %v3850_v26  ;;  %v1391_v24 = vpack.c.bf16 %v1340_v61, %v1340_v61  ;;  %v3913_v26 = vld [vmem:[%s4971_s9 + $0x500] ss:$8 sps:$4 sm:$0xff]   ;;  %v3933_v38 = vld [vmem:[%s4971_s9 + $0x534] ss:$8 sps:$4 sm:$0xff]   ;;  %v3928_v39 = vld [vmem:[%s4971_s9 + $0x130] ss:$8 sps:$4 sm:$0xff]  }
  0xd5   : > { %2967 = vmatprep.mubr.bf16.mxu1 %v1384_v62  ;;  %3131 = vmatprep.mubr.bf16.mxu0 %v1392_v4  ;;  %v3934_v43 = vld [vmem:[%s4971_s9 + $0x140] ss:$8 sps:$4 sm:$0xff]   ;;  %v3954_v55 = vld [vmem:[%s4971_s9 + $0x174] ss:$8 sps:$4 sm:$0xff]   ;;  %v3952_v57 = vld [vmem:[%s4971_s9 + $0x170] ss:$8 sps:$4 sm:$0xff]  }
  0xd6   : > { %2948 = vmatpush1.bf16.msra.mxu1 %v3852_v27  ;;  %v3918_v27 = vld [vmem:[%s4971_s9 + $0x114] ss:$8 sps:$4 sm:$0xff]   ;;  %v3946_v53 = vld [vmem:[%s4971_s9 + $0x160] ss:$8 sps:$4 sm:$0xff]   ;;  %v3963_v60 = vld [vmem:[%s4971_s9 + $0x584] ss:$8 sps:$4 sm:$0xff]  }
  0xd7   : > { %3112 = vmatpush1.bf16.msra.mxu0 %v3853_v28  ;;  %2949 = vmatprep.subr.bf16.mxu1 %v3854_v29  ;;  %v3921_v28 = vld [vmem:[%s4971_s9 + $0x514] ss:$8 sps:$4 sm:$0xff]   ;;  %v1386_v29 = vpack.c.bf16 %v1315_v21, %v1315_v21  ;;  %v3958_v61 = vld [vmem:[%s4971_s9 + $0x180] ss:$8 sps:$4 sm:$0xff]   ;;  %v3975_v4 = vld [vmem:[%s4971_s9 + $0x5a4] ss:$8 sps:$4 sm:$0xff]  }
  0xd8   : > { %3113 = vmatprep.subr.bf16.mxu0 %v3856_v30  ;;  %v1394_v30 = vpack.c.bf16 %v1349_v22, %v1349_v22  ;;  %v3961_v62 = vld [vmem:[%s4971_s9 + $0x580] ss:$8 sps:$4 sm:$0xff]   ;;  %v3966_v63 = vld [vmem:[%s4971_s9 + $0x194] ss:$8 sps:$4 sm:$0xff]   ;;  %v3976_v9 = vld [vmem:[%s4971_s9 + $0x1b0] ss:$8 sps:$4 sm:$0xff]  }
  0xd9   : > { %v3979_v10 = vld [vmem:[%s4971_s9 + $0x5b0] ss:$8 sps:$4 sm:$0xff]   ;;  %v3996_v21 = vld [vmem:[%s4971_s9 + $0x1e4] ss:$8 sps:$4 sm:$0xff]  }
  0xda   : > { %2950 = vmatpush1.bf16.msra.mxu1 %v3858_v31  ;;  %v3916_v31 = vld [vmem:[%s4971_s9 + $0x110] ss:$8 sps:$4 sm:$0xff]   ;;  %v3999_v22 = vld [vmem:[%s4971_s9 + $0x5e4] ss:$8 sps:$4 sm:$0xff]  }
  0xdb   : > { %3114 = vmatpush1.bf16.msra.mxu0 %v3859_v32  ;;  %2951 = vmatprep.subr.bf16.mxu1 %v3860_v33  ;;  %v3919_v32 = vld [vmem:[%s4971_s9 + $0x510] ss:$8 sps:$4 sm:$0xff]   ;;  %v3924_v33 = vld [vmem:[%s4971_s9 + $0x124] ss:$8 sps:$4 sm:$0xff]  }
  0xdc   : > { %3115 = vmatprep.subr.bf16.mxu0 %v3862_v34  ;;  %v3927_v34 = vld [vmem:[%s4971_s9 + $0x524] ss:$8 sps:$4 sm:$0xff]  }
  0xde   : > { %2952 = vmatpush1.bf16.msra.mxu1 %v3864_v35  ;;  %v3922_v35 = vld [vmem:[%s4971_s9 + $0x120] ss:$8 sps:$4 sm:$0xff]  }
  0xdf   : > { %3116 = vmatpush1.bf16.msra.mxu0 %v3865_v36  ;;  %2953 = vmatprep.subr.bf16.mxu1 %v3866_v40  ;;  %v3925_v36 = vld [vmem:[%s4971_s9 + $0x520] ss:$8 sps:$4 sm:$0xff]   ;;  %v3931_v40 = vld [vmem:[%s4971_s9 + $0x530] ss:$8 sps:$4 sm:$0xff]  }
  0xe0   : > { %3117 = vmatprep.subr.bf16.mxu0 %v3868_v41  ;;  %v3936_v41 = vld [vmem:[%s4971_s9 + $0x144] ss:$8 sps:$4 sm:$0xff]  }
  0xe2   : > { %2954 = vmatpush1.bf16.msra.mxu1 %v3870_v42  ;;  %v3939_v42 = vld [vmem:[%s4971_s9 + $0x544] ss:$8 sps:$4 sm:$0xff]  }
  0xe3   : > { %3118 = vmatpush1.bf16.msra.mxu0 %v3871_v45  ;;  %2955 = vmatprep.subr.bf16.mxu1 %v3872_v46  ;;  %v3937_v45 = vld [vmem:[%s4971_s9 + $0x540] ss:$8 sps:$4 sm:$0xff]   ;;  %v3942_v46 = vld [vmem:[%s4971_s9 + $0x154] ss:$8 sps:$4 sm:$0xff]  }
  0xe4   : > { %3119 = vmatprep.subr.bf16.mxu0 %v3874_v47  ;;  %v3945_v47 = vld [vmem:[%s4971_s9 + $0x554] ss:$8 sps:$4 sm:$0xff]  }
  0xe6   : > { %2956 = vmatpush1.bf16.msra.mxu1 %v3876_v48  ;;  %v3940_v48 = vld [vmem:[%s4971_s9 + $0x150] ss:$8 sps:$4 sm:$0xff]  }
  0xe7   : > { %3120 = vmatpush1.bf16.msra.mxu0 %v3877_v49  ;;  %2957 = vmatprep.subr.bf16.mxu1 %v3878_v51  ;;  %v3943_v49 = vld [vmem:[%s4971_s9 + $0x550] ss:$8 sps:$4 sm:$0xff]   ;;  %v3948_v51 = vld [vmem:[%s4971_s9 + $0x164] ss:$8 sps:$4 sm:$0xff]  }
  0xe8   : > { %3121 = vmatprep.subr.bf16.mxu0 %v3880_v52  ;;  %v3951_v52 = vld [vmem:[%s4971_s9 + $0x564] ss:$8 sps:$4 sm:$0xff]  }
  0xea   : > { %2958 = vmatpush1.bf16.msra.mxu1 %v3882_v54  ;;  %v3949_v54 = vld [vmem:[%s4971_s9 + $0x560] ss:$8 sps:$4 sm:$0xff]  }
  0xeb   : > { %3122 = vmatpush1.bf16.msra.mxu0 %v3883_v56  ;;  %2959 = vmatprep.subr.bf16.mxu1 %v3884_v58  ;;  %v3957_v56 = vld [vmem:[%s4971_s9 + $0x574] ss:$8 sps:$4 sm:$0xff]   ;;  %v3955_v58 = vld [vmem:[%s4971_s9 + $0x570] ss:$8 sps:$4 sm:$0xff]  }
  0xec   : > { %3123 = vmatprep.subr.bf16.mxu0 %v3886_v59  ;;  %v3960_v59 = vld [vmem:[%s4971_s9 + $0x184] ss:$8 sps:$4 sm:$0xff]  }
  0xee   : > { %2960 = vmatpush1.bf16.msra.mxu1 %v3888_v0  ;;  %v3969_v0 = vld [vmem:[%s4971_s9 + $0x594] ss:$8 sps:$4 sm:$0xff]  }
  0xef   : > { %3124 = vmatpush1.bf16.msra.mxu0 %v3889_v1  ;;  %2961 = vmatprep.subr.bf16.mxu1 %v3890_v2  ;;  %v3964_v1 = vld [vmem:[%s4971_s9 + $0x190] ss:$8 sps:$4 sm:$0xff]  }
  0xf0   : > { %3125 = vmatprep.subr.bf16.mxu0 %v3892_v3  ;;  %v3967_v2 = vld [vmem:[%s4971_s9 + $0x590] ss:$8 sps:$4 sm:$0xff]   ;;  %v3972_v3 = vld [vmem:[%s4971_s9 + $0x1a4] ss:$8 sps:$4 sm:$0xff]  }
  0xf2   : > { %2962 = vmatpush1.bf16.msra.mxu1 %v3894_v5  ;;  %v3970_v5 = vld [vmem:[%s4971_s9 + $0x1a0] ss:$8 sps:$4 sm:$0xff]  }
  0xf3   : > { %3126 = vmatpush1.bf16.msra.mxu0 %v3895_v6  ;;  %2963 = vmatprep.subr.bf16.mxu1 %v3896_v7  ;;  %v3973_v6 = vld [vmem:[%s4971_s9 + $0x5a0] ss:$8 sps:$4 sm:$0xff]   ;;  %v3978_v7 = vld [vmem:[%s4971_s9 + $0x1b4] ss:$8 sps:$4 sm:$0xff]  }
  0xf4   : > { %3127 = vmatprep.subr.bf16.mxu0 %v3898_v8  ;;  %v3981_v8 = vld [vmem:[%s4971_s9 + $0x5b4] ss:$8 sps:$4 sm:$0xff]  }
  0xf6   : > { %2964 = vmatpush1.bf16.msra.mxu1 %v3900_v11  ;;  %v3984_v11 = vld [vmem:[%s4971_s9 + $0x1c4] ss:$8 sps:$4 sm:$0xff]  }
  0xf7   : > { %3128 = vmatpush1.bf16.msra.mxu0 %v3901_v12  ;;  %2965 = vmatprep.subr.bf16.mxu1 %v3902_v13  ;;  %v3987_v12 = vld [vmem:[%s4971_s9 + $0x5c4] ss:$8 sps:$4 sm:$0xff]   ;;  %v3982_v13 = vld [vmem:[%s4971_s9 + $0x1c0] ss:$8 sps:$4 sm:$0xff]  }
  0xf8   : > { %3129 = vmatprep.subr.bf16.mxu0 %v3904_v14  ;;  %v3985_v14 = vld [vmem:[%s4971_s9 + $0x5c0] ss:$8 sps:$4 sm:$0xff]  }
  0xfa   : > { %2966 = vmatpush1.bf16.msra.mxu1 %v3906_v17  ;;  %v3990_v17 = vld [vmem:[%s4971_s9 + $0x1d4] ss:$8 sps:$4 sm:$0xff]  }
  0xfb   : > { %3130 = vmatpush1.bf16.msra.mxu0 %v3907_v18  ;;  %2976 = vmatprep.subr.bf16.mxu1 %v3911_v19  ;;  %v3993_v18 = vld [vmem:[%s4971_s9 + $0x5d4] ss:$8 sps:$4 sm:$0xff]   ;;  %v3988_v19 = vld [vmem:[%s4971_s9 + $0x1d0] ss:$8 sps:$4 sm:$0xff]  }
  0xfc   : > { %3140 = vmatprep.subr.bf16.mxu0 %v3915_v20  ;;  %v3991_v20 = vld [vmem:[%s4971_s9 + $0x5d0] ss:$8 sps:$4 sm:$0xff]  }
  0xfd   : > { %2968 = vmatmul.mubr.bf16.vlgmr.msra.gmra.mrb[0].mxu1 %v1383_v23  ;;  %v3994_v23 = vld [vmem:[%s4971_s9 + $0x1e0] ss:$8 sps:$4 sm:$0xff]  }
  0xfe   : > { %3132 = vmatmul.mubr.bf16.vlgmr.msra.gmra.mrb[0].mxu0 %v1391_v24  ;;  %2977 = vmatpush1.bf16.msra.mxu1 %v3909_v25  ;;  %v3997_v24 = vld [vmem:[%s4971_s9 + $0x5e0] ss:$8 sps:$4 sm:$0xff]   ;;  %v4002_v25 = vld [vmem:[%s4971_s9 + $0x1f4] ss:$8 sps:$4 sm:$0xff]  }
  0xff   : > { %3141 = vmatpush1.bf16.msra.mxu0 %v3913_v26  ;;  %2978 = vmatprep.subr.bf16.mxu1 %v3918_v27  ;;  %v4005_v26 = vld [vmem:[%s4971_s9 + $0x5f4] ss:$8 sps:$4 sm:$0xff]   ;;  %v4000_v27 = vld [vmem:[%s4971_s9 + $0x1f0] ss:$8 sps:$4 sm:$0xff]  }
 0x100   : > { %3142 = vmatprep.subr.bf16.mxu0 %v3921_v28  ;;  %3008 = vmatprep.mubr.bf16.mxu1 %v1386_v29  ;;  %v4003_v28 = vld [vmem:[%s4971_s9 + $0x5f0] ss:$8 sps:$4 sm:$0xff]   ;;  %v4008_v29 = vld [vmem:[%s4971_s9 + $0x204] ss:$8 sps:$4 sm:$0xff]  }
 0x101   : > { %3172 = vmatprep.mubr.bf16.mxu0 %v1394_v30  ;;  %v4011_v30 = vld [vmem:[%s4971_s9 + $0x604] ss:$8 sps:$4 sm:$0xff]  }
 0x102   : > { %2979 = vmatpush1.bf16.msra.mxu1 %v3916_v31  ;;  %v4006_v31 = vld [vmem:[%s4971_s9 + $0x200] ss:$8 sps:$4 sm:$0xff]  }
 0x103   : > { %3143 = vmatpush1.bf16.msra.mxu0 %v3919_v32  ;;  %2980 = vmatprep.subr.bf16.mxu1 %v3924_v33  ;;  %v1385_v32 = vpack.c.bf16 %v5051_v15, %v5051_v15  ;;  %v1393_v33 = vpack.c.bf16 %v5054_v16, %v5054_v16  ;;  %v5146_v15 = vld [vmem:[%s4965_s26 + $0x18] sm:$0xff] }
 0x104   : > { %3144 = vmatprep.subr.bf16.mxu0 %v3927_v34  ;;  %v4009_v34 = vld [vmem:[%s4971_s9 + $0x600] ss:$8 sps:$4 sm:$0xff]   ;;  %v4012_v16 = vld [vmem:[%s4971_s9 + $0x210] ss:$8 sps:$4 sm:$0xff]  }
 0x106   : > { %2981 = vmatpush1.bf16.msra.mxu1 %v3922_v35  ;;  %v4014_v35 = vld [vmem:[%s4971_s9 + $0x214] ss:$8 sps:$4 sm:$0xff]  }
 0x107   : > { %3145 = vmatpush1.bf16.msra.mxu0 %v3925_v36  ;;  %2982 = vmatprep.subr.bf16.mxu1 %v3930_v37  ;;  %v5138_v36 = vld [vmem:[%s4965_s26 + $0x8] sm:$0xff]  ;;  %v4017_v37 = vld [vmem:[%s4971_s9 + $0x614] ss:$8 sps:$4 sm:$0xff]  }
 0x108   : > { %3146 = vmatprep.subr.bf16.mxu0 %v3933_v38  ;;  %v5143_v38 = vrot.slane %v5138_v36, %v5022_v50 }
 0x10a   : > { %2983 = vmatpush1.bf16.msra.mxu1 %v3928_v39  ;;  %v4015_v39 = vld [vmem:[%s4971_s9 + $0x610] ss:$8 sps:$4 sm:$0xff]  }
 0x10b   : > { %3147 = vmatpush1.bf16.msra.mxu0 %v3931_v40  ;;  %2984 = vmatprep.subr.bf16.mxu1 %v3936_v41  ;;  %v1331_v40 = vcombine.high %v5143_v38, %v5143_v38  ;;  %v5154_v41 = vrot.slane %v5146_v15, %v5022_v50 }
 0x10c   : > { %3148 = vmatprep.subr.bf16.mxu0 %v3939_v42  ;;  %v4020_v42 = vld [vmem:[%s4971_s9 + $0x224] ss:$8 sps:$4 sm:$0xff]  }
 0x10e   : > { %2985 = vmatpush1.bf16.msra.mxu1 %v3934_v43  ;;  %v4023_v43 = vld [vmem:[%s4971_s9 + $0x624] ss:$8 sps:$4 sm:$0xff]  }
 0x10f   : > { %3149 = vmatpush1.bf16.msra.mxu0 %v3937_v45  ;;  %2986 = vmatprep.subr.bf16.mxu1 %v3942_v46  ;;  %v1388_v45 = vpack.c.bf16 %v1331_v40, %v1331_v40  ;;  %v1365_v46 = vcombine.high %v5154_v41, %v5154_v41  ;;  %v4098_v40 = vld [vmem:[%s4971_s9 + $0x2f4] ss:$8 sps:$4 sm:$0xff]  }
 0x110   : > { %3150 = vmatprep.subr.bf16.mxu0 %v3945_v47  ;;  %v4018_v47 = vld [vmem:[%s4971_s9 + $0x220] ss:$8 sps:$4 sm:$0xff]  }
 0x112   : > { %2987 = vmatpush1.bf16.msra.mxu1 %v3940_v48  ;;  %v4021_v48 = vld [vmem:[%s4971_s9 + $0x620] ss:$8 sps:$4 sm:$0xff]  }
 0x113   : > { %3151 = vmatpush1.bf16.msra.mxu0 %v3943_v49  ;;  %2988 = vmatprep.subr.bf16.mxu1 %v3948_v51  ;;  %v1396_v49 = vpack.c.bf16 %v1365_v46, %v1365_v46  ;;  %v4026_v51 = vld [vmem:[%s4971_s9 + $0x234] ss:$8 sps:$4 sm:$0xff]   ;;  %v4104_v46 = vld [vmem:[%s4971_s9 + $0x304] ss:$8 sps:$4 sm:$0xff]  }
 0x114   : > { %3152 = vmatprep.subr.bf16.mxu0 %v3951_v52  ;;  %v4029_v52 = vld [vmem:[%s4971_s9 + $0x634] ss:$8 sps:$4 sm:$0xff]  }
 0x116   : > { %2989 = vmatpush1.bf16.msra.mxu1 %v3946_v53  ;;  %v4024_v53 = vld [vmem:[%s4971_s9 + $0x230] ss:$8 sps:$4 sm:$0xff]  }
 0x117   : > { %3153 = vmatpush1.bf16.msra.mxu0 %v3949_v54  ;;  %2990 = vmatprep.subr.bf16.mxu1 %v3954_v55  ;;  %v4027_v54 = vld [vmem:[%s4971_s9 + $0x630] ss:$8 sps:$4 sm:$0xff]   ;;  %v4032_v55 = vld [vmem:[%s4971_s9 + $0x244] ss:$8 sps:$4 sm:$0xff]  }
 0x118   : > { %3154 = vmatprep.subr.bf16.mxu0 %v3957_v56  ;;  %v4035_v56 = vld [vmem:[%s4971_s9 + $0x644] ss:$8 sps:$4 sm:$0xff]  }
 0x11a   : > { %2991 = vmatpush1.bf16.msra.mxu1 %v3952_v57  ;;  %v4030_v57 = vld [vmem:[%s4971_s9 + $0x240] ss:$8 sps:$4 sm:$0xff]  }
 0x11b   : > { %3155 = vmatpush1.bf16.msra.mxu0 %v3955_v58  ;;  %2992 = vmatprep.subr.bf16.mxu1 %v3960_v59  ;;  %v4033_v58 = vld [vmem:[%s4971_s9 + $0x640] ss:$8 sps:$4 sm:$0xff]   ;;  %v4038_v59 = vld [vmem:[%s4971_s9 + $0x254] ss:$8 sps:$4 sm:$0xff]  }
 0x11c   : > { %3156 = vmatprep.subr.bf16.mxu0 %v3963_v60  ;;  %v4041_v60 = vld [vmem:[%s4971_s9 + $0x654] ss:$8 sps:$4 sm:$0xff]  }
 0x11e   : > { %2993 = vmatpush1.bf16.msra.mxu1 %v3958_v61  ;;  %v4036_v61 = vld [vmem:[%s4971_s9 + $0x250] ss:$8 sps:$4 sm:$0xff]  }
 0x11f   : > { %3157 = vmatpush1.bf16.msra.mxu0 %v3961_v62  ;;  %2994 = vmatprep.subr.bf16.mxu1 %v3966_v63  ;;  %v4039_v62 = vld [vmem:[%s4971_s9 + $0x650] ss:$8 sps:$4 sm:$0xff]   ;;  %v4044_v63 = vld [vmem:[%s4971_s9 + $0x264] ss:$8 sps:$4 sm:$0xff]  }
 0x120   : > { %3158 = vmatprep.subr.bf16.mxu0 %v3969_v0  ;;  %v4047_v0 = vld [vmem:[%s4971_s9 + $0x664] ss:$8 sps:$4 sm:$0xff]  }
 0x122   : > { %2995 = vmatpush1.bf16.msra.mxu1 %v3964_v1  ;;  %v4042_v1 = vld [vmem:[%s4971_s9 + $0x260] ss:$8 sps:$4 sm:$0xff]  }
 0x123   : > { %3159 = vmatpush1.bf16.msra.mxu0 %v3967_v2  ;;  %2996 = vmatprep.subr.bf16.mxu1 %v3972_v3  ;;  %v4045_v2 = vld [vmem:[%s4971_s9 + $0x660] ss:$8 sps:$4 sm:$0xff]   ;;  %v4050_v3 = vld [vmem:[%s4971_s9 + $0x274] ss:$8 sps:$4 sm:$0xff]  }
 0x124   : > { %3160 = vmatprep.subr.bf16.mxu0 %v3975_v4  ;;  %v4053_v4 = vld [vmem:[%s4971_s9 + $0x674] ss:$8 sps:$4 sm:$0xff]  }
 0x126   : > { %2997 = vmatpush1.bf16.msra.mxu1 %v3970_v5  ;;  %v4048_v5 = vld [vmem:[%s4971_s9 + $0x270] ss:$8 sps:$4 sm:$0xff]  }
 0x127   : > { %3161 = vmatpush1.bf16.msra.mxu0 %v3973_v6  ;;  %2998 = vmatprep.subr.bf16.mxu1 %v3978_v7  ;;  %v4051_v6 = vld [vmem:[%s4971_s9 + $0x670] ss:$8 sps:$4 sm:$0xff]   ;;  %v4056_v7 = vld [vmem:[%s4971_s9 + $0x284] ss:$8 sps:$4 sm:$0xff]  }
 0x128   : > { %3162 = vmatprep.subr.bf16.mxu0 %v3981_v8  ;;  %v4059_v8 = vld [vmem:[%s4971_s9 + $0x684] ss:$8 sps:$4 sm:$0xff]  }
 0x12a   : > { %2999 = vmatpush1.bf16.msra.mxu1 %v3976_v9  ;;  %v4054_v9 = vld [vmem:[%s4971_s9 + $0x280] ss:$8 sps:$4 sm:$0xff]  }
 0x12b   : > { %3163 = vmatpush1.bf16.msra.mxu0 %v3979_v10  ;;  %3000 = vmatprep.subr.bf16.mxu1 %v3984_v11  ;;  %v4057_v10 = vld [vmem:[%s4971_s9 + $0x680] ss:$8 sps:$4 sm:$0xff]   ;;  %v4062_v11 = vld [vmem:[%s4971_s9 + $0x294] ss:$8 sps:$4 sm:$0xff]  }
 0x12c   : > { %3164 = vmatprep.subr.bf16.mxu0 %v3987_v12  ;;  %v4065_v12 = vld [vmem:[%s4971_s9 + $0x694] ss:$8 sps:$4 sm:$0xff]  }
 0x12e   : > { %3001 = vmatpush1.bf16.msra.mxu1 %v3982_v13  ;;  %v4060_v13 = vld [vmem:[%s4971_s9 + $0x290] ss:$8 sps:$4 sm:$0xff]  }
 0x12f   : > { %3165 = vmatpush1.bf16.msra.mxu0 %v3985_v14  ;;  %3002 = vmatprep.subr.bf16.mxu1 %v3990_v17  ;;  %v4063_v14 = vld [vmem:[%s4971_s9 + $0x690] ss:$8 sps:$4 sm:$0xff]   ;;  %v4068_v17 = vld [vmem:[%s4971_s9 + $0x2a4] ss:$8 sps:$4 sm:$0xff]  }
 0x130   : > { %3166 = vmatprep.subr.bf16.mxu0 %v3993_v18  ;;  %v4071_v18 = vld [vmem:[%s4971_s9 + $0x6a4] ss:$8 sps:$4 sm:$0xff]  }
 0x132   : > { %3003 = vmatpush1.bf16.msra.mxu1 %v3988_v19  ;;  %v4066_v19 = vld [vmem:[%s4971_s9 + $0x2a0] ss:$8 sps:$4 sm:$0xff]  }
 0x133   : > { %3167 = vmatpush1.bf16.msra.mxu0 %v3991_v20  ;;  %3004 = vmatprep.subr.bf16.mxu1 %v3996_v21  ;;  %v4069_v20 = vld [vmem:[%s4971_s9 + $0x6a0] ss:$8 sps:$4 sm:$0xff]   ;;  %v4074_v21 = vld [vmem:[%s4971_s9 + $0x2b4] ss:$8 sps:$4 sm:$0xff]  }
 0x134   : > { %3168 = vmatprep.subr.bf16.mxu0 %v3999_v22  ;;  %v4077_v22 = vld [vmem:[%s4971_s9 + $0x6b4] ss:$8 sps:$4 sm:$0xff]  }
 0x136   : > { %3005 = vmatpush1.bf16.msra.mxu1 %v3994_v23  ;;  %v4072_v23 = vld [vmem:[%s4971_s9 + $0x2b0] ss:$8 sps:$4 sm:$0xff]  }
 0x137   : > { %3169 = vmatpush1.bf16.msra.mxu0 %v3997_v24  ;;  %3006 = vmatprep.subr.bf16.mxu1 %v4002_v25  ;;  %v4075_v24 = vld [vmem:[%s4971_s9 + $0x6b0] ss:$8 sps:$4 sm:$0xff]   ;;  %v4080_v25 = vld [vmem:[%s4971_s9 + $0x2c4] ss:$8 sps:$4 sm:$0xff]  }
 0x138   : > { %3170 = vmatprep.subr.bf16.mxu0 %v4005_v26  ;;  %v4083_v26 = vld [vmem:[%s4971_s9 + $0x6c4] ss:$8 sps:$4 sm:$0xff]  }
 0x13a   : > { %3007 = vmatpush1.bf16.msra.mxu1 %v4000_v27  ;;  %v4078_v27 = vld [vmem:[%s4971_s9 + $0x2c0] ss:$8 sps:$4 sm:$0xff]  }
 0x13b   : > { %3171 = vmatpush1.bf16.msra.mxu0 %v4003_v28  ;;  %3017 = vmatprep.subr.bf16.mxu1 %v4008_v29  ;;  %v4081_v28 = vld [vmem:[%s4971_s9 + $0x6c0] ss:$8 sps:$4 sm:$0xff]   ;;  %v4086_v29 = vld [vmem:[%s4971_s9 + $0x2d4] ss:$8 sps:$4 sm:$0xff]  }
 0x13c   : > { %3181 = vmatprep.subr.bf16.mxu0 %v4011_v30  ;;  %v4089_v30 = vld [vmem:[%s4971_s9 + $0x6d4] ss:$8 sps:$4 sm:$0xff]  }
 0x13d   : > { %3009 = vmatmul.mubr.bf16.vlgmr.msra.gmra.mrb[0].mxu1 %v1385_v32  ;;  %v4087_v32 = vld [vmem:[%s4971_s9 + $0x6d0] ss:$8 sps:$4 sm:$0xff]  }
 0x13e   : > { %3173 = vmatmul.mubr.bf16.vlgmr.msra.gmra.mrb[0].mxu0 %v1393_v33  ;;  %3018 = vmatpush1.bf16.msra.mxu1 %v4006_v31  ;;  %v4084_v31 = vld [vmem:[%s4971_s9 + $0x2d0] ss:$8 sps:$4 sm:$0xff]   ;;  %v4092_v33 = vld [vmem:[%s4971_s9 + $0x2e4] ss:$8 sps:$4 sm:$0xff]  }
 0x13f   : > { %3182 = vmatpush1.bf16.msra.mxu0 %v4009_v34  ;;  %3019 = vmatprep.subr.bf16.mxu1 %v4014_v35  ;;  %v4095_v34 = vld [vmem:[%s4971_s9 + $0x6e4] ss:$8 sps:$4 sm:$0xff]   ;;  %v1316_v35 = vcombine.high %v5138_v36, %v5138_v36  ;;  %v4096_v36 = vld [vmem:[%s4971_s9 + $0x2f0] ss:$8 sps:$4 sm:$0xff]  }
 0x140   : > { %3183 = vmatprep.subr.bf16.mxu0 %v4017_v37  ;;  %3049 = vmatprep.mubr.bf16.mxu1 %v1388_v45  ;;  %v1350_v37 = vcombine.high %v5146_v15, %v5146_v15  ;;  %v4099_v15 = vld [vmem:[%s4971_s9 + $0x6f0] ss:$8 sps:$4 sm:$0xff]  }
 0x141   : > { %3213 = vmatprep.mubr.bf16.mxu0 %v1396_v49 }
 0x142   : > { %3020 = vmatpush1.bf16.msra.mxu1 %v4012_v16  ;;  %v4090_v16 = vld [vmem:[%s4971_s9 + $0x2e0] ss:$8 sps:$4 sm:$0xff]   ;;  %v5220_v45 = vrot.slane %v1350_v37, %v5022_v50  ;;  %v4171_v37 = vld [vmem:[%s4971_s9 + $0x7b0] ss:$8 sps:$4 sm:$0xff]  }
 0x143   : > { %3184 = vmatpush1.bf16.msra.mxu0 %v4015_v39  ;;  %3021 = vmatprep.subr.bf16.mxu1 %v4020_v42  ;;  %v4093_v39 = vld [vmem:[%s4971_s9 + $0x6e0] ss:$8 sps:$4 sm:$0xff]   ;;  %v4101_v42 = vld [vmem:[%s4971_s9 + $0x6f4] ss:$8 sps:$4 sm:$0xff]  }
 0x144   : > { %3185 = vmatprep.subr.bf16.mxu0 %v4023_v43  ;;  %v5217_v43 = vrot.slane %v1316_v35, %v5022_v50  ;;  %v1366_v49 = vcombine.high %v5220_v45, %v5220_v45  ;;  %v4168_v35 = vld [vmem:[%s4971_s9 + $0x3b0] ss:$8 sps:$4 sm:$0xff]  }
 0x146   : > { %3022 = vmatpush1.bf16.msra.mxu1 %v4018_v47  ;;  %v4107_v47 = vld [vmem:[%s4971_s9 + $0x704] ss:$8 sps:$4 sm:$0xff]  }
 0x147   : > { %3186 = vmatpush1.bf16.msra.mxu0 %v4021_v48  ;;  %3023 = vmatprep.subr.bf16.mxu1 %v4026_v51  ;;  %v1332_v48 = vcombine.high %v5217_v43, %v5217_v43  ;;  %v1387_v51 = vpack.c.bf16 %v5143_v38, %v5143_v38  ;;  %v4108_v38 = vld [vmem:[%s4971_s9 + $0x310] ss:$8 sps:$4 sm:$0xff]  }
 0x148   : > { %3187 = vmatprep.subr.bf16.mxu0 %v4029_v52  ;;  %v1395_v52 = vpack.c.bf16 %v5154_v41, %v5154_v41  ;;  %v4111_v41 = vld [vmem:[%s4971_s9 + $0x710] ss:$8 sps:$4 sm:$0xff]  }
 0x14a   : > { %3024 = vmatpush1.bf16.msra.mxu1 %v4024_v53  ;;  %v4102_v53 = vld [vmem:[%s4971_s9 + $0x300] ss:$8 sps:$4 sm:$0xff]  }
 0x14b   : > { %3188 = vmatpush1.bf16.msra.mxu0 %v4027_v54  ;;  %3025 = vmatprep.subr.bf16.mxu1 %v4032_v55  ;;  %v4105_v54 = vld [vmem:[%s4971_s9 + $0x700] ss:$8 sps:$4 sm:$0xff]   ;;  %v4110_v55 = vld [vmem:[%s4971_s9 + $0x314] ss:$8 sps:$4 sm:$0xff]  }
 0x14c   : > { %3189 = vmatprep.subr.bf16.mxu0 %v4035_v56  ;;  %v4113_v56 = vld [vmem:[%s4971_s9 + $0x714] ss:$8 sps:$4 sm:$0xff]  }
 0x14e   : > { %3026 = vmatpush1.bf16.msra.mxu1 %v4030_v57  ;;  %v1390_v57 = vpack.c.bf16 %v1332_v48, %v1332_v48  ;;  %v4188_v48 = vld [vmem:[%s4971_s9 + $0x3e4] ss:$8 sps:$4 sm:$0xff]  }
 0x14f   : > { %3190 = vmatpush1.bf16.msra.mxu0 %v4033_v58  ;;  %3027 = vmatprep.subr.bf16.mxu1 %v4038_v59  ;;  %v1398_v58 = vpack.c.bf16 %v1366_v49, %v1366_v49  ;;  %v4116_v59 = vld [vmem:[%s4971_s9 + $0x324] ss:$8 sps:$4 sm:$0xff]  }
 0x150   : > { %3191 = vmatprep.subr.bf16.mxu0 %v4041_v60  ;;  %v4119_v60 = vld [vmem:[%s4971_s9 + $0x724] ss:$8 sps:$4 sm:$0xff]  }
 0x151   : > { %v4191_v49 = vld [vmem:[%s4971_s9 + $0x7e4] ss:$8 sps:$4 sm:$0xff]  }
 0x152   : > { %3028 = vmatpush1.bf16.msra.mxu1 %v4036_v61  ;;  %v4114_v61 = vld [vmem:[%s4971_s9 + $0x320] ss:$8 sps:$4 sm:$0xff]  }
 0x153   : > { %3192 = vmatpush1.bf16.msra.mxu0 %v4039_v62  ;;  %3029 = vmatprep.subr.bf16.mxu1 %v4044_v63  ;;  %v4117_v62 = vld [vmem:[%s4971_s9 + $0x720] ss:$8 sps:$4 sm:$0xff]   ;;  %v4122_v63 = vld [vmem:[%s4971_s9 + $0x334] ss:$8 sps:$4 sm:$0xff]  }
 0x154   : > { %3193 = vmatprep.subr.bf16.mxu0 %v4047_v0  ;;  %v4125_v0 = vld [vmem:[%s4971_s9 + $0x734] ss:$8 sps:$4 sm:$0xff]  }
 0x156   : > { %3030 = vmatpush1.bf16.msra.mxu1 %v4042_v1  ;;  %v4120_v1 = vld [vmem:[%s4971_s9 + $0x330] ss:$8 sps:$4 sm:$0xff]  }
 0x157   : > { %3194 = vmatpush1.bf16.msra.mxu0 %v4045_v2  ;;  %3031 = vmatprep.subr.bf16.mxu1 %v4050_v3  ;;  %v4123_v2 = vld [vmem:[%s4971_s9 + $0x730] ss:$8 sps:$4 sm:$0xff]   ;;  %v4128_v3 = vld [vmem:[%s4971_s9 + $0x344] ss:$8 sps:$4 sm:$0xff]  }
 0x158   : > { %3195 = vmatprep.subr.bf16.mxu0 %v4053_v4  ;;  %v4131_v4 = vld [vmem:[%s4971_s9 + $0x744] ss:$8 sps:$4 sm:$0xff]  }
 0x15a   : > { %3032 = vmatpush1.bf16.msra.mxu1 %v4048_v5  ;;  %v4126_v5 = vld [vmem:[%s4971_s9 + $0x340] ss:$8 sps:$4 sm:$0xff]  }
 0x15b   : > { %3196 = vmatpush1.bf16.msra.mxu0 %v4051_v6  ;;  %3033 = vmatprep.subr.bf16.mxu1 %v4056_v7  ;;  %v4129_v6 = vld [vmem:[%s4971_s9 + $0x740] ss:$8 sps:$4 sm:$0xff]   ;;  %v4134_v7 = vld [vmem:[%s4971_s9 + $0x354] ss:$8 sps:$4 sm:$0xff]  }
 0x15c   : > { %3197 = vmatprep.subr.bf16.mxu0 %v4059_v8  ;;  %v4137_v8 = vld [vmem:[%s4971_s9 + $0x754] ss:$8 sps:$4 sm:$0xff]  }
 0x15e   : > { %3034 = vmatpush1.bf16.msra.mxu1 %v4054_v9  ;;  %v4132_v9 = vld [vmem:[%s4971_s9 + $0x350] ss:$8 sps:$4 sm:$0xff]  }
 0x15f   : > { %3198 = vmatpush1.bf16.msra.mxu0 %v4057_v10  ;;  %3035 = vmatprep.subr.bf16.mxu1 %v4062_v11  ;;  %v4135_v10 = vld [vmem:[%s4971_s9 + $0x750] ss:$8 sps:$4 sm:$0xff]   ;;  %v4140_v11 = vld [vmem:[%s4971_s9 + $0x364] ss:$8 sps:$4 sm:$0xff]  }
 0x160   : > { %3199 = vmatprep.subr.bf16.mxu0 %v4065_v12  ;;  %v4143_v12 = vld [vmem:[%s4971_s9 + $0x764] ss:$8 sps:$4 sm:$0xff]  }
 0x162   : > { %3036 = vmatpush1.bf16.msra.mxu1 %v4060_v13  ;;  %v4138_v13 = vld [vmem:[%s4971_s9 + $0x360] ss:$8 sps:$4 sm:$0xff]  }
 0x163   : > { %3200 = vmatpush1.bf16.msra.mxu0 %v4063_v14  ;;  %3037 = vmatprep.subr.bf16.mxu1 %v4068_v17  ;;  %v4141_v14 = vld [vmem:[%s4971_s9 + $0x760] ss:$8 sps:$4 sm:$0xff]   ;;  %v4146_v17 = vld [vmem:[%s4971_s9 + $0x374] ss:$8 sps:$4 sm:$0xff]  }
 0x164   : > { %3201 = vmatprep.subr.bf16.mxu0 %v4071_v18  ;;  %v4149_v18 = vld [vmem:[%s4971_s9 + $0x774] ss:$8 sps:$4 sm:$0xff]  }
 0x166   : > { %3038 = vmatpush1.bf16.msra.mxu1 %v4066_v19  ;;  %v4144_v19 = vld [vmem:[%s4971_s9 + $0x370] ss:$8 sps:$4 sm:$0xff]  }
 0x167   : > { %3202 = vmatpush1.bf16.msra.mxu0 %v4069_v20  ;;  %3039 = vmatprep.subr.bf16.mxu1 %v4074_v21  ;;  %v4147_v20 = vld [vmem:[%s4971_s9 + $0x770] ss:$8 sps:$4 sm:$0xff]   ;;  %v4152_v21 = vld [vmem:[%s4971_s9 + $0x384] ss:$8 sps:$4 sm:$0xff]  }
 0x168   : > { %3203 = vmatprep.subr.bf16.mxu0 %v4077_v22  ;;  %v4155_v22 = vld [vmem:[%s4971_s9 + $0x784] ss:$8 sps:$4 sm:$0xff]  }
 0x16a   : > { %3040 = vmatpush1.bf16.msra.mxu1 %v4072_v23  ;;  %v4150_v23 = vld [vmem:[%s4971_s9 + $0x380] ss:$8 sps:$4 sm:$0xff]  }
 0x16b   : > { %3204 = vmatpush1.bf16.msra.mxu0 %v4075_v24  ;;  %3041 = vmatprep.subr.bf16.mxu1 %v4080_v25  ;;  %v4153_v24 = vld [vmem:[%s4971_s9 + $0x780] ss:$8 sps:$4 sm:$0xff]   ;;  %v4158_v25 = vld [vmem:[%s4971_s9 + $0x394] ss:$8 sps:$4 sm:$0xff]  }
 0x16c   : > { %3205 = vmatprep.subr.bf16.mxu0 %v4083_v26  ;;  %v4161_v26 = vld [vmem:[%s4971_s9 + $0x794] ss:$8 sps:$4 sm:$0xff]  }
 0x16e   : > { %3042 = vmatpush1.bf16.msra.mxu1 %v4078_v27  ;;  %v4156_v27 = vld [vmem:[%s4971_s9 + $0x390] ss:$8 sps:$4 sm:$0xff]  }
 0x16f   : > { %3206 = vmatpush1.bf16.msra.mxu0 %v4081_v28  ;;  %3043 = vmatprep.subr.bf16.mxu1 %v4086_v29  ;;  %v4159_v28 = vld [vmem:[%s4971_s9 + $0x790] ss:$8 sps:$4 sm:$0xff]   ;;  %v4164_v29 = vld [vmem:[%s4971_s9 + $0x3a4] ss:$8 sps:$4 sm:$0xff]  }
 0x170   : > { %3207 = vmatprep.subr.bf16.mxu0 %v4089_v30  ;;  %v4167_v30 = vld [vmem:[%s4971_s9 + $0x7a4] ss:$8 sps:$4 sm:$0xff]  }
 0x172   : > { %3044 = vmatpush1.bf16.msra.mxu1 %v4084_v31  ;;  %v4162_v31 = vld [vmem:[%s4971_s9 + $0x3a0] ss:$8 sps:$4 sm:$0xff]  }
 0x173   : > { %3208 = vmatpush1.bf16.msra.mxu0 %v4087_v32  ;;  %3045 = vmatprep.subr.bf16.mxu1 %v4092_v33  ;;  %v4165_v32 = vld [vmem:[%s4971_s9 + $0x7a0] ss:$8 sps:$4 sm:$0xff]   ;;  %v4170_v33 = vld [vmem:[%s4971_s9 + $0x3b4] ss:$8 sps:$4 sm:$0xff]  }
 0x174   : > { %3209 = vmatprep.subr.bf16.mxu0 %v4095_v34  ;;  %v4173_v34 = vld [vmem:[%s4971_s9 + $0x7b4] ss:$8 sps:$4 sm:$0xff]  }
 0x176   : > { %3046 = vmatpush1.bf16.msra.mxu1 %v4090_v16  ;;  %v4176_v16 = vld [vmem:[%s4971_s9 + $0x3c4] ss:$8 sps:$4 sm:$0xff]  }
 0x177   : > { %3210 = vmatpush1.bf16.msra.mxu0 %v4093_v39  ;;  %3047 = vmatprep.subr.bf16.mxu1 %v4098_v40  ;;  %v4179_v39 = vld [vmem:[%s4971_s9 + $0x7c4] ss:$8 sps:$4 sm:$0xff]   ;;  %v4174_v40 = vld [vmem:[%s4971_s9 + $0x3c0] ss:$8 sps:$4 sm:$0xff]  }
 0x178   : > { %3211 = vmatprep.subr.bf16.mxu0 %v4101_v42  ;;  %v4177_v42 = vld [vmem:[%s4971_s9 + $0x7c0] ss:$8 sps:$4 sm:$0xff]  }
 0x17a   : > { %3048 = vmatpush1.bf16.msra.mxu1 %v4096_v36  ;;  %v4182_v36 = vld [vmem:[%s4971_s9 + $0x3d4] ss:$8 sps:$4 sm:$0xff]  }
 0x17b   : > { %3212 = vmatpush1.bf16.msra.mxu0 %v4099_v15  ;;  %3058 = vmatprep.subr.bf16.mxu1 %v4104_v46  ;;  %v4185_v15 = vld [vmem:[%s4971_s9 + $0x7d4] ss:$8 sps:$4 sm:$0xff]   ;;  %v4180_v46 = vld [vmem:[%s4971_s9 + $0x3d0] ss:$8 sps:$4 sm:$0xff]  }
 0x17c   : > { %3222 = vmatprep.subr.bf16.mxu0 %v4107_v47  ;;  %v4183_v47 = vld [vmem:[%s4971_s9 + $0x7d0] ss:$8 sps:$4 sm:$0xff]  }
 0x17d   : > { %3050 = vmatmul.mubr.bf16.vlgmr.msra.gmra.mrb[0].mxu1 %v1387_v51  ;;  %v4186_v51 = vld [vmem:[%s4971_s9 + $0x3e0] ss:$8 sps:$4 sm:$0xff]  }
 0x17e   : > { %3214 = vmatmul.mubr.bf16.vlgmr.msra.gmra.mrb[0].mxu0 %v1395_v52  ;;  %3059 = vmatpush1.bf16.msra.mxu1 %v4102_v53  ;;  %v4189_v52 = vld [vmem:[%s4971_s9 + $0x7e0] ss:$8 sps:$4 sm:$0xff]   ;;  %v4194_v53 = vld [vmem:[%s4971_s9 + $0x3f4] ss:$8 sps:$4 sm:$0xff]  }
 0x17f   : > { %3223 = vmatpush1.bf16.msra.mxu0 %v4105_v54  ;;  %3060 = vmatprep.subr.bf16.mxu1 %v4110_v55  ;;  %v4197_v54 = vld [vmem:[%s4971_s9 + $0x7f4] ss:$8 sps:$4 sm:$0xff]   ;;  %v4192_v55 = vld [vmem:[%s4971_s9 + $0x3f0] ss:$8 sps:$4 sm:$0xff]  }
 0x180   : > { %3224 = vmatprep.subr.bf16.mxu0 %v4113_v56  ;;  %3090 = vmatprep.mubr.bf16.mxu1 %v1390_v57  ;;  %v4195_v56 = vld [vmem:[%s4971_s9 + $0x7f0] ss:$8 sps:$4 sm:$0xff]   ;;  %v1389_v57 = vpack.c.bf16 %v5217_v43, %v5217_v43 }
 0x181   : > { %3254 = vmatprep.mubr.bf16.mxu0 %v1398_v58  ;;  %v1397_v58 = vpack.c.bf16 %v5220_v45, %v5220_v45  ;;  %v3281_v45 = vld [vmem:[%s1282_s5] sm:$0x3] (!%p3689_p6) }
 0x182   : > { %3061 = vmatpush1.bf16.msra.mxu1 %v4108_v38 }
 0x183   : > { %3225 = vmatpush1.bf16.msra.mxu0 %v4111_v41  ;;  %3062 = vmatprep.subr.bf16.mxu1 %v4116_v59 }
 0x184   : > { %3226 = vmatprep.subr.bf16.mxu0 %v4119_v60 }
 0x186   : > { %3063 = vmatpush1.bf16.msra.mxu1 %v4114_v61 }
 0x187   : > { %3227 = vmatpush1.bf16.msra.mxu0 %v4117_v62  ;;  %3064 = vmatprep.subr.bf16.mxu1 %v4122_v63 }
 0x188   : > { %3228 = vmatprep.subr.bf16.mxu0 %v4125_v0 }
 0x18a   : > { %3065 = vmatpush1.bf16.msra.mxu1 %v4120_v1 }
 0x18b   : > { %3229 = vmatpush1.bf16.msra.mxu0 %v4123_v2  ;;  %3066 = vmatprep.subr.bf16.mxu1 %v4128_v3 }
 0x18c   : > { %3230 = vmatprep.subr.bf16.mxu0 %v4131_v4  ;;  %v1290_v4 = vld [vmem:[#allocation2] sm:$0xf] }
 0x18e   : > { %3067 = vmatpush1.bf16.msra.mxu1 %v4126_v5 }
 0x18f   : > { %3231 = vmatpush1.bf16.msra.mxu0 %v4129_v6  ;;  %3068 = vmatprep.subr.bf16.mxu1 %v4134_v7  ;;  %v3285_v6 = vsub.s32 (!%p3689_p6), 0, %v5014_v44  ;;  %v3289_v7 = vsub.s32 (!%p3689_p6), 1, %v5014_v44 }
 0x190   : > { %3232 = vmatprep.subr.bf16.mxu0 %v4137_v8 }
 0x191   : > { %v3286_v8 = vrot.slane (!%p3689_p6), %v3281_v45, %v3285_v6 }
 0x192   : > { %3069 = vmatpush1.bf16.msra.mxu1 %v4132_v9  ;;  %v3290_v9 = vrot.slane (!%p3689_p6), %v3281_v45, %v3289_v7 }
 0x193   : > { %3233 = vmatpush1.bf16.msra.mxu0 %v4135_v10  ;;  %3070 = vmatprep.subr.bf16.mxu1 %v4140_v11 }
 0x194   : > { %3234 = vmatprep.subr.bf16.mxu0 %v4143_v12  ;;  %v3291_v10 = vcombine.low (!%p3689_p6), %v3286_v8, %v3290_v9 }
 0x196   : > { %3071 = vmatpush1.bf16.msra.mxu1 %v4138_v13  ;;  %v3298_v12 = vrot.slane (!%p3689_p6), %v3291_v10, %v5022_v50 }
 0x197   : > { %3235 = vmatpush1.bf16.msra.mxu0 %v4141_v14  ;;  %3072 = vmatprep.subr.bf16.mxu1 %v4146_v17 }
 0x198   : > { %3236 = vmatprep.subr.bf16.mxu0 %v4149_v18 }
 0x19a   : > { %3073 = vmatpush1.bf16.msra.mxu1 %v4144_v19 }
 0x19b   : > { %3237 = vmatpush1.bf16.msra.mxu0 %v4147_v20  ;;  %3074 = vmatprep.subr.bf16.mxu1 %v4152_v21 }
 0x19c   : > { %3238 = vmatprep.subr.bf16.mxu0 %v4155_v22 }
 0x19e   : > { %3075 = vmatpush1.bf16.msra.mxu1 %v4150_v23 }
 0x19f   : > { %3239 = vmatpush1.bf16.msra.mxu0 %v4153_v24  ;;  %3076 = vmatprep.subr.bf16.mxu1 %v4158_v25 }
 0x1a0   : > { %3240 = vmatprep.subr.bf16.mxu0 %v4161_v26 }
 0x1a2   : > { %3077 = vmatpush1.bf16.msra.mxu1 %v4156_v27 }
 0x1a3   : > { %3241 = vmatpush1.bf16.msra.mxu0 %v4159_v28  ;;  %3078 = vmatprep.subr.bf16.mxu1 %v4164_v29 }
 0x1a4   : > { %3242 = vmatprep.subr.bf16.mxu0 %v4167_v30 }
 0x1a6   : > { %3079 = vmatpush1.bf16.msra.mxu1 %v4162_v31 }
 0x1a7   : > { %3243 = vmatpush1.bf16.msra.mxu0 %v4165_v32  ;;  %3080 = vmatprep.subr.bf16.mxu1 %v4170_v33 }
 0x1a8   : > { %3244 = vmatprep.subr.bf16.mxu0 %v4173_v34 }
 0x1aa   : > { %3081 = vmatpush1.bf16.msra.mxu1 %v4168_v35 }
 0x1ab   : > { %3245 = vmatpush1.bf16.msra.mxu0 %v4171_v37  ;;  %3082 = vmatprep.subr.bf16.mxu1 %v4176_v16 }
 0x1ac   : > { %3246 = vmatprep.subr.bf16.mxu0 %v4179_v39 }
 0x1ae   : > { %3083 = vmatpush1.bf16.msra.mxu1 %v4174_v40 }
 0x1af   : > { %3247 = vmatpush1.bf16.msra.mxu0 %v4177_v42  ;;  %3084 = vmatprep.subr.bf16.mxu1 %v4182_v36 }
 0x1b0   : > { %3248 = vmatprep.subr.bf16.mxu0 %v4185_v15 }
 0x1b2   : > { %3085 = vmatpush1.bf16.msra.mxu1 %v4180_v46 }
 0x1b3   : > { %3249 = vmatpush1.bf16.msra.mxu0 %v4183_v47  ;;  %3086 = vmatprep.subr.bf16.mxu1 %v4188_v48 }
 0x1b4   : > { %3250 = vmatprep.subr.bf16.mxu0 %v4191_v49 }
 0x1b6   : > { %3087 = vmatpush1.bf16.msra.mxu1 %v4186_v51 }
 0x1b7   : > { %3251 = vmatpush1.bf16.msra.mxu0 %v4189_v52  ;;  %3088 = vmatprep.subr.bf16.mxu1 %v4194_v53 }
 0x1b8   : > { %3252 = vmatprep.subr.bf16.mxu0 %v4197_v54 }
 0x1ba   : > { %3089 = vmatpush1.bf16.msra.mxu1 %v4192_v55 }
 0x1bb   : > { %3253 = vmatpush1.bf16.msra.mxu0 %v4195_v56 }
 0x1bd   : > { %3091 = vmatmul.mubr.bf16.vlgmr.msra.gmra.mrb[0].mxu1 %v1389_v57 }
 0x1be   : > { %3255 = vmatmul.mubr.bf16.vlgmr.msra.gmra.mrb[0].mxu0 %v1397_v58 }
 0x290   : > { %v3092_v38 = vpop.f32.mrb[0].mxu1 }
 0x291   : > { %v3256_v41 = vpop.f32.mrb[0].mxu0  ;;  %v3094_v60 = vpop.f32.mrb[1].mxu1 }
 0x292   : > { %v3697_v59 = vadd.f32 %v3256_v41, %v3092_v38  ;;  %v3258_v61 = vpop.f32.mrb[1].mxu0  ;;  %v3096_v63 = vpop.f32.mrb[2].mxu1 }
 0x293   : > { %v3698_v62 = vadd.f32 %v3258_v61, %v3094_v60  ;;  %v3260_v0 = vpop.f32.mrb[2].mxu0  ;;  %v3097_v1 = vpop.f32.mrb[3].mxu1 }
 0x294   : > { %v3261_v2 = vpop.f32.mrb[3].mxu0 }
 0x295   : > { %v3265_v3 = vcombine.low %v3697_v59, %v3698_v62  ;;  %3279 = sbr.rel (%p3689_p6) target bundleno = 678 (0x2a6), region = 78 }
 0x297   : > { %v3272_v43 = vrot.slane %v3265_v3, %v5022_v50 }
 0x299   : > { %v3274_v5 = vadd.f32 %v3272_v43, %v1290_v4 }
 0x29b   : > { %3275 = vst [vmem:[#allocation2] sm:$0xf] %v3274_v5 }
 0x2a2   : > { %v3280_v11 = vld [vmem:[#allocation2] sm:$0xf] }
 0x2a3   : > { %v3300_v13 = vadd.f32 %v3298_v12, %v3280_v11 }
 0x2a5   : > { %3301 = vst [vmem:[%s1270_s1] sm:$0xf] %v3300_v13 }
 0x2a6 PF: > { %s3696_s17 = sshll.u32 %s4298_s18, 6  ;;  %s3317_s4 = sshll.u32 %s1270_s1, 4  ;;  %s3318_s4 = int_to_ptr.vmem [resolvable:$true] %s3317_s4 }
 0x2a7   : > { %s5316_s27 = scalar_lea.hbm %s5376_s3, %s3696_s17  ;;  %s5383_s29 = sand.u32 1, %s4278_s13  }
 0x2a8   : > { %s3303_s26 = scalar_lea.sflag [#allocation5], %s5383_s29  ;;  %s4200_s15 = scalar_lea.vmem %s3318_s4, 64 }
 0x2a9   : > { %p4201_p8 = scmp.ne.s32.totalorder %s3318_s4, %s4200_s15  ;;  %s4314_s28 = smov [#allocation4]  }
 0x2aa   : > { %s4204_s5 = sshll.u32 %s4314_s28, 4  ;;  %s4205_s5 = int_to_ptr.vmem [resolvable:$false] %s4204_s5 }
 0x2ab   : > { %p4202_p9 = pnand %p4201_p8, %p4407_p7  ;;  %s4206_s9 = scalar_lea.vmem %s4205_s5, 128 }
 0x2ac   : > { %p4207_p11 = scmp.lt.s32.totalorder %s3318_s4, %s4205_s5  ;;  %p4208_p13 = scmp.lt.s32.totalorder %s4206_s9, %s4200_s15 }
 0x2ad   : > { %p4203_p10 = pneg %p4202_p9 }
 0x2ae   : > { %p4209_p0 = por %p4208_p13, %p4207_p11 }
 0x2b0   : > { %p4210_p1 = pnand %p4209_p0, %p4203_p10 }
 0x2b2   : > { %4213 = shalt.err (!%p4210_p1)
}
 0x2b3   : > { %s4214_s1 = scalar_lea.hbm %s5316_s27, 64  ;;  %s4218_s10 = scalar_lea.hbm %s5376_s3, 128 }
 0x2b4   : > { %p4215_p2 = scmp.ne.s32.totalorder %s5316_s27, %s4214_s1  ;;  %p4219_p5 = scmp.lt.u32.totalorder %s5316_s27, %s5376_s3 }
 0x2b5   : > { %p4220_p6 = scmp.lt.u32.totalorder %s4218_s10, %s4214_s1  ;;  %p4222_p9 = scmp.lt.u32.totalorder %s4214_s1, %s5316_s27 }
 0x2b6   : > { %p4216_p3 = pnand %p4215_p2, %p4407_p7 }
 0x2b7   : > { %p4221_p8 = por %p4220_p6, %p4219_p5 }
 0x2b8   : > { %p4217_p4 = pneg %p4216_p3 }
 0x2b9   : > { %p4223_p10 = por %p4222_p9, %p4221_p8 }
 0x2bb   : > { %p4224_p11 = pnand %p4223_p10, %p4217_p4 }
 0x2bd   : > { %4227 = shalt.err (!%p4224_p11)
}
 0x2be   : > { %3723 = dma.vmem_to_hbm [thread:$0]  (%p4407_p7), %s3318_s4, 64, %s5316_s27, %s3303_s26  }
 0x2bf PF: > { %p3729_p13 = scmp.ge.s32.totalorder %s4310_s21, 2  ;;  %s3329_s23 = sand.u32 1, %s4274_s12  }
 0x2c0   : > { %s3330_s29 = scalar_lea.sflag [#allocation5], %s3329_s23 }
 0x2c1   : > { %p3726_p0 = pnand %p3729_p13, %p4415_p12 }
 0x2c3   : > { %4269 = dma.done.wait (!%p3726_p0), %s3330_s29, 64  }
 0x2c4   : > { %4271 = vsyncadd (!%p3726_p0), %s3330_s29, 4294967232  ;;  %s16_s21 = sadd.s32 1, %s4310_s21   ;;  %s5384_s12 = smov %s4278_s13 }
 0x2c5   : > { %p13_p1 = scmp.ge.s32.totalorder %s16_s21, 10   ;;  %s5385_s13 = smov %s4282_s14 }
 0x2c6   : > { %s5386_s14 = smov %s4420_s7  ;;  %s5387_s15 = smov %s4290_s16 }
 0x2c7   : > { %s5388_s16 = smov %s4423_s8  ;;  %s5389_s17 = smov %s4302_s19 }
 0x2c8   : > { %s5390_s18 = smov %s4306_s20  ;;  %s5391_s19 = smov %s5394_s24 }
 0x2c9   : > { %s5392_s20 = smov %s5398_s25  ;;  %15 = sbr.rel (!%p13_p1) target bundleno = 8 (0x8), region = 124 }
 0x2d0   :  { %3335 = vsyncpa [#allocation5], 1 }
 0x2d1   :  { %3337 = vsyncpa [#allocation5 + $0x1], 1 }

</bundles_post_ra>
